<compile_context>
chip_gen: v5e
topology: v5e:2x2
jax: 0.10.0
libtpu: 0.0.40
codegen_flags: <defaults>
</compile_context>

<pallas_src>
import numpy as np
import jax
import jax.numpy as jnp
from jax.experimental import pallas as pl
from jax.experimental.pallas import tpu as pltpu

# ----------------------------- model configuration -----------------------------
B = 2                        # batch
IN_CHANS = 1                 # args.in_chans
ROI = 16                     # args.roi_x = roi_y = roi_z
PATCH = 4                    # args.patch_size
GRID = ROI // PATCH          # 4 patches per axis
NP = GRID ** 3               # 64 patches
EMBED = 32                   # args.encoder_embed_dim
DEPTH = 2                    # args.encoder_depth
HEADS = 2                    # args.encoder_num_heads
HEAD_DIM = EMBED // HEADS    # 16
MLP_HIDDEN = 4 * EMBED       # 128
NUM_CLASSES = 3              # args.num_classes
PATCH_VOL = PATCH ** 3       # 64
CPV = IN_CHANS * PATCH_VOL   # 64
OUT_FEATS = NUM_CLASSES * PATCH_VOL   # 192
OUT_PAD = 256                # decoder output lanes padded to a 128 multiple
FEAT_DIM = 2 * EMBED + CPV   # 128: decoder K dim with the skip conv fused in
LN_EPS = 1e-6                # TODO(synk): timm convention; PyTorch nn.LayerNorm default is 1e-5

WCOLS = 128                  # bf16 matmul-weight slab lane width
VCOLS = 256                  # f32 pos/LN/bias slab lane width


# ------------------------------ parameter packing ------------------------------
def _pack_slab(entries, ncols, dtype, row_align):
    """Pack (name, array) entries row-wise into one [R, ncols] slab.

    Returns (slab, {name: (row_offset, nrows, ncols_used)}) with every row offset a
    multiple of `row_align` (16 for bf16 sublane packing, 1/8 for f32)."""
    offs, blocks, r = {}, [], 0
    for name, arr in entries:
        a = np.asarray(arr, dtype=np.float32)
        if a.ndim == 1:
            a = a[None, :]
        nr, nc = a.shape
        assert nc <= ncols, (name, a.shape)
        pad = (-nr) % row_align
        blk = np.zeros((nr + pad, ncols), dtype=np.float32)
        blk[:nr, :nc] = a
        offs[name] = (r, nr, nc)
        blocks.append(blk)
        r += nr + pad
    slab = np.concatenate(blocks, axis=0)
    tail = (-slab.shape[0]) % max(row_align, 8)
    if tail:
        slab = np.concatenate([slab, np.zeros((tail, ncols), np.float32)], axis=0)
    return jnp.asarray(slab, dtype=dtype), offs


def init_params(key):
    """Logical (PyTorch-like) parameters of the stand-in UNETR3D."""
    def nrm(k, shape, scale=0.02):
        return scale * jax.random.normal(k, shape, dtype=jnp.float32)

    ks = iter(jax.random.split(key, 64))
    p = {
        "proj_w": nrm(next(ks), (CPV, EMBED)),            # Conv3d(k=stride=patch) as matmul
        "proj_b": nrm(next(ks), (EMBED,)),
        "pos_emb": nrm(next(ks), (NP, EMBED)),
        "norm_g": 1.0 + nrm(next(ks), (EMBED,), 0.05),
        "norm_b": nrm(next(ks), (EMBED,)),
        "dec_w": nrm(next(ks), (2 * EMBED, OUT_FEATS)),
        "dec_b": nrm(next(ks), (OUT_FEATS,)),
        "skip_w": nrm(next(ks), (IN_CHANS, NUM_CLASSES)),  # 1x1x1 input-skip conv
        "skip_b": nrm(next(ks), (NUM_CLASSES,)),
    }

    def stack(shape, scale=0.02, base=0.0):
        return jnp.stack([base + nrm(next(ks), shape, scale) for _ in range(DEPTH)])

    p["ln1_g"] = stack((EMBED,), 0.05, 1.0)
    p["ln1_b"] = stack((EMBED,))
    p["ln2_g"] = stack((EMBED,), 0.05, 1.0)
    p["ln2_b"] = stack((EMBED,))
    p["qkv_w"] = stack((EMBED, 3 * EMBED), 0.2)            # larger scale -> peaked softmax
    p["qkv_b"] = stack((3 * EMBED,))
    p["attn_proj_w"] = stack((EMBED, EMBED))
    p["attn_proj_b"] = stack((EMBED,))
    p["fc1_w"] = stack((EMBED, MLP_HIDDEN))
    p["fc1_b"] = stack((MLP_HIDDEN,))
    p["fc2_w"] = stack((MLP_HIDDEN, EMBED))
    p["fc2_b"] = stack((EMBED,))
    return p


def pack_params(p):
    """Fold biases, fuse the skip conv into the decoder weight, and build the two slabs."""
    w_entries, v_entries = [], []

    w_entries.append(("proj_w", np.asarray(p["proj_w"])))
    # proj_b folded into the positional embedding (one broadcast add saved).
    v_entries.append(("pos", np.asarray(p["pos_emb"]) + np.asarray(p["proj_b"])[None, :]))

    for d in range(DEPTH):
        qkv_w = np.asarray(p["qkv_w"][d])                  # [E, 3E], cols = [q | k | v]
        qkv_b = np.asarray(p["qkv_b"][d])
        # head-major repack: cols -> [q_h0 | q_h1 | k_h0 | k_h1 | v_h0 | v_h1]
        cols = []
        for t in range(3):
            for h in range(HEADS):
                lo = t * EMBED + h * HEAD_DIM
                cols.append(qkv_w[:, lo:lo + HEAD_DIM])
        w_entries.append((f"qkv_{d}", np.concatenate(cols, axis=1)))
        for t, tname in enumerate("qkv"):
            for h in range(HEADS):
                lo = t * EMBED + h * HEAD_DIM
                v_entries.append((f"{tname}b_{d}_{h}", qkv_b[lo:lo + HEAD_DIM]))
        wo = np.asarray(p["attn_proj_w"][d])               # [E, E]; rows are head-major
        for h in range(HEADS):
            w_entries.append((f"wo_{d}_{h}", wo[h * HEAD_DIM:(h + 1) * HEAD_DIM, :]))
        w_entries.append((f"fc1_{d}", np.asarray(p["fc1_w"][d])))
        w_entries.append((f"fc2t_{d}", np.asarray(p["fc2_w"][d]).T))   # stored transposed
        v_entries += [
            (f"ln1_g_{d}", np.asarray(p["ln1_g"][d])),
            (f"ln1_b_{d}", np.asarray(p["ln1_b"][d])),
            (f"attnb_{d}", np.asarray(p["attn_proj_b"][d])),
            (f"ln2_g_{d}", np.asarray(p["ln2_g"][d])),
            (f"ln2_b_{d}", np.asarray(p["ln2_b"][d])),
            (f"fc1b_{d}", np.asarray(p["fc1_b"][d])),
            (f"fc2b_{d}", np.asarray(p["fc2_b"][d])),
        ]

    # Decoder head over feat = [final | hidden0 | patches]; bottom CPV rows implement the
    # 1x1x1 input-skip conv.  Columns padded to OUT_PAD (unmasked stores); stored
    # transposed so the kernel contracts lane-vs-lane.
    dec_aug = np.zeros((FEAT_DIM, OUT_PAD), np.float32)
    dec_aug[:2 * EMBED, :OUT_FEATS] = np.asarray(p["dec_w"])
    skip_w = np.asarray(p["skip_w"])
    for ic in range(IN_CHANS):
        for c in range(NUM_CLASSES):
            for vx in range(PATCH_VOL):
                dec_aug[2 * EMBED + ic * PATCH_VOL + vx, c * PATCH_VOL + vx] = skip_w[ic, c]
    w_entries.append(("dec_wt", dec_aug.T))                # [OUT_PAD, FEAT_DIM]

    dec_b = np.zeros((OUT_PAD,), np.float32)
    dec_b[:OUT_FEATS] = np.asarray(p["dec_b"]) + np.repeat(np.asarray(p["skip_b"]), PATCH_VOL)
    v_entries += [
        ("norm_g", np.asarray(p["norm_g"])),
        ("norm_b", np.asarray(p["norm_b"])),
        ("dec_b", dec_b),
    ]

    wslab, woffs = _pack_slab(w_entries, WCOLS, jnp.bfloat16, 16)
    vslab, voffs = _pack_slab(v_entries, VCOLS, jnp.float32, 1)
    return wslab, woffs, vslab, voffs


# ------------------------------ fused Pallas kernel ------------------------------
def _make_kernel(woffs, voffs, bstep):
    scale = 1.0 / float(HEAD_DIM) ** 0.5
    f32, bf16 = jnp.float32, jnp.bfloat16

    def kernel(patches_ref, w_ref, v_ref, out_ref):
        def W(name):                                   # bf16 matmul weight (pre-cast)
            r, nr, nc = woffs[name]
            return w_ref[r:r + nr, 0:nc]

        def V(name):                                   # f32 vector / pos-emb
            r, nr, nc = voffs[name]
            return v_ref[r:r + nr, 0:nc]

        def mm(a, w):                                  # A @ W, bf16 MXU, f32 accum
            return jnp.dot(a.astype(bf16), w.astype(bf16), preferred_element_type=f32)

        def mm_t(a, wt):                               # A @ W^T (W stored transposed)
            return jax.lax.dot_general(a.astype(bf16), wt.astype(bf16),
                                       (((1,), (1,)), ((), ())),
                                       preferred_element_type=f32)

        def layernorm(x, g, b):                        # single pass + one FMA epilogue
            m = jnp.mean(x, axis=-1, keepdims=True)
            m2 = jnp.mean(x * x, axis=-1, keepdims=True)
            s = jax.lax.rsqrt(m2 - m * m + LN_EPS) * g
            return x * s + (b - m * s)

        patches = patches_ref[...].astype(f32)                       # [M, CPV]

        # -------- encoder: patch embed (Conv3d k=stride=patch) + pos emb --------
        pos = V("pos")                                               # [NP, E] (+proj_b)
        if bstep > 1:
            pos = jnp.concatenate([pos] * bstep, axis=0)             # sublane tile, cheap
        x = mm(patches, W("proj_w")) + pos                           # [M, E]

        hidden0 = x
        for d in range(DEPTH):                    # static unroll over transformer blocks
            # ---- pre-LN multi-head self-attention + residual (head-major, no lane
            # slices on activations; per-head context folded into the out-projection) ----
            y = layernorm(x, V(f"ln1_g_{d}"), V(f"ln1_b_{d}"))
            yb = y.astype(bf16)
            qkvw = W(f"qkv_{d}")                                     # [E, 3E] head-major cols
            attn = None
            for h in range(HEADS):
                def head_w(t, _h=h):
                    c = (t * HEADS + _h) * HEAD_DIM
                    return qkvw[:, c:c + HEAD_DIM]                   # tiny weight slice
                q = jnp.dot(yb, head_w(0), preferred_element_type=f32) + V(f"qb_{d}_{h}")
                k = jnp.dot(yb, head_w(1), preferred_element_type=f32) + V(f"kb_{d}_{h}")
                v = jnp.dot(yb, head_w(2), preferred_element_type=f32) + V(f"vb_{d}_{h}")
                ctx_parts = []
                for b in range(bstep):            # per-batch attention (sublane slices)
                    sl = slice(b * NP, (b + 1) * NP)
                    s = mm_t(q[sl], k[sl]) * scale                   # [NP, NP]
                    s = s - jnp.max(s, axis=-1, keepdims=True)
                    pr = jnp.exp(s)
                    pr = pr * pl.reciprocal(jnp.sum(pr, axis=-1, keepdims=True), approx=True)
                    ctx_parts.append(mm(pr, v[sl]))                  # [NP, HD]
                ctx = ctx_parts[0] if bstep == 1 else jnp.concatenate(ctx_parts, axis=0)
                delta = mm(ctx, W(f"wo_{d}_{h}"))                    # [M, E]
                attn = delta if attn is None else attn + delta
            x = x + attn + V(f"attnb_{d}")

            # ---- pre-LN MLP + residual ----
            y = layernorm(x, V(f"ln2_g_{d}"), V(f"ln2_b_{d}"))
            h1 = mm(y, W(f"fc1_{d}")) + V(f"fc1b_{d}")
            # TODO(synk): PyTorch nn.GELU defaults to exact erf; tanh approximation used.
            h1 = jax.nn.gelu(h1, approximate=True)
            x = x + mm_t(h1, W(f"fc2t_{d}")) + V(f"fc2b_{d}")

            if d == 0:
                hidden0 = x                        # hidden_states[0] for the decoder

        xf = layernorm(x, V("norm_g"), V("norm_b"))                  # final encoder norm

        # -------- decoder: patch-expanding head with the 1x1x1 input-skip conv fused
        # into the same K=128 matmul; output padded to 256 lanes (unmasked stores). ----
        feat = jnp.concatenate([xf, hidden0, patches], axis=-1)      # [M, FEAT_DIM]
        logits = mm_t(feat, W("dec_wt")) + V("dec_b")                # [M, OUT_PAD]
        out_ref[...] = logits.astype(out_ref.dtype)

    return kernel


# ------------------------------ wrappers ------------------------------
def extract_patches(x_in):
    """[B, C, H, W, D] -> [B, NP, C*p^3], Conv3d(k=stride=patch)-compatible ordering."""
    Bc, C, H, W, D = x_in.shape
    x = x_in.reshape(Bc, C, GRID, PATCH, GRID, PATCH, GRID, PATCH)
    x = x.transpose(0, 2, 4, 6, 1, 3, 5, 7)            # B, gh, gw, gd, C, ph, pw, pd
    return x.reshape(Bc, NP, C * PATCH_VOL)


def unpatchify(logits_p):
    """[B, NP, NC*p^3] -> [B, NC, ROI, ROI, ROI]."""
    Bc = logits_p.shape[0]
    x = logits_p.reshape(Bc, GRID, GRID, GRID, NUM_CLASSES, PATCH, PATCH, PATCH)
    x = x.transpose(0, 4, 1, 5, 2, 6, 3, 7)
    return x.reshape(Bc, NUM_CLASSES, ROI, ROI, ROI)


def make_forward(woffs, voffs, bstep):
    kernel = _make_kernel(woffs, voffs, bstep)

    def forward(wslab, vslab, x_in):
        Bc = x_in.shape[0]
        assert Bc % bstep == 0
        mblk = bstep * NP
        patches = extract_patches(x_in).reshape(Bc * NP, CPV)        # batch folded in rows
        out = pl.pallas_call(
            kernel,
            out_shape=jax.ShapeDtypeStruct((Bc * NP, OUT_PAD), jnp.float32),
            grid=(Bc // bstep,),
            in_specs=[
                pl.BlockSpec((mblk, CPV), lambda g: (g, 0)),
                pl.BlockSpec(wslab.shape, lambda g: (0, 0)),         # resident weight slab
                pl.BlockSpec(vslab.shape, lambda g: (0, 0)),         # resident vector slab
            ],
            out_specs=pl.BlockSpec((mblk, OUT_PAD), lambda g: (g, 0)),
            compiler_params=pltpu.CompilerParams(dimension_semantics=("parallel",)),
        )(patches, wslab, vslab)
        logits_p = out.reshape(Bc, NP, OUT_PAD)[:, :, :OUT_FEATS]    # strip lane padding
        # TODO(synk): the concrete UNETR decoder (MONAI-style transposed-conv pyramid) is
        # an injected dependency not defined in the reference; a linear patch-expanding
        # head plus a 1x1x1 input-skip conv stands in.
        # TODO(synk): time_meters / torch.cuda.synchronize are host-side timing; skipped.
        return unpatchify(logits_p)

    return forward


def reference_forward(p, x_in):
    """Pure-JAX f32 reference of the same stand-in forward (correctness check only)."""
    Bc = x_in.shape[0]
    patches = extract_patches(x_in)

    def ln(x, g, b):
        m = jnp.mean(x, -1, keepdims=True)
        v = jnp.mean(jnp.square(x - m), -1, keepdims=True)
        return (x - m) * jax.lax.rsqrt(v + LN_EPS) * g + b

    x = jnp.einsum("bnc,ce->bne", patches, p["proj_w"]) + p["proj_b"] + p["pos_emb"]
    hidden0 = x
    scale = 1.0 / float(HEAD_DIM) ** 0.5
    for d in range(DEPTH):
        y = ln(x, p["ln1_g"][d], p["ln1_b"][d])
        qkv = jnp.einsum("bne,ef->bnf", y, p["qkv_w"][d]) + p["qkv_b"][d]
        q, k, v = jnp.split(qkv, 3, axis=-1)
        q = q.reshape(Bc, NP, HEADS, HEAD_DIM)
        k = k.reshape(Bc, NP, HEADS, HEAD_DIM)
        v = v.reshape(Bc, NP, HEADS, HEAD_DIM)
        s = jnp.einsum("bnhd,bmhd->bhnm", q, k) * scale
        a = jax.nn.softmax(s, axis=-1)
        ctx = jnp.einsum("bhnm,bmhd->bnhd", a, v).reshape(Bc, NP, EMBED)
        x = x + jnp.einsum("bne,ef->bnf", ctx, p["attn_proj_w"][d]) + p["attn_proj_b"][d]
        y = ln(x, p["ln2_g"][d], p["ln2_b"][d])
        h1 = jax.nn.gelu(jnp.einsum("bne,ef->bnf", y, p["fc1_w"][d]) + p["fc1_b"][d],
                         approximate=True)
        x = x + jnp.einsum("bnf,fe->bne", h1, p["fc2_w"][d]) + p["fc2_b"][d]
        if d == 0:
            hidden0 = x
    xf = ln(x, p["norm_g"], p["norm_b"])
    feat = jnp.concatenate([xf, hidden0], axis=-1)
    logits_p = jnp.einsum("bnf,fo->bno", feat, p["dec_w"]) + p["dec_b"]
    vol = unpatchify(logits_p)
    skip = jnp.einsum("bixyz,ic->bcxyz", x_in, p["skip_w"]) \
        + p["skip_b"][None, :, None, None, None]
    return vol + skip


def _tensorcores_per_chip():
    """Crude probe: v7x has 2 TensorCores per chip, v5e/v6e have 1."""
    try:
        kind = jax.devices()[0].device_kind.lower()
    except Exception:
        return 1
    return 2 if "v7" in kind else 1


if __name__ == "__main__":
    key = jax.random.PRNGKey(0)
    pkey, xkey = jax.random.split(key)
    params = init_params(pkey)
    wslab, woffs, vslab, voffs = pack_params(params)
    x_in = jax.random.normal(xkey, (B, IN_CHANS, ROI, ROI, ROI), dtype=jnp.float32)

    # v5e/v6e (single TensorCore): fold batch into the token axis, one grid step.
    # v7x (two TensorCores): one batch element per grid step, sharded across cores.
    bstep = B if _tensorcores_per_chip() == 1 else 1

    fwd = jax.jit(make_forward(woffs, voffs, bstep))
    out = jax.block_until_ready(fwd(wslab, vslab, x_in))
    assert out.shape == (B, NUM_CLASSES, ROI, ROI, ROI), out.shape
    assert bool(jnp.all(jnp.isfinite(out)))

    # Tolerance-checked pure-JAX reference (bf16 MXU + approx softmax reciprocal in the
    # kernel => loose absolute tolerance; catches structural/packing bugs).
    ref = jax.block_until_ready(jax.jit(reference_forward)(params, x_in))
    err = float(jnp.max(jnp.abs(out - ref)))
    assert err < 0.08, f"kernel mismatch vs JAX reference: max|diff|={err}"

    print("KERNEL_OK")
</pallas_src>

<mosaic_0001>
module attributes {stable_mosaic.version = 11 : i64} {
  func.func @kernel(%arg0: i32, %arg1: memref<128x64xf32, #tpu.memory_space<vmem>>, %arg2: memref<576x128xbf16, #tpu.memory_space<vmem>>, %arg3: memref<96x256xf32, #tpu.memory_space<vmem>>, %arg4: memref<128x256xf32, #tpu.memory_space<vmem>>) attributes {dimension_semantics = [#tpu.dimension_semantics<parallel>], iteration_bounds = array<i64: 1>, scalar_prefetch = 0 : i64, scratch_operands = 0 : i64, tpu.core_type = #tpu.core_type<tc>, window_params = [{transform_indices = @transform_0, window_bounds = array<i64: 128, 64>}, {pipeline_mode = #tpu.pipeline_mode<synchronous>, transform_indices = @transform_1, window_bounds = array<i64: 576, 128>}, {pipeline_mode = #tpu.pipeline_mode<synchronous>, transform_indices = @transform_2, window_bounds = array<i64: 96, 256>}, {transform_indices = @transform_3, window_bounds = array<i64: 128, 256>}]} {
    %c0 = arith.constant 0 : index
    %c0_0 = arith.constant 0 : index
    %0 = vector.load %arg1[%c0, %c0_0] : memref<128x64xf32, #tpu.memory_space<vmem>>, vector<128x64xf32>
    %c0_1 = arith.constant 0 : index
    %c0_2 = arith.constant 0 : index
    %1 = vector.load %arg3[%c0_1, %c0_2] : memref<96x256xf32, #tpu.memory_space<vmem>>, vector<64x32xf32>
    %2 = tpu.concatenate %1, %1 in 0 : vector<64x32xf32>, vector<64x32xf32> -> vector<128x32xf32>
    %c0_3 = arith.constant 0 : index
    %c0_4 = arith.constant 0 : index
    %3 = vector.load %arg2[%c0_3, %c0_4] : memref<576x128xbf16, #tpu.memory_space<vmem>>, vector<64x32xbf16>
    %4 = arith.truncf %0 : vector<128x64xf32> to vector<128x64xbf16>
    %cst = arith.constant dense<0.000000e+00> : vector<128x32xf32>
    %5 = tpu.matmul %4, %3, %cst {dimension_numbers = #tpu.dot_dimension_numbers<[1], [0], [0], [1], [0, 0, 1, 1], [], []>} : vector<128x64xbf16>, vector<64x32xbf16>, vector<128x32xf32> -> vector<128x32xf32>
    %6 = arith.addf %5, %2 : vector<128x32xf32>
    %c70 = arith.constant 70 : index
    %c0_5 = arith.constant 0 : index
    %7 = vector.load %arg3[%c70, %c0_5] : memref<96x256xf32, #tpu.memory_space<vmem>>, vector<1x32xf32>
    %c71 = arith.constant 71 : index
    %c0_6 = arith.constant 0 : index
    %8 = vector.load %arg3[%c71, %c0_6] : memref<96x256xf32, #tpu.memory_space<vmem>>, vector<1x32xf32>
    %cst_7 = arith.constant dense<0.000000e+00> : vector<128xf32>
    %9 = vector.multi_reduction <add>, %6, %cst_7 [1] : vector<128x32xf32> to vector<128xf32>
    %10 = vector.shape_cast %9 : vector<128xf32> to vector<128x1xf32>
    %cst_8 = arith.constant 3.200000e+01 : f32
    %11 = vector.broadcast %cst_8 : f32 to vector<128x1xf32>
    %12 = arith.divf %10, %11 : vector<128x1xf32>
    %13 = arith.mulf %6, %6 : vector<128x32xf32>
    %cst_9 = arith.constant dense<0.000000e+00> : vector<128xf32>
    %14 = vector.multi_reduction <add>, %13, %cst_9 [1] : vector<128x32xf32> to vector<128xf32>
    %15 = vector.shape_cast %14 : vector<128xf32> to vector<128x1xf32>
    %cst_10 = arith.constant 3.200000e+01 : f32
    %16 = vector.broadcast %cst_10 : f32 to vector<128x1xf32>
    %17 = arith.divf %15, %16 : vector<128x1xf32>
    %18 = arith.mulf %12, %12 : vector<128x1xf32>
    %19 = arith.subf %17, %18 : vector<128x1xf32>
    %cst_11 = arith.constant 9.99999997E-7 : f32
    %20 = vector.broadcast %cst_11 : f32 to vector<128x1xf32>
    %21 = arith.addf %19, %20 : vector<128x1xf32>
    %22 = math.rsqrt %21 : vector<128x1xf32>
    %23 = vector.broadcast %22 : vector<128x1xf32> to vector<128x32xf32>
    %24 = vector.broadcast %7 : vector<1x32xf32> to vector<128x32xf32>
    %25 = arith.mulf %23, %24 : vector<128x32xf32>
    %26 = arith.mulf %6, %25 : vector<128x32xf32>
    %27 = vector.broadcast %12 : vector<128x1xf32> to vector<128x32xf32>
    %28 = arith.mulf %27, %25 : vector<128x32xf32>
    %29 = vector.broadcast %8 : vector<1x32xf32> to vector<128x32xf32>
    %30 = arith.subf %29, %28 : vector<128x32xf32>
    %31 = arith.addf %26, %30 : vector<128x32xf32>
    %32 = arith.truncf %31 : vector<128x32xf32> to vector<128x32xbf16>
    %c64 = arith.constant 64 : index
    %c0_12 = arith.constant 0 : index
    %33 = vector.load %arg2[%c64, %c0_12] : memref<576x128xbf16, #tpu.memory_space<vmem>>, vector<32x96xbf16>
    %34 = vector.extract_strided_slice %33 {offsets = [0, 0], sizes = [32, 16], strides = [1, 1]} : vector<32x96xbf16> to vector<32x16xbf16>
    %cst_13 = arith.constant dense<0.000000e+00> : vector<128x16xf32>
    %35 = tpu.matmul %32, %34, %cst_13 {dimension_numbers = #tpu.dot_dimension_numbers<[1], [0], [0], [1], [0, 0, 1, 1], [], []>} : vector<128x32xbf16>, vector<32x16xbf16>, vector<128x16xf32> -> vector<128x16xf32>
    %c64_14 = arith.constant 64 : index
    %c0_15 = arith.constant 0 : index
    %36 = vector.load %arg3[%c64_14, %c0_15] : memref<96x256xf32, #tpu.memory_space<vmem>>, vector<1x16xf32>
    %37 = vector.broadcast %36 : vector<1x16xf32> to vector<128x16xf32>
    %38 = arith.addf %35, %37 : vector<128x16xf32>
    %39 = vector.extract_strided_slice %33 {offsets = [0, 32], sizes = [32, 16], strides = [1, 1]} : vector<32x96xbf16> to vector<32x16xbf16>
    %cst_16 = arith.constant dense<0.000000e+00> : vector<128x16xf32>
    %40 = tpu.matmul %32, %39, %cst_16 {dimension_numbers = #tpu.dot_dimension_numbers<[1], [0], [0], [1], [0, 0, 1, 1], [], []>} : vector<128x32xbf16>, vector<32x16xbf16>, vector<128x16xf32> -> vector<128x16xf32>
    %c66 = arith.constant 66 : index
    %c0_17 = arith.constant 0 : index
    %41 = vector.load %arg3[%c66, %c0_17] : memref<96x256xf32, #tpu.memory_space<vmem>>, vector<1x16xf32>
    %42 = vector.broadcast %41 : vector<1x16xf32> to vector<128x16xf32>
    %43 = arith.addf %40, %42 : vector<128x16xf32>
    %44 = vector.extract_strided_slice %33 {offsets = [0, 64], sizes = [32, 16], strides = [1, 1]} : vector<32x96xbf16> to vector<32x16xbf16>
    %cst_18 = arith.constant dense<0.000000e+00> : vector<128x16xf32>
    %45 = tpu.matmul %32, %44, %cst_18 {dimension_numbers = #tpu.dot_dimension_numbers<[1], [0], [0], [1], [0, 0, 1, 1], [], []>} : vector<128x32xbf16>, vector<32x16xbf16>, vector<128x16xf32> -> vector<128x16xf32>
    %c68 = arith.constant 68 : index
    %c0_19 = arith.constant 0 : index
    %46 = vector.load %arg3[%c68, %c0_19] : memref<96x256xf32, #tpu.memory_space<vmem>>, vector<1x16xf32>
    %47 = vector.broadcast %46 : vector<1x16xf32> to vector<128x16xf32>
    %48 = arith.addf %45, %47 : vector<128x16xf32>
    %49 = vector.extract_strided_slice %38 {offsets = [0, 0], sizes = [64, 16], strides = [1, 1]} : vector<128x16xf32> to vector<64x16xf32>
    %50 = vector.extract_strided_slice %43 {offsets = [0, 0], sizes = [64, 16], strides = [1, 1]} : vector<128x16xf32> to vector<64x16xf32>
    %51 = arith.truncf %49 : vector<64x16xf32> to vector<64x16xbf16>
    %52 = arith.truncf %50 : vector<64x16xf32> to vector<64x16xbf16>
    %cst_20 = arith.constant dense<0.000000e+00> : vector<64x64xf32>
    %53 = tpu.matmul %51, %52, %cst_20 {dimension_numbers = #tpu.dot_dimension_numbers<[1], [1], [0], [0], [0, 0, 1, 0], [], []>} : vector<64x16xbf16>, vector<64x16xbf16>, vector<64x64xf32> -> vector<64x64xf32>
    %cst_21 = arith.constant 2.500000e-01 : f32
    %54 = vector.broadcast %cst_21 : f32 to vector<64x64xf32>
    %55 = arith.mulf %53, %54 : vector<64x64xf32>
    %cst_22 = arith.constant dense<0xFF800000> : vector<64xf32>
    %56 = vector.multi_reduction <maximumf>, %55, %cst_22 [1] : vector<64x64xf32> to vector<64xf32>
    %57 = vector.shape_cast %56 : vector<64xf32> to vector<64x1xf32>
    %58 = vector.broadcast %57 : vector<64x1xf32> to vector<64x64xf32>
    %59 = arith.subf %55, %58 : vector<64x64xf32>
    %60 = math.exp %59 : vector<64x64xf32>
    %cst_23 = arith.constant dense<0.000000e+00> : vector<64xf32>
    %61 = vector.multi_reduction <add>, %60, %cst_23 [1] : vector<64x64xf32> to vector<64xf32>
    %62 = vector.shape_cast %61 : vector<64xf32> to vector<64x1xf32>
    %63 = tpu.reciprocal %62 {approx = true} : vector<64x1xf32> -> vector<64x1xf32>
    %64 = vector.broadcast %63 : vector<64x1xf32> to vector<64x64xf32>
    %65 = arith.mulf %60, %64 : vector<64x64xf32>
    %66 = vector.extract_strided_slice %48 {offsets = [0, 0], sizes = [64, 16], strides = [1, 1]} : vector<128x16xf32> to vector<64x16xf32>
    %67 = arith.truncf %65 : vector<64x64xf32> to vector<64x64xbf16>
    %68 = arith.truncf %66 : vector<64x16xf32> to vector<64x16xbf16>
    %cst_24 = arith.constant dense<0.000000e+00> : vector<64x16xf32>
    %69 = tpu.matmul %67, %68, %cst_24 {dimension_numbers = #tpu.dot_dimension_numbers<[1], [0], [0], [1], [0, 0, 1, 1], [], []>} : vector<64x64xbf16>, vector<64x16xbf16>, vector<64x16xf32> -> vector<64x16xf32>
    %70 = vector.extract_strided_slice %38 {offsets = [64, 0], sizes = [64, 16], strides = [1, 1]} : vector<128x16xf32> to vector<64x16xf32>
    %71 = vector.extract_strided_slice %43 {offsets = [64, 0], sizes = [64, 16], strides = [1, 1]} : vector<128x16xf32> to vector<64x16xf32>
    %72 = arith.truncf %70 : vector<64x16xf32> to vector<64x16xbf16>
    %73 = arith.truncf %71 : vector<64x16xf32> to vector<64x16xbf16>
    %cst_25 = arith.constant dense<0.000000e+00> : vector<64x64xf32>
    %74 = tpu.matmul %72, %73, %cst_25 {dimension_numbers = #tpu.dot_dimension_numbers<[1], [1], [0], [0], [0, 0, 1, 0], [], []>} : vector<64x16xbf16>, vector<64x16xbf16>, vector<64x64xf32> -> vector<64x64xf32>
    %cst_26 = arith.constant 2.500000e-01 : f32
    %75 = vector.broadcast %cst_26 : f32 to vector<64x64xf32>
    %76 = arith.mulf %74, %75 : vector<64x64xf32>
    %cst_27 = arith.constant dense<0xFF800000> : vector<64xf32>
    %77 = vector.multi_reduction <maximumf>, %76, %cst_27 [1] : vector<64x64xf32> to vector<64xf32>
    %78 = vector.shape_cast %77 : vector<64xf32> to vector<64x1xf32>
    %79 = vector.broadcast %78 : vector<64x1xf32> to vector<64x64xf32>
    %80 = arith.subf %76, %79 : vector<64x64xf32>
    %81 = math.exp %80 : vector<64x64xf32>
    %cst_28 = arith.constant dense<0.000000e+00> : vector<64xf32>
    %82 = vector.multi_reduction <add>, %81, %cst_28 [1] : vector<64x64xf32> to vector<64xf32>
    %83 = vector.shape_cast %82 : vector<64xf32> to vector<64x1xf32>
    %84 = tpu.reciprocal %83 {approx = true} : vector<64x1xf32> -> vector<64x1xf32>
    %85 = vector.broadcast %84 : vector<64x1xf32> to vector<64x64xf32>
    %86 = arith.mulf %81, %85 : vector<64x64xf32>
    %87 = vector.extract_strided_slice %48 {offsets = [64, 0], sizes = [64, 16], strides = [1, 1]} : vector<128x16xf32> to vector<64x16xf32>
    %88 = arith.truncf %86 : vector<64x64xf32> to vector<64x64xbf16>
    %89 = arith.truncf %87 : vector<64x16xf32> to vector<64x16xbf16>
    %cst_29 = arith.constant dense<0.000000e+00> : vector<64x16xf32>
    %90 = tpu.matmul %88, %89, %cst_29 {dimension_numbers = #tpu.dot_dimension_numbers<[1], [0], [0], [1], [0, 0, 1, 1], [], []>} : vector<64x64xbf16>, vector<64x16xbf16>, vector<64x16xf32> -> vector<64x16xf32>
    %91 = tpu.concatenate %69, %90 in 0 : vector<64x16xf32>, vector<64x16xf32> -> vector<128x16xf32>
    %c96 = arith.constant 96 : index
    %c0_30 = arith.constant 0 : index
    %92 = vector.load %arg2[%c96, %c0_30] : memref<576x128xbf16, #tpu.memory_space<vmem>>, vector<16x32xbf16>
    %93 = arith.truncf %91 : vector<128x16xf32> to vector<128x16xbf16>
    %cst_31 = arith.constant dense<0.000000e+00> : vector<128x32xf32>
    %94 = tpu.matmul %93, %92, %cst_31 {dimension_numbers = #tpu.dot_dimension_numbers<[1], [0], [0], [1], [0, 0, 1, 1], [], []>} : vector<128x16xbf16>, vector<16x32xbf16>, vector<128x32xf32> -> vector<128x32xf32>
    %95 = vector.extract_strided_slice %33 {offsets = [0, 16], sizes = [32, 16], strides = [1, 1]} : vector<32x96xbf16> to vector<32x16xbf16>
    %cst_32 = arith.constant dense<0.000000e+00> : vector<128x16xf32>
    %96 = tpu.matmul %32, %95, %cst_32 {dimension_numbers = #tpu.dot_dimension_numbers<[1], [0], [0], [1], [0, 0, 1, 1], [], []>} : vector<128x32xbf16>, vector<32x16xbf16>, vector<128x16xf32> -> vector<128x16xf32>
    %c65 = arith.constant 65 : index
    %c0_33 = arith.constant 0 : index
    %97 = vector.load %arg3[%c65, %c0_33] : memref<96x256xf32, #tpu.memory_space<vmem>>, vector<1x16xf32>
    %98 = vector.broadcast %97 : vector<1x16xf32> to vector<128x16xf32>
    %99 = arith.addf %96, %98 : vector<128x16xf32>
    %100 = vector.extract_strided_slice %33 {offsets = [0, 48], sizes = [32, 16], strides = [1, 1]} : vector<32x96xbf16> to vector<32x16xbf16>
    %cst_34 = arith.constant dense<0.000000e+00> : vector<128x16xf32>
    %101 = tpu.matmul %32, %100, %cst_34 {dimension_numbers = #tpu.dot_dimension_numbers<[1], [0], [0], [1], [0, 0, 1, 1], [], []>} : vector<128x32xbf16>, vector<32x16xbf16>, vector<128x16xf32> -> vector<128x16xf32>
    %c67 = arith.constant 67 : index
    %c0_35 = arith.constant 0 : index
    %102 = vector.load %arg3[%c67, %c0_35] : memref<96x256xf32, #tpu.memory_space<vmem>>, vector<1x16xf32>
    %103 = vector.broadcast %102 : vector<1x16xf32> to vector<128x16xf32>
    %104 = arith.addf %101, %103 : vector<128x16xf32>
    %105 = vector.extract_strided_slice %33 {offsets = [0, 80], sizes = [32, 16], strides = [1, 1]} : vector<32x96xbf16> to vector<32x16xbf16>
    %cst_36 = arith.constant dense<0.000000e+00> : vector<128x16xf32>
    %106 = tpu.matmul %32, %105, %cst_36 {dimension_numbers = #tpu.dot_dimension_numbers<[1], [0], [0], [1], [0, 0, 1, 1], [], []>} : vector<128x32xbf16>, vector<32x16xbf16>, vector<128x16xf32> -> vector<128x16xf32>
    %c69 = arith.constant 69 : index
    %c0_37 = arith.constant 0 : index
    %107 = vector.load %arg3[%c69, %c0_37] : memref<96x256xf32, #tpu.memory_space<vmem>>, vector<1x16xf32>
    %108 = vector.broadcast %107 : vector<1x16xf32> to vector<128x16xf32>
    %109 = arith.addf %106, %108 : vector<128x16xf32>
    %110 = vector.extract_strided_slice %99 {offsets = [0, 0], sizes = [64, 16], strides = [1, 1]} : vector<128x16xf32> to vector<64x16xf32>
    %111 = vector.extract_strided_slice %104 {offsets = [0, 0], sizes = [64, 16], strides = [1, 1]} : vector<128x16xf32> to vector<64x16xf32>
    %112 = arith.truncf %110 : vector<64x16xf32> to vector<64x16xbf16>
    %113 = arith.truncf %111 : vector<64x16xf32> to vector<64x16xbf16>
    %cst_38 = arith.constant dense<0.000000e+00> : vector<64x64xf32>
    %114 = tpu.matmul %112, %113, %cst_38 {dimension_numbers = #tpu.dot_dimension_numbers<[1], [1], [0], [0], [0, 0, 1, 0], [], []>} : vector<64x16xbf16>, vector<64x16xbf16>, vector<64x64xf32> -> vector<64x64xf32>
    %cst_39 = arith.constant 2.500000e-01 : f32
    %115 = vector.broadcast %cst_39 : f32 to vector<64x64xf32>
    %116 = arith.mulf %114, %115 : vector<64x64xf32>
    %cst_40 = arith.constant dense<0xFF800000> : vector<64xf32>
    %117 = vector.multi_reduction <maximumf>, %116, %cst_40 [1] : vector<64x64xf32> to vector<64xf32>
    %118 = vector.shape_cast %117 : vector<64xf32> to vector<64x1xf32>
    %119 = vector.broadcast %118 : vector<64x1xf32> to vector<64x64xf32>
    %120 = arith.subf %116, %119 : vector<64x64xf32>
    %121 = math.exp %120 : vector<64x64xf32>
    %cst_41 = arith.constant dense<0.000000e+00> : vector<64xf32>
    %122 = vector.multi_reduction <add>, %121, %cst_41 [1] : vector<64x64xf32> to vector<64xf32>
    %123 = vector.shape_cast %122 : vector<64xf32> to vector<64x1xf32>
    %124 = tpu.reciprocal %123 {approx = true} : vector<64x1xf32> -> vector<64x1xf32>
    %125 = vector.broadcast %124 : vector<64x1xf32> to vector<64x64xf32>
    %126 = arith.mulf %121, %125 : vector<64x64xf32>
    %127 = vector.extract_strided_slice %109 {offsets = [0, 0], sizes = [64, 16], strides = [1, 1]} : vector<128x16xf32> to vector<64x16xf32>
    %128 = arith.truncf %126 : vector<64x64xf32> to vector<64x64xbf16>
    %129 = arith.truncf %127 : vector<64x16xf32> to vector<64x16xbf16>
    %cst_42 = arith.constant dense<0.000000e+00> : vector<64x16xf32>
    %130 = tpu.matmul %128, %129, %cst_42 {dimension_numbers = #tpu.dot_dimension_numbers<[1], [0], [0], [1], [0, 0, 1, 1], [], []>} : vector<64x64xbf16>, vector<64x16xbf16>, vector<64x16xf32> -> vector<64x16xf32>
    %131 = vector.extract_strided_slice %99 {offsets = [64, 0], sizes = [64, 16], strides = [1, 1]} : vector<128x16xf32> to vector<64x16xf32>
    %132 = vector.extract_strided_slice %104 {offsets = [64, 0], sizes = [64, 16], strides = [1, 1]} : vector<128x16xf32> to vector<64x16xf32>
    %133 = arith.truncf %131 : vector<64x16xf32> to vector<64x16xbf16>
    %134 = arith.truncf %132 : vector<64x16xf32> to vector<64x16xbf16>
    %cst_43 = arith.constant dense<0.000000e+00> : vector<64x64xf32>
    %135 = tpu.matmul %133, %134, %cst_43 {dimension_numbers = #tpu.dot_dimension_numbers<[1], [1], [0], [0], [0, 0, 1, 0], [], []>} : vector<64x16xbf16>, vector<64x16xbf16>, vector<64x64xf32> -> vector<64x64xf32>
    %cst_44 = arith.constant 2.500000e-01 : f32
    %136 = vector.broadcast %cst_44 : f32 to vector<64x64xf32>
    %137 = arith.mulf %135, %136 : vector<64x64xf32>
    %cst_45 = arith.constant dense<0xFF800000> : vector<64xf32>
    %138 = vector.multi_reduction <maximumf>, %137, %cst_45 [1] : vector<64x64xf32> to vector<64xf32>
    %139 = vector.shape_cast %138 : vector<64xf32> to vector<64x1xf32>
    %140 = vector.broadcast %139 : vector<64x1xf32> to vector<64x64xf32>
    %141 = arith.subf %137, %140 : vector<64x64xf32>
    %142 = math.exp %141 : vector<64x64xf32>
    %cst_46 = arith.constant dense<0.000000e+00> : vector<64xf32>
    %143 = vector.multi_reduction <add>, %142, %cst_46 [1] : vector<64x64xf32> to vector<64xf32>
    %144 = vector.shape_cast %143 : vector<64xf32> to vector<64x1xf32>
    %145 = tpu.reciprocal %144 {approx = true} : vector<64x1xf32> -> vector<64x1xf32>
    %146 = vector.broadcast %145 : vector<64x1xf32> to vector<64x64xf32>
    %147 = arith.mulf %142, %146 : vector<64x64xf32>
    %148 = vector.extract_strided_slice %109 {offsets = [64, 0], sizes = [64, 16], strides = [1, 1]} : vector<128x16xf32> to vector<64x16xf32>
    %149 = arith.truncf %147 : vector<64x64xf32> to vector<64x64xbf16>
    %150 = arith.truncf %148 : vector<64x16xf32> to vector<64x16xbf16>
    %cst_47 = arith.constant dense<0.000000e+00> : vector<64x16xf32>
    %151 = tpu.matmul %149, %150, %cst_47 {dimension_numbers = #tpu.dot_dimension_numbers<[1], [0], [0], [1], [0, 0, 1, 1], [], []>} : vector<64x64xbf16>, vector<64x16xbf16>, vector<64x16xf32> -> vector<64x16xf32>
    %152 = tpu.concatenate %130, %151 in 0 : vector<64x16xf32>, vector<64x16xf32> -> vector<128x16xf32>
    %c112 = arith.constant 112 : index
    %c0_48 = arith.constant 0 : index
    %153 = vector.load %arg2[%c112, %c0_48] : memref<576x128xbf16, #tpu.memory_space<vmem>>, vector<16x32xbf16>
    %154 = arith.truncf %152 : vector<128x16xf32> to vector<128x16xbf16>
    %cst_49 = arith.constant dense<0.000000e+00> : vector<128x32xf32>
    %155 = tpu.matmul %154, %153, %cst_49 {dimension_numbers = #tpu.dot_dimension_numbers<[1], [0], [0], [1], [0, 0, 1, 1], [], []>} : vector<128x16xbf16>, vector<16x32xbf16>, vector<128x32xf32> -> vector<128x32xf32>
    %156 = arith.addf %94, %155 : vector<128x32xf32>
    %157 = arith.addf %6, %156 : vector<128x32xf32>
    %c72 = arith.constant 72 : index
    %c0_50 = arith.constant 0 : index
    %158 = vector.load %arg3[%c72, %c0_50] : memref<96x256xf32, #tpu.memory_space<vmem>>, vector<1x32xf32>
    %159 = vector.broadcast %158 : vector<1x32xf32> to vector<128x32xf32>
    %160 = arith.addf %157, %159 : vector<128x32xf32>
    %c73 = arith.constant 73 : index
    %c0_51 = arith.constant 0 : index
    %161 = vector.load %arg3[%c73, %c0_51] : memref<96x256xf32, #tpu.memory_space<vmem>>, vector<1x32xf32>
    %c74 = arith.constant 74 : index
    %c0_52 = arith.constant 0 : index
    %162 = vector.load %arg3[%c74, %c0_52] : memref<96x256xf32, #tpu.memory_space<vmem>>, vector<1x32xf32>
    %cst_53 = arith.constant dense<0.000000e+00> : vector<128xf32>
    %163 = vector.multi_reduction <add>, %160, %cst_53 [1] : vector<128x32xf32> to vector<128xf32>
    %164 = vector.shape_cast %163 : vector<128xf32> to vector<128x1xf32>
    %cst_54 = arith.constant 3.200000e+01 : f32
    %165 = vector.broadcast %cst_54 : f32 to vector<128x1xf32>
    %166 = arith.divf %164, %165 : vector<128x1xf32>
    %167 = arith.mulf %160, %160 : vector<128x32xf32>
    %cst_55 = arith.constant dense<0.000000e+00> : vector<128xf32>
    %168 = vector.multi_reduction <add>, %167, %cst_55 [1] : vector<128x32xf32> to vector<128xf32>
    %169 = vector.shape_cast %168 : vector<128xf32> to vector<128x1xf32>
    %cst_56 = arith.constant 3.200000e+01 : f32
    %170 = vector.broadcast %cst_56 : f32 to vector<128x1xf32>
    %171 = arith.divf %169, %170 : vector<128x1xf32>
    %172 = arith.mulf %166, %166 : vector<128x1xf32>
    %173 = arith.subf %171, %172 : vector<128x1xf32>
    %cst_57 = arith.constant 9.99999997E-7 : f32
    %174 = vector.broadcast %cst_57 : f32 to vector<128x1xf32>
    %175 = arith.addf %173, %174 : vector<128x1xf32>
    %176 = math.rsqrt %175 : vector<128x1xf32>
    %177 = vector.broadcast %176 : vector<128x1xf32> to vector<128x32xf32>
    %178 = vector.broadcast %161 : vector<1x32xf32> to vector<128x32xf32>
    %179 = arith.mulf %177, %178 : vector<128x32xf32>
    %180 = arith.mulf %160, %179 : vector<128x32xf32>
    %181 = vector.broadcast %166 : vector<128x1xf32> to vector<128x32xf32>
    %182 = arith.mulf %181, %179 : vector<128x32xf32>
    %183 = vector.broadcast %162 : vector<1x32xf32> to vector<128x32xf32>
    %184 = arith.subf %183, %182 : vector<128x32xf32>
    %185 = arith.addf %180, %184 : vector<128x32xf32>
    %c128 = arith.constant 128 : index
    %c0_58 = arith.constant 0 : index
    %186 = vector.load %arg2[%c128, %c0_58] : memref<576x128xbf16, #tpu.memory_space<vmem>>, vector<32x128xbf16>
    %187 = arith.truncf %185 : vector<128x32xf32> to vector<128x32xbf16>
    %cst_59 = arith.constant dense<0.000000e+00> : vector<128x128xf32>
    %188 = tpu.matmul %187, %186, %cst_59 {dimension_numbers = #tpu.dot_dimension_numbers<[1], [0], [0], [1], [0, 0, 1, 1], [], []>} : vector<128x32xbf16>, vector<32x128xbf16>, vector<128x128xf32> -> vector<128x128xf32>
    %c75 = arith.constant 75 : index
    %c0_60 = arith.constant 0 : index
    %189 = vector.load %arg3[%c75, %c0_60] : memref<96x256xf32, #tpu.memory_space<vmem>>, vector<1x128xf32>
    %190 = vector.broadcast %189 : vector<1x128xf32> to vector<128x128xf32>
    %191 = arith.addf %188, %190 : vector<128x128xf32>
    %192 = arith.mulf %191, %191 : vector<128x128xf32>
    %193 = arith.mulf %191, %192 : vector<128x128xf32>
    %cst_61 = arith.constant 4.471500e-02 : f32
    %194 = vector.broadcast %cst_61 : f32 to vector<128x128xf32>
    %195 = arith.mulf %194, %193 : vector<128x128xf32>
    %196 = arith.addf %191, %195 : vector<128x128xf32>
    %cst_62 = arith.constant 0.797884583 : f32
    %197 = vector.broadcast %cst_62 : f32 to vector<128x128xf32>
    %198 = arith.mulf %197, %196 : vector<128x128xf32>
    %199 = math.tanh %198 : vector<128x128xf32>
    %cst_63 = arith.constant 1.000000e+00 : f32
    %200 = vector.broadcast %cst_63 : f32 to vector<128x128xf32>
    %201 = arith.addf %200, %199 : vector<128x128xf32>
    %cst_64 = arith.constant 5.000000e-01 : f32
    %202 = vector.broadcast %cst_64 : f32 to vector<128x128xf32>
    %203 = arith.mulf %202, %201 : vector<128x128xf32>
    %204 = arith.mulf %191, %203 : vector<128x128xf32>
    %c160 = arith.constant 160 : index
    %c0_65 = arith.constant 0 : index
    %205 = vector.load %arg2[%c160, %c0_65] : memref<576x128xbf16, #tpu.memory_space<vmem>>, vector<32x128xbf16>
    %206 = arith.truncf %204 : vector<128x128xf32> to vector<128x128xbf16>
    %cst_66 = arith.constant dense<0.000000e+00> : vector<128x32xf32>
    %207 = tpu.matmul %206, %205, %cst_66 {dimension_numbers = #tpu.dot_dimension_numbers<[1], [1], [0], [0], [0, 0, 1, 0], [], []>} : vector<128x128xbf16>, vector<32x128xbf16>, vector<128x32xf32> -> vector<128x32xf32>
    %208 = arith.addf %160, %207 : vector<128x32xf32>
    %c76 = arith.constant 76 : index
    %c0_67 = arith.constant 0 : index
    %209 = vector.load %arg3[%c76, %c0_67] : memref<96x256xf32, #tpu.memory_space<vmem>>, vector<1x32xf32>
    %210 = vector.broadcast %209 : vector<1x32xf32> to vector<128x32xf32>
    %211 = arith.addf %208, %210 : vector<128x32xf32>
    %c83 = arith.constant 83 : index
    %c0_68 = arith.constant 0 : index
    %212 = vector.load %arg3[%c83, %c0_68] : memref<96x256xf32, #tpu.memory_space<vmem>>, vector<1x32xf32>
    %c84 = arith.constant 84 : index
    %c0_69 = arith.constant 0 : index
    %213 = vector.load %arg3[%c84, %c0_69] : memref<96x256xf32, #tpu.memory_space<vmem>>, vector<1x32xf32>
    %cst_70 = arith.constant dense<0.000000e+00> : vector<128xf32>
    %214 = vector.multi_reduction <add>, %211, %cst_70 [1] : vector<128x32xf32> to vector<128xf32>
    %215 = vector.shape_cast %214 : vector<128xf32> to vector<128x1xf32>
    %cst_71 = arith.constant 3.200000e+01 : f32
    %216 = vector.broadcast %cst_71 : f32 to vector<128x1xf32>
    %217 = arith.divf %215, %216 : vector<128x1xf32>
    %218 = arith.mulf %211, %211 : vector<128x32xf32>
    %cst_72 = arith.constant dense<0.000000e+00> : vector<128xf32>
    %219 = vector.multi_reduction <add>, %218, %cst_72 [1] : vector<128x32xf32> to vector<128xf32>
    %220 = vector.shape_cast %219 : vector<128xf32> to vector<128x1xf32>
    %cst_73 = arith.constant 3.200000e+01 : f32
    %221 = vector.broadcast %cst_73 : f32 to vector<128x1xf32>
    %222 = arith.divf %220, %221 : vector<128x1xf32>
    %223 = arith.mulf %217, %217 : vector<128x1xf32>
    %224 = arith.subf %222, %223 : vector<128x1xf32>
    %cst_74 = arith.constant 9.99999997E-7 : f32
    %225 = vector.broadcast %cst_74 : f32 to vector<128x1xf32>
    %226 = arith.addf %224, %225 : vector<128x1xf32>
    %227 = math.rsqrt %226 : vector<128x1xf32>
    %228 = vector.broadcast %227 : vector<128x1xf32> to vector<128x32xf32>
    %229 = vector.broadcast %212 : vector<1x32xf32> to vector<128x32xf32>
    %230 = arith.mulf %228, %229 : vector<128x32xf32>
    %231 = arith.mulf %211, %230 : vector<128x32xf32>
    %232 = vector.broadcast %217 : vector<128x1xf32> to vector<128x32xf32>
    %233 = arith.mulf %232, %230 : vector<128x32xf32>
    %234 = vector.broadcast %213 : vector<1x32xf32> to vector<128x32xf32>
    %235 = arith.subf %234, %233 : vector<128x32xf32>
    %236 = arith.addf %231, %235 : vector<128x32xf32>
    %237 = arith.truncf %236 : vector<128x32xf32> to vector<128x32xbf16>
    %c192 = arith.constant 192 : index
    %c0_75 = arith.constant 0 : index
    %238 = vector.load %arg2[%c192, %c0_75] : memref<576x128xbf16, #tpu.memory_space<vmem>>, vector<32x96xbf16>
    %239 = vector.extract_strided_slice %238 {offsets = [0, 0], sizes = [32, 16], strides = [1, 1]} : vector<32x96xbf16> to vector<32x16xbf16>
    %cst_76 = arith.constant dense<0.000000e+00> : vector<128x16xf32>
    %240 = tpu.matmul %237, %239, %cst_76 {dimension_numbers = #tpu.dot_dimension_numbers<[1], [0], [0], [1], [0, 0, 1, 1], [], []>} : vector<128x32xbf16>, vector<32x16xbf16>, vector<128x16xf32> -> vector<128x16xf32>
    %c77 = arith.constant 77 : index
    %c0_77 = arith.constant 0 : index
    %241 = vector.load %arg3[%c77, %c0_77] : memref<96x256xf32, #tpu.memory_space<vmem>>, vector<1x16xf32>
    %242 = vector.broadcast %241 : vector<1x16xf32> to vector<128x16xf32>
    %243 = arith.addf %240, %242 : vector<128x16xf32>
    %244 = vector.extract_strided_slice %238 {offsets = [0, 32], sizes = [32, 16], strides = [1, 1]} : vector<32x96xbf16> to vector<32x16xbf16>
    %cst_78 = arith.constant dense<0.000000e+00> : vector<128x16xf32>
    %245 = tpu.matmul %237, %244, %cst_78 {dimension_numbers = #tpu.dot_dimension_numbers<[1], [0], [0], [1], [0, 0, 1, 1], [], []>} : vector<128x32xbf16>, vector<32x16xbf16>, vector<128x16xf32> -> vector<128x16xf32>
    %c79 = arith.constant 79 : index
    %c0_79 = arith.constant 0 : index
    %246 = vector.load %arg3[%c79, %c0_79] : memref<96x256xf32, #tpu.memory_space<vmem>>, vector<1x16xf32>
    %247 = vector.broadcast %246 : vector<1x16xf32> to vector<128x16xf32>
    %248 = arith.addf %245, %247 : vector<128x16xf32>
    %249 = vector.extract_strided_slice %238 {offsets = [0, 64], sizes = [32, 16], strides = [1, 1]} : vector<32x96xbf16> to vector<32x16xbf16>
    %cst_80 = arith.constant dense<0.000000e+00> : vector<128x16xf32>
    %250 = tpu.matmul %237, %249, %cst_80 {dimension_numbers = #tpu.dot_dimension_numbers<[1], [0], [0], [1], [0, 0, 1, 1], [], []>} : vector<128x32xbf16>, vector<32x16xbf16>, vector<128x16xf32> -> vector<128x16xf32>
    %c81 = arith.constant 81 : index
    %c0_81 = arith.constant 0 : index
    %251 = vector.load %arg3[%c81, %c0_81] : memref<96x256xf32, #tpu.memory_space<vmem>>, vector<1x16xf32>
    %252 = vector.broadcast %251 : vector<1x16xf32> to vector<128x16xf32>
    %253 = arith.addf %250, %252 : vector<128x16xf32>
    %254 = vector.extract_strided_slice %243 {offsets = [0, 0], sizes = [64, 16], strides = [1, 1]} : vector<128x16xf32> to vector<64x16xf32>
    %255 = vector.extract_strided_slice %248 {offsets = [0, 0], sizes = [64, 16], strides = [1, 1]} : vector<128x16xf32> to vector<64x16xf32>
    %256 = arith.truncf %254 : vector<64x16xf32> to vector<64x16xbf16>
    %257 = arith.truncf %255 : vector<64x16xf32> to vector<64x16xbf16>
    %cst_82 = arith.constant dense<0.000000e+00> : vector<64x64xf32>
    %258 = tpu.matmul %256, %257, %cst_82 {dimension_numbers = #tpu.dot_dimension_numbers<[1], [1], [0], [0], [0, 0, 1, 0], [], []>} : vector<64x16xbf16>, vector<64x16xbf16>, vector<64x64xf32> -> vector<64x64xf32>
    %cst_83 = arith.constant 2.500000e-01 : f32
    %259 = vector.broadcast %cst_83 : f32 to vector<64x64xf32>
    %260 = arith.mulf %258, %259 : vector<64x64xf32>
    %cst_84 = arith.constant dense<0xFF800000> : vector<64xf32>
    %261 = vector.multi_reduction <maximumf>, %260, %cst_84 [1] : vector<64x64xf32> to vector<64xf32>
    %262 = vector.shape_cast %261 : vector<64xf32> to vector<64x1xf32>
    %263 = vector.broadcast %262 : vector<64x1xf32> to vector<64x64xf32>
    %264 = arith.subf %260, %263 : vector<64x64xf32>
    %265 = math.exp %264 : vector<64x64xf32>
    %cst_85 = arith.constant dense<0.000000e+00> : vector<64xf32>
    %266 = vector.multi_reduction <add>, %265, %cst_85 [1] : vector<64x64xf32> to vector<64xf32>
    %267 = vector.shape_cast %266 : vector<64xf32> to vector<64x1xf32>
    %268 = tpu.reciprocal %267 {approx = true} : vector<64x1xf32> -> vector<64x1xf32>
    %269 = vector.broadcast %268 : vector<64x1xf32> to vector<64x64xf32>
    %270 = arith.mulf %265, %269 : vector<64x64xf32>
    %271 = vector.extract_strided_slice %253 {offsets = [0, 0], sizes = [64, 16], strides = [1, 1]} : vector<128x16xf32> to vector<64x16xf32>
    %272 = arith.truncf %270 : vector<64x64xf32> to vector<64x64xbf16>
    %273 = arith.truncf %271 : vector<64x16xf32> to vector<64x16xbf16>
    %cst_86 = arith.constant dense<0.000000e+00> : vector<64x16xf32>
    %274 = tpu.matmul %272, %273, %cst_86 {dimension_numbers = #tpu.dot_dimension_numbers<[1], [0], [0], [1], [0, 0, 1, 1], [], []>} : vector<64x64xbf16>, vector<64x16xbf16>, vector<64x16xf32> -> vector<64x16xf32>
    %275 = vector.extract_strided_slice %243 {offsets = [64, 0], sizes = [64, 16], strides = [1, 1]} : vector<128x16xf32> to vector<64x16xf32>
    %276 = vector.extract_strided_slice %248 {offsets = [64, 0], sizes = [64, 16], strides = [1, 1]} : vector<128x16xf32> to vector<64x16xf32>
    %277 = arith.truncf %275 : vector<64x16xf32> to vector<64x16xbf16>
    %278 = arith.truncf %276 : vector<64x16xf32> to vector<64x16xbf16>
    %cst_87 = arith.constant dense<0.000000e+00> : vector<64x64xf32>
    %279 = tpu.matmul %277, %278, %cst_87 {dimension_numbers = #tpu.dot_dimension_numbers<[1], [1], [0], [0], [0, 0, 1, 0], [], []>} : vector<64x16xbf16>, vector<64x16xbf16>, vector<64x64xf32> -> vector<64x64xf32>
    %cst_88 = arith.constant 2.500000e-01 : f32
    %280 = vector.broadcast %cst_88 : f32 to vector<64x64xf32>
    %281 = arith.mulf %279, %280 : vector<64x64xf32>
    %cst_89 = arith.constant dense<0xFF800000> : vector<64xf32>
    %282 = vector.multi_reduction <maximumf>, %281, %cst_89 [1] : vector<64x64xf32> to vector<64xf32>
    %283 = vector.shape_cast %282 : vector<64xf32> to vector<64x1xf32>
    %284 = vector.broadcast %283 : vector<64x1xf32> to vector<64x64xf32>
    %285 = arith.subf %281, %284 : vector<64x64xf32>
    %286 = math.exp %285 : vector<64x64xf32>
    %cst_90 = arith.constant dense<0.000000e+00> : vector<64xf32>
    %287 = vector.multi_reduction <add>, %286, %cst_90 [1] : vector<64x64xf32> to vector<64xf32>
    %288 = vector.shape_cast %287 : vector<64xf32> to vector<64x1xf32>
    %289 = tpu.reciprocal %288 {approx = true} : vector<64x1xf32> -> vector<64x1xf32>
    %290 = vector.broadcast %289 : vector<64x1xf32> to vector<64x64xf32>
    %291 = arith.mulf %286, %290 : vector<64x64xf32>
    %292 = vector.extract_strided_slice %253 {offsets = [64, 0], sizes = [64, 16], strides = [1, 1]} : vector<128x16xf32> to vector<64x16xf32>
    %293 = arith.truncf %291 : vector<64x64xf32> to vector<64x64xbf16>
    %294 = arith.truncf %292 : vector<64x16xf32> to vector<64x16xbf16>
    %cst_91 = arith.constant dense<0.000000e+00> : vector<64x16xf32>
    %295 = tpu.matmul %293, %294, %cst_91 {dimension_numbers = #tpu.dot_dimension_numbers<[1], [0], [0], [1], [0, 0, 1, 1], [], []>} : vector<64x64xbf16>, vector<64x16xbf16>, vector<64x16xf32> -> vector<64x16xf32>
    %296 = tpu.concatenate %274, %295 in 0 : vector<64x16xf32>, vector<64x16xf32> -> vector<128x16xf32>
    %c224 = arith.constant 224 : index
    %c0_92 = arith.constant 0 : index
    %297 = vector.load %arg2[%c224, %c0_92] : memref<576x128xbf16, #tpu.memory_space<vmem>>, vector<16x32xbf16>
    %298 = arith.truncf %296 : vector<128x16xf32> to vector<128x16xbf16>
    %cst_93 = arith.constant dense<0.000000e+00> : vector<128x32xf32>
    %299 = tpu.matmul %298, %297, %cst_93 {dimension_numbers = #tpu.dot_dimension_numbers<[1], [0], [0], [1], [0, 0, 1, 1], [], []>} : vector<128x16xbf16>, vector<16x32xbf16>, vector<128x32xf32> -> vector<128x32xf32>
    %300 = vector.extract_strided_slice %238 {offsets = [0, 16], sizes = [32, 16], strides = [1, 1]} : vector<32x96xbf16> to vector<32x16xbf16>
    %cst_94 = arith.constant dense<0.000000e+00> : vector<128x16xf32>
    %301 = tpu.matmul %237, %300, %cst_94 {dimension_numbers = #tpu.dot_dimension_numbers<[1], [0], [0], [1], [0, 0, 1, 1], [], []>} : vector<128x32xbf16>, vector<32x16xbf16>, vector<128x16xf32> -> vector<128x16xf32>
    %c78 = arith.constant 78 : index
    %c0_95 = arith.constant 0 : index
    %302 = vector.load %arg3[%c78, %c0_95] : memref<96x256xf32, #tpu.memory_space<vmem>>, vector<1x16xf32>
    %303 = vector.broadcast %302 : vector<1x16xf32> to vector<128x16xf32>
    %304 = arith.addf %301, %303 : vector<128x16xf32>
    %305 = vector.extract_strided_slice %238 {offsets = [0, 48], sizes = [32, 16], strides = [1, 1]} : vector<32x96xbf16> to vector<32x16xbf16>
    %cst_96 = arith.constant dense<0.000000e+00> : vector<128x16xf32>
    %306 = tpu.matmul %237, %305, %cst_96 {dimension_numbers = #tpu.dot_dimension_numbers<[1], [0], [0], [1], [0, 0, 1, 1], [], []>} : vector<128x32xbf16>, vector<32x16xbf16>, vector<128x16xf32> -> vector<128x16xf32>
    %c80 = arith.constant 80 : index
    %c0_97 = arith.constant 0 : index
    %307 = vector.load %arg3[%c80, %c0_97] : memref<96x256xf32, #tpu.memory_space<vmem>>, vector<1x16xf32>
    %308 = vector.broadcast %307 : vector<1x16xf32> to vector<128x16xf32>
    %309 = arith.addf %306, %308 : vector<128x16xf32>
    %310 = vector.extract_strided_slice %238 {offsets = [0, 80], sizes = [32, 16], strides = [1, 1]} : vector<32x96xbf16> to vector<32x16xbf16>
    %cst_98 = arith.constant dense<0.000000e+00> : vector<128x16xf32>
    %311 = tpu.matmul %237, %310, %cst_98 {dimension_numbers = #tpu.dot_dimension_numbers<[1], [0], [0], [1], [0, 0, 1, 1], [], []>} : vector<128x32xbf16>, vector<32x16xbf16>, vector<128x16xf32> -> vector<128x16xf32>
    %c82 = arith.constant 82 : index
    %c0_99 = arith.constant 0 : index
    %312 = vector.load %arg3[%c82, %c0_99] : memref<96x256xf32, #tpu.memory_space<vmem>>, vector<1x16xf32>
    %313 = vector.broadcast %312 : vector<1x16xf32> to vector<128x16xf32>
    %314 = arith.addf %311, %313 : vector<128x16xf32>
    %315 = vector.extract_strided_slice %304 {offsets = [0, 0], sizes = [64, 16], strides = [1, 1]} : vector<128x16xf32> to vector<64x16xf32>
    %316 = vector.extract_strided_slice %309 {offsets = [0, 0], sizes = [64, 16], strides = [1, 1]} : vector<128x16xf32> to vector<64x16xf32>
    %317 = arith.truncf %315 : vector<64x16xf32> to vector<64x16xbf16>
    %318 = arith.truncf %316 : vector<64x16xf32> to vector<64x16xbf16>
    %cst_100 = arith.constant dense<0.000000e+00> : vector<64x64xf32>
    %319 = tpu.matmul %317, %318, %cst_100 {dimension_numbers = #tpu.dot_dimension_numbers<[1], [1], [0], [0], [0, 0, 1, 0], [], []>} : vector<64x16xbf16>, vector<64x16xbf16>, vector<64x64xf32> -> vector<64x64xf32>
    %cst_101 = arith.constant 2.500000e-01 : f32
    %320 = vector.broadcast %cst_101 : f32 to vector<64x64xf32>
    %321 = arith.mulf %319, %320 : vector<64x64xf32>
    %cst_102 = arith.constant dense<0xFF800000> : vector<64xf32>
    %322 = vector.multi_reduction <maximumf>, %321, %cst_102 [1] : vector<64x64xf32> to vector<64xf32>
    %323 = vector.shape_cast %322 : vector<64xf32> to vector<64x1xf32>
    %324 = vector.broadcast %323 : vector<64x1xf32> to vector<64x64xf32>
    %325 = arith.subf %321, %324 : vector<64x64xf32>
    %326 = math.exp %325 : vector<64x64xf32>
    %cst_103 = arith.constant dense<0.000000e+00> : vector<64xf32>
    %327 = vector.multi_reduction <add>, %326, %cst_103 [1] : vector<64x64xf32> to vector<64xf32>
    %328 = vector.shape_cast %327 : vector<64xf32> to vector<64x1xf32>
    %329 = tpu.reciprocal %328 {approx = true} : vector<64x1xf32> -> vector<64x1xf32>
    %330 = vector.broadcast %329 : vector<64x1xf32> to vector<64x64xf32>
    %331 = arith.mulf %326, %330 : vector<64x64xf32>
    %332 = vector.extract_strided_slice %314 {offsets = [0, 0], sizes = [64, 16], strides = [1, 1]} : vector<128x16xf32> to vector<64x16xf32>
    %333 = arith.truncf %331 : vector<64x64xf32> to vector<64x64xbf16>
    %334 = arith.truncf %332 : vector<64x16xf32> to vector<64x16xbf16>
    %cst_104 = arith.constant dense<0.000000e+00> : vector<64x16xf32>
    %335 = tpu.matmul %333, %334, %cst_104 {dimension_numbers = #tpu.dot_dimension_numbers<[1], [0], [0], [1], [0, 0, 1, 1], [], []>} : vector<64x64xbf16>, vector<64x16xbf16>, vector<64x16xf32> -> vector<64x16xf32>
    %336 = vector.extract_strided_slice %304 {offsets = [64, 0], sizes = [64, 16], strides = [1, 1]} : vector<128x16xf32> to vector<64x16xf32>
    %337 = vector.extract_strided_slice %309 {offsets = [64, 0], sizes = [64, 16], strides = [1, 1]} : vector<128x16xf32> to vector<64x16xf32>
    %338 = arith.truncf %336 : vector<64x16xf32> to vector<64x16xbf16>
    %339 = arith.truncf %337 : vector<64x16xf32> to vector<64x16xbf16>
    %cst_105 = arith.constant dense<0.000000e+00> : vector<64x64xf32>
    %340 = tpu.matmul %338, %339, %cst_105 {dimension_numbers = #tpu.dot_dimension_numbers<[1], [1], [0], [0], [0, 0, 1, 0], [], []>} : vector<64x16xbf16>, vector<64x16xbf16>, vector<64x64xf32> -> vector<64x64xf32>
    %cst_106 = arith.constant 2.500000e-01 : f32
    %341 = vector.broadcast %cst_106 : f32 to vector<64x64xf32>
    %342 = arith.mulf %340, %341 : vector<64x64xf32>
    %cst_107 = arith.constant dense<0xFF800000> : vector<64xf32>
    %343 = vector.multi_reduction <maximumf>, %342, %cst_107 [1] : vector<64x64xf32> to vector<64xf32>
    %344 = vector.shape_cast %343 : vector<64xf32> to vector<64x1xf32>
    %345 = vector.broadcast %344 : vector<64x1xf32> to vector<64x64xf32>
    %346 = arith.subf %342, %345 : vector<64x64xf32>
    %347 = math.exp %346 : vector<64x64xf32>
    %cst_108 = arith.constant dense<0.000000e+00> : vector<64xf32>
    %348 = vector.multi_reduction <add>, %347, %cst_108 [1] : vector<64x64xf32> to vector<64xf32>
    %349 = vector.shape_cast %348 : vector<64xf32> to vector<64x1xf32>
    %350 = tpu.reciprocal %349 {approx = true} : vector<64x1xf32> -> vector<64x1xf32>
    %351 = vector.broadcast %350 : vector<64x1xf32> to vector<64x64xf32>
    %352 = arith.mulf %347, %351 : vector<64x64xf32>
    %353 = vector.extract_strided_slice %314 {offsets = [64, 0], sizes = [64, 16], strides = [1, 1]} : vector<128x16xf32> to vector<64x16xf32>
    %354 = arith.truncf %352 : vector<64x64xf32> to vector<64x64xbf16>
    %355 = arith.truncf %353 : vector<64x16xf32> to vector<64x16xbf16>
    %cst_109 = arith.constant dense<0.000000e+00> : vector<64x16xf32>
    %356 = tpu.matmul %354, %355, %cst_109 {dimension_numbers = #tpu.dot_dimension_numbers<[1], [0], [0], [1], [0, 0, 1, 1], [], []>} : vector<64x64xbf16>, vector<64x16xbf16>, vector<64x16xf32> -> vector<64x16xf32>
    %357 = tpu.concatenate %335, %356 in 0 : vector<64x16xf32>, vector<64x16xf32> -> vector<128x16xf32>
    %c240 = arith.constant 240 : index
    %c0_110 = arith.constant 0 : index
    %358 = vector.load %arg2[%c240, %c0_110] : memref<576x128xbf16, #tpu.memory_space<vmem>>, vector<16x32xbf16>
    %359 = arith.truncf %357 : vector<128x16xf32> to vector<128x16xbf16>
    %cst_111 = arith.constant dense<0.000000e+00> : vector<128x32xf32>
    %360 = tpu.matmul %359, %358, %cst_111 {dimension_numbers = #tpu.dot_dimension_numbers<[1], [0], [0], [1], [0, 0, 1, 1], [], []>} : vector<128x16xbf16>, vector<16x32xbf16>, vector<128x32xf32> -> vector<128x32xf32>
    %361 = arith.addf %299, %360 : vector<128x32xf32>
    %362 = arith.addf %211, %361 : vector<128x32xf32>
    %c85 = arith.constant 85 : index
    %c0_112 = arith.constant 0 : index
    %363 = vector.load %arg3[%c85, %c0_112] : memref<96x256xf32, #tpu.memory_space<vmem>>, vector<1x32xf32>
    %364 = vector.broadcast %363 : vector<1x32xf32> to vector<128x32xf32>
    %365 = arith.addf %362, %364 : vector<128x32xf32>
    %c86 = arith.constant 86 : index
    %c0_113 = arith.constant 0 : index
    %366 = vector.load %arg3[%c86, %c0_113] : memref<96x256xf32, #tpu.memory_space<vmem>>, vector<1x32xf32>
    %c87 = arith.constant 87 : index
    %c0_114 = arith.constant 0 : index
    %367 = vector.load %arg3[%c87, %c0_114] : memref<96x256xf32, #tpu.memory_space<vmem>>, vector<1x32xf32>
    %cst_115 = arith.constant dense<0.000000e+00> : vector<128xf32>
    %368 = vector.multi_reduction <add>, %365, %cst_115 [1] : vector<128x32xf32> to vector<128xf32>
    %369 = vector.shape_cast %368 : vector<128xf32> to vector<128x1xf32>
    %cst_116 = arith.constant 3.200000e+01 : f32
    %370 = vector.broadcast %cst_116 : f32 to vector<128x1xf32>
    %371 = arith.divf %369, %370 : vector<128x1xf32>
    %372 = arith.mulf %365, %365 : vector<128x32xf32>
    %cst_117 = arith.constant dense<0.000000e+00> : vector<128xf32>
    %373 = vector.multi_reduction <add>, %372, %cst_117 [1] : vector<128x32xf32> to vector<128xf32>
    %374 = vector.shape_cast %373 : vector<128xf32> to vector<128x1xf32>
    %cst_118 = arith.constant 3.200000e+01 : f32
    %375 = vector.broadcast %cst_118 : f32 to vector<128x1xf32>
    %376 = arith.divf %374, %375 : vector<128x1xf32>
    %377 = arith.mulf %371, %371 : vector<128x1xf32>
    %378 = arith.subf %376, %377 : vector<128x1xf32>
    %cst_119 = arith.constant 9.99999997E-7 : f32
    %379 = vector.broadcast %cst_119 : f32 to vector<128x1xf32>
    %380 = arith.addf %378, %379 : vector<128x1xf32>
    %381 = math.rsqrt %380 : vector<128x1xf32>
    %382 = vector.broadcast %381 : vector<128x1xf32> to vector<128x32xf32>
    %383 = vector.broadcast %366 : vector<1x32xf32> to vector<128x32xf32>
    %384 = arith.mulf %382, %383 : vector<128x32xf32>
    %385 = arith.mulf %365, %384 : vector<128x32xf32>
    %386 = vector.broadcast %371 : vector<128x1xf32> to vector<128x32xf32>
    %387 = arith.mulf %386, %384 : vector<128x32xf32>
    %388 = vector.broadcast %367 : vector<1x32xf32> to vector<128x32xf32>
    %389 = arith.subf %388, %387 : vector<128x32xf32>
    %390 = arith.addf %385, %389 : vector<128x32xf32>
    %c256 = arith.constant 256 : index
    %c0_120 = arith.constant 0 : index
    %391 = vector.load %arg2[%c256, %c0_120] : memref<576x128xbf16, #tpu.memory_space<vmem>>, vector<32x128xbf16>
    %392 = arith.truncf %390 : vector<128x32xf32> to vector<128x32xbf16>
    %cst_121 = arith.constant dense<0.000000e+00> : vector<128x128xf32>
    %393 = tpu.matmul %392, %391, %cst_121 {dimension_numbers = #tpu.dot_dimension_numbers<[1], [0], [0], [1], [0, 0, 1, 1], [], []>} : vector<128x32xbf16>, vector<32x128xbf16>, vector<128x128xf32> -> vector<128x128xf32>
    %c88 = arith.constant 88 : index
    %c0_122 = arith.constant 0 : index
    %394 = vector.load %arg3[%c88, %c0_122] : memref<96x256xf32, #tpu.memory_space<vmem>>, vector<1x128xf32>
    %395 = vector.broadcast %394 : vector<1x128xf32> to vector<128x128xf32>
    %396 = arith.addf %393, %395 : vector<128x128xf32>
    %397 = arith.mulf %396, %396 : vector<128x128xf32>
    %398 = arith.mulf %396, %397 : vector<128x128xf32>
    %cst_123 = arith.constant 4.471500e-02 : f32
    %399 = vector.broadcast %cst_123 : f32 to vector<128x128xf32>
    %400 = arith.mulf %399, %398 : vector<128x128xf32>
    %401 = arith.addf %396, %400 : vector<128x128xf32>
    %cst_124 = arith.constant 0.797884583 : f32
    %402 = vector.broadcast %cst_124 : f32 to vector<128x128xf32>
    %403 = arith.mulf %402, %401 : vector<128x128xf32>
    %404 = math.tanh %403 : vector<128x128xf32>
    %cst_125 = arith.constant 1.000000e+00 : f32
    %405 = vector.broadcast %cst_125 : f32 to vector<128x128xf32>
    %406 = arith.addf %405, %404 : vector<128x128xf32>
    %cst_126 = arith.constant 5.000000e-01 : f32
    %407 = vector.broadcast %cst_126 : f32 to vector<128x128xf32>
    %408 = arith.mulf %407, %406 : vector<128x128xf32>
    %409 = arith.mulf %396, %408 : vector<128x128xf32>
    %c288 = arith.constant 288 : index
    %c0_127 = arith.constant 0 : index
    %410 = vector.load %arg2[%c288, %c0_127] : memref<576x128xbf16, #tpu.memory_space<vmem>>, vector<32x128xbf16>
    %411 = arith.truncf %409 : vector<128x128xf32> to vector<128x128xbf16>
    %cst_128 = arith.constant dense<0.000000e+00> : vector<128x32xf32>
    %412 = tpu.matmul %411, %410, %cst_128 {dimension_numbers = #tpu.dot_dimension_numbers<[1], [1], [0], [0], [0, 0, 1, 0], [], []>} : vector<128x128xbf16>, vector<32x128xbf16>, vector<128x32xf32> -> vector<128x32xf32>
    %413 = arith.addf %365, %412 : vector<128x32xf32>
    %c89 = arith.constant 89 : index
    %c0_129 = arith.constant 0 : index
    %414 = vector.load %arg3[%c89, %c0_129] : memref<96x256xf32, #tpu.memory_space<vmem>>, vector<1x32xf32>
    %415 = vector.broadcast %414 : vector<1x32xf32> to vector<128x32xf32>
    %416 = arith.addf %413, %415 : vector<128x32xf32>
    %c90 = arith.constant 90 : index
    %c0_130 = arith.constant 0 : index
    %417 = vector.load %arg3[%c90, %c0_130] : memref<96x256xf32, #tpu.memory_space<vmem>>, vector<1x32xf32>
    %c91 = arith.constant 91 : index
    %c0_131 = arith.constant 0 : index
    %418 = vector.load %arg3[%c91, %c0_131] : memref<96x256xf32, #tpu.memory_space<vmem>>, vector<1x32xf32>
    %cst_132 = arith.constant dense<0.000000e+00> : vector<128xf32>
    %419 = vector.multi_reduction <add>, %416, %cst_132 [1] : vector<128x32xf32> to vector<128xf32>
    %420 = vector.shape_cast %419 : vector<128xf32> to vector<128x1xf32>
    %cst_133 = arith.constant 3.200000e+01 : f32
    %421 = vector.broadcast %cst_133 : f32 to vector<128x1xf32>
    %422 = arith.divf %420, %421 : vector<128x1xf32>
    %423 = arith.mulf %416, %416 : vector<128x32xf32>
    %cst_134 = arith.constant dense<0.000000e+00> : vector<128xf32>
    %424 = vector.multi_reduction <add>, %423, %cst_134 [1] : vector<128x32xf32> to vector<128xf32>
    %425 = vector.shape_cast %424 : vector<128xf32> to vector<128x1xf32>
    %cst_135 = arith.constant 3.200000e+01 : f32
    %426 = vector.broadcast %cst_135 : f32 to vector<128x1xf32>
    %427 = arith.divf %425, %426 : vector<128x1xf32>
    %428 = arith.mulf %422, %422 : vector<128x1xf32>
    %429 = arith.subf %427, %428 : vector<128x1xf32>
    %cst_136 = arith.constant 9.99999997E-7 : f32
    %430 = vector.broadcast %cst_136 : f32 to vector<128x1xf32>
    %431 = arith.addf %429, %430 : vector<128x1xf32>
    %432 = math.rsqrt %431 : vector<128x1xf32>
    %433 = vector.broadcast %432 : vector<128x1xf32> to vector<128x32xf32>
    %434 = vector.broadcast %417 : vector<1x32xf32> to vector<128x32xf32>
    %435 = arith.mulf %433, %434 : vector<128x32xf32>
    %436 = arith.mulf %416, %435 : vector<128x32xf32>
    %437 = vector.broadcast %422 : vector<128x1xf32> to vector<128x32xf32>
    %438 = arith.mulf %437, %435 : vector<128x32xf32>
    %439 = vector.broadcast %418 : vector<1x32xf32> to vector<128x32xf32>
    %440 = arith.subf %439, %438 : vector<128x32xf32>
    %441 = arith.addf %436, %440 : vector<128x32xf32>
    %442 = tpu.concatenate %441, %211, %0 in 1 : vector<128x32xf32>, vector<128x32xf32>, vector<128x64xf32> -> vector<128x128xf32>
    %c320 = arith.constant 320 : index
    %c0_137 = arith.constant 0 : index
    %443 = vector.load %arg2[%c320, %c0_137] : memref<576x128xbf16, #tpu.memory_space<vmem>>, vector<256x128xbf16>
    %444 = arith.truncf %442 : vector<128x128xf32> to vector<128x128xbf16>
    %cst_138 = arith.constant dense<0.000000e+00> : vector<128x256xf32>
    %445 = tpu.matmul %444, %443, %cst_138 {dimension_numbers = #tpu.dot_dimension_numbers<[1], [1], [0], [0], [0, 0, 1, 0], [], []>} : vector<128x128xbf16>, vector<256x128xbf16>, vector<128x256xf32> -> vector<128x256xf32>
    %c92 = arith.constant 92 : index
    %c0_139 = arith.constant 0 : index
    %446 = vector.load %arg3[%c92, %c0_139] : memref<96x256xf32, #tpu.memory_space<vmem>>, vector<1x256xf32>
    %447 = vector.broadcast %446 : vector<1x256xf32> to vector<128x256xf32>
    %448 = arith.addf %445, %447 : vector<128x256xf32>
    %c0_140 = arith.constant 0 : index
    %c0_141 = arith.constant 0 : index
    %449 = vector.load %arg4[%c0_140, %c0_141] : memref<128x256xf32, #tpu.memory_space<vmem>>, vector<128x256xf32>
    tpu.vector_store %arg4[%c0_140, %c0_141], %448 {strides = array<i32>} : memref<128x256xf32, #tpu.memory_space<vmem>>, vector<128x256xf32>,
    return
  }
  func.func @transform_0(%arg0: i32) -> (i32, i32) {
    %c0_i32 = arith.constant 0 : i32
    %c0_i32_0 = arith.constant 0 : i32
    return %arg0, %c0_i32 : i32, i32
  }
  func.func @transform_1(%arg0: i32) -> (i32, i32) {
    %c0_i32 = arith.constant 0 : i32
    %c0_i32_0 = arith.constant 0 : i32
    %c0_i32_1 = arith.constant 0 : i32
    return %c0_i32, %c0_i32_0 : i32, i32
  }
  func.func @transform_2(%arg0: i32) -> (i32, i32) {
    %c0_i32 = arith.constant 0 : i32
    %c0_i32_0 = arith.constant 0 : i32
    %c0_i32_1 = arith.constant 0 : i32
    return %c0_i32, %c0_i32_0 : i32, i32
  }
  func.func @transform_3(%arg0: i32) -> (i32, i32) {
    %c0_i32 = arith.constant 0 : i32
    %c0_i32_0 = arith.constant 0 : i32
    return %arg0, %c0_i32 : i32, i32
  }
}

</mosaic_0001>

<bundles_post_ra>
// kernel: forward.1
= control target key start
LH: loop header
LB: loop body
LE: loop exit
PB: predicated region body
PF: predicated region fallthrough
CT: control target
= control target key end

     0   :  { %vm79_vm0 = vcmask 523264   ;;  %vm155_vm1 = vcmask 261120   ;;  %s7271_s15 = smov 96   ;;  %s7273_s22 = smov 64   ;;  %s11198_s1 = inlined_call_operand.vmem [shape: bf16[576,128], index: 1, kind: input, shape index: {}]   ;;  %s11199_s0 = inlined_call_operand.vmem [shape: f32[128,64], index: 0, kind: input, shape index: {}]   ;;  %s11200_s2 = inlined_call_operand.vmem [shape: f32[96,256], index: 2, kind: input, shape index: {}]   ;;  %s11201_s3 = inlined_call_operand.vmem [shape: f32[128,256], index: 3, kind: output, shape index: {}]  }
   0x1   :  { %v6655_v0 = vld [vmem:[%s11198_s1 + $0x18] sm:$0xff]  ;;  %v7304_v1 = vld [vmem:[%s11199_s0] sm:$0xff]  ;;  %v7309_v2 = vld [vmem:[%s11199_s0 + $0x8] sm:$0xff]  ;;  %s7274_s30 = smov 80   ;;  %s7275_s6 = smov 112  }
   0x2   :  { %11219 = vst [vmem:[#allocation2_spill] sm:$0xff] %v7304_v1  ;;  %108 = vmatpush.bf16.msra.mxu0 %v6655_v0  ;;  %v6654_v3 = vld [vmem:[%s11198_s1 + $0x10] sm:$0xff]  ;;  %v7324_v6 = vld [vmem:[%s11199_s0 + $0x18] sm:$0xff]  ;;  %6688 = vmatpush.bf16.msra.mxu1 %v6655_v0  ;;  %v7331_v8 = vld [vmem:[%s11199_s0 + $0x20] sm:$0xff]  ;;  %v47_v13 = vpack.c.bf16 %v7309_v2, %v7304_v1  ;;  %s7276_s7 = smov 48   ;;  %s7277_s28 = smov 32  }
   0x3   :  { %11220 = vst [vmem:[#allocation3_spill] sm:$0xff] %v7309_v2  ;;  %v7319_v5 = vld [vmem:[%s11199_s0 + $0x10] sm:$0xff]  ;;  %v7336_v9 = vld [vmem:[%s11199_s0 + $0x28] sm:$0xff]  ;;  %v6652_v12 = vld [vmem:[%s11198_s1] sm:$0xff] }
   0x4   :  { %11221 = vst [vmem:[#allocation4_spill] sm:$0xff] %v7319_v5  ;;  %v6653_v11 = vld [vmem:[%s11198_s1 + $0x8] sm:$0xff]  ;;  %v7352_v14 = vld [vmem:[%s11199_s0 + $0x30] sm:$0xff]  ;;  %v7357_v15 = vld [vmem:[%s11199_s0 + $0x38] sm:$0xff]  ;;  %v48_v17 = vpack.c.bf16 %v7324_v6, %v7319_v5  ;;  %v49_v21 = vpack.c.bf16 %v7336_v9, %v7331_v8 }
   0x5   :  { %11222 = vst [vmem:[#allocation5_spill] sm:$0xff] %v7324_v6  ;;  %v7367_v18 = vld [vmem:[%s11199_s0 + $0x40] sm:$0xff]  ;;  %v7372_v19 = vld [vmem:[%s11199_s0 + $0x48] sm:$0xff]  ;;  %v7382_v22 = vld [vmem:[%s11199_s0 + $0x50] sm:$0xff]  ;;  %v50_v25 = vpack.c.bf16 %v7357_v15, %v7352_v14 }
   0x6   :  { %11223 = vst [vmem:[#allocation6_spill] sm:$0xff] %v7331_v8  ;;  %109 = vmatpush.bf16.msra.mxu0 %v6654_v3  ;;  %6689 = vmatpush.bf16.msra.mxu1 %v6654_v3  ;;  %v7387_v23 = vld [vmem:[%s11199_s0 + $0x58] sm:$0xff]  ;;  %v7397_v26 = vld [vmem:[%s11199_s0 + $0x60] sm:$0xff]  ;;  %v7402_v27 = vld [vmem:[%s11199_s0 + $0x68] sm:$0xff]  ;;  %v51_v33 = vpack.c.bf16 %v7372_v19, %v7367_v18 }
   0x7   :  { %11224 = vst [vmem:[#allocation7_spill] sm:$0xff] %v7336_v9  ;;  %v53_v29 = vpack.c.bf16 %v7402_v27, %v7397_v26  ;;  %v7411_v30 = vld [vmem:[%s11199_s0 + $0x70] sm:$0xff]  ;;  %v7416_v31 = vld [vmem:[%s11199_s0 + $0x78] sm:$0xff]  ;;  %v52_v35 = vpack.c.bf16 %v7387_v23, %v7382_v22  ;;  %v7433_v36 = vld [vmem:[%s11200_s2] sm:$0xff] }
   0x8   :  { %11225 = vst [vmem:[#allocation8_spill] sm:$0xff] %v7352_v14  ;;  %v54_v34 = vpack.c.bf16 %v7416_v31, %v7411_v30  ;;  %v7446_v42 = vld [vmem:[%s11200_s2 + $0x10] sm:$0xff]  ;;  %v7458_v47 = vld [vmem:[%s11198_s1 + $0x28] sm:$0xff]  ;;  %v7464_v49 = vld [vmem:[%s11200_s2 + $0x20] sm:$0xff] }
   0x9   :  { %11226 = vst [vmem:[#allocation9_spill] sm:$0xff] %v7357_v15  ;;  %v7478_v55 = vld [vmem:[%s11200_s2 + $0x30] sm:$0xff]  ;;  %v7490_v60 = vld [vmem:[%s11198_s1 + $0x20] sm:$0xff] }
   0xa   :  { %110 = vmatpush.bf16.msra.mxu0 %v6653_v11  ;;  %6690 = vmatpush.bf16.msra.mxu1 %v6653_v11  ;;  %11227 = vst [vmem:[#allocation10_spill] sm:$0xff] %v7367_v18  ;;  %v7496_v62 = vld [vmem:[%s11200_s2 + $0x40] sm:$0xff] }
   0xb   :  { %11228 = vst [vmem:[#allocation11_spill] sm:$0xff] %v7372_v19 }
   0xc   :  { %11229 = vst [vmem:[#allocation12_spill] sm:$0xff] %v7382_v22 }
   0xd   :  { %11230 = vst [vmem:[#allocation13_spill] sm:$0xff] %v7387_v23 }
   0xe   :  { %111 = vmatpush.bf16.msra.mxu0 %v6652_v12  ;;  %6691 = vmatpush.bf16.msra.mxu1 %v6652_v12  ;;  %11231 = vst [vmem:[#allocation14_spill] sm:$0xff] %v7397_v26  ;;  %v36_v12 = vld [vmem:[%s11200_s2 + $0x50] sm:$0xff] }
   0xf   :  { %11232 = vst [vmem:[#allocation15_spill] sm:$0xff] %v7402_v27 }
  0x10   :  { %11233 = vst [vmem:[#allocation16_spill] sm:$0xff] %v7411_v30 }
  0x11   :  { %6307 = vmatmul.msk.bf16.vlgmr.msra.gmra.mxu0 %vm79_vm0, %v47_v13  ;;  %11234 = vst [vmem:[#allocation17_spill] sm:$0xff] %v7416_v31  ;;  %6313 = vmatmul.msk.bf16.vlgmr.msra.gmra.mxu1 %vm79_vm0, %v53_v29 }
  0x12   :  { %650 = vmatpush.bf16.msrb.mxu1 %v7458_v47 }
  0x16   :  { %651 = vmatpush.bf16.msrb.mxu1 %v7490_v60 }
  0x21   :  { %6308 = vmatmul.msk.bf16.gmra.mxu0 %vm79_vm0, %v48_v17  ;;  %6314 = vmatmul.msk.bf16.gmra.mxu1 %vm79_vm0, %v54_v34  ;;  %v7520_v34 = vld [vmem:[%s11200_s2 + $0x60] sm:$0xff] }
  0x31   :  { %6309 = vmatmul.msk.bf16.gmra.mxu0 %vm79_vm0, %v49_v21 }
  0x41   :  { %6310 = vmatmul.msk.bf16.gmra.mxu0 %vm79_vm0, %v50_v25 }
  0x51   :  { %6311 = vmatmul.msk.bf16.gmra.mxu0 %vm79_vm0, %v51_v33 }
  0x61   :  { %6312 = vmatmul.msk.bf16.gmra.mxu0 %vm79_vm0, %v52_v35 }
  0x8e   :  { %v113_v37 = vpop.f32.mrf.mxu0 }
  0x8f   :  { %v7436_v38 = vadd.f32 %v113_v37, %v7433_v36 }
  0x91   :  { %v156_v39 = vsel %vm155_vm1, %v7436_v38, 0.0  ;;  %v227_v40 = vmul.f32 %v7436_v38, %v7436_v38 }
  0x92   :  { %157 = vadd.xlane.f32.xlu0 %v156_v39 }
  0x93   :  { %v243_v41 = vsel %vm155_vm1, %v227_v40, 0.0 }
  0x94   :  { %244 = vadd.xlane.f32.xlu1 %v243_v41 }
  0x96   :  { %v115_v43 = vpop.f32.mrf.mxu0 }
  0x97   :  { %v7449_v44 = vadd.f32 %v115_v43, %v7446_v42  ;;  %v38_v43 = vld [vmem:[%s11200_s2 + $0x70] sm:$0xff] }
  0x99   :  { %v159_v45 = vsel %vm155_vm1, %v7449_v44, 0.0  ;;  %v228_v46 = vmul.f32 %v7449_v44, %v7449_v44 }
  0x9a   :  { %160 = vadd.xlane.f32.xlu0 %v159_v45 }
  0x9b   :  { %v246_v48 = vsel %vm155_vm1, %v228_v46, 0.0 }
  0x9c   :  { %247 = vadd.xlane.f32.xlu1 %v246_v48 }
  0x9e   :  { %v118_v50 = vpop.f32.mrf.mxu0 }
  0x9f   :  { %v7468_v51 = vadd.f32 %v118_v50, %v7464_v49 }
  0xa1   :  { %v162_v52 = vsel %vm155_vm1, %v7468_v51, 0.0  ;;  %v229_v53 = vmul.f32 %v7468_v51, %v7468_v51 }
  0xa2   :  { %163 = vadd.xlane.f32.xlu2 %v162_v52 }
  0xa3   :  { %v249_v54 = vsel %vm155_vm1, %v229_v53, 0.0 }
  0xa4   :  { %250 = vadd.xlane.f32.xlu0 %v249_v54 }
  0xa6   :  { %v120_v56 = vpop.f32.mrf.mxu0 }
  0xa7   :  { %v7481_v57 = vadd.f32 %v120_v56, %v7478_v55 }
  0xa9   :  { %v165_v58 = vsel %vm155_vm1, %v7481_v57, 0.0  ;;  %v230_v59 = vmul.f32 %v7481_v57, %v7481_v57 }
  0xaa   :  { %166 = vadd.xlane.f32.xlu2 %v165_v58 }
  0xab   :  { %v252_v61 = vsel %vm155_vm1, %v230_v59, 0.0 }
  0xac   :  { %253 = vadd.xlane.f32.xlu1 %v252_v61  ;;  %v143_v61 = vpop.f32.mrf.mxu1 }
  0xae   :  { %v123_v63 = vpop.f32.mrf.mxu0 }
  0xaf   :  { %v7500_v0 = vadd.f32 %v123_v63, %v7496_v62 }
  0xb1   :  { %v168_v3 = vsel %vm155_vm1, %v7500_v0, 0.0  ;;  %v231_v11 = vmul.f32 %v7500_v0, %v7500_v0 }
  0xb2   :  { %169 = vadd.xlane.f32.xlu0 %v168_v3 }
  0xb3   :  { %v255_v21 = vsel %vm155_vm1, %v231_v11, 0.0  ;;  %v7272_v11 = vmov 32.0  }
  0xb4   :  { %6781 = vrcp.f32 %v7272_v11 }
  0xb6   :  { %v125_v13 = vpop.f32.mrf.mxu0 }
  0xb7   :  { %v7509_v17 = vadd.f32 %v125_v13, %v36_v12 }
  0xb9   :  { %v171_v25 = vsel %vm155_vm1, %v7509_v17, 0.0  ;;  %v232_v29 = vmul.f32 %v7509_v17, %v7509_v17 }
  0xba   :  { %172 = vadd.xlane.f32.xlu1 %v171_v25  ;;  %256 = vadd.xlane.f32.xlu0 %v255_v21 }
  0xbb   :  { %v258_v33 = vsel %vm155_vm1, %v232_v29, 0.0  ;;  %v6782_v29 = vpop.eup %6781 }
  0xbc   :  { %vm209_vm2 = vweird.f32 %v6782_v29 }
  0xbe   :  { %v128_v35 = vpop.f32.mrf.mxu0 }
  0xbf   :  { %v7525_v37 = vadd.f32 %v128_v35, %v7520_v34 }
  0xc1   :  { %v174_v39 = vsel %vm155_vm1, %v7525_v37, 0.0  ;;  %v233_v41 = vmul.f32 %v7525_v37, %v7525_v37 }
  0xc2   :  { %696 = vrot.lane.b32.xlu2 %v7458_v47, %s7271_s15  ;;  %259 = vadd.xlane.f32.xlu1 %v258_v33 }
  0xc3   :  { %v261_v45 = vsel %vm155_vm1, %v233_v41, 0.0 }
  0xc6   :  { %v130_v40 = vpop.f32.mrf.mxu0 }
  0xc7   :  { %v7537_v46 = vadd.f32 %v130_v40, %v38_v43  ;;  %v205_v40 = vmul.f32 32.0, %v6782_v29 }
  0xc9   :  { %v234_v48 = vmul.f32 %v7537_v46, %v7537_v46 }
  0xca   :  { %175 = vadd.xlane.f32.xlu1 %v174_v39 }
  0xcb   :  { %v264_v52 = vsel %vm155_vm1, %v234_v48, 0.0  ;;  %v206_v48 = vsub.f32 1.0, %v205_v40 }
  0xce   :  { %694 = vrot.lane.b32.xlu0 %v7490_v60, %s7271_s15  ;;  %v133_v50 = vpop.f32.mrf.mxu0 }
  0xcf   :  { %v7543_v53 = vadd.f32 %v133_v50, %v7433_v36  ;;  %v177_v36 = vsel %vm155_vm1, %v7537_v46, 0.0 }
  0xd1   :  { %v235_v54 = vmul.f32 %v7543_v53, %v7543_v53 }
  0xd2   :  { %262 = vadd.xlane.f32.xlu1 %v261_v45 }
  0xd3   :  { %v267_v58 = vsel %vm155_vm1, %v235_v54, 0.0 }
  0xd6   :  { %v135_v56 = vpop.f32.mrf.mxu0 }
  0xd7   :  { %v7549_v59 = vadd.f32 %v135_v56, %v7446_v42  ;;  %v145_v42 = vpop.f32.mrf.mxu1  ;;  %v207_v56 = vmul.f32 %v6782_v29, %v206_v48 }
  0xd8   :  { %v7573_v54 = vadd.f32 %v145_v42, %v36_v12 }
  0xd9   :  { %v183_v3 = vsel %vm155_vm1, %v7549_v59, 0.0  ;;  %v236_v13 = vmul.f32 %v7549_v59, %v7549_v59 }
  0xda   :  { %265 = vadd.xlane.f32.xlu1 %v264_v52 }
  0xdb   :  { %v270_v25 = vsel %vm155_vm1, %v236_v13, 0.0 }
  0xde   :  { %v138_v63 = vpop.f32.mrf.mxu0 }
  0xdf   :  { %v7558_v21 = vadd.f32 %v138_v63, %v7464_v49  ;;  %v180_v49 = vsel %vm155_vm1, %v7543_v53, 0.0  ;;  %v148_v52 = vpop.f32.mrf.mxu1  ;;  %v195_v63 = vsel %vm155_vm1, %v7573_v54, 0.0 }
  0xe0   :  { %v7586_v12 = vadd.f32 %v148_v52, %v7520_v34 }
  0xe1   :  { %v186_v33 = vsel %vm155_vm1, %v7558_v21, 0.0  ;;  %v237_v41 = vmul.f32 %v7558_v21, %v7558_v21 }
  0xe2   :  { %268 = vadd.xlane.f32.xlu1 %v267_v58  ;;  %v7578_v58 = vadd.f32 %v143_v61, %v7496_v62  ;;  %v240_v61 = vmul.f32 %v7573_v54, %v7573_v54  ;;  %v241_v52 = vmul.f32 %v7586_v12, %v7586_v12 }
  0xe3   :  { %v273_v50 = vsel %vm155_vm1, %v237_v41, 0.0 }
  0xe4   :  { %v192_v11 = vsel %vm155_vm1, %v7578_v58, 0.0  ;;  %v239_v62 = vmul.f32 %v7578_v58, %v7578_v58 }
  0xe6   :  { %v140_v35 = vpop.f32.mrf.mxu0  ;;  %v279_v41 = vsel %vm155_vm1, %v239_v62, 0.0  ;;  %v285_v62 = vsel %vm155_vm1, %v241_v52, 0.0 }
  0xe7   :  { %v7564_v39 = vadd.f32 %v140_v35, %v7478_v55  ;;  %v150_v13 = vpop.f32.mrf.mxu1 }
  0xe8   :  { %v7596_v35 = vadd.f32 %v150_v13, %v38_v43 }
  0xe9   :  { %v189_v45 = vsel %vm155_vm1, %v7564_v39, 0.0  ;;  %v238_v55 = vmul.f32 %v7564_v39, %v7564_v39 }
  0xea   :  { %184 = vadd.xlane.f32.xlu1 %v183_v3  ;;  %11235 = vst [vmem:[#allocation18_spill] sm:$0xff] %v7596_v35  ;;  %v242_v48 = vmul.f32 %v7596_v35, %v7596_v35 }
  0xeb   :  { %178 = vadd.xlane.f32.xlu2 %v177_v36  ;;  %v276_v3 = vsel %vm155_vm1, %v238_v55, 0.0  ;;  %v208_v36 = vadd.f32 %v6782_v29, %v207_v56 }
  0xec   :  { %v288_v56 = vsel %vm155_vm1, %v242_v48, 0.0 }
  0xed   :  { %v7588_v42 = vsel %vm209_vm2, %v6782_v29, %v208_v36  ;;  %v201_v36 = vsel %vm155_vm1, %v7596_v35, 0.0 }
  0xf2   :  { %271 = vadd.xlane.f32.xlu1 %v270_v25 }
  0xf3   :  { %187 = vadd.xlane.f32.xlu2 %v186_v33  ;;  %v198_v33 = vsel %vm155_vm1, %v7586_v12, 0.0 }
  0xf8   :  { %181 = vadd.xlane.f32.xlu0 %v180_v49 }
  0xfa   :  { %190 = vadd.xlane.f32.xlu1 %v189_v45  ;;  %v282_v45 = vsel %vm155_vm1, %v240_v61, 0.0 }
  0xfb   :  { %274 = vadd.xlane.f32.xlu2 %v273_v50 }
 0x100   :  { %196 = vadd.xlane.f32.xlu0 %v195_v63 }
 0x102   :  { %277 = vadd.xlane.f32.xlu1 %v276_v3 }
 0x103   :  { %193 = vadd.xlane.f32.xlu2 %v192_v11 }
 0x105   :  { %v158_v25 = vpop.xlane.xlu0 %157 }
 0x106   :  { %v7599_v34 = vmul.f32 %v7588_v42, %v158_v25 }
 0x107   :  { %v245_v40 = vpop.xlane.xlu1 %244 }
 0x108   :  { %v307_v29 = vmul.f32 %v7599_v34, %v7599_v34  ;;  %v291_v49 = vmul.f32 %v245_v40, %v7588_v42  ;;  %199 = vadd.xlane.f32.xlu0 %v198_v33 }
 0x10a   :  { %v323_v50 = vsub.f32 %v291_v49, %v307_v29  ;;  %280 = vadd.xlane.f32.xlu1 %v279_v41 }
 0x10b   :  { %283 = vadd.xlane.f32.xlu2 %v282_v45 }
 0x10c   :  { %v339_v43 = vadd.f32 1e-06, %v323_v50 }
 0x10d   :  { %v161_v55 = vpop.xlane.xlu0 %160 }
 0x10e   :  { %6783 = vrsqrt.f32 %v339_v43  ;;  %v212_v63 = vmul.f32 %v7588_v42, %v161_v55  ;;  %vm361_vm4 = vweird.f32 %v339_v43 }
 0x10f   :  { %v248_v3 = vpop.xlane.xlu1 %247 }
 0x110   :  { %v308_v11 = vmul.f32 %v212_v63, %v212_v63  ;;  %v292_v13 = vmul.f32 %v248_v3, %v7588_v42  ;;  %289 = vadd.xlane.f32.xlu0 %v288_v56 }
 0x112   :  { %v324_v61 = vsub.f32 %v292_v13, %v308_v11  ;;  %202 = vadd.xlane.f32.xlu1 %v201_v36 }
 0x113   :  { %286 = vadd.xlane.f32.xlu2 %v285_v62 }
 0x114   :  { %v6784_v25 = vpop.eup %6783  ;;  %v340_v33 = vadd.f32 1e-06, %v324_v61 }
 0x115   :  { %v356_v40 = vmul.f32 %v6784_v25, %v339_v43  ;;  %v164_v41 = vpop.xlane.xlu2 %163  ;;  %vm362_vm3 = vweird.f32 %v6784_v25 }
 0x116   :  { %6785 = vrsqrt.f32 %v340_v33  ;;  %v7617_v29 = vmul.f32 %v7588_v42, %v164_v41  ;;  %vm363_vm5 = vmor %vm361_vm4, %vm362_vm3  ;;  %vm371_vm7 = vweird.f32 %v340_v33 }
 0x117   :  { %v357_v49 = vmul.f32 %v6784_v25, %v356_v40  ;;  %v251_v45 = vpop.xlane.xlu0 %250  ;;  %v7628_v40 = vld [vmem:[%s11200_s2 + $0x86] ss:$0 sm:$0xff] }
 0x118   :  { %v309_v48 = vmul.f32 %v7617_v29, %v7617_v29  ;;  %v293_v50 = vmul.f32 %v251_v45, %v7588_v42 }
 0x119   :  { %v358_v52 = vmul.f32 0.5, %v357_v49 }
 0x11a   :  { %v325_v55 = vsub.f32 %v293_v50, %v309_v48 }
 0x11b   :  { %v359_v56 = vsub.f32 1.5, %v358_v52 }
 0x11c   :  { %v6786_v3 = vpop.eup %6785  ;;  %v341_v36 = vadd.f32 1e-06, %v325_v55 }
 0x11d   :  { %v360_v11 = vmul.f32 %v6784_v25, %v359_v56  ;;  %v366_v13 = vmul.f32 %v6786_v3, %v340_v33  ;;  %v167_v62 = vpop.xlane.xlu2 %166  ;;  %vm372_vm6 = vweird.f32 %v6786_v3 }
 0x11e   :  { %6787 = vrsqrt.f32 %v341_v36  ;;  %v7623_v61 = vmul.f32 %v7588_v42, %v167_v62  ;;  %vm373_vm8 = vmor %vm371_vm7, %vm372_vm6  ;;  %vm381_vm10 = vweird.f32 %v341_v36 }
 0x11f   :  { %v364_v41 = vsel %vm363_vm5, %v6784_v25, %v360_v11  ;;  %v367_v49 = vmul.f32 %v6786_v3, %v366_v13  ;;  %v254_v45 = vpop.xlane.xlu1 %253  ;;  %v7638_v13 = vld [vmem:[%s11200_s2 + $0x87] ss:$0 sm:$0xff] }
 0x120   :  { %v310_v48 = vmul.f32 %v7623_v61, %v7623_v61  ;;  %v294_v43 = vmul.f32 %v254_v45, %v7588_v42  ;;  %v515_v52 = vmul.f32 %v364_v41, %v7628_v40 }
 0x121   :  { %v368_v50 = vmul.f32 0.5, %v367_v49 }
 0x122   :  { %v326_v55 = vsub.f32 %v294_v43, %v310_v48  ;;  %v547_v11 = vmul.f32 %v515_v52, %v7599_v34 }
 0x123   :  { %v369_v56 = vsub.f32 1.5, %v368_v50 }
 0x124   :  { %v6788_v62 = vpop.eup %6787  ;;  %v342_v32 = vadd.f32 1e-06, %v326_v55  ;;  %v563_v43 = vsub.f32 %v7638_v13, %v547_v11 }
 0x125   :  { %v370_v28 = vmul.f32 %v6786_v3, %v369_v56  ;;  %v376_v24 = vmul.f32 %v6788_v62, %v341_v36  ;;  %v697_v20 = vpop.permute.xlu2 %696  ;;  %v170_v25 = vpop.xlane.xlu0 %169  ;;  %vm382_vm9 = vweird.f32 %v6788_v62 }
 0x126   :  { %6789 = vrsqrt.f32 %v342_v32  ;;  %706 = vmatpush.bf16.msra.mxu2 %v697_v20  ;;  %v7642_v48 = vmul.f32 %v7588_v42, %v170_v25  ;;  %vm383_vm11 = vmor %vm381_vm10, %vm382_vm9  ;;  %vm391_vm13 = vweird.f32 %v342_v32 }
 0x127   :  { %v374_v41 = vsel %vm373_vm8, %v6786_v3, %v370_v28  ;;  %v377_v49 = vmul.f32 %v6788_v62, %v376_v24  ;;  %v531_v24 = vmul.f32 %v515_v52, %v7436_v38 }
 0x128   :  { %v516_v45 = vmul.f32 %v374_v41, %v7628_v40  ;;  %v311_v55 = vmul.f32 %v7642_v48, %v7642_v48 }
 0x129   :  { %v378_v33 = vmul.f32 0.5, %v377_v49  ;;  %v579_v41 = vadd.f32 %v563_v43, %v531_v24 }
 0x12a   :  { %v548_v50 = vmul.f32 %v516_v45, %v212_v63  ;;  %v532_v28 = vmul.f32 %v516_v45, %v7449_v44 }
 0x12b   :  { %v379_v34 = vsub.f32 1.5, %v378_v33  ;;  %752 = vrot.lane.b32.xlu1 %v7458_v47, %s7273_s22  ;;  %750 = vrot.lane.b32.xlu2 %v7490_v60, %s7273_s22 }
 0x12c   :  { %v6790_v20 = vpop.eup %6789  ;;  %v564_v3 = vsub.f32 %v7638_v13, %v548_v50 }
 0x12d   :  { %v380_v63 = vmul.f32 %v6788_v62, %v379_v34  ;;  %v386_v56 = vmul.f32 %v6790_v20, %v342_v32  ;;  %v173_v25 = vpop.xlane.xlu1 %172  ;;  %v257_v11 = vpop.xlane.xlu0 %256  ;;  %vm392_vm12 = vweird.f32 %v6790_v20 }
 0x12e   :  { %v580_v47 = vadd.f32 %v564_v3, %v532_v28  ;;  %v295_v60 = vmul.f32 %v257_v11, %v7588_v42  ;;  %v7657_v45 = vmul.f32 %v7588_v42, %v173_v25  ;;  %vm393_vm14 = vmor %vm391_vm13, %vm392_vm12 }
 0x12f   :  { %v384_v49 = vsel %vm383_vm11, %v6788_v62, %v380_v63  ;;  %v387_v52 = vmul.f32 %v6790_v20, %v386_v56 }
 0x130   :  { %v327_v33 = vsub.f32 %v295_v60, %v311_v55  ;;  %v7659_v50 = vpack.c.bf16 %v580_v47, %v579_v41  ;;  %v517_v36 = vmul.f32 %v384_v49, %v7628_v40  ;;  %v312_v24 = vmul.f32 %v7657_v45, %v7657_v45 }
 0x131   :  { %v388_v10 = vmul.f32 0.5, %v387_v52 }
 0x132   :  { %v343_v34 = vadd.f32 1e-06, %v327_v33  ;;  %6323 = vmatmul.msk.bf16.vlgmr.msrb.gmra.mxu1 %vm155_vm1, %v7659_v50  ;;  %v549_v3 = vmul.f32 %v517_v36, %v7617_v29  ;;  %v533_v49 = vmul.f32 %v517_v36, %v7468_v51 }
 0x133   :  { %v389_v43 = vsub.f32 1.5, %v388_v10 }
 0x134   :  { %6791 = vrsqrt.f32 %v343_v34  ;;  %v565_v10 = vsub.f32 %v7638_v13, %v549_v3  ;;  %vm401_vm15 = vweird.f32 %v343_v34 }
 0x135   :  { %v390_v62 = vmul.f32 %v6790_v20, %v389_v43  ;;  %v260_v28 = vpop.xlane.xlu1 %259 }
 0x136   :  { %v296_v55 = vmul.f32 %v260_v28, %v7588_v42 }
 0x137   :  { %v394_v63 = vsel %vm393_vm14, %v6790_v20, %v390_v62  ;;  %v581_v20 = vadd.f32 %v565_v10, %v533_v49 }
 0x138   :  { %v518_v56 = vmul.f32 %v394_v63, %v7628_v40  ;;  %v328_v25 = vsub.f32 %v296_v55, %v312_v24 }
 0x13a   :  { %v6792_v11 = vpop.eup %6791  ;;  %v550_v41 = vmul.f32 %v518_v56, %v7623_v61  ;;  %v344_v47 = vadd.f32 1e-06, %v328_v25  ;;  %v534_v32 = vmul.f32 %v518_v56, %v7481_v57 }
 0x13b   :  { %v396_v60 = vmul.f32 %v6792_v11, %v343_v34  ;;  %vm402_vm2 = vweird.f32 %v6792_v11 }
 0x13c   :  { %v566_v29 = vsub.f32 %v7638_v13, %v550_v41  ;;  %6793 = vrsqrt.f32 %v344_v47  ;;  %vm403_vm3 = vmor %vm401_vm15, %vm402_vm2  ;;  %vm411_vm5 = vweird.f32 %v344_v47 }
 0x13d   :  { %v397_v52 = vmul.f32 %v6792_v11, %v396_v60  ;;  %v176_v33 = vpop.xlane.xlu1 %175 }
 0x13e   :  { %v582_v43 = vadd.f32 %v566_v29, %v534_v32  ;;  %v7677_v36 = vmul.f32 %v7588_v42, %v176_v33 }
 0x13f   :  { %v398_v62 = vmul.f32 0.5, %v397_v52 }
 0x140   :  { %v695_v24 = vpop.permute.xlu0 %694  ;;  %v7674_v28 = vpack.c.bf16 %v582_v43, %v581_v20  ;;  %v313_v34 = vmul.f32 %v7677_v36, %v7677_v36 }
 0x141   :  { %v399_v3 = vsub.f32 1.5, %v398_v62  ;;  %707 = vmatpush.bf16.msra.mxu2 %v695_v24 }
 0x142   :  { %v6794_v61 = vpop.eup %6793  ;;  %6324 = vmatmul.msk.bf16.gmra.mxu1 %vm155_vm1, %v7674_v28 }
 0x143   :  { %v400_v55 = vmul.f32 %v6792_v11, %v399_v3  ;;  %v406_v63 = vmul.f32 %v6794_v61, %v344_v47  ;;  %vm412_vm4 = vweird.f32 %v6794_v61 }
 0x144   :  { %6331 = vmatmul.msk.bf16.vlgmr.msra.gmra.mxu2 %vm155_vm1, %v7659_v50  ;;  %vm413_vm6 = vmor %vm411_vm5, %vm412_vm4 }
 0x145   :  { %v404_v56 = vsel %vm403_vm3, %v6792_v11, %v400_v55  ;;  %v407_v25 = vmul.f32 %v6794_v61, %v406_v63  ;;  %v263_v10 = vpop.xlane.xlu1 %262 }
 0x146   :  { %v297_v41 = vmul.f32 %v263_v10, %v7588_v42  ;;  %v519_v49 = vmul.f32 %v404_v56, %v7628_v40 }
 0x147   :  { %v408_v60 = vmul.f32 0.5, %v407_v25 }
 0x148   :  { %v329_v29 = vsub.f32 %v297_v41, %v313_v34  ;;  %v551_v33 = vmul.f32 %v519_v49, %v7642_v48  ;;  %v535_v55 = vmul.f32 %v519_v49, %v7500_v0 }
 0x149   :  { %v409_v32 = vsub.f32 1.5, %v408_v60 }
 0x14a   :  { %v345_v62 = vadd.f32 1e-06, %v329_v29  ;;  %v567_v24 = vsub.f32 %v7638_v13, %v551_v33 }
 0x14b   :  { %v410_v52 = vmul.f32 %v6794_v61, %v409_v32 }
 0x14c   :  { %6795 = vrsqrt.f32 %v345_v62  ;;  %v583_v47 = vadd.f32 %v567_v24, %v535_v55  ;;  %vm421_vm7 = vweird.f32 %v345_v62 }
 0x14d   :  { %v414_v20 = vsel %vm413_vm6, %v6794_v61, %v410_v52  ;;  %v266_v11 = vpop.xlane.xlu1 %265 }
 0x14e   :  { %v520_v43 = vmul.f32 %v414_v20, %v7628_v40  ;;  %v298_v29 = vmul.f32 %v266_v11, %v7588_v42 }
 0x150   :  { %v552_v3 = vmul.f32 %v520_v43, %v7657_v45  ;;  %v536_v63 = vmul.f32 %v520_v43, %v7509_v17 }
 0x152   :  { %v568_v56 = vsub.f32 %v7638_v13, %v552_v3  ;;  %v6796_v10 = vpop.eup %6795 }
 0x153   :  { %v416_v45 = vmul.f32 %v6796_v10, %v345_v62  ;;  %vm422_vm8 = vweird.f32 %v6796_v10 }
 0x154   :  { %v584_v25 = vadd.f32 %v568_v56, %v536_v63  ;;  %6332 = vmatmul.msk.bf16.gmra.mxu2 %vm155_vm1, %v7674_v28  ;;  %vm423_vm9 = vmor %vm421_vm7, %vm422_vm8 }
 0x155   :  { %v269_v48 = vpop.xlane.xlu1 %268  ;;  %v417_v60 = vmul.f32 %v6796_v10, %v416_v45 }
 0x156   :  { %v7696_v61 = vpack.c.bf16 %v584_v25, %v583_v47 }
 0x157   :  { %v418_v33 = vmul.f32 0.5, %v417_v60 }
 0x158   :  { %6325 = vmatmul.msk.bf16.gmra.mxu1 %vm155_vm1, %v7696_v61 }
 0x159   :  { %v419_v56 = vsub.f32 1.5, %v418_v33 }
 0x15b   :  { %v420_v45 = vmul.f32 %v6796_v10, %v419_v56 }
 0x15d   :  { %v185_v34 = vpop.xlane.xlu1 %184 }
 0x15e   :  { %v179_v41 = vpop.xlane.xlu2 %178  ;;  %v7704_v32 = vmul.f32 %v7588_v42, %v185_v34 }
 0x15f   :  { %v7701_v49 = vmul.f32 %v7588_v42, %v179_v41  ;;  %v299_v41 = vmul.f32 %v269_v48, %v7588_v42 }
 0x160   :  { %v316_v43 = vmul.f32 %v7704_v32, %v7704_v32 }
 0x161   :  { %v314_v52 = vmul.f32 %v7701_v49, %v7701_v49 }
 0x163   :  { %v330_v20 = vsub.f32 %v298_v29, %v314_v52 }
 0x164   :  { %6333 = vmatmul.msk.bf16.gmra.mxu2 %vm155_vm1, %v7696_v61 }
 0x165   :  { %v346_v24 = vadd.f32 1e-06, %v330_v20  ;;  %v272_v3 = vpop.xlane.xlu1 %271 }
 0x166   :  { %v300_v55 = vmul.f32 %v272_v3, %v7588_v42  ;;  %v188_v63 = vpop.xlane.xlu2 %187  ;;  %v424_v3 = vsel %vm423_vm9, %v6796_v10, %v420_v45 }
 0x167   :  { %6797 = vrsqrt.f32 %v346_v24  ;;  %v7715_v11 = vmul.f32 %v7588_v42, %v188_v63  ;;  %v521_v16 = vmul.f32 %v424_v3, %v7628_v40  ;;  %vm431_vm11 = vweird.f32 %v346_v24 }
 0x168   :  { %v332_v47 = vsub.f32 %v300_v55, %v316_v43 }
 0x169   :  { %v317_v52 = vmul.f32 %v7715_v11, %v7715_v11 }
 0x16a   :  { %v7717_v25 = vadd.f32 1e-06, %v332_v47 }
 0x16b   :  { %v182_v34 = vpop.xlane.xlu0 %181 }
 0x16c   :  { %6799 = vrsqrt.f32 %v7717_v25  ;;  %v7722_v60 = vmul.f32 %v7588_v42, %v182_v34  ;;  %vm451_vm13 = vweird.f32 %v7717_v25 }
 0x16d   :  { %v6798_v29 = vpop.eup %6797  ;;  %v191_v33 = vpop.xlane.xlu1 %190 }
 0x16e   :  { %v426_v20 = vmul.f32 %v6798_v29, %v346_v24  ;;  %v315_v43 = vmul.f32 %v7722_v60, %v7722_v60  ;;  %v275_v62 = vpop.xlane.xlu2 %274  ;;  %v7730_v56 = vmul.f32 %v7588_v42, %v191_v33  ;;  %vm432_vm10 = vweird.f32 %v6798_v29 }
 0x16f   :  { %v301_v55 = vmul.f32 %v275_v62, %v7588_v42  ;;  %vm433_vm12 = vmor %vm431_vm11, %vm432_vm10 }
 0x170   :  { %v427_v48 = vmul.f32 %v6798_v29, %v426_v20  ;;  %v331_v63 = vsub.f32 %v299_v41, %v315_v43  ;;  %v318_v41 = vmul.f32 %v7730_v56, %v7730_v56  ;;  %v553_v20 = vmul.f32 %v521_v16, %v7677_v36 }
 0x171   :  { %v333_v47 = vsub.f32 %v301_v55, %v317_v52 }
 0x172   :  { %v7732_v34 = vpop.eup %6799  ;;  %v428_v7 = vmul.f32 0.5, %v427_v48  ;;  %v347_v4 = vadd.f32 1e-06, %v331_v63  ;;  %v569_v36 = vsub.f32 %v7638_v13, %v553_v20 }
 0x173   :  { %v446_v30 = vmul.f32 %v7732_v34, %v7717_v25  ;;  %v7737_v31 = vadd.f32 1e-06, %v333_v47  ;;  %v197_v10 = vpop.xlane.xlu0 %196  ;;  %vm452_vm14 = vweird.f32 %v7732_v34 }
 0x174   :  { %v429_v45 = vsub.f32 1.5, %v428_v7  ;;  %6801 = vrsqrt.f32 %v347_v4  ;;  %v7750_v26 = vmul.f32 %v7588_v42, %v197_v10  ;;  %vm7769_vm15 = vmor %vm451_vm13, %vm452_vm14  ;;  %vm441_vm2 = vweird.f32 %v347_v4 }
 0x175   :  { %v447_v52 = vmul.f32 %v7732_v34, %v446_v30  ;;  %6803 = vrsqrt.f32 %v7737_v31  ;;  %v278_v33 = vpop.xlane.xlu1 %277  ;;  %vm461_vm7 = vweird.f32 %v7737_v31 }
 0x176   :  { %v430_v43 = vmul.f32 %v6798_v29, %v429_v45  ;;  %v302_v62 = vmul.f32 %v278_v33, %v7588_v42  ;;  %v194_v3 = vpop.xlane.xlu2 %193  ;;  %v537_v45 = vmul.f32 %v521_v16, %v7525_v37 }
 0x177   :  { %v448_v55 = vmul.f32 0.5, %v447_v52  ;;  %v7746_v63 = vmul.f32 %v7588_v42, %v194_v3  ;;  %v320_v3 = vmul.f32 %v7750_v26, %v7750_v26 }
 0x178   :  { %v434_v7 = vsel %vm433_vm12, %v6798_v29, %v430_v43  ;;  %v334_v48 = vsub.f32 %v302_v62, %v318_v41 }
 0x179   :  { %v522_v47 = vmul.f32 %v434_v7, %v7628_v40  ;;  %v449_v30 = vsub.f32 1.5, %v448_v55  ;;  %v319_v25 = vmul.f32 %v7746_v63, %v7746_v63  ;;  %v585_v7 = vadd.f32 %v569_v36, %v537_v45 }
 0x17a   :  { %v6802_v27 = vpop.eup %6801  ;;  %v7755_v24 = vadd.f32 1e-06, %v334_v48 }
 0x17b   :  { %v7757_v29 = vpop.eup %6803  ;;  %v554_v41 = vmul.f32 %v522_v47, %v7701_v49  ;;  %v436_v52 = vmul.f32 %v6802_v27, %v347_v4  ;;  %v200_v33 = vpop.xlane.xlu0 %199  ;;  %v450_v10 = vmul.f32 %v7732_v34, %v449_v30  ;;  %v538_v20 = vmul.f32 %v522_v47, %v7537_v46 }
 0x17c   :  { %v456_v43 = vmul.f32 %v7757_v29, %v7737_v31  ;;  %6805 = vrsqrt.f32 %v7755_v24  ;;  %vm442_vm3 = vweird.f32 %v6802_v27  ;;  %v7784_v45 = vmul.f32 %v7588_v42, %v200_v33 }
 0x17d   :  { %v570_v62 = vsub.f32 %v7638_v13, %v554_v41  ;;  %v437_v49 = vmul.f32 %v6802_v27, %v436_v52  ;;  %v281_v55 = vpop.xlane.xlu1 %280  ;;  %v454_v41 = vsel %vm7769_vm15, %v7732_v34, %v450_v10  ;;  %vm7787_vm4 = vmor %vm441_vm2, %vm442_vm3  ;;  %vm471_vm5 = vweird.f32 %v7755_v24 }
 0x17e   :  { %v303_v48 = vmul.f32 %v281_v55, %v7588_v42  ;;  %v284_v30 = vpop.xlane.xlu2 %283  ;;  %v457_v52 = vmul.f32 %v7757_v29, %v456_v43  ;;  %v524_v34 = vmul.f32 %v454_v41, %v7628_v40  ;;  %vm462_vm8 = vweird.f32 %v7757_v29 }
 0x17f   :  { %v586_v22 = vadd.f32 %v570_v62, %v538_v20  ;;  %v438_v23 = vmul.f32 0.5, %v437_v49  ;;  %v304_v47 = vmul.f32 %v284_v30, %v7588_v42  ;;  %vm463_vm10 = vmor %vm461_vm7, %vm462_vm8 }
 0x180   :  { %v335_v18 = vsub.f32 %v303_v48, %v319_v25  ;;  %v556_v48 = vmul.f32 %v524_v34, %v7704_v32 }
 0x181   :  { %v7781_v19 = vpack.c.bf16 %v586_v22, %v585_v7  ;;  %v439_v8 = vsub.f32 1.5, %v438_v23  ;;  %v336_v36 = vsub.f32 %v304_v47, %v320_v3  ;;  %v458_v23 = vmul.f32 0.5, %v457_v52 }
 0x182   :  { %v6806_v55 = vpop.eup %6805  ;;  %v7791_v62 = vadd.f32 1e-06, %v335_v18 }
 0x183   :  { %v440_v10 = vmul.f32 %v6802_v27, %v439_v8  ;;  %v466_v43 = vmul.f32 %v6806_v55, %v7755_v24  ;;  %v7795_v22 = vadd.f32 1e-06, %v336_v36  ;;  %6326 = vmatmul.msk.bf16.gmra.mxu1 %vm155_vm1, %v7781_v19  ;;  %6334 = vmatmul.msk.bf16.gmra.mxu2 %vm155_vm1, %v7781_v19  ;;  %v290_v4 = vpop.xlane.xlu0 %289  ;;  %v321_v8 = vmul.f32 %v7784_v45, %v7784_v45 }
 0x184   :  { %6807 = vrsqrt.f32 %v7791_v62  ;;  %v306_v7 = vmul.f32 %v290_v4, %v7588_v42  ;;  %v459_v41 = vsub.f32 1.5, %v458_v23  ;;  %vm472_vm6 = vweird.f32 %v6806_v55 }
 0x185   :  { %v444_v18 = vsel %vm7787_vm4, %v6802_v27, %v440_v10  ;;  %v467_v33 = vmul.f32 %v6806_v55, %v466_v43  ;;  %6809 = vrsqrt.f32 %v7795_v22  ;;  %v203_v25 = vpop.xlane.xlu1 %202  ;;  %vm7827_vm9 = vmor %vm471_vm5, %vm472_vm6  ;;  %vm481_vm11 = vweird.f32 %v7791_v62 }
 0x186   :  { %v523_v16 = vmul.f32 %v444_v18, %v7628_v40  ;;  %v7809_v49 = vmul.f32 %v7588_v42, %v203_v25  ;;  %v287_v3 = vpop.xlane.xlu2 %286  ;;  %v572_v18 = vsub.f32 %v7638_v13, %v556_v48  ;;  %v460_v31 = vmul.f32 %v7757_v29, %v459_v41 }
 0x187   :  { %v468_v30 = vmul.f32 0.5, %v467_v33  ;;  %v305_v27 = vmul.f32 %v287_v3, %v7588_v42  ;;  %vm491_vm13 = vweird.f32 %v7795_v22 }
 0x188   :  { %v555_v47 = vmul.f32 %v523_v16, %v7722_v60  ;;  %v322_v52 = vmul.f32 %v7809_v49, %v7809_v49  ;;  %v539_v60 = vmul.f32 %v523_v16, %v7543_v53 }
 0x189   :  { %v469_v36 = vsub.f32 1.5, %v468_v30  ;;  %v337_v20 = vsub.f32 %v305_v27, %v321_v8 }
 0x18a   :  { %v7818_v10 = vpop.eup %6807  ;;  %v571_v43 = vsub.f32 %v7638_v13, %v555_v47  ;;  %v338_v32 = vsub.f32 %v306_v7, %v322_v52  ;;  %v540_v7 = vmul.f32 %v524_v34, %v7549_v59  ;;  %v464_v52 = vsel %vm463_vm10, %v7757_v29, %v460_v31 }
 0x18b   :  { %v6810_v4 = vpop.eup %6809  ;;  %v470_v23 = vmul.f32 %v6806_v55, %v469_v36  ;;  %v476_v8 = vmul.f32 %v7818_v10, %v7791_v62  ;;  %v7835_v3 = vadd.f32 1e-06, %v337_v20  ;;  %vm482_vm12 = vweird.f32 %v7818_v10 }
 0x18c   :  { %v486_v25 = vmul.f32 %v6810_v4, %v7795_v22  ;;  %v587_v48 = vadd.f32 %v571_v43, %v539_v60  ;;  %v7839_v24 = vadd.f32 1e-06, %v338_v32  ;;  %v588_v47 = vadd.f32 %v572_v18, %v540_v7  ;;  %vm7861_vm15 = vmor %vm481_vm11, %vm482_vm12 }
 0x18d   :  { %v477_v16 = vmul.f32 %v7818_v10, %v476_v8  ;;  %v474_v30 = vsel %vm7827_vm9, %v6806_v55, %v470_v23  ;;  %6811 = vrsqrt.f32 %v7835_v3  ;;  %v525_v43 = vmul.f32 %v464_v52, %v7628_v40 }
 0x18e   :  { %v487_v27 = vmul.f32 %v6810_v4, %v486_v25  ;;  %v7845_v41 = vpack.c.bf16 %v588_v47, %v587_v48  ;;  %v526_v36 = vmul.f32 %v474_v30, %v7628_v40  ;;  %6813 = vrsqrt.f32 %v7839_v24 }
 0x18f   :  { %v478_v34 = vmul.f32 0.5, %v477_v16  ;;  %v557_v23 = vmul.f32 %v525_v43, %v7715_v11  ;;  %vm492_vm14 = vweird.f32 %v6810_v4  ;;  %v541_v22 = vmul.f32 %v525_v43, %v7558_v21 }
 0x190   :  { %v488_v20 = vmul.f32 0.5, %v487_v27  ;;  %v558_v29 = vmul.f32 %v526_v36, %v7730_v56  ;;  %v542_v7 = vmul.f32 %v526_v36, %v7564_v39  ;;  %vm493_vm2 = vmor %vm491_vm13, %vm492_vm14  ;;  %vm501_vm3 = vweird.f32 %v7835_v3 }
 0x191   :  { %v479_v55 = vsub.f32 1.5, %v478_v34  ;;  %v573_v62 = vsub.f32 %v7638_v13, %v557_v23  ;;  %vm511_vm5 = vweird.f32 %v7839_v24  ;;  %vm813_vm9 = vcmask 130048  }
 0x192   :  { %v489_v18 = vsub.f32 1.5, %v488_v20  ;;  %v574_v33 = vsub.f32 %v7638_v13, %v558_v29  ;;  %v751_v20 = vpop.permute.xlu2 %750 }
 0x193   :  { %6327 = vmatmul.msk.bf16.gmra.mxu1 %vm155_vm1, %v7845_v41  ;;  %6335 = vmatmul.msk.bf16.gmra.mxu2 %vm155_vm1, %v7845_v41  ;;  %v6812_v32 = vpop.eup %6811  ;;  %v480_v8 = vmul.f32 %v7818_v10, %v479_v55  ;;  %v589_v34 = vadd.f32 %v573_v62, %v541_v22 }
 0x194   :  { %v6814_v60 = vpop.eup %6813  ;;  %v490_v56 = vmul.f32 %v6810_v4, %v489_v18  ;;  %v496_v25 = vmul.f32 %v6812_v32, %v7835_v3  ;;  %v590_v48 = vadd.f32 %v574_v33, %v542_v7  ;;  %vm502_vm4 = vweird.f32 %v6812_v32 }
 0x195   :  { %v506_v11 = vmul.f32 %v6814_v60, %v7839_v24  ;;  %v484_v16 = vsel %vm7861_vm15, %v7818_v10, %v480_v8  ;;  %vm512_vm6 = vweird.f32 %v6814_v60  ;;  %vm503_vm7 = vmor %vm501_vm3, %vm502_vm4 }
 0x196   :  { %v494_v27 = vsel %vm493_vm2, %v6810_v4, %v490_v56  ;;  %v497_v47 = vmul.f32 %v6812_v32, %v496_v25  ;;  %v527_v29 = vmul.f32 %v484_v16, %v7628_v40  ;;  %v7875_v55 = vpack.c.bf16 %v590_v48, %v589_v34  ;;  %vm513_vm8 = vmor %vm511_vm5, %vm512_vm6 }
 0x197   :  { %v507_v52 = vmul.f32 %v6814_v60, %v506_v11  ;;  %v528_v36 = vmul.f32 %v494_v27, %v7628_v40 }
 0x198   :  { %v498_v43 = vmul.f32 0.5, %v497_v47  ;;  %v559_v10 = vmul.f32 %v527_v29, %v7746_v63 }
 0x199   :  { %v508_v18 = vmul.f32 0.5, %v507_v52  ;;  %v560_v4 = vmul.f32 %v528_v36, %v7750_v26  ;;  %v543_v26 = vmul.f32 %v527_v29, %v7578_v58  ;;  %v544_v25 = vmul.f32 %v528_v36, %v7573_v54 }
 0x19a   :  { %v499_v23 = vsub.f32 1.5, %v498_v43  ;;  %v575_v8 = vsub.f32 %v7638_v13, %v559_v10  ;;  %v7928_v10 = vld [vmem:[%s11200_s2 + $0x82] ss:$0 sm:$0xff] }
 0x19b   :  { %v509_v33 = vsub.f32 1.5, %v508_v18  ;;  %v576_v31 = vsub.f32 %v7638_v13, %v560_v4 }
 0x19c   :  { %v500_v56 = vmul.f32 %v6812_v32, %v499_v23  ;;  %v591_v11 = vadd.f32 %v575_v8, %v543_v26 }
 0x19d   :  { %v753_v30 = vpop.permute.xlu1 %752  ;;  %v510_v63 = vmul.f32 %v6814_v60, %v509_v33  ;;  %v592_v62 = vadd.f32 %v576_v31, %v544_v25 }
 0x19e   :  { %6692 = vmatpush.bf16.msra.mxu3 %v753_v30  ;;  %762 = vmatpush.bf16.msrb.mxu2 %v753_v30  ;;  %v504_v7 = vsel %vm503_vm7, %v6812_v32, %v500_v56 }
 0x19f   :  { %v514_v3 = vsel %vm513_vm8, %v6814_v60, %v510_v63  ;;  %v529_v22 = vmul.f32 %v504_v7, %v7628_v40  ;;  %v7893_v48 = vpack.c.bf16 %v592_v62, %v591_v11 }
 0x1a0   :  { %v530_v24 = vmul.f32 %v514_v3, %v7628_v40 }
 0x1a1   :  { %v561_v16 = vmul.f32 %v529_v22, %v7784_v45  ;;  %v545_v40 = vmul.f32 %v529_v22, %v7586_v12 }
 0x1a2   :  { %6693 = vmatpush.bf16.msra.mxu3 %v751_v20  ;;  %763 = vmatpush.bf16.msrb.mxu2 %v751_v20  ;;  %v562_v30 = vmul.f32 %v530_v24, %v7809_v49  ;;  %v546_v27 = vmul.f32 %v530_v24, %v7596_v35 }
 0x1a3   :  { %6328 = vmatmul.msk.bf16.gmra.mxu1 %vm155_vm1, %v7875_v55  ;;  %6336 = vmatmul.msk.bf16.gmra.mxu2 %vm155_vm1, %v7875_v55  ;;  %v577_v32 = vsub.f32 %v7638_v13, %v561_v16 }
 0x1a4   :  { %v578_v60 = vsub.f32 %v7638_v13, %v562_v30 }
 0x1a5   :  { %6340 = vmatmul.msk.bf16.vlgmr.msra.gmra.mxu3 %vm155_vm1, %v7674_v28  ;;  %v593_v47 = vadd.f32 %v577_v32, %v545_v40 }
 0x1a6   :  { %v594_v52 = vadd.f32 %v578_v60, %v546_v27 }
 0x1a8   :  { %v7907_v34 = vpack.c.bf16 %v594_v52, %v593_v47 }
 0x1af   :  { %v653_v18 = vpop.f32.mrf.mxu1 }
 0x1b3   :  { %6329 = vmatmul.msk.bf16.gmra.mxu1 %vm155_vm1, %v7893_v48  ;;  %6337 = vmatmul.msk.bf16.gmra.mxu2 %vm155_vm1, %v7893_v48 }
 0x1b5   :  { %6341 = vmatmul.msk.bf16.gmra.mxu3 %vm155_vm1, %v7696_v61 }
 0x1b7   :  { %v655_v31 = vpop.f32.mrf.mxu1 }
 0x1bf   :  { %v658_v3 = vpop.f32.mrf.mxu1 }
 0x1c3   :  { %6330 = vmatmul.msk.bf16.gmra.mxu1 %vm155_vm1, %v7907_v34  ;;  %6338 = vmatmul.msk.bf16.gmra.mxu2 %vm155_vm1, %v7907_v34 }
 0x1c5   :  { %6342 = vmatmul.msk.bf16.gmra.mxu3 %vm155_vm1, %v7781_v19 }
 0x1c7   :  { %v709_v45 = vpop.f32.mrf.mxu2  ;;  %v660_v40 = vpop.f32.mrf.mxu1 }
 0x1c8   :  { %v710_v60 = vadd.f32 %v709_v45, %v7928_v10 }
 0x1cf   :  { %v711_v13 = vpop.f32.mrf.mxu2 }
 0x1d0   :  { %v712_v30 = vadd.f32 %v711_v13, %v7928_v10 }
 0x1d2   :  { %v809_v47 = vpack.c.bf16 %v712_v30, %v710_v60 }
 0x1d3   :  { %6339 = vmatmul.msk.bf16.vlgmr.msrb.gmra.mxu2 %vm155_vm1, %v7659_v50 }
 0x1d5   :  { %6343 = vmatmul.msk.bf16.gmra.mxu3 %vm155_vm1, %v7845_v41  ;;  %v663_v13 = vpop.f32.mrf.mxu1 }
 0x1d7   :  { %v714_v49 = vpop.f32.mrf.mxu2 }
 0x1d8   :  { %v715_v22 = vadd.f32 %v714_v49, %v7928_v10  ;;  %v7949_v49 = vld [vmem:[%s11200_s2 + $0x80] ss:$0 sm:$0xff] }
 0x1df   :  { %v716_v20 = vpop.f32.mrf.mxu2 }
 0x1e0   :  { %v717_v62 = vadd.f32 %v716_v20, %v7928_v10  ;;  %v827_v20 = vsel %vm813_vm9, %v809_v47, 0 }
 0x1e2   :  { %v810_v16 = vpack.c.bf16 %v717_v62, %v715_v22 }
 0x1e4   :  { %v830_v32 = vsel %vm813_vm9, %v810_v16, 0 }
 0x1e5   :  { %6344 = vmatmul.msk.bf16.gmra.mxu3 %vm155_vm1, %v7875_v55 }
 0x1e7   :  { %v719_v29 = vpop.f32.mrf.mxu2 }
 0x1e8   :  { %v720_v26 = vadd.f32 %v719_v29, %v7928_v10  ;;  %v656_v29 = vadd.f32 %v655_v31, %v7949_v49 }
 0x1ef   :  { %v721_v36 = vpop.f32.mrf.mxu2 }
 0x1f0   :  { %v722_v56 = vadd.f32 %v721_v36, %v7928_v10 }
 0x1f2   :  { %v811_v11 = vpack.c.bf16 %v722_v56, %v720_v26  ;;  %v661_v56 = vadd.f32 %v660_v40, %v7949_v49  ;;  %v659_v26 = vadd.f32 %v658_v3, %v7949_v49  ;;  %v7964_v3 = vld [vmem:[%s11200_s2 + $0x84] ss:$0 sm:$0xff] }
 0x1f4   :  { %v833_v7 = vsel %vm813_vm9, %v811_v11, 0 }
 0x1f5   :  { %6345 = vmatmul.msk.bf16.gmra.mxu3 %vm155_vm1, %v7893_v48 }
 0x205   :  { %6346 = vmatmul.msk.bf16.gmra.mxu3 %vm155_vm1, %v7907_v34 }
 0x206   :  { %v724_v43 = vpop.f32.mrf.mxu2 }
 0x207   :  { %v725_v23 = vadd.f32 %v724_v43, %v7928_v10  ;;  %v654_v43 = vadd.f32 %v653_v18, %v7949_v49 }
 0x209   :  { %v805_v45 = vpack.c.bf16 %v656_v29, %v654_v43 }
 0x20e   :  { %v726_v4 = vpop.f32.mrf.mxu2 }
 0x20f   :  { %v727_v33 = vadd.f32 %v726_v4, %v7928_v10 }
 0x211   :  { %v812_v8 = vpack.c.bf16 %v727_v33, %v725_v23  ;;  %v665_v33 = vpop.f32.mrf.mxu1 }
 0x212   :  { %v666_v16 = vadd.f32 %v665_v33, %v7949_v49 }
 0x213   :  { %v836_v63 = vsel %vm813_vm9, %v812_v8, 0 }
 0x214   :  { %842 = vmatpush.bf16.xpose.msra.mxu1 %v836_v63 }
 0x216   :  { %v7935_v25 = vpop.f32.mrf.mxu2 }
 0x219   :  { %v668_v11 = vpop.f32.mrf.mxu1 }
 0x21c   :  { %843 = vmatpush.bf16.xpose.msra.mxu1 %v833_v7  ;;  %v806_v7 = vpack.c.bf16 %v661_v56, %v659_v26 }
 0x21e   :  { %v7940_v24 = vpop.f32.mrf.mxu2 }
 0x221   :  { %v670_v18 = vpop.f32.mrf.mxu1 }
 0x224   :  { %844 = vmatpush.bf16.xpose.msra.mxu1 %v830_v32  ;;  %v664_v32 = vadd.f32 %v663_v13, %v7949_v49 }
 0x226   :  { %v734_v27 = vpop.f32.mrf.mxu2 }
 0x228   :  { %v770_v52 = vpop.f32.mrf.mxu3 }
 0x22c   :  { %845 = vmatpush.bf16.xpose.msra.mxu1 %v827_v20  ;;  %v807_v20 = vpack.c.bf16 %v666_v16, %v664_v32 }
 0x22e   :  { %v736_v36 = vpop.f32.mrf.mxu2 }
 0x230   :  { %v772_v4 = vpop.f32.mrf.mxu3 }
 0x233   :  { %6347 = vmatmul.msk.bf16.vlgmr.msra.gmra.mxu1 %vm813_vm9, %v805_v45 }
 0x236   :  { %v739_v23 = vpop.f32.mrf.mxu2 }
 0x238   :  { %v775_v8 = vpop.f32.mrf.mxu3 }
 0x239   :  { %v776_v16 = vadd.f32 %v775_v8, %v7964_v3  ;;  %v735_v8 = vadd.f32 %v734_v27, %v7928_v10 }
 0x23e   :  { %v741_v63 = vpop.f32.mrf.mxu2 }
 0x23f   :  { %v742_v33 = vadd.f32 %v741_v63, %v7928_v10 }
 0x240   :  { %v777_v62 = vpop.f32.mrf.mxu3 }
 0x241   :  { %v778_v13 = vadd.f32 %v777_v62, %v7964_v3  ;;  %v771_v62 = vadd.f32 %v770_v52, %v7964_v3 }
 0x243   :  { %6348 = vmatmul.msk.bf16.gmra.mxu1 %vm813_vm9, %v806_v7  ;;  %v673_v7 = vpop.f32.mrf.mxu1  ;;  %v969_v32 = vpack.c.bf16 %v778_v13, %v776_v16 }
 0x246   :  { %v744_v31 = vpop.f32.mrf.mxu2 }
 0x247   :  { %v745_v60 = vadd.f32 %v744_v31, %v7928_v10  ;;  %v740_v31 = vadd.f32 %v739_v23, %v7928_v10  ;;  %v671_v23 = vadd.f32 %v670_v18, %v7949_v49 }
 0x248   :  { %v780_v22 = vpop.f32.mrf.mxu3 }
 0x249   :  { %v781_v29 = vadd.f32 %v780_v22, %v7964_v3 }
 0x24e   :  { %v746_v30 = vpop.f32.mrf.mxu2 }
 0x24f   :  { %v747_v40 = vadd.f32 %v746_v30, %v7928_v10  ;;  %v773_v30 = vadd.f32 %v772_v4, %v7964_v3 }
 0x250   :  { %v782_v47 = vpop.f32.mrf.mxu3 }
 0x251   :  { %v783_v43 = vadd.f32 %v782_v47, %v7964_v3  ;;  %v1019_v45 = vpack.c.bf16 %v747_v40, %v745_v60  ;;  %v1018_v60 = vpack.c.bf16 %v742_v33, %v740_v31  ;;  %v737_v40 = vadd.f32 %v736_v36, %v7928_v10 }
 0x252   :  { %v968_v47 = vpack.c.bf16 %v773_v30, %v771_v62 }
 0x253   :  { %v970_v56 = vpack.c.bf16 %v783_v43, %v781_v29  ;;  %6349 = vmatmul.msk.bf16.gmra.mxu1 %vm813_vm9, %v807_v20  ;;  %v1042_v26 = vsel %vm813_vm9, %v1019_v45, 0  ;;  %v1039_v20 = vsel %vm813_vm9, %v1018_v60, 0  ;;  %v675_v29 = vpop.f32.mrf.mxu1  ;;  %v669_v43 = vadd.f32 %v668_v11, %v7949_v49 }
 0x254   :  { %1048 = vmatpush.bf16.xpose.msrb.mxu3 %v1042_v26  ;;  %v1017_v33 = vpack.c.bf16 %v737_v40, %v735_v8  ;;  %v732_v26 = vadd.f32 %v7940_v24, %v7928_v10  ;;  %v730_v11 = vadd.f32 %v7935_v25, %v7928_v10  ;;  %v676_v30 = vadd.f32 %v675_v29, %v7949_v49 }
 0x255   :  { %987 = vmatpush.bf16.msra.mxu2 %v970_v56  ;;  %v808_v36 = vpack.c.bf16 %v671_v23, %v669_v43 }
 0x256   :  { %v765_v22 = vpop.f32.mrf.mxu2  ;;  %v1036_v27 = vsel %vm813_vm9, %v1017_v33, 0  ;;  %v1016_v18 = vpack.c.bf16 %v732_v26, %v730_v11 }
 0x257   :  { %v766_v45 = vadd.f32 %v765_v22, %v7964_v3 }
 0x258   :  { %v7975_v63 = vpop.f32.mrf.mxu3  ;;  %v1033_v22 = vsel %vm813_vm9, %v1016_v18, 0 }
 0x259   :  { %988 = vmatpush.bf16.msra.mxu2 %v969_v32  ;;  %v674_v32 = vadd.f32 %v673_v7, %v7949_v49 }
 0x25b   :  { %v678_v31 = vpop.f32.mrf.mxu1  ;;  %v1012_v60 = vpack.c.bf16 %v676_v30, %v674_v32 }
 0x25c   :  { %1049 = vmatpush.bf16.xpose.msrb.mxu3 %v1039_v20  ;;  %v679_v10 = vadd.f32 %v678_v31, %v7949_v49 }
 0x25d   :  { %989 = vmatpush.bf16.msra.mxu2 %v968_v47 }
 0x25e   :  { %v767_v4 = vpop.f32.mrf.mxu2 }
 0x25f   :  { %v768_v52 = vadd.f32 %v767_v4, %v7964_v3 }
 0x260   :  { %v787_v13 = vpop.f32.mrf.mxu3 }
 0x261   :  { %v967_v56 = vpack.c.bf16 %v768_v52, %v766_v45  ;;  %v788_v30 = vadd.f32 %v787_v13, %v7964_v3 }
 0x263   :  { %6350 = vmatmul.msk.bf16.gmra.mxu1 %vm813_vm9, %v808_v36  ;;  %990 = vmatpush.bf16.msra.mxu2 %v967_v56  ;;  %v680_v62 = vpop.f32.mrf.mxu1 }
 0x264   :  { %1050 = vmatpush.bf16.xpose.msrb.mxu3 %v1036_v27  ;;  %v681_v20 = vadd.f32 %v680_v62, %v7949_v49  ;;  %v786_v62 = vadd.f32 %v7975_v63, %v7964_v3 }
 0x266   :  { %v1013_v23 = vpack.c.bf16 %v681_v20, %v679_v10 }
 0x268   :  { %v790_v16 = vpop.f32.mrf.mxu3 }
 0x269   :  { %v791_v31 = vadd.f32 %v790_v16, %v7964_v3 }
 0x26b   :  { %v683_v47 = vpop.f32.mrf.mxu1 }
 0x26c   :  { %1051 = vmatpush.bf16.xpose.msrb.mxu3 %v1033_v22  ;;  %v684_v7 = vadd.f32 %v683_v47, %v7949_v49 }
 0x270   :  { %v792_v24 = vpop.f32.mrf.mxu3 }
 0x271   :  { %v793_v11 = vadd.f32 %v792_v24, %v7964_v3 }
 0x273   :  { %6355 = vmatmul.msk.bf16.vlgmr.msrb.gmra.mxu3 %vm813_vm9, %v1012_v60  ;;  %v685_v8 = vpop.f32.mrf.mxu1  ;;  %v1174_v32 = vpack.c.bf16 %v793_v11, %v791_v31 }
 0x274   :  { %v686_v29 = vadd.f32 %v685_v8, %v7949_v49 }
 0x276   :  { %v1014_v52 = vpack.c.bf16 %v686_v29, %v684_v7 }
 0x278   :  { %v795_v40 = vpop.f32.mrf.mxu3 }
 0x279   :  { %v796_v27 = vadd.f32 %v795_v40, %v7964_v3  ;;  %v1173_v40 = vpack.c.bf16 %v788_v30, %v786_v62 }
 0x27b   :  { %v688_v43 = vpop.f32.mrf.mxu1 }
 0x27c   :  { %v689_v47 = vadd.f32 %v688_v43, %v7949_v49 }
 0x280   :  { %v797_v25 = vpop.f32.mrf.mxu3 }
 0x281   :  { %v798_v56 = vadd.f32 %v797_v25, %v7964_v3 }
 0x283   :  { %6356 = vmatmul.msk.bf16.gmra.mxu3 %vm813_vm9, %v1013_v23  ;;  %v1175_v18 = vpack.c.bf16 %v798_v56, %v796_v27  ;;  %v690_v22 = vpop.f32.mrf.mxu1 }
 0x284   :  { %v691_v60 = vadd.f32 %v690_v22, %v7949_v49 }
 0x286   :  { %v1015_v20 = vpack.c.bf16 %v691_v60, %v689_v47 }
 0x288   :  { %v800_v4 = vpop.f32.mrf.mxu3 }
 0x289   :  { %v801_v33 = vadd.f32 %v800_v4, %v7964_v3 }
 0x290   :  { %v802_v45 = vpop.f32.mrf.mxu3 }
 0x291   :  { %v803_v36 = vadd.f32 %v802_v45, %v7964_v3 }
 0x293   :  { %6357 = vmatmul.msk.bf16.gmra.mxu3 %vm813_vm9, %v1014_v52  ;;  %v1176_v26 = vpack.c.bf16 %v803_v36, %v801_v33 }
 0x295   :  { %1193 = vmatpush.bf16.msrb.mxu0 %v1176_v26 }
 0x299   :  { %1194 = vmatpush.bf16.msrb.mxu0 %v1175_v18 }
 0x29d   :  { %1195 = vmatpush.bf16.msrb.mxu0 %v1174_v32 }
 0x2a1   :  { %1196 = vmatpush.bf16.msrb.mxu0 %v1173_v40 }
 0x2a3   :  { %6358 = vmatmul.msk.bf16.gmra.mxu3 %vm813_vm9, %v1015_v20 }
 0x2b0   :  { %v847_v24 = vpop.f32.mrf.mxu1 }
 0x2b1   :  { %v867_v16 = vmul.f32 0.25, %v847_v24 }
 0x2b3   :  { %v875_v10 = vsel %vm79_vm0, %v867_v16, -inf }
 0x2b4   :  { %876 = vmax.xlane.f32.xlu0 %v875_v10 }
 0x2b8   :  { %v849_v13 = vpop.f32.mrf.mxu1 }
 0x2b9   :  { %v868_v25 = vmul.f32 0.25, %v849_v13 }
 0x2bb   :  { %v878_v23 = vsel %vm79_vm0, %v868_v25, -inf }
 0x2bc   :  { %879 = vmax.xlane.f32.xlu0 %v878_v23 }
 0x2c0   :  { %v852_v8 = vpop.f32.mrf.mxu1 }
 0x2c1   :  { %v869_v3 = vmul.f32 0.25, %v852_v8 }
 0x2c3   :  { %v881_v63 = vsel %vm79_vm0, %v869_v3, -inf }
 0x2c4   :  { %882 = vmax.xlane.f32.xlu0 %v881_v63 }
 0x2c8   :  { %v854_v49 = vpop.f32.mrf.mxu1 }
 0x2c9   :  { %v870_v4 = vmul.f32 0.25, %v854_v49 }
 0x2cb   :  { %v884_v29 = vsel %vm79_vm0, %v870_v4, -inf }
 0x2cc   :  { %885 = vmax.xlane.f32.xlu1 %v884_v29 }
 0x2d0   :  { %v857_v7 = vpop.f32.mrf.mxu1 }
 0x2d1   :  { %v871_v43 = vmul.f32 0.25, %v857_v7 }
 0x2d3   :  { %v887_v45 = vsel %vm79_vm0, %v871_v43, -inf }
 0x2d4   :  { %888 = vmax.xlane.f32.xlu2 %v887_v45 }
 0x2d8   :  { %v859_v52 = vpop.f32.mrf.mxu1 }
 0x2d9   :  { %v872_v33 = vmul.f32 0.25, %v859_v52 }
 0x2db   :  { %v890_v36 = vsel %vm79_vm0, %v872_v33, -inf }
 0x2dc   :  { %891 = vmax.xlane.f32.xlu0 %v890_v36 }
 0x2e0   :  { %v862_v56 = vpop.f32.mrf.mxu1 }
 0x2e1   :  { %v873_v26 = vmul.f32 0.25, %v862_v56 }
 0x2e3   :  { %v893_v27 = vsel %vm79_vm0, %v873_v26, -inf }
 0x2e4   :  { %894 = vmax.xlane.f32.xlu0 %v893_v27 }
 0x2e8   :  { %v864_v11 = vpop.f32.mrf.mxu1 }
 0x2e9   :  { %v874_v18 = vmul.f32 0.25, %v864_v11 }
 0x2eb   :  { %v896_v31 = vsel %vm79_vm0, %v874_v18, -inf }
 0x2ec   :  { %897 = vmax.xlane.f32.xlu0 %v896_v31 }
 0x327   :  { %v877_v22 = vpop.xlane.xlu0 %876 }
 0x328   :  { %v899_v30 = vsub.f32 %v867_v16, %v877_v22 }
 0x32a   :  { %v907_v32 = vmul.f32 1.442695, %v899_v30 }
 0x32c   :  { %6815 = vpow2.f32 %v907_v32 }
 0x32f   :  { %v880_v60 = vpop.xlane.xlu0 %879 }
 0x330   :  { %v900_v62 = vsub.f32 %v868_v25, %v880_v60 }
 0x332   :  { %v8021_v47 = vpop.eup %6815  ;;  %v909_v40 = vmul.f32 1.442695, %v900_v62 }
 0x333   :  { %v923_v20 = vsel %vm79_vm0, %v8021_v47, 0.0 }
 0x334   :  { %6817 = vpow2.f32 %v909_v40  ;;  %924 = vadd.xlane.f32.xlu0 %v923_v20 }
 0x337   :  { %v883_v24 = vpop.xlane.xlu0 %882 }
 0x338   :  { %v901_v10 = vsub.f32 %v869_v3, %v883_v24 }
 0x33a   :  { %v8025_v13 = vpop.eup %6817  ;;  %v911_v23 = vmul.f32 1.442695, %v901_v10  ;;  %v1053_v10 = vpop.f32.mrf.mxu3 }
 0x33b   :  { %v926_v16 = vsel %vm79_vm0, %v8025_v13, 0.0 }
 0x33c   :  { %6819 = vpow2.f32 %v911_v23  ;;  %927 = vadd.xlane.f32.xlu0 %v926_v16 }
 0x33f   :  { %v886_v8 = vpop.xlane.xlu1 %885 }
 0x340   :  { %v902_v25 = vsub.f32 %v870_v4, %v886_v8 }
 0x342   :  { %v8029_v63 = vpop.eup %6819  ;;  %v913_v49 = vmul.f32 1.442695, %v902_v25  ;;  %v1055_v16 = vpop.f32.mrf.mxu3  ;;  %v8063_v25 = vld [vmem:[%s11198_s1 + $0x20] sm:$0xff] }
 0x343   :  { %v929_v29 = vsel %vm79_vm0, %v8029_v63, 0.0 }
 0x344   :  { %6821 = vpow2.f32 %v913_v49  ;;  %930 = vadd.xlane.f32.xlu2 %v929_v29 }
 0x347   :  { %v889_v7 = vpop.xlane.xlu2 %888 }
 0x348   :  { %v903_v3 = vsub.f32 %v871_v43, %v889_v7  ;;  %v8071_v7 = vmul.f32 0.25, %v1053_v10 }
 0x34a   :  { %v8033_v45 = vpop.eup %6821  ;;  %v915_v52 = vmul.f32 1.442695, %v903_v3  ;;  %v1058_v8 = vpop.f32.mrf.mxu3 }
 0x34b   :  { %v932_v36 = vsel %vm79_vm0, %v8033_v45, 0.0 }
 0x34c   :  { %6823 = vpow2.f32 %v915_v52  ;;  %933 = vadd.xlane.f32.xlu1 %v932_v36  ;;  %v1081_v52 = vsel %vm79_vm0, %v8071_v7, -inf }
 0x34f   :  { %v892_v56 = vpop.xlane.xlu0 %891 }
 0x350   :  { %v904_v4 = vsub.f32 %v872_v33, %v892_v56  ;;  %v8077_v56 = vmul.f32 0.25, %v1055_v16 }
 0x352   :  { %v8037_v27 = vpop.eup %6823  ;;  %v917_v11 = vmul.f32 1.442695, %v904_v4  ;;  %v1060_v49 = vpop.f32.mrf.mxu3 }
 0x353   :  { %v935_v31 = vsel %vm79_vm0, %v8037_v27, 0.0  ;;  %v8075_v36 = vmul.f32 0.25, %v1060_v49 }
 0x354   :  { %6825 = vpow2.f32 %v917_v11  ;;  %936 = vadd.xlane.f32.xlu0 %v935_v31  ;;  %v1084_v31 = vsel %vm79_vm0, %v8077_v56, -inf }
 0x355   :  { %v1090_v4 = vsel %vm79_vm0, %v8075_v36, -inf }
 0x357   :  { %v895_v22 = vpop.xlane.xlu0 %894 }
 0x358   :  { %v905_v43 = vsub.f32 %v873_v26, %v895_v22 }
 0x35a   :  { %v8041_v30 = vpop.eup %6825  ;;  %v919_v32 = vmul.f32 1.442695, %v905_v43  ;;  %v1063_v29 = vpop.f32.mrf.mxu3 }
 0x35b   :  { %v938_v60 = vsel %vm79_vm0, %v8041_v30, 0.0 }
 0x35c   :  { %6827 = vpow2.f32 %v919_v32  ;;  %939 = vadd.xlane.f32.xlu2 %v938_v60  ;;  %v8085_v32 = vmul.f32 0.25, %v1063_v29 }
 0x35f   :  { %v898_v62 = vpop.xlane.xlu0 %897 }
 0x360   :  { %v906_v33 = vsub.f32 %v874_v18, %v898_v62  ;;  %v8056_v18 = vld [vmem:[%s11198_s1 + $0x28] sm:$0xff]  ;;  %v8089_v62 = vmul.f32 0.25, %v1058_v8 }
 0x362   :  { %v8045_v40 = vpop.eup %6827  ;;  %v921_v20 = vmul.f32 1.442695, %v906_v33  ;;  %v1065_v3 = vpop.f32.mrf.mxu3  ;;  %v1093_v33 = vsel %vm79_vm0, %v8085_v32, -inf  ;;  %v1087_v10 = vsel %vm79_vm0, %v8089_v62, -inf }
 0x363   :  { %v941_v24 = vsel %vm79_vm0, %v8045_v40, 0.0  ;;  %v8083_v43 = vmul.f32 0.25, %v1065_v3 }
 0x364   :  { %6829 = vpow2.f32 %v921_v20  ;;  %942 = vadd.xlane.f32.xlu1 %v941_v24 }
 0x365   :  { %v1096_v60 = vsel %vm79_vm0, %v8083_v43, -inf }
 0x36a   :  { %v8049_v26 = vpop.eup %6829  ;;  %v1068_v11 = vpop.f32.mrf.mxu3 }
 0x36b   :  { %v944_v23 = vsel %vm79_vm0, %v8049_v26, 0.0  ;;  %v8097_v49 = vmul.f32 0.25, %v1068_v11 }
 0x36c   :  { %945 = vadd.xlane.f32.xlu0 %v944_v23 }
 0x372   :  { %v1070_v20 = vpop.f32.mrf.mxu3 }
 0x373   :  { %v8095_v23 = vmul.f32 0.25, %v1070_v20 }
 0x374   :  { %1287 = vrot.lane.b32.xlu2 %v8056_v18, %s7274_s30 }
 0x375   :  { %v1102_v29 = vsel %vm79_vm0, %v8095_v23, -inf }
 0x37d   :  { %1285 = vrot.lane.b32.xlu1 %v8063_v25, %s7274_s30 }
 0x380   :  { %1231 = vrot.lane.b32.xlu0 %v8056_v18, %s7275_s6 }
 0x388   :  { %1229 = vrot.lane.b32.xlu0 %v8063_v25, %s7275_s6 }
 0x39d   :  { %1082 = vmax.xlane.f32.xlu2 %v1081_v52 }
 0x3a5   :  { %1091 = vmax.xlane.f32.xlu2 %v1090_v4 }
 0x3a7   :  { %1085 = vmax.xlane.f32.xlu1 %v1084_v31  ;;  %v925_v22 = vpop.xlane.xlu0 %924  ;;  %v1099_v31 = vsel %vm79_vm0, %v8097_v49, -inf }
 0x3a8   :  { %6831 = vrcp.f32 %v925_v22 }
 0x3ad   :  { %1097 = vmax.xlane.f32.xlu2 %v1096_v60 }
 0x3ae   :  { %v6832_v16 = vpop.eup %6831 }
 0x3af   :  { %1094 = vmax.xlane.f32.xlu1 %v1093_v33  ;;  %v928_v24 = vpop.xlane.xlu0 %927  ;;  %v955_v3 = vmul.f32 %v6832_v16, %v8021_v47 }
 0x3b0   :  { %6833 = vrcp.f32 %v928_v24 }
 0x3b2   :  { %1088 = vmax.xlane.f32.xlu0 %v1087_v10 }
 0x3b6   :  { %v6834_v8 = vpop.eup %6833 }
 0x3b7   :  { %v956_v52 = vmul.f32 %v6834_v8, %v8025_v13  ;;  %1103 = vmax.xlane.f32.xlu1 %v1102_v29  ;;  %v931_v22 = vpop.xlane.xlu2 %930 }
 0x3b8   :  { %6835 = vrcp.f32 %v931_v22 }
 0x3b9   :  { %v963_v4 = vpack.c.bf16 %v956_v52, %v955_v3 }
 0x3ba   :  { %1100 = vmax.xlane.f32.xlu0 %v1099_v31 }
 0x3bb   :  { %6351 = vmatmul.msk.bf16.vlgmr.msra.gmra.mxu2 %vm79_vm0, %v963_v4 }
 0x3be   :  { %v6836_v60 = vpop.eup %6835 }
 0x3bf   :  { %v934_v11 = vpop.xlane.xlu1 %933  ;;  %v957_v20 = vmul.f32 %v6836_v60, %v8029_v63 }
 0x3c0   :  { %6837 = vrcp.f32 %v934_v11 }
 0x3c6   :  { %v6838_v33 = vpop.eup %6837 }
 0x3c7   :  { %v958_v47 = vmul.f32 %v6838_v33, %v8033_v45  ;;  %v937_v13 = vpop.xlane.xlu0 %936 }
 0x3c8   :  { %6839 = vrcp.f32 %v937_v13 }
 0x3c9   :  { %v964_v24 = vpack.c.bf16 %v958_v47, %v957_v20 }
 0x3cb   :  { %6352 = vmatmul.msk.bf16.gmra.mxu2 %vm79_vm0, %v964_v24 }
 0x3ce   :  { %v6840_v16 = vpop.eup %6839 }
 0x3cf   :  { %v940_v10 = vpop.xlane.xlu2 %939  ;;  %v959_v3 = vmul.f32 %v6840_v16, %v8037_v27 }
 0x3d0   :  { %6841 = vrcp.f32 %v940_v10 }
 0x3d6   :  { %v6842_v8 = vpop.eup %6841 }
 0x3d7   :  { %v1288_v29 = vpop.permute.xlu2 %1287  ;;  %v960_v52 = vmul.f32 %v6842_v8, %v8041_v30  ;;  %v943_v31 = vpop.xlane.xlu1 %942 }
 0x3d8   :  { %1297 = vmatpush.bf16.msrb.mxu2 %v1288_v29  ;;  %6843 = vrcp.f32 %v943_v31 }
 0x3d9   :  { %v965_v4 = vpack.c.bf16 %v960_v52, %v959_v3 }
 0x3db   :  { %6353 = vmatmul.msk.bf16.gmra.mxu2 %vm79_vm0, %v965_v4 }
 0x3de   :  { %v6844_v45 = vpop.eup %6843 }
 0x3df   :  { %v946_v63 = vpop.xlane.xlu0 %945  ;;  %v961_v11 = vmul.f32 %v6844_v45, %v8045_v40 }
 0x3e0   :  { %6845 = vrcp.f32 %v946_v63 }
 0x3e6   :  { %v6846_v22 = vpop.eup %6845 }
 0x3e7   :  { %v962_v60 = vmul.f32 %v6846_v22, %v8049_v26 }
 0x3e9   :  { %v966_v33 = vpack.c.bf16 %v962_v60, %v961_v11 }
 0x3eb   :  { %6354 = vmatmul.msk.bf16.gmra.mxu2 %vm79_vm0, %v966_v33 }
 0x3ef   :  { %v1286_v27 = vpop.permute.xlu1 %1285 }
 0x3f0   :  { %1298 = vmatpush.bf16.msrb.mxu2 %v1286_v27 }
 0x3f2   :  { %v1232_v30 = vpop.permute.xlu0 %1231 }
 0x3f3   :  { %1241 = vmatpush.bf16.msrb.mxu1 %v1232_v30 }
 0x3fa   :  { %v1230_v20 = vpop.permute.xlu0 %1229 }
 0x3fb   :  { %1242 = vmatpush.bf16.msrb.mxu1 %v1230_v20  ;;  %6371 = vmatmul.msk.bf16.vlgmr.msrb.gmra.mxu2 %vm155_vm1, %v7659_v50 }
 0x3fe   :  { %6363 = vmatmul.msk.bf16.vlgmr.msrb.gmra.mxu1 %vm155_vm1, %v7659_v50 }
 0x40b   :  { %6372 = vmatmul.msk.bf16.gmra.mxu2 %vm155_vm1, %v7674_v28 }
 0x40e   :  { %6364 = vmatmul.msk.bf16.gmra.mxu1 %vm155_vm1, %v7674_v28 }
 0x410   :  { %v1083_v40 = vpop.xlane.xlu2 %1082 }
 0x411   :  { %v1105_v26 = vsub.f32 %v8071_v7, %v1083_v40 }
 0x413   :  { %v1113_v47 = vmul.f32 1.442695, %v1105_v26 }
 0x415   :  { %6847 = vpow2.f32 %v1113_v47 }
 0x418   :  { %v1092_v24 = vpop.xlane.xlu2 %1091 }
 0x419   :  { %v1108_v13 = vsub.f32 %v8075_v36, %v1092_v24 }
 0x41a   :  { %v1086_v10 = vpop.xlane.xlu1 %1085 }
 0x41b   :  { %v8125_v16 = vpop.eup %6847  ;;  %v1119_v8 = vmul.f32 1.442695, %v1108_v13  ;;  %v1106_v29 = vsub.f32 %v8077_v56, %v1086_v10  ;;  %6373 = vmatmul.msk.bf16.gmra.mxu2 %vm155_vm1, %v7696_v61 }
 0x41c   :  { %v1129_v3 = vsel %vm79_vm0, %v8125_v16, 0.0 }
 0x41d   :  { %6849 = vpow2.f32 %v1119_v8  ;;  %v1115_v52 = vmul.f32 1.442695, %v1106_v29  ;;  %1130 = vadd.xlane.f32.xlu2 %v1129_v3 }
 0x41e   :  { %6365 = vmatmul.msk.bf16.gmra.mxu1 %vm155_vm1, %v7696_v61 }
 0x41f   :  { %6851 = vpow2.f32 %v1115_v52 }
 0x420   :  { %v1098_v63 = vpop.xlane.xlu2 %1097 }
 0x421   :  { %v1110_v33 = vsub.f32 %v8083_v43, %v1098_v63 }
 0x422   :  { %v1095_v7 = vpop.xlane.xlu1 %1094 }
 0x423   :  { %v8134_v36 = vpop.eup %6849  ;;  %v1109_v4 = vsub.f32 %v8085_v32, %v1095_v7  ;;  %v1123_v20 = vmul.f32 1.442695, %v1110_v33 }
 0x424   :  { %v1138_v56 = vsel %vm79_vm0, %v8134_v36, 0.0 }
 0x425   :  { %v8139_v31 = vpop.eup %6851  ;;  %v1121_v45 = vmul.f32 1.442695, %v1109_v4  ;;  %1139 = vadd.xlane.f32.xlu2 %v1138_v56  ;;  %v1089_v22 = vpop.xlane.xlu0 %1088 }
 0x426   :  { %v1107_v11 = vsub.f32 %v8089_v62, %v1089_v22  ;;  %v1132_v60 = vsel %vm79_vm0, %v8139_v31, 0.0 }
 0x427   :  { %6853 = vpow2.f32 %v1121_v45  ;;  %1133 = vadd.xlane.f32.xlu0 %v1132_v60 }
 0x428   :  { %v1117_v27 = vmul.f32 1.442695, %v1107_v11 }
 0x42a   :  { %6855 = vpow2.f32 %v1117_v27  ;;  %v1104_v32 = vpop.xlane.xlu1 %1103 }
 0x42b   :  { %v1112_v30 = vsub.f32 %v8095_v23, %v1104_v32  ;;  %6374 = vmatmul.msk.bf16.gmra.mxu2 %vm155_vm1, %v7781_v19 }
 0x42d   :  { %v8148_v40 = vpop.eup %6853  ;;  %v1127_v26 = vmul.f32 1.442695, %v1112_v30  ;;  %v1101_v62 = vpop.xlane.xlu0 %1100 }
 0x42e   :  { %v1111_v47 = vsub.f32 %v8097_v49, %v1101_v62  ;;  %6366 = vmatmul.msk.bf16.gmra.mxu1 %vm155_vm1, %v7781_v19  ;;  %v1141_v43 = vsel %vm79_vm0, %v8148_v40, 0.0 }
 0x42f   :  { %6857 = vpow2.f32 %v1127_v26  ;;  %1142 = vadd.xlane.f32.xlu0 %v1141_v43 }
 0x430   :  { %v6856_v24 = vpop.eup %6855  ;;  %6859 = vpow2.f32 %v1123_v20  ;;  %v1125_v23 = vmul.f32 1.442695, %v1111_v47 }
 0x431   :  { %v1135_v13 = vsel %vm79_vm0, %v6856_v24, 0.0 }
 0x432   :  { %6861 = vpow2.f32 %v1125_v23  ;;  %1136 = vadd.xlane.f32.xlu1 %v1135_v13 }
 0x435   :  { %v8156_v10 = vpop.eup %6857 }
 0x436   :  { %v8158_v8 = vpop.eup %6859  ;;  %v1150_v49 = vsel %vm79_vm0, %v8156_v10, 0.0 }
 0x437   :  { %1151 = vadd.xlane.f32.xlu0 %v1150_v49  ;;  %v1144_v52 = vsel %vm79_vm0, %v8158_v8, 0.0 }
 0x438   :  { %v8162_v29 = vpop.eup %6861 }
 0x439   :  { %v1147_v3 = vsel %vm79_vm0, %v8162_v29, 0.0 }
 0x43a   :  { %1148 = vadd.xlane.f32.xlu2 %v1147_v3  ;;  %1145 = vadd.xlane.f32.xlu1 %v1144_v52 }
 0x43b   :  { %6375 = vmatmul.msk.bf16.gmra.mxu2 %vm155_vm1, %v7845_v41 }
 0x43e   :  { %v8170_v7 = vpop.f32.mrf.mxu2  ;;  %6367 = vmatmul.msk.bf16.gmra.mxu1 %vm155_vm1, %v7845_v41 }
 0x446   :  { %v8174_v4 = vpop.f32.mrf.mxu2 }
 0x44b   :  { %6376 = vmatmul.msk.bf16.gmra.mxu2 %vm155_vm1, %v7875_v55 }
 0x44e   :  { %v8178_v56 = vpop.f32.mrf.mxu2  ;;  %6368 = vmatmul.msk.bf16.gmra.mxu1 %vm155_vm1, %v7875_v55 }
 0x452   :  { %1341 = vrot.lane.b32.xlu2 %v8063_v25, %s7276_s7 }
 0x453   :  { %1343 = vrot.lane.b32.xlu1 %v8056_v18, %s7276_s7 }
 0x456   :  { %v8186_v63 = vpop.f32.mrf.mxu2 }
 0x45b   :  { %6377 = vmatmul.msk.bf16.gmra.mxu2 %vm155_vm1, %v7893_v48 }
 0x45e   :  { %v8190_v45 = vpop.f32.mrf.mxu2  ;;  %6369 = vmatmul.msk.bf16.gmra.mxu1 %vm155_vm1, %v7893_v48 }
 0x466   :  { %v8194_v22 = vpop.f32.mrf.mxu2 }
 0x46b   :  { %6378 = vmatmul.msk.bf16.gmra.mxu2 %vm155_vm1, %v7907_v34 }
 0x46e   :  { %v8198_v11 = vpop.f32.mrf.mxu2  ;;  %6370 = vmatmul.msk.bf16.gmra.mxu1 %vm155_vm1, %v7907_v34 }
 0x476   :  { %v8202_v18 = vpop.f32.mrf.mxu2 }
 0x47b   :  { %v8211_v52 = vpop.f32.mrf.mxu1 }
 0x47e   :  { %v8204_v25 = vpop.f32.mrf.mxu2 }
 0x486   :  { %v8206_v60 = vpop.f32.mrf.mxu2 }
 0x48e   :  { %v1305_v33 = vpop.f32.mrf.mxu2 }
 0x490   :  { %v1131_v27 = vpop.xlane.xlu2 %1130 }
 0x491   :  { %6863 = vrcp.f32 %v1131_v27 }
 0x496   :  { %v1307_v32 = vpop.f32.mrf.mxu2 }
 0x497   :  { %v6864_v26 = vpop.eup %6863 }
 0x498   :  { %v1161_v47 = vmul.f32 %v6864_v26, %v8125_v16  ;;  %v1140_v49 = vpop.xlane.xlu2 %1139  ;;  %v1246_v26 = vpop.f32.mrf.mxu1 }
 0x49a   :  { %v1134_v30 = vpop.xlane.xlu0 %1133 }
 0x49b   :  { %6865 = vrcp.f32 %v1134_v30 }
 0x49e   :  { %v1310_v20 = vpop.f32.mrf.mxu2 }
 0x4a1   :  { %v6866_v62 = vpop.eup %6865 }
 0x4a2   :  { %v1162_v43 = vmul.f32 %v6866_v62, %v8139_v31  ;;  %v8217_v31 = vld [vmem:[%s11200_s2 + $0x83] ss:$0 sm:$0xff]  ;;  %v1143_v62 = vpop.xlane.xlu0 %1142 }
 0x4a4   :  { %v1169_v23 = vpack.c.bf16 %v1162_v43, %v1161_v47 }
 0x4a5   :  { %v1137_v13 = vpop.xlane.xlu1 %1136 }
 0x4a6   :  { %6359 = vmatmul.msk.bf16.vlgmr.msrb.gmra.mxu0 %vm79_vm0, %v1169_v23  ;;  %v1312_v3 = vpop.f32.mrf.mxu2  ;;  %6867 = vrcp.f32 %v1137_v13  ;;  %v1311_v13 = vadd.f32 %v1310_v20, %v8217_v31 }
 0x4a7   :  { %6869 = vrcp.f32 %v1140_v49 }
 0x4aa   :  { %v1152_v20 = vpop.xlane.xlu0 %1151 }
 0x4ac   :  { %v6868_v27 = vpop.eup %6867 }
 0x4ad   :  { %v6870_v30 = vpop.eup %6869  ;;  %v1163_v14 = vmul.f32 %v6868_v27, %v6856_v24  ;;  %v1146_v5 = vpop.xlane.xlu1 %1145 }
 0x4ae   :  { %v1315_v9 = vpop.f32.mrf.mxu2  ;;  %v1164_v15 = vmul.f32 %v6870_v30, %v8134_v36  ;;  %6871 = vrcp.f32 %v1146_v5  ;;  %v1313_v36 = vadd.f32 %v1312_v3, %v8217_v31  ;;  %v1149_v30 = vpop.xlane.xlu2 %1148 }
 0x4af   :  { %v1316_v43 = vadd.f32 %v1315_v9, %v8217_v31  ;;  %6873 = vrcp.f32 %v1143_v62  ;;  %v1249_v5 = vpop.f32.mrf.mxu1  ;;  %v1308_v62 = vadd.f32 %v1307_v32, %v8217_v31  ;;  %v1303_v32 = vadd.f32 %v8206_v60, %v8217_v31 }
 0x4b0   :  { %v1170_v16 = vpack.c.bf16 %v1164_v15, %v1163_v14  ;;  %6875 = vrcp.f32 %v1149_v30 }
 0x4b1   :  { %6877 = vrcp.f32 %v1152_v20 }
 0x4b4   :  { %v6872_v15 = vpop.eup %6871 }
 0x4b5   :  { %v6874_v27 = vpop.eup %6873  ;;  %v1166_v9 = vmul.f32 %v6872_v15, %v8158_v8 }
 0x4b6   :  { %6360 = vmatmul.msk.bf16.gmra.mxu0 %vm79_vm0, %v1170_v16  ;;  %v1317_v47 = vpop.f32.mrf.mxu2  ;;  %v1402_v16 = vpack.c.bf16 %v1313_v36, %v1311_v13  ;;  %v1342_v36 = vpop.permute.xlu2 %1341  ;;  %v1301_v13 = vadd.f32 %v8204_v25, %v8217_v31 }
 0x4b7   :  { %v1318_v23 = vadd.f32 %v1317_v47, %v8217_v31  ;;  %v1165_v47 = vmul.f32 %v6874_v27, %v8148_v40  ;;  %v1251_v40 = vpop.f32.mrf.mxu1 }
 0x4b8   :  { %v1423_v3 = vsel %vm813_vm9, %v1402_v16, 0  ;;  %v1400_v16 = vpack.c.bf16 %v1303_v32, %v1301_v13 }
 0x4b9   :  { %v1403_v24 = vpack.c.bf16 %v1318_v23, %v1316_v43  ;;  %v1171_v43 = vpack.c.bf16 %v1166_v9, %v1165_v47  ;;  %v1306_v23 = vadd.f32 %v1305_v33, %v8217_v31  ;;  %v6876_v33 = vpop.eup %6875 }
 0x4ba   :  { %v6878_v30 = vpop.eup %6877  ;;  %v1167_v9 = vmul.f32 %v6876_v33, %v8162_v29 }
 0x4bb   :  { %v1426_v14 = vsel %vm813_vm9, %v1403_v24, 0  ;;  %v1401_v8 = vpack.c.bf16 %v1308_v62, %v1306_v23  ;;  %v1168_v47 = vmul.f32 %v6878_v30, %v8156_v10  ;;  %v1417_v62 = vsel %vm813_vm9, %v1400_v16, 0  ;;  %v8251_v23 = vld [vmem:[%s11200_s2 + $0x81] ss:$0 sm:$0xff] }
 0x4bc   :  { %1432 = vmatpush.bf16.xpose.msra.mxu0 %v1426_v14  ;;  %v1247_v10 = vadd.f32 %v1246_v26, %v8251_v23  ;;  %v1245_v29 = vadd.f32 %v8211_v52, %v8251_v23  ;;  %v1250_v32 = vadd.f32 %v1249_v5, %v8251_v23 }
 0x4bd   :  { %v1420_v15 = vsel %vm813_vm9, %v1401_v8, 0  ;;  %v1252_v8 = vadd.f32 %v1251_v40, %v8251_v23 }
 0x4be   :  { %v8225_v49 = vpop.f32.mrf.mxu2 }
 0x4bf   :  { %v1254_v60 = vpop.f32.mrf.mxu1  ;;  %v1397_v33 = vpack.c.bf16 %v1252_v8, %v1250_v32 }
 0x4c4   :  { %1433 = vmatpush.bf16.xpose.msra.mxu0 %v1423_v3  ;;  %v1172_v3 = vpack.c.bf16 %v1168_v47, %v1167_v9 }
 0x4c5   :  { %v1344_v24 = vpop.permute.xlu1 %1343 }
 0x4c6   :  { %6361 = vmatmul.msk.bf16.gmra.mxu0 %vm79_vm0, %v1171_v43  ;;  %v8233_v14 = vpop.f32.mrf.mxu2  ;;  %1353 = vmatpush.bf16.msra.mxu3 %v1344_v24  ;;  %v1396_v24 = vpack.c.bf16 %v1247_v10, %v1245_v29 }
 0x4c7   :  { %v1256_v25 = vpop.f32.mrf.mxu1 }
 0x4c8   :  { %v1257_v47 = vadd.f32 %v1256_v25, %v8251_v23 }
 0x4ca   :  { %1354 = vmatpush.bf16.msra.mxu3 %v1342_v36 }
 0x4cc   :  { %1434 = vmatpush.bf16.xpose.msra.mxu0 %v1420_v15 }
 0x4cd   :  { %6379 = vmatmul.msk.bf16.vlgmr.msra.gmra.mxu3 %vm155_vm1, %v7659_v50 }
 0x4ce   :  { %v1325_v27 = vpop.f32.mrf.mxu2 }
 0x4cf   :  { %v1259_v36 = vpop.f32.mrf.mxu1 }
 0x4d0   :  { %v1260_v8 = vadd.f32 %v1259_v36, %v8251_v23 }
 0x4d4   :  { %1435 = vmatpush.bf16.xpose.msra.mxu0 %v1417_v62  ;;  %v1255_v62 = vadd.f32 %v1254_v60, %v8251_v23  ;;  %v1321_v60 = vadd.f32 %v8225_v49, %v8217_v31 }
 0x4d6   :  { %6362 = vmatmul.msk.bf16.gmra.mxu0 %vm79_vm0, %v1172_v3  ;;  %v1327_v43 = vpop.f32.mrf.mxu2  ;;  %v1398_v29 = vpack.c.bf16 %v1257_v47, %v1255_v62 }
 0x4d7   :  { %v1261_v15 = vpop.f32.mrf.mxu1  ;;  %v1328_v3 = vadd.f32 %v1327_v43, %v8217_v31 }
 0x4d8   :  { %v1262_v25 = vadd.f32 %v1261_v15, %v8251_v23 }
 0x4dd   :  { %6380 = vmatmul.msk.bf16.gmra.mxu3 %vm155_vm1, %v7674_v28 }
 0x4de   :  { %v1330_v50 = vpop.f32.mrf.mxu2 }
 0x4df   :  { %v1331_v40 = vadd.f32 %v1330_v50, %v8217_v31 }
 0x4e6   :  { %v1332_v20 = vpop.f32.mrf.mxu2  ;;  %6387 = vmatmul.msk.bf16.vlgmr.msra.gmra.mxu0 %vm813_vm9, %v1396_v24  ;;  %v1326_v24 = vadd.f32 %v1325_v27, %v8217_v31 }
 0x4e7   :  { %v1333_v16 = vadd.f32 %v1332_v20, %v8217_v31 }
 0x4e8   :  { %v1607_v50 = vpack.c.bf16 %v1328_v3, %v1326_v24 }
 0x4e9   :  { %v1608_v5 = vpack.c.bf16 %v1333_v16, %v1331_v40 }
 0x4eb   :  { %v1629_v10 = vsel %vm813_vm9, %v1608_v5, 0 }
 0x4ed   :  { %6381 = vmatmul.msk.bf16.gmra.mxu3 %vm155_vm1, %v7696_v61  ;;  %v1264_v61 = vpop.f32.mrf.mxu1 }
 0x4ee   :  { %v1335_v28 = vpop.f32.mrf.mxu2 }
 0x4ef   :  { %v1336_v52 = vadd.f32 %v1335_v28, %v8217_v31  ;;  %v1626_v28 = vsel %vm813_vm9, %v1607_v50, 0 }
 0x4f5   :  { %v1266_v20 = vpop.f32.mrf.mxu1 }
 0x4f6   :  { %v1337_v13 = vpop.f32.mrf.mxu2  ;;  %6388 = vmatmul.msk.bf16.gmra.mxu0 %vm813_vm9, %v1397_v33  ;;  %v1399_v33 = vpack.c.bf16 %v1262_v25, %v1260_v8 }
 0x4f7   :  { %v1338_v26 = vadd.f32 %v1337_v13, %v8217_v31  ;;  %v1265_v13 = vadd.f32 %v1264_v61, %v8251_v23 }
 0x4f9   :  { %v1609_v30 = vpack.c.bf16 %v1338_v26, %v1336_v52 }
 0x4fb   :  { %v1632_v9 = vsel %vm813_vm9, %v1609_v30, 0 }
 0x4fc   :  { %1638 = vmatpush.bf16.xpose.msra.mxu1 %v1632_v9 }
 0x4fd   :  { %6382 = vmatmul.msk.bf16.gmra.mxu3 %vm155_vm1, %v7781_v19  ;;  %v1323_v19 = vadd.f32 %v8233_v14, %v8217_v31  ;;  %v1269_v27 = vpop.f32.mrf.mxu1  ;;  %v1267_v14 = vadd.f32 %v1266_v20, %v8251_v23 }
 0x4fe   :  { %v1270_v52 = vadd.f32 %v1269_v27, %v8251_v23 }
 0x4ff   :  { %v1606_v43 = vpack.c.bf16 %v1323_v19, %v1321_v60  ;;  %v1602_v31 = vpack.c.bf16 %v1267_v14, %v1265_v13 }
 0x501   :  { %v1623_v32 = vsel %vm813_vm9, %v1606_v43, 0 }
 0x504   :  { %1639 = vmatpush.bf16.xpose.msra.mxu1 %v1629_v10 }
 0x505   :  { %v1271_v49 = vpop.f32.mrf.mxu1 }
 0x506   :  { %6389 = vmatmul.msk.bf16.gmra.mxu0 %vm813_vm9, %v1398_v29  ;;  %v1272_v15 = vadd.f32 %v1271_v49, %v8251_v23 }
 0x508   :  { %v1603_v26 = vpack.c.bf16 %v1272_v15, %v1270_v52 }
 0x50c   :  { %1640 = vmatpush.bf16.xpose.msra.mxu1 %v1626_v28 }
 0x50d   :  { %6383 = vmatmul.msk.bf16.gmra.mxu3 %vm155_vm1, %v7845_v41  ;;  %v1274_v36 = vpop.f32.mrf.mxu1 }
 0x50e   :  { %v1275_v61 = vadd.f32 %v1274_v36, %v8251_v23 }
 0x514   :  { %1641 = vmatpush.bf16.xpose.msra.mxu1 %v1623_v32 }
 0x515   :  { %v1276_v16 = vpop.f32.mrf.mxu1 }
 0x516   :  { %6390 = vmatmul.msk.bf16.gmra.mxu0 %vm813_vm9, %v1399_v33 }
 0x51b   :  { %6395 = vmatmul.msk.bf16.vlgmr.msra.gmra.mxu1 %vm813_vm9, %v1602_v31 }
 0x51d   :  { %6384 = vmatmul.msk.bf16.gmra.mxu3 %vm155_vm1, %v7875_v55  ;;  %v1277_v55 = vadd.f32 %v1276_v16, %v8251_v23  ;;  %v1279_v40 = vpop.f32.mrf.mxu1 }
 0x51e   :  { %v1280_v10 = vadd.f32 %v1279_v40, %v8251_v23  ;;  %v1340_v40 = vld [vmem:[%s11200_s2 + $0x85] ss:$0 sm:$0xff] }
 0x51f   :  { %v1604_v5 = vpack.c.bf16 %v1277_v55, %v1275_v61 }
 0x523   :  { %v8291_v41 = vpop.f32.mrf.mxu0 }
 0x525   :  { %v1281_v62 = vpop.f32.mrf.mxu1 }
 0x52b   :  { %v8295_v30 = vpop.f32.mrf.mxu0  ;;  %6396 = vmatmul.msk.bf16.gmra.mxu1 %vm813_vm9, %v1603_v26 }
 0x52d   :  { %6385 = vmatmul.msk.bf16.gmra.mxu3 %vm155_vm1, %v7893_v48  ;;  %v1282_v48 = vadd.f32 %v1281_v62, %v8251_v23 }
 0x52f   :  { %v1605_v29 = vpack.c.bf16 %v1282_v48, %v1280_v10 }
 0x533   :  { %v8300_v9 = vpop.f32.mrf.mxu0 }
 0x53b   :  { %v8304_v47 = vpop.f32.mrf.mxu0  ;;  %6397 = vmatmul.msk.bf16.gmra.mxu1 %vm813_vm9, %v1604_v5 }
 0x53d   :  { %6386 = vmatmul.msk.bf16.gmra.mxu3 %vm155_vm1, %v7907_v34 }
 0x543   :  { %v8309_v3 = vpop.f32.mrf.mxu0 }
 0x54b   :  { %v8313_v24 = vpop.f32.mrf.mxu0  ;;  %6398 = vmatmul.msk.bf16.gmra.mxu1 %vm813_vm9, %v1605_v29 }
 0x550   :  { %v1356_v20 = vpop.f32.mrf.mxu3 }
 0x553   :  { %v8316_v50 = vpop.f32.mrf.mxu0 }
 0x558   :  { %v1358_v19 = vpop.f32.mrf.mxu3 }
 0x55b   :  { %v8318_v28 = vpop.f32.mrf.mxu0 }
 0x560   :  { %v1361_v60 = vpop.f32.mrf.mxu3 }
 0x563   :  { %v1437_v34 = vpop.f32.mrf.mxu0 }
 0x564   :  { %v8320_v43 = vmul.f32 0.25, %v1437_v34 }
 0x566   :  { %v1465_v25 = vsel %vm79_vm0, %v8320_v43, -inf }
 0x567   :  { %1466 = vmax.xlane.f32.xlu0 %v1465_v25 }
 0x568   :  { %v1363_v23 = vpop.f32.mrf.mxu3 }
 0x56b   :  { %v1439_v27 = vpop.f32.mrf.mxu0 }
 0x56c   :  { %v8324_v8 = vmul.f32 0.25, %v1439_v27 }
 0x56e   :  { %v1468_v32 = vsel %vm79_vm0, %v8324_v8, -inf }
 0x56f   :  { %1469 = vmax.xlane.f32.xlu0 %v1468_v32 }
 0x570   :  { %v1366_v33 = vpop.f32.mrf.mxu3 }
 0x571   :  { %v1367_v27 = vadd.f32 %v1366_v33, %v1340_v40 }
 0x573   :  { %v1442_v14 = vpop.f32.mrf.mxu0 }
 0x574   :  { %v8328_v13 = vmul.f32 0.25, %v1442_v14  ;;  %v1364_v14 = vadd.f32 %v1363_v23, %v1340_v40 }
 0x576   :  { %v1471_v31 = vsel %vm79_vm0, %v8328_v13, -inf }
 0x577   :  { %1472 = vmax.xlane.f32.xlu0 %v1471_v31 }
 0x578   :  { %v1368_v49 = vpop.f32.mrf.mxu3 }
 0x579   :  { %v1369_v10 = vadd.f32 %v1368_v49, %v1340_v40  ;;  %v1357_v49 = vadd.f32 %v1356_v20, %v1340_v40 }
 0x57b   :  { %v1444_v36 = vpop.f32.mrf.mxu0  ;;  %v1559_v31 = vpack.c.bf16 %v1369_v10, %v1367_v27 }
 0x57c   :  { %v8332_v15 = vmul.f32 0.25, %v1444_v36 }
 0x57e   :  { %v1474_v52 = vsel %vm79_vm0, %v8332_v15, -inf }
 0x57f   :  { %1475 = vmax.xlane.f32.xlu1 %v1474_v52  ;;  %v1362_v52 = vadd.f32 %v1361_v60, %v1340_v40 }
 0x580   :  { %v1371_v26 = vpop.f32.mrf.mxu3 }
 0x581   :  { %v1372_v62 = vadd.f32 %v1371_v26, %v1340_v40 }
 0x583   :  { %v1447_v16 = vpop.f32.mrf.mxu0 }
 0x584   :  { %v8336_v55 = vmul.f32 0.25, %v1447_v16  ;;  %v1359_v16 = vadd.f32 %v1358_v19, %v1340_v40 }
 0x586   :  { %v1477_v61 = vsel %vm79_vm0, %v8336_v55, -inf }
 0x587   :  { %1478 = vmax.xlane.f32.xlu2 %v1477_v61  ;;  %v1558_v61 = vpack.c.bf16 %v1364_v14, %v1362_v52 }
 0x588   :  { %v1373_v5 = vpop.f32.mrf.mxu3 }
 0x589   :  { %v1374_v48 = vadd.f32 %v1373_v5, %v1340_v40 }
 0x58b   :  { %v1560_v29 = vpack.c.bf16 %v1374_v48, %v1372_v62  ;;  %v1449_v34 = vpop.f32.mrf.mxu0  ;;  %v1557_v62 = vpack.c.bf16 %v1359_v16, %v1357_v49 }
 0x58c   :  { %v8343_v25 = vmul.f32 0.25, %v1449_v34 }
 0x58d   :  { %1577 = vmatpush.bf16.msrb.mxu0 %v1560_v29 }
 0x58e   :  { %v1480_v32 = vsel %vm79_vm0, %v8343_v25, -inf }
 0x58f   :  { %1481 = vmax.xlane.f32.xlu0 %v1480_v32 }
 0x590   :  { %v1376_v36 = vpop.f32.mrf.mxu3 }
 0x591   :  { %1578 = vmatpush.bf16.msrb.mxu0 %v1559_v31  ;;  %v1377_v6 = vadd.f32 %v1376_v36, %v1340_v40 }
 0x593   :  { %v1452_v26 = vpop.f32.mrf.mxu0 }
 0x594   :  { %v8347_v5 = vmul.f32 0.25, %v1452_v26 }
 0x595   :  { %1579 = vmatpush.bf16.msrb.mxu0 %v1558_v61 }
 0x596   :  { %v1483_v33 = vsel %vm79_vm0, %v8347_v5, -inf }
 0x597   :  { %1484 = vmax.xlane.f32.xlu0 %v1483_v33 }
 0x598   :  { %v1378_v48 = vpop.f32.mrf.mxu3 }
 0x599   :  { %1580 = vmatpush.bf16.msrb.mxu0 %v1557_v62  ;;  %v1379_v62 = vadd.f32 %v1378_v48, %v1340_v40 }
 0x59b   :  { %v1454_v23 = vpop.f32.mrf.mxu0 }
 0x59c   :  { %v8351_v10 = vmul.f32 0.25, %v1454_v23 }
 0x59e   :  { %v1486_v60 = vsel %vm79_vm0, %v8351_v10, -inf }
 0x59f   :  { %1487 = vmax.xlane.f32.xlu0 %v1486_v60  ;;  %v1763_v60 = vpack.c.bf16 %v1379_v62, %v1377_v6 }
 0x5a0   :  { %v1381_v19 = vpop.f32.mrf.mxu3 }
 0x5a1   :  { %v1382_v33 = vadd.f32 %v1381_v19, %v1340_v40 }
 0x5a8   :  { %v1383_v29 = vpop.f32.mrf.mxu3 }
 0x5a9   :  { %v1384_v26 = vadd.f32 %v1383_v29, %v1340_v40 }
 0x5ab   :  { %v1764_v23 = vpack.c.bf16 %v1384_v26, %v1382_v33 }
 0x5b0   :  { %v1386_v34 = vpop.f32.mrf.mxu3 }
 0x5b1   :  { %v1387_v61 = vadd.f32 %v1386_v34, %v1340_v40 }
 0x5b8   :  { %v1388_v27 = vpop.f32.mrf.mxu3 }
 0x5b9   :  { %v1389_v52 = vadd.f32 %v1388_v27, %v1340_v40 }
 0x5bb   :  { %v1765_v49 = vpack.c.bf16 %v1389_v52, %v1387_v61 }
 0x5c0   :  { %v1391_v20 = vpop.f32.mrf.mxu3 }
 0x5c1   :  { %v1392_v14 = vadd.f32 %v1391_v20, %v1340_v40  ;;  %v1643_v20 = vpop.f32.mrf.mxu1 }
 0x5c8   :  { %v1393_v32 = vpop.f32.mrf.mxu3 }
 0x5c9   :  { %v1394_v31 = vadd.f32 %v1393_v32, %v1340_v40  ;;  %v1645_v36 = vpop.f32.mrf.mxu1 }
 0x5cb   :  { %v1766_v16 = vpack.c.bf16 %v1394_v31, %v1392_v14 }
 0x5cd   :  { %1783 = vmatpush.bf16.msra.mxu2 %v1766_v16 }
 0x5d1   :  { %1784 = vmatpush.bf16.msra.mxu2 %v1765_v49  ;;  %v1648_v31 = vpop.f32.mrf.mxu1 }
 0x5d5   :  { %1785 = vmatpush.bf16.msra.mxu2 %v1764_v23 }
 0x5d9   :  { %1786 = vmatpush.bf16.msra.mxu2 %v1763_v60 }
 0x5da   :  { %v1467_v1 = vpop.xlane.xlu0 %1466 }
 0x5db   :  { %v1489_v2 = vsub.f32 %v8320_v43, %v1467_v1 }
 0x5dd   :  { %v1497_v35 = vmul.f32 1.442695, %v1489_v2 }
 0x5df   :  { %6879 = vpow2.f32 %v1497_v35 }
 0x5e2   :  { %v1470_v27 = vpop.xlane.xlu0 %1469 }
 0x5e3   :  { %v1490_v34 = vsub.f32 %v8324_v8, %v1470_v27 }
 0x5e5   :  { %v8357_v32 = vpop.eup %6879  ;;  %v1499_v29 = vmul.f32 1.442695, %v1490_v34 }
 0x5e6   :  { %v1513_v48 = vsel %vm79_vm0, %v8357_v32, 0.0 }
 0x5e7   :  { %6881 = vpow2.f32 %v1499_v29  ;;  %1514 = vadd.xlane.f32.xlu0 %v1513_v48 }
 0x5ea   :  { %v1473_v40 = vpop.xlane.xlu0 %1472 }
 0x5eb   :  { %v1491_v6 = vsub.f32 %v8328_v13, %v1473_v40 }
 0x5ed   :  { %v8362_v19 = vpop.eup %6881  ;;  %v1501_v1 = vmul.f32 1.442695, %v1491_v6 }
 0x5ee   :  { %v1516_v2 = vsel %vm79_vm0, %v8362_v19, 0.0 }
 0x5ef   :  { %6883 = vpow2.f32 %v1501_v1  ;;  %1517 = vadd.xlane.f32.xlu0 %v1516_v2 }
 0x5f2   :  { %v1476_v35 = vpop.xlane.xlu1 %1475 }
 0x5f3   :  { %v1492_v43 = vsub.f32 %v8332_v15, %v1476_v35  ;;  %v1650_v15 = vpop.f32.mrf.mxu1 }
 0x5f5   :  { %v8367_v8 = vpop.eup %6883  ;;  %v1503_v14 = vmul.f32 1.442695, %v1492_v43 }
 0x5f6   :  { %v1519_v52 = vsel %vm79_vm0, %v8367_v8, 0.0 }
 0x5f7   :  { %6885 = vpow2.f32 %v1503_v14  ;;  %1520 = vadd.xlane.f32.xlu1 %v1519_v52 }
 0x5fa   :  { %v1479_v13 = vpop.xlane.xlu2 %1478 }
 0x5fb   :  { %v1493_v16 = vsub.f32 %v8336_v55, %v1479_v13  ;;  %v1653_v55 = vpop.f32.mrf.mxu1  ;;  %v8395_v13 = vmul.f32 0.25, %v1650_v15 }
 0x5fd   :  { %v8372_v61 = vpop.eup %6885  ;;  %v1505_v26 = vmul.f32 1.442695, %v1493_v16 }
 0x5fe   :  { %v1522_v49 = vsel %vm79_vm0, %v8372_v61, 0.0 }
 0x5ff   :  { %6887 = vpow2.f32 %v1505_v26  ;;  %1523 = vadd.xlane.f32.xlu0 %v1522_v49  ;;  %v1680_v26 = vsel %vm79_vm0, %v8395_v13, -inf }
 0x602   :  { %v1482_v33 = vpop.xlane.xlu0 %1481 }
 0x603   :  { %v1494_v62 = vsub.f32 %v8343_v25, %v1482_v33  ;;  %v8386_v25 = vmul.f32 0.25, %v1643_v20  ;;  %v1655_v35 = vpop.f32.mrf.mxu1  ;;  %v8397_v20 = vmul.f32 0.25, %v1645_v36  ;;  %v8411_v36 = vmul.f32 0.25, %v1653_v55 }
 0x605   :  { %v8377_v23 = vpop.eup %6887  ;;  %v1507_v60 = vmul.f32 1.442695, %v1494_v62  ;;  %v1674_v33 = vsel %vm79_vm0, %v8397_v20, -inf  ;;  %v8407_v62 = vmul.f32 0.25, %v1648_v31 }
 0x606   :  { %v1525_v27 = vsel %vm79_vm0, %v8377_v23, 0.0 }
 0x607   :  { %6889 = vpow2.f32 %v1507_v60  ;;  %1526 = vadd.xlane.f32.xlu2 %v1525_v27  ;;  %v1677_v27 = vsel %vm79_vm0, %v8407_v62, -inf }
 0x60a   :  { %v1485_v34 = vpop.xlane.xlu0 %1484 }
 0x60b   :  { %v1495_v29 = vsub.f32 %v8347_v5, %v1485_v34  ;;  %v1671_v5 = vsel %vm79_vm0, %v8386_v25, -inf  ;;  %v1683_v34 = vsel %vm79_vm0, %v8411_v36, -inf }
 0x60d   :  { %v8382_v48 = vpop.eup %6889  ;;  %v1509_v40 = vmul.f32 1.442695, %v1495_v29 }
 0x60e   :  { %v1528_v6 = vsel %vm79_vm0, %v8382_v48, 0.0 }
 0x60f   :  { %6891 = vpow2.f32 %v1509_v40  ;;  %1529 = vadd.xlane.f32.xlu1 %v1528_v6  ;;  %v8419_v40 = vmul.f32 0.25, %v1655_v35 }
 0x611   :  { %v1686_v55 = vsel %vm79_vm0, %v8419_v40, -inf }
 0x612   :  { %v1488_v1 = vpop.xlane.xlu0 %1487 }
 0x613   :  { %v1496_v2 = vsub.f32 %v8351_v10, %v1488_v1  ;;  %v1658_v10 = vpop.f32.mrf.mxu1 }
 0x614   :  { %v8409_v15 = vmul.f32 0.25, %v1658_v10 }
 0x615   :  { %v8389_v43 = vpop.eup %6891  ;;  %v1511_v14 = vmul.f32 1.442695, %v1496_v2 }
 0x616   :  { %v1531_v52 = vsel %vm79_vm0, %v8389_v43, 0.0  ;;  %v1689_v60 = vsel %vm79_vm0, %v8409_v15, -inf }
 0x617   :  { %6893 = vpow2.f32 %v1511_v14  ;;  %1672 = vmax.xlane.f32.xlu1 %v1671_v5  ;;  %1532 = vadd.xlane.f32.xlu0 %v1531_v52 }
 0x61b   :  { %v1660_v29 = vpop.f32.mrf.mxu1 }
 0x61c   :  { %v8421_v31 = vmul.f32 0.25, %v1660_v29 }
 0x61d   :  { %v8399_v16 = vpop.eup %6893 }
 0x61e   :  { %v1534_v49 = vsel %vm79_vm0, %v8399_v16, 0.0  ;;  %v1692_v6 = vsel %vm79_vm0, %v8421_v31, -inf }
 0x61f   :  { %1681 = vmax.xlane.f32.xlu1 %v1680_v26  ;;  %1535 = vadd.xlane.f32.xlu2 %v1534_v49 }
 0x620   :  { %1675 = vmax.xlane.f32.xlu0 %v1674_v33 }
 0x627   :  { %1690 = vmax.xlane.f32.xlu1 %v1689_v60  ;;  %1678 = vmax.xlane.f32.xlu2 %v1677_v27 }
 0x628   :  { %1684 = vmax.xlane.f32.xlu0 %v1683_v34 }
 0x62f   :  { %1687 = vmax.xlane.f32.xlu2 %v1686_v55 }
 0x630   :  { %1693 = vmax.xlane.f32.xlu0 %v1692_v6 }
 0x65a   :  { %v1515_v1 = vpop.xlane.xlu0 %1514 }
 0x65b   :  { %6895 = vrcp.f32 %v1515_v1  ;;  %v6658_v1 = vld [vmem:[%s11198_s1 + $0x30] sm:$0xff] }
 0x65c   :  { %1934 = vmatpush.bf16.msra.mxu0 %v6658_v1 }
 0x661   :  { %v6896_v14 = vpop.eup %6895 }
 0x662   :  { %v1518_v2 = vpop.xlane.xlu0 %1517  ;;  %v1545_v52 = vmul.f32 %v6896_v14, %v8357_v32 }
 0x663   :  { %6897 = vrcp.f32 %v1518_v2 }
 0x669   :  { %v6898_v5 = vpop.eup %6897 }
 0x66a   :  { %v1546_v35 = vmul.f32 %v6898_v5, %v8362_v19  ;;  %v1521_v26 = vpop.xlane.xlu1 %1520 }
 0x66b   :  { %6899 = vrcp.f32 %v1521_v26 }
 0x66c   :  { %v1553_v10 = vpack.c.bf16 %v1546_v35, %v1545_v52 }
 0x66e   :  { %6391 = vmatmul.msk.bf16.vlgmr.msrb.gmra.mxu0 %vm79_vm0, %v1553_v10 }
 0x671   :  { %v6900_v33 = vpop.eup %6899 }
 0x672   :  { %v1524_v49 = vpop.xlane.xlu0 %1523  ;;  %v1547_v27 = vmul.f32 %v6900_v33, %v8367_v8 }
 0x673   :  { %6901 = vrcp.f32 %v1524_v49 }
 0x679   :  { %v6902_v60 = vpop.eup %6901 }
 0x67a   :  { %v1548_v34 = vmul.f32 %v6902_v60, %v8372_v61  ;;  %v1527_v55 = vpop.xlane.xlu2 %1526 }
 0x67b   :  { %6903 = vrcp.f32 %v1527_v55 }
 0x67c   :  { %v1554_v29 = vpack.c.bf16 %v1548_v34, %v1547_v27 }
 0x67e   :  { %6392 = vmatmul.msk.bf16.gmra.mxu0 %vm79_vm0, %v1554_v29 }
 0x681   :  { %v6904_v19 = vpop.eup %6903 }
 0x682   :  { %v1530_v32 = vpop.xlane.xlu1 %1529  ;;  %v1549_v2 = vmul.f32 %v6904_v19, %v8377_v23 }
 0x683   :  { %6905 = vrcp.f32 %v1530_v32 }
 0x689   :  { %v6906_v6 = vpop.eup %6905 }
 0x68a   :  { %v1550_v14 = vmul.f32 %v6906_v6, %v8382_v48  ;;  %v1533_v8 = vpop.xlane.xlu0 %1532  ;;  %v1673_v5 = vpop.xlane.xlu1 %1672 }
 0x68b   :  { %v1695_v61 = vsub.f32 %v8386_v25, %v1673_v5 }
 0x68c   :  { %v1555_v52 = vpack.c.bf16 %v1550_v14, %v1549_v2 }
 0x68d   :  { %v1703_v35 = vmul.f32 1.442695, %v1695_v61 }
 0x68e   :  { %6393 = vmatmul.msk.bf16.gmra.mxu0 %vm79_vm0, %v1555_v52 }
 0x68f   :  { %6907 = vpow2.f32 %v1703_v35 }
 0x690   :  { %6909 = vrcp.f32 %v1533_v8 }
 0x692   :  { %v1536_v10 = vpop.xlane.xlu2 %1535  ;;  %v1682_v26 = vpop.xlane.xlu1 %1681 }
 0x693   :  { %6911 = vrcp.f32 %v1536_v10  ;;  %v1676_v49 = vpop.xlane.xlu0 %1675  ;;  %v1698_v33 = vsub.f32 %v8395_v13, %v1682_v26 }
 0x694   :  { %v1696_v23 = vsub.f32 %v8397_v20, %v1676_v49 }
 0x695   :  { %v8442_v48 = vpop.eup %6907  ;;  %v1709_v60 = vmul.f32 1.442695, %v1698_v33 }
 0x696   :  { %v1705_v27 = vmul.f32 1.442695, %v1696_v23  ;;  %v1719_v25 = vsel %vm79_vm0, %v8442_v48, 0.0  ;;  %v6910_v34 = vpop.eup %6909 }
 0x697   :  { %6913 = vpow2.f32 %v1709_v60  ;;  %1720 = vadd.xlane.f32.xlu2 %v1719_v25  ;;  %v1551_v55 = vmul.f32 %v6910_v34, %v8389_v43 }
 0x698   :  { %6915 = vpow2.f32 %v1705_v27 }
 0x699   :  { %v6912_v29 = vpop.eup %6911 }
 0x69a   :  { %v1552_v32 = vmul.f32 %v6912_v29, %v8399_v16  ;;  %v1679_v19 = vpop.xlane.xlu2 %1678  ;;  %v1691_v13 = vpop.xlane.xlu1 %1690 }
 0x69b   :  { %v1697_v20 = vsub.f32 %v8407_v62, %v1679_v19  ;;  %v1685_v6 = vpop.xlane.xlu0 %1684  ;;  %v1701_v1 = vsub.f32 %v8409_v15, %v1691_v13  ;;  %v1223_v13 = vpack.c.bf16 %v8202_v18, %v8198_v11 }
 0x69c   :  { %v1699_v2 = vsub.f32 %v8411_v36, %v1685_v6  ;;  %v1556_v14 = vpack.c.bf16 %v1552_v32, %v1551_v55  ;;  %v6659_v32 = vld [vmem:[%s11198_s1 + $0x38] sm:$0xff]  ;;  %v1224_v6 = vpack.c.bf16 %v8295_v30, %v8291_v41  ;;  %v1226_v41 = vpack.c.bf16 %v8313_v24, %v8309_v3 }
 0x69d   :  { %v8451_v8 = vpop.eup %6913  ;;  %v1707_v5 = vmul.f32 1.442695, %v1697_v20  ;;  %v1715_v61 = vmul.f32 1.442695, %v1701_v1  ;;  %1855 = vmatpush.bf16.msrb.mxu3 %v6659_v32  ;;  %v1227_v3 = vpack.c.bf16 %v8318_v28, %v8316_v50 }
 0x69e   :  { %v8453_v52 = vpop.eup %6915  ;;  %v1711_v35 = vmul.f32 1.442695, %v1699_v2  ;;  %6394 = vmatmul.msk.bf16.gmra.mxu0 %vm79_vm0, %v1556_v14  ;;  %v1728_v43 = vsel %vm79_vm0, %v8451_v8, 0.0 }
 0x69f   :  { %6917 = vpow2.f32 %v1707_v5  ;;  %v1722_v16 = vsel %vm79_vm0, %v8453_v52, 0.0  ;;  %1729 = vadd.xlane.f32.xlu2 %v1728_v43 }
 0x6a0   :  { %6919 = vpow2.f32 %v1711_v35  ;;  %1723 = vadd.xlane.f32.xlu1 %v1722_v16 }
 0x6a1   :  { %6921 = vpow2.f32 %v1715_v61 }
 0x6a2   :  { %v1688_v62 = vpop.xlane.xlu2 %1687 }
 0x6a3   :  { %v1700_v15 = vsub.f32 %v8419_v40, %v1688_v62  ;;  %v1694_v36 = vpop.xlane.xlu0 %1693 }
 0x6a4   :  { %v1702_v10 = vsub.f32 %v8421_v31, %v1694_v36  ;;  %v1220_v31 = vpack.c.bf16 %v8174_v4, %v8170_v7  ;;  %v1221_v7 = vpack.c.bf16 %v8186_v63, %v8178_v56  ;;  %v1222_v4 = vpack.c.bf16 %v8194_v22, %v8190_v45 }
 0x6a5   :  { %v8462_v26 = vpop.eup %6917  ;;  %v1713_v49 = vmul.f32 1.442695, %v1700_v15  ;;  %v1225_v45 = vpack.c.bf16 %v8304_v47, %v8300_v9 }
 0x6a6   :  { %v8464_v33 = vpop.eup %6919  ;;  %v1717_v23 = vmul.f32 1.442695, %v1702_v10  ;;  %v1725_v60 = vsel %vm79_vm0, %v8462_v26, 0.0 }
 0x6a7   :  { %v8468_v27 = vpop.eup %6921  ;;  %6923 = vpow2.f32 %v1713_v49  ;;  %1726 = vadd.xlane.f32.xlu0 %v1725_v60  ;;  %v1731_v25 = vsel %vm79_vm0, %v8464_v33, 0.0 }
 0x6a8   :  { %6925 = vpow2.f32 %v1717_v23  ;;  %1732 = vadd.xlane.f32.xlu1 %v1731_v25  ;;  %v1737_v40 = vsel %vm79_vm0, %v8468_v27, 0.0 }
 0x6a9   :  { %1738 = vadd.xlane.f32.xlu2 %v1737_v40 }
 0x6ad   :  { %v8476_v34 = vpop.eup %6923 }
 0x6ae   :  { %v8478_v29 = vpop.eup %6925  ;;  %6419 = vmatmul.msk.bf16.vlgmr.msra.gmra.mxu0 %vm813_vm9, %v1220_v31  ;;  %v1734_v55 = vsel %vm79_vm0, %v8476_v34, 0.0 }
 0x6af   :  { %1735 = vadd.xlane.f32.xlu0 %v1734_v55  ;;  %v1740_v19 = vsel %vm79_vm0, %v8478_v29, 0.0 }
 0x6b0   :  { %1741 = vadd.xlane.f32.xlu1 %v1740_v19 }
 0x6be   :  { %6420 = vmatmul.msk.bf16.gmra.mxu0 %vm813_vm9, %v1221_v7 }
 0x6ce   :  { %6421 = vmatmul.msk.bf16.gmra.mxu0 %vm813_vm9, %v1222_v4 }
 0x6de   :  { %6422 = vmatmul.msk.bf16.gmra.mxu0 %vm813_vm9, %v1223_v13 }
 0x6eb   :  { %v1582_v20 = vpop.f32.mrf.mxu0 }
 0x6ee   :  { %6423 = vmatmul.msk.bf16.gmra.mxu0 %vm813_vm9, %v1224_v6 }
 0x6f3   :  { %v1584_v1 = vpop.f32.mrf.mxu0 }
 0x6f4   :  { %v1810_v56 = vpack.c.bf16 %v1584_v1, %v1582_v20  ;;  %v8528_v1 = vld [vmem:[%s11200_s2 + $0x90] ss:$0 sm:$0xff] }
 0x6f6   :  { %6407 = vmatmul.msk.bf16.vlgmr.msrb.gmra.mxu3 %vm813_vm9, %v1810_v56 }
 0x6fb   :  { %v1587_v63 = vpop.f32.mrf.mxu0 }
 0x6fe   :  { %6424 = vmatmul.msk.bf16.gmra.mxu0 %vm813_vm9, %v1225_v45 }
 0x703   :  { %v1589_v22 = vpop.f32.mrf.mxu0 }
 0x704   :  { %v1811_v11 = vpack.c.bf16 %v1589_v22, %v1587_v63 }
 0x706   :  { %6408 = vmatmul.msk.bf16.gmra.mxu3 %vm813_vm9, %v1811_v11 }
 0x70a   :  { %v1721_v30 = vpop.xlane.xlu2 %1720 }
 0x70b   :  { %v1592_v18 = vpop.f32.mrf.mxu0  ;;  %6927 = vrcp.f32 %v1721_v30 }
 0x70e   :  { %6425 = vmatmul.msk.bf16.gmra.mxu0 %vm813_vm9, %v1226_v41 }
 0x711   :  { %v6928_v9 = vpop.eup %6927 }
 0x712   :  { %v1751_v61 = vmul.f32 %v6928_v9, %v8442_v48  ;;  %v1730_v62 = vpop.xlane.xlu2 %1729 }
 0x713   :  { %v1724_v2 = vpop.xlane.xlu1 %1723  ;;  %v1594_v14 = vpop.f32.mrf.mxu0 }
 0x714   :  { %6929 = vrcp.f32 %v1724_v2  ;;  %v1812_v5 = vpack.c.bf16 %v1594_v14, %v1592_v18 }
 0x716   :  { %6409 = vmatmul.msk.bf16.gmra.mxu3 %vm813_vm9, %v1812_v5 }
 0x71a   :  { %v6930_v47 = vpop.eup %6929  ;;  %v1727_v16 = vpop.xlane.xlu0 %1726 }
 0x71b   :  { %v1752_v35 = vmul.f32 %v6930_v47, %v8453_v52  ;;  %v1597_v43 = vpop.f32.mrf.mxu0  ;;  %6931 = vrcp.f32 %v1727_v16  ;;  %v1733_v23 = vpop.xlane.xlu1 %1732 }
 0x71c   :  { %6933 = vrcp.f32 %v1730_v62  ;;  %v1739_v19 = vpop.xlane.xlu2 %1738 }
 0x71d   :  { %v1759_v24 = vpack.c.bf16 %v1752_v35, %v1751_v61 }
 0x71e   :  { %6426 = vmatmul.msk.bf16.gmra.mxu0 %vm813_vm9, %v1227_v3 }
 0x71f   :  { %6399 = vmatmul.msk.bf16.vlgmr.msra.gmra.mxu2 %vm79_vm0, %v1759_v24 }
 0x721   :  { %v6932_v10 = vpop.eup %6931 }
 0x722   :  { %v6934_v48 = vpop.eup %6933  ;;  %v1753_v52 = vmul.f32 %v6932_v10, %v8462_v26  ;;  %v1736_v50 = vpop.xlane.xlu0 %1735 }
 0x723   :  { %v1599_v15 = vpop.f32.mrf.mxu0  ;;  %v1754_v49 = vmul.f32 %v6934_v48, %v8451_v8  ;;  %6935 = vrcp.f32 %v1736_v50  ;;  %v1742_v55 = vpop.xlane.xlu1 %1741 }
 0x724   :  { %v1813_v36 = vpack.c.bf16 %v1599_v15, %v1597_v43  ;;  %6937 = vrcp.f32 %v1733_v23 }
 0x725   :  { %v1760_v28 = vpack.c.bf16 %v1754_v49, %v1753_v52  ;;  %6939 = vrcp.f32 %v1742_v55 }
 0x726   :  { %6410 = vmatmul.msk.bf16.gmra.mxu3 %vm813_vm9, %v1813_v36  ;;  %6941 = vrcp.f32 %v1739_v19 }
 0x729   :  { %v6936_v60 = vpop.eup %6935 }
 0x72a   :  { %v6938_v25 = vpop.eup %6937  ;;  %v1756_v40 = vmul.f32 %v6936_v60, %v8476_v34 }
 0x72b   :  { %v1755_v31 = vmul.f32 %v6938_v25, %v8464_v33  ;;  %v6940_v8 = vpop.eup %6939  ;;  %v1936_v20 = vpop.f32.mrf.mxu0 }
 0x72c   :  { %v6942_v26 = vpop.eup %6941  ;;  %v1758_v7 = vmul.f32 %v6940_v8, %v8478_v29 }
 0x72d   :  { %v1761_v32 = vpack.c.bf16 %v1756_v40, %v1755_v31  ;;  %v1757_v4 = vmul.f32 %v6942_v26, %v8468_v27 }
 0x72f   :  { %6400 = vmatmul.msk.bf16.gmra.mxu2 %vm79_vm0, %v1760_v28  ;;  %v1762_v13 = vpack.c.bf16 %v1758_v7, %v1757_v4 }
 0x733   :  { %v1938_v34 = vpop.f32.mrf.mxu0 }
 0x73b   :  { %v1941_v29 = vpop.f32.mrf.mxu0 }
 0x73f   :  { %6401 = vmatmul.msk.bf16.gmra.mxu2 %vm79_vm0, %v1761_v32 }
 0x743   :  { %v1943_v14 = vpop.f32.mrf.mxu0 }
 0x74b   :  { %v1946_v62 = vpop.f32.mrf.mxu0 }
 0x74f   :  { %6402 = vmatmul.msk.bf16.gmra.mxu2 %vm79_vm0, %v1762_v13 }
 0x753   :  { %v1948_v28 = vpop.f32.mrf.mxu0 }
 0x75b   :  { %v1951_v19 = vpop.f32.mrf.mxu0 }
 0x779   :  { %v1857_v6 = vpop.f32.mrf.mxu3 }
 0x77a   :  { %v1937_v33 = vadd.f32 %v1936_v20, %v1857_v6 }
 0x77c   :  { %v1976_v56 = vadd.f32 %v1937_v33, %v7436_v38 }
 0x77e   :  { %v8532_v63 = vadd.f32 %v8528_v1, %v1976_v56 }
 0x780   :  { %v2011_v27 = vsel %vm155_vm1, %v8532_v63, 0.0  ;;  %v2075_v45 = vmul.f32 %v8532_v63, %v8532_v63 }
 0x781   :  { %v1859_v22 = vpop.f32.mrf.mxu3  ;;  %2012 = vadd.xlane.f32.xlu0 %v2011_v27 }
 0x782   :  { %v1939_v11 = vadd.f32 %v1938_v34, %v1859_v22  ;;  %v2091_v18 = vsel %vm155_vm1, %v2075_v45, 0.0 }
 0x783   :  { %2092 = vadd.xlane.f32.xlu1 %v2091_v18 }
 0x784   :  { %v1977_v41 = vadd.f32 %v1939_v11, %v7449_v44 }
 0x786   :  { %v8541_v38 = vadd.f32 %v8528_v1, %v1977_v41 }
 0x788   :  { %v2014_v30 = vsel %vm155_vm1, %v8541_v38, 0.0  ;;  %v2076_v2 = vmul.f32 %v8541_v38, %v8541_v38 }
 0x789   :  { %v1862_v5 = vpop.f32.mrf.mxu3  ;;  %2015 = vadd.xlane.f32.xlu2 %v2014_v30 }
 0x78a   :  { %v1942_v9 = vadd.f32 %v1941_v29, %v1862_v5  ;;  %v2094_v47 = vsel %vm155_vm1, %v2076_v2, 0.0  ;;  %v1953_v29 = vpop.f32.mrf.mxu0 }
 0x78b   :  { %2095 = vadd.xlane.f32.xlu0 %v2094_v47 }
 0x78c   :  { %v1978_v61 = vadd.f32 %v1942_v9, %v7468_v51 }
 0x78e   :  { %v8550_v44 = vadd.f32 %v8528_v1, %v1978_v61 }
 0x790   :  { %v2017_v35 = vsel %vm155_vm1, %v8550_v44, 0.0  ;;  %v2077_v43 = vmul.f32 %v8550_v44, %v8550_v44 }
 0x791   :  { %v1864_v3 = vpop.f32.mrf.mxu3  ;;  %2018 = vadd.xlane.f32.xlu2 %v2017_v35 }
 0x792   :  { %v1944_v24 = vadd.f32 %v1943_v14, %v1864_v3  ;;  %v2097_v16 = vsel %vm155_vm1, %v2077_v43, 0.0 }
 0x793   :  { %2098 = vadd.xlane.f32.xlu0 %v2097_v16 }
 0x794   :  { %v1979_v15 = vadd.f32 %v1944_v24, %v7481_v57 }
 0x796   :  { %v8559_v51 = vadd.f32 %v8528_v1, %v1979_v15 }
 0x798   :  { %v2020_v36 = vsel %vm155_vm1, %v8559_v51, 0.0  ;;  %v2078_v10 = vmul.f32 %v8559_v51, %v8559_v51 }
 0x799   :  { %v1867_v48 = vpop.f32.mrf.mxu3  ;;  %2021 = vadd.xlane.f32.xlu1 %v2020_v36 }
 0x79a   :  { %v1947_v52 = vadd.f32 %v1946_v62, %v1867_v48  ;;  %v2100_v49 = vsel %vm155_vm1, %v2078_v10, 0.0  ;;  %v6661_v10 = vld [vmem:[%s11198_s1 + $0x48] sm:$0xff] }
 0x79b   :  { %2101 = vadd.xlane.f32.xlu2 %v2100_v49  ;;  %2498 = vmatpush.bf16.msrb.mxu1 %v6661_v10 }
 0x79c   :  { %v1980_v50 = vadd.f32 %v1947_v52, %v7500_v0 }
 0x79e   :  { %v8568_v57 = vadd.f32 %v8528_v1, %v1980_v50 }
 0x7a0   :  { %v2023_v23 = vsel %vm155_vm1, %v8568_v57, 0.0  ;;  %v2079_v60 = vmul.f32 %v8568_v57, %v8568_v57 }
 0x7a1   :  { %v1869_v25 = vpop.f32.mrf.mxu3  ;;  %2024 = vadd.xlane.f32.xlu1 %v2023_v23 }
 0x7a2   :  { %v1949_v40 = vadd.f32 %v1948_v28, %v1869_v25  ;;  %v1788_v31 = vpop.f32.mrf.mxu2  ;;  %v2103_v55 = vsel %vm155_vm1, %v2079_v60, 0.0  ;;  %v6660_v28 = vld [vmem:[%s11198_s1 + $0x40] sm:$0xff] }
 0x7a3   :  { %2104 = vadd.xlane.f32.xlu2 %v2103_v55  ;;  %2499 = vmatpush.bf16.msrb.mxu1 %v6660_v28 }
 0x7a4   :  { %v1981_v32 = vadd.f32 %v1949_v40, %v7509_v17 }
 0x7a6   :  { %v8577_v0 = vadd.f32 %v8528_v1, %v1981_v32 }
 0x7a8   :  { %v2026_v8 = vsel %vm155_vm1, %v8577_v0, 0.0  ;;  %v2080_v26 = vmul.f32 %v8577_v0, %v8577_v0 }
 0x7a9   :  { %2027 = vadd.xlane.f32.xlu0 %v2026_v8  ;;  %v1872_v7 = vpop.f32.mrf.mxu3 }
 0x7aa   :  { %v1790_v4 = vpop.f32.mrf.mxu2  ;;  %v1952_v13 = vadd.f32 %v1951_v19, %v1872_v7  ;;  %v2106_v20 = vsel %vm155_vm1, %v2080_v26, 0.0 }
 0x7ab   :  { %v1814_v34 = vpack.c.bf16 %v1790_v4, %v1788_v31  ;;  %2107 = vadd.xlane.f32.xlu1 %v2106_v20 }
 0x7ac   :  { %v1982_v17 = vadd.f32 %v1952_v13, %v7525_v37 }
 0x7ad   :  { %6411 = vmatmul.msk.bf16.gmra.mxu3 %vm813_vm9, %v1814_v34 }
 0x7ae   :  { %v8587_v6 = vadd.f32 %v8528_v1, %v1982_v17 }
 0x7b0   :  { %v2029_v33 = vsel %vm155_vm1, %v8587_v6, 0.0  ;;  %v2081_v56 = vmul.f32 %v8587_v6, %v8587_v6 }
 0x7b1   :  { %2030 = vadd.xlane.f32.xlu0 %v2029_v33  ;;  %v1874_v27 = vpop.f32.mrf.mxu3 }
 0x7b2   :  { %v1793_v45 = vpop.f32.mrf.mxu2  ;;  %v1954_v22 = vadd.f32 %v1953_v29, %v1874_v27  ;;  %v2109_v11 = vsel %vm155_vm1, %v2081_v56, 0.0 }
 0x7b3   :  { %2110 = vadd.xlane.f32.xlu1 %v2109_v11 }
 0x7b4   :  { %v1983_v37 = vadd.f32 %v1954_v22, %v7537_v46  ;;  %v8628_v22 = vld [vmem:[%s11200_s2 + $0x91] ss:$0 sm:$0xff] }
 0x7b6   :  { %v8596_v18 = vadd.f32 %v8528_v1, %v1983_v37 }
 0x7b8   :  { %v2032_v41 = vsel %vm155_vm1, %v8596_v18, 0.0  ;;  %v2082_v30 = vmul.f32 %v8596_v18, %v8596_v18 }
 0x7b9   :  { %2033 = vadd.xlane.f32.xlu2 %v2032_v41 }
 0x7ba   :  { %v1795_v2 = vpop.f32.mrf.mxu2  ;;  %v2112_v14 = vsel %vm155_vm1, %v2082_v30, 0.0 }
 0x7bb   :  { %v1815_v5 = vpack.c.bf16 %v1795_v2, %v1793_v45  ;;  %2113 = vadd.xlane.f32.xlu0 %v2112_v14 }
 0x7bd   :  { %6412 = vmatmul.msk.bf16.gmra.mxu3 %vm813_vm9, %v1815_v5 }
 0x7c2   :  { %v1798_v9 = vpop.f32.mrf.mxu2 }
 0x7ca   :  { %v1800_v47 = vpop.f32.mrf.mxu2 }
 0x7cb   :  { %v1816_v46 = vpack.c.bf16 %v1800_v47, %v1798_v9 }
 0x7cd   :  { %6413 = vmatmul.msk.bf16.gmra.mxu3 %vm813_vm9, %v1816_v46 }
 0x7d2   :  { %v1803_v61 = vpop.f32.mrf.mxu2 }
 0x7da   :  { %v1805_v35 = vpop.f32.mrf.mxu2 }
 0x7db   :  { %v1817_v43 = vpack.c.bf16 %v1805_v35, %v1803_v61 }
 0x7dd   :  { %6414 = vmatmul.msk.bf16.gmra.mxu3 %vm813_vm9, %v1817_v43 }
 0x7f4   :  { %v2013_v3 = vpop.xlane.xlu0 %2012 }
 0x7f5   :  { %v2059_v24 = vmul.f32 %v2013_v3, %v7588_v42 }
 0x7f6   :  { %v2093_v16 = vpop.xlane.xlu1 %2092 }
 0x7f7   :  { %v2155_v62 = vmul.f32 %v2059_v24, %v2059_v24  ;;  %v2139_v15 = vmul.f32 %v2093_v16, %v7588_v42 }
 0x7f9   :  { %v2171_v36 = vsub.f32 %v2139_v15, %v2155_v62  ;;  %v8640_v15 = vld [vmem:[%s11200_s2 + $0x92] ss:$0 sm:$0xff] }
 0x7fb   :  { %v2187_v48 = vadd.f32 1e-06, %v2171_v36 }
 0x7fc   :  { %v2016_v52 = vpop.xlane.xlu2 %2015 }
 0x7fd   :  { %6943 = vrsqrt.f32 %v2187_v48  ;;  %v2060_v49 = vmul.f32 %v2016_v52, %v7588_v42  ;;  %vm2209_vm11 = vweird.f32 %v2187_v48 }
 0x7fe   :  { %v2096_v50 = vpop.xlane.xlu0 %2095 }
 0x7ff   :  { %v2156_v23 = vmul.f32 %v2060_v49, %v2060_v49  ;;  %v2140_v60 = vmul.f32 %v2096_v50, %v7588_v42 }
 0x801   :  { %v2172_v25 = vsub.f32 %v2140_v60, %v2156_v23 }
 0x803   :  { %v6944_v40 = vpop.eup %6943  ;;  %v2188_v31 = vadd.f32 1e-06, %v2172_v25 }
 0x804   :  { %v2204_v55 = vmul.f32 %v6944_v40, %v2187_v48  ;;  %v2019_v32 = vpop.xlane.xlu2 %2018  ;;  %vm2210_vm10 = vweird.f32 %v6944_v40 }
 0x805   :  { %6945 = vrsqrt.f32 %v2188_v31  ;;  %v8617_v19 = vmul.f32 %v2019_v32, %v7588_v42  ;;  %vm2211_vm12 = vmor %vm2209_vm11, %vm2210_vm10  ;;  %vm2219_vm14 = vweird.f32 %v2188_v31 }
 0x806   :  { %v2205_v8 = vmul.f32 %v6944_v40, %v2204_v55  ;;  %v2099_v26 = vpop.xlane.xlu0 %2098 }
 0x807   :  { %v2157_v7 = vmul.f32 %v8617_v19, %v8617_v19  ;;  %v2141_v4 = vmul.f32 %v2099_v26, %v7588_v42 }
 0x808   :  { %v2206_v13 = vmul.f32 0.5, %v2205_v8 }
 0x809   :  { %v2173_v20 = vsub.f32 %v2141_v4, %v2157_v7 }
 0x80a   :  { %v2207_v34 = vsub.f32 1.5, %v2206_v13 }
 0x80b   :  { %v6946_v17 = vpop.eup %6945  ;;  %v2189_v33 = vadd.f32 1e-06, %v2173_v20 }
 0x80c   :  { %v2208_v56 = vmul.f32 %v6944_v40, %v2207_v34  ;;  %v2214_v29 = vmul.f32 %v6946_v17, %v2188_v31  ;;  %v2022_v27 = vpop.xlane.xlu1 %2021  ;;  %vm2220_vm13 = vweird.f32 %v6946_v17 }
 0x80d   :  { %6947 = vrsqrt.f32 %v2189_v33  ;;  %v8623_v45 = vmul.f32 %v2022_v27, %v7588_v42  ;;  %vm2221_vm15 = vmor %vm2219_vm14, %vm2220_vm13  ;;  %vm2229_vm3 = vweird.f32 %v2189_v33 }
 0x80e   :  { %v2212_v11 = vsel %vm2211_vm12, %v6944_v40, %v2208_v56  ;;  %v2215_v37 = vmul.f32 %v6946_v17, %v2214_v29  ;;  %v2102_v41 = vpop.xlane.xlu2 %2101 }
 0x80f   :  { %v2158_v30 = vmul.f32 %v8623_v45, %v8623_v45  ;;  %v2142_v2 = vmul.f32 %v2102_v41, %v7588_v42  ;;  %v2363_v5 = vmul.f32 %v2212_v11, %v8628_v22 }
 0x810   :  { %v2216_v14 = vmul.f32 0.5, %v2215_v37 }
 0x811   :  { %v2174_v9 = vsub.f32 %v2142_v2, %v2158_v30  ;;  %v2395_v16 = vmul.f32 %v2363_v5, %v2059_v24  ;;  %v2379_v55 = vmul.f32 %v2363_v5, %v8532_v63  ;;  %v1956_v2 = vpop.f32.mrf.mxu0 }
 0x812   :  { %v2217_v47 = vsub.f32 1.5, %v2216_v14 }
 0x813   :  { %v6948_v46 = vpop.eup %6947  ;;  %v2190_v61 = vadd.f32 1e-06, %v2174_v9  ;;  %v2411_v23 = vsub.f32 %v8640_v15, %v2395_v16 }
 0x814   :  { %v2218_v35 = vmul.f32 %v6946_v17, %v2217_v47  ;;  %v2224_v43 = vmul.f32 %v6948_v46, %v2189_v33  ;;  %v2025_v3 = vpop.xlane.xlu1 %2024  ;;  %vm2230_vm2 = vweird.f32 %v6948_v46 }
 0x815   :  { %6949 = vrsqrt.f32 %v2190_v61  ;;  %v8635_v62 = vmul.f32 %v2025_v3, %v7588_v42  ;;  %v2427_v20 = vadd.f32 %v2411_v23, %v2379_v55  ;;  %vm2231_vm4 = vmor %vm2229_vm3, %vm2230_vm2  ;;  %vm2239_vm6 = vweird.f32 %v2190_v61 }
 0x816   :  { %v2222_v36 = vsel %vm2221_vm15, %v6946_v17, %v2218_v35  ;;  %v2225_v10 = vmul.f32 %v6948_v46, %v2224_v43  ;;  %v2105_v48 = vpop.xlane.xlu2 %2104 }
 0x817   :  { %v2364_v52 = vmul.f32 %v2222_v36, %v8628_v22  ;;  %v2159_v50 = vmul.f32 %v8635_v62, %v8635_v62  ;;  %v2143_v24 = vmul.f32 %v2105_v48, %v7588_v42 }
 0x818   :  { %v2226_v28 = vmul.f32 0.5, %v2225_v10 }
 0x819   :  { %v2396_v60 = vmul.f32 %v2364_v52, %v2060_v49  ;;  %v2175_v25 = vsub.f32 %v2143_v24, %v2159_v50  ;;  %v2380_v32 = vmul.f32 %v2364_v52, %v8541_v38 }
 0x81a   :  { %v2227_v40 = vsub.f32 1.5, %v2226_v28 }
 0x81b   :  { %v6950_v31 = vpop.eup %6949  ;;  %v2412_v8 = vsub.f32 %v8640_v15, %v2396_v60  ;;  %v2191_v26 = vadd.f32 1e-06, %v2175_v25 }
 0x81c   :  { %v2228_v7 = vmul.f32 %v6948_v46, %v2227_v40  ;;  %v2234_v4 = vmul.f32 %v6950_v31, %v2190_v61  ;;  %v2028_v13 = vpop.xlane.xlu0 %2027  ;;  %vm2240_vm5 = vweird.f32 %v6950_v31 }
 0x81d   :  { %v2428_v34 = vadd.f32 %v2412_v8, %v2380_v32  ;;  %6951 = vrsqrt.f32 %v2191_v26  ;;  %v8651_v49 = vmul.f32 %v2028_v13, %v7588_v42  ;;  %vm2241_vm7 = vmor %vm2239_vm6, %vm2240_vm5  ;;  %v1958_v32 = vpop.f32.mrf.mxu0  ;;  %vm2249_vm10 = vweird.f32 %v2191_v26 }
 0x81e   :  { %v2232_v17 = vsel %vm2231_vm4, %v6948_v46, %v2228_v7  ;;  %v2235_v56 = vmul.f32 %v6950_v31, %v2234_v4  ;;  %v2108_v29 = vpop.xlane.xlu1 %2107 }
 0x81f   :  { %v2160_v27 = vmul.f32 %v8651_v49, %v8651_v49  ;;  %v2144_v11 = vmul.f32 %v2108_v29, %v7588_v42  ;;  %v2447_v37 = vpack.c.bf16 %v2428_v34, %v2427_v20  ;;  %v2365_v33 = vmul.f32 %v2232_v17, %v8628_v22 }
 0x820   :  { %v2236_v41 = vmul.f32 0.5, %v2235_v56 }
 0x821   :  { %v2176_v30 = vsub.f32 %v2144_v11, %v2160_v27  ;;  %6435 = vmatmul.msk.bf16.vlgmr.msrb.gmra.mxu1 %vm155_vm1, %v2447_v37  ;;  %v2397_v3 = vmul.f32 %v2365_v33, %v8617_v19  ;;  %v2381_v40 = vmul.f32 %v2365_v33, %v8550_v44 }
 0x822   :  { %v2237_v14 = vsub.f32 1.5, %v2236_v41 }
 0x823   :  { %v6952_v5 = vpop.eup %6951  ;;  %v2192_v9 = vadd.f32 1e-06, %v2176_v30  ;;  %v2413_v23 = vsub.f32 %v8640_v15, %v2397_v3 }
 0x824   :  { %v2238_v47 = vmul.f32 %v6950_v31, %v2237_v14  ;;  %v2244_v46 = vmul.f32 %v6952_v5, %v2191_v26  ;;  %v2031_v35 = vpop.xlane.xlu0 %2030  ;;  %vm2250_vm8 = vweird.f32 %v6952_v5 }
 0x825   :  { %6953 = vrsqrt.f32 %v2192_v9  ;;  %v8659_v43 = vmul.f32 %v2031_v35, %v7588_v42  ;;  %vm2251_vm11 = vmor %vm2249_vm10, %vm2250_vm8  ;;  %v2429_v13 = vadd.f32 %v2413_v23, %v2381_v40  ;;  %vm2259_vm13 = vweird.f32 %v2192_v9 }
 0x826   :  { %v2242_v16 = vsel %vm2241_vm7, %v6950_v31, %v2238_v47  ;;  %v2245_v36 = vmul.f32 %v6952_v5, %v2244_v46  ;;  %v2111_v10 = vpop.xlane.xlu1 %2110 }
 0x827   :  { %v2366_v48 = vmul.f32 %v2242_v16, %v8628_v22  ;;  %v2161_v52 = vmul.f32 %v8659_v43, %v8659_v43  ;;  %v2145_v50 = vmul.f32 %v2111_v10, %v7588_v42  ;;  %v1961_v10 = vpop.f32.mrf.mxu0 }
 0x828   :  { %v2246_v61 = vmul.f32 0.5, %v2245_v36 }
 0x829   :  { %v2177_v24 = vsub.f32 %v2145_v50, %v2161_v52  ;;  %v2398_v28 = vmul.f32 %v2366_v48, %v8623_v45  ;;  %v2382_v31 = vmul.f32 %v2366_v48, %v8559_v51 }
 0x82a   :  { %v2247_v60 = vsub.f32 1.5, %v2246_v61 }
 0x82b   :  { %v6954_v25 = vpop.eup %6953  ;;  %v2193_v19 = vadd.f32 1e-06, %v2177_v24  ;;  %v2414_v55 = vsub.f32 %v8640_v15, %v2398_v28 }
 0x82c   :  { %v2248_v8 = vmul.f32 %v6952_v5, %v2247_v60  ;;  %v2254_v7 = vmul.f32 %v6954_v25, %v2192_v9  ;;  %v2034_v4 = vpop.xlane.xlu2 %2033  ;;  %vm2260_vm12 = vweird.f32 %v6954_v25 }
 0x82d   :  { %6955 = vrsqrt.f32 %v2193_v19  ;;  %v8672_v45 = vmul.f32 %v2034_v4, %v7588_v42  ;;  %v2430_v20 = vadd.f32 %v2414_v55, %v2382_v31  ;;  %vm2261_vm14 = vmor %vm2259_vm13, %vm2260_vm12  ;;  %vm2269_vm2 = vweird.f32 %v2193_v19 }
 0x82e   :  { %v2252_v34 = vsel %vm2251_vm11, %v6952_v5, %v2248_v8  ;;  %v2255_v17 = vmul.f32 %v6954_v25, %v2254_v7  ;;  %v2114_v56 = vpop.xlane.xlu0 %2113 }
 0x82f   :  { %v2162_v29 = vmul.f32 %v8672_v45, %v8672_v45  ;;  %v2146_v27 = vmul.f32 %v2114_v56, %v7588_v42  ;;  %v2448_v11 = vpack.c.bf16 %v2430_v20, %v2429_v13  ;;  %v2367_v41 = vmul.f32 %v2252_v34, %v8628_v22 }
 0x830   :  { %v2256_v37 = vmul.f32 0.5, %v2255_v17  ;;  %v1877_v26 = vpop.f32.mrf.mxu3 }
 0x831   :  { %v2178_v33 = vsub.f32 %v2146_v27, %v2162_v29  ;;  %v1957_v30 = vadd.f32 %v1956_v2, %v1877_v26  ;;  %6436 = vmatmul.msk.bf16.gmra.mxu1 %vm155_vm1, %v2448_v11  ;;  %v2399_v36 = vmul.f32 %v2367_v41, %v8635_v62  ;;  %v2383_v31 = vmul.f32 %v2367_v41, %v8568_v57  ;;  %v1963_v29 = vpop.f32.mrf.mxu0 }
 0x832   :  { %v2257_v14 = vsub.f32 1.5, %v2256_v37 }
 0x833   :  { %v6956_v47 = vpop.eup %6955  ;;  %v2194_v5 = vadd.f32 1e-06, %v2178_v33  ;;  %v1984_v46 = vadd.f32 %v1957_v30, %v7543_v53  ;;  %v2415_v62 = vsub.f32 %v8640_v15, %v2399_v36 }
 0x834   :  { %v2258_v35 = vmul.f32 %v6954_v25, %v2257_v14  ;;  %v2264_v3 = vmul.f32 %v6956_v47, %v2193_v19  ;;  %vm2270_vm15 = vweird.f32 %v6956_v47 }
 0x835   :  { %6957 = vrsqrt.f32 %v2194_v5  ;;  %v8681_v16 = vadd.f32 %v8528_v1, %v1984_v46  ;;  %vm2271_vm3 = vmor %vm2269_vm2, %vm2270_vm15  ;;  %v2431_v4 = vadd.f32 %v2415_v62, %v2383_v31  ;;  %vm2279_vm5 = vweird.f32 %v2194_v5 }
 0x836   :  { %v2262_v2 = vsel %vm2261_vm14, %v6954_v25, %v2258_v35  ;;  %v2265_v48 = vmul.f32 %v6956_v47, %v2264_v3 }
 0x837   :  { %v2368_v52 = vmul.f32 %v2262_v2, %v8628_v22  ;;  %v2035_v50 = vsel %vm155_vm1, %v8681_v16, 0.0  ;;  %v2083_v53 = vmul.f32 %v8681_v16, %v8681_v16 }
 0x838   :  { %v2266_v9 = vmul.f32 0.5, %v2265_v48  ;;  %2036 = vadd.xlane.f32.xlu2 %v2035_v50  ;;  %v1879_v61 = vpop.f32.mrf.mxu3 }
 0x839   :  { %v1959_v24 = vadd.f32 %v1958_v32, %v1879_v61  ;;  %v2115_v28 = vsel %vm155_vm1, %v2083_v53, 0.0  ;;  %v2400_v23 = vmul.f32 %v2368_v52, %v8651_v49  ;;  %v2384_v55 = vmul.f32 %v2368_v52, %v8577_v0  ;;  %v1966_v52 = vpop.f32.mrf.mxu0 }
 0x83a   :  { %v2267_v60 = vsub.f32 1.5, %v2266_v9  ;;  %2116 = vadd.xlane.f32.xlu0 %v2115_v28 }
 0x83b   :  { %v6958_v25 = vpop.eup %6957  ;;  %v1985_v40 = vadd.f32 %v1959_v24, %v7549_v59  ;;  %v2416_v8 = vsub.f32 %v8640_v15, %v2400_v23 }
 0x83c   :  { %v2268_v7 = vmul.f32 %v6956_v47, %v2267_v60  ;;  %v2274_v32 = vmul.f32 %v6958_v25, %v2194_v5  ;;  %vm2280_vm4 = vweird.f32 %v6958_v25 }
 0x83d   :  { %v8697_v49 = vadd.f32 %v8528_v1, %v1985_v40  ;;  %v2432_v13 = vadd.f32 %v2416_v8, %v2384_v55  ;;  %vm2281_vm6 = vmor %vm2279_vm5, %vm2280_vm4 }
 0x83e   :  { %v2272_v20 = vsel %vm2271_vm3, %v6956_v47, %v2268_v7  ;;  %v2275_v34 = vmul.f32 %v6958_v25, %v2274_v32 }
 0x83f   :  { %v2038_v59 = vsel %vm155_vm1, %v8697_v49, 0.0  ;;  %v2084_v17 = vmul.f32 %v8697_v49, %v8697_v49  ;;  %v2449_v56 = vpack.c.bf16 %v2432_v13, %v2431_v4  ;;  %v2369_v11 = vmul.f32 %v2272_v20, %v8628_v22 }
 0x840   :  { %v2276_v27 = vmul.f32 0.5, %v2275_v34  ;;  %2039 = vadd.xlane.f32.xlu1 %v2038_v59  ;;  %v1882_v19 = vpop.f32.mrf.mxu3 }
 0x841   :  { %v1962_v37 = vadd.f32 %v1961_v10, %v1882_v19  ;;  %v2118_v26 = vsel %vm155_vm1, %v2084_v17, 0.0  ;;  %6437 = vmatmul.msk.bf16.gmra.mxu1 %vm155_vm1, %v2449_v56  ;;  %v2401_v47 = vmul.f32 %v2369_v11, %v8659_v43  ;;  %v2385_v50 = vmul.f32 %v2369_v11, %v8587_v6  ;;  %v1968_v31 = vpop.f32.mrf.mxu0 }
 0x842   :  { %v2277_v41 = vsub.f32 1.5, %v2276_v27  ;;  %2119 = vadd.xlane.f32.xlu2 %v2118_v26 }
 0x843   :  { %v1986_v33 = vadd.f32 %v1962_v37, %v7558_v21  ;;  %v2417_v48 = vsub.f32 %v8640_v15, %v2401_v47  ;;  %v11244_v47 = vld [vmem:[#allocation18_spill] sm:$0xff] }
 0x844   :  { %v2278_v30 = vmul.f32 %v6958_v25, %v2277_v41 }
 0x845   :  { %v8708_v14 = vadd.f32 %v8528_v1, %v1986_v33  ;;  %v2433_v24 = vadd.f32 %v2417_v48, %v2385_v50 }
 0x846   :  { %v2282_v46 = vsel %vm2281_vm6, %v6958_v25, %v2278_v30 }
 0x847   :  { %v2370_v35 = vmul.f32 %v2282_v46, %v8628_v22  ;;  %v2041_v3 = vsel %vm155_vm1, %v8708_v14, 0.0  ;;  %v2085_v36 = vmul.f32 %v8708_v14, %v8708_v14 }
 0x848   :  { %2042 = vadd.xlane.f32.xlu1 %v2041_v3  ;;  %v1884_v10 = vpop.f32.mrf.mxu3 }
 0x849   :  { %v1964_v21 = vadd.f32 %v1963_v29, %v1884_v10  ;;  %v2121_v5 = vsel %vm155_vm1, %v2085_v36, 0.0  ;;  %v2402_v2 = vmul.f32 %v2370_v35, %v8672_v45  ;;  %v2386_v53 = vmul.f32 %v2370_v35, %v8596_v18  ;;  %v1971_v34 = vpop.f32.mrf.mxu0  ;;  %v6663_v10 = vld [vmem:[%s11198_s1 + $0x58] sm:$0xff] }
 0x84a   :  { %2122 = vadd.xlane.f32.xlu2 %v2121_v5  ;;  %2715 = vmatpush.bf16.xpose.msrb.mxu2 %v6663_v10 }
 0x84b   :  { %v1987_v43 = vadd.f32 %v1964_v21, %v7564_v39  ;;  %v2418_v9 = vsub.f32 %v8640_v15, %v2402_v2  ;;  %v8777_v21 = vld [vmem:[%s11200_s2 + $0x93] ss:$0 sm:$0xff] }
 0x84d   :  { %v8724_v61 = vadd.f32 %v8528_v1, %v1987_v43  ;;  %v2434_v28 = vadd.f32 %v2418_v9, %v2386_v53 }
 0x84f   :  { %v2044_v45 = vsel %vm155_vm1, %v8724_v61, 0.0  ;;  %v2086_v23 = vmul.f32 %v8724_v61, %v8724_v61  ;;  %v2450_v62 = vpack.c.bf16 %v2434_v28, %v2433_v24 }
 0x850   :  { %2045 = vadd.xlane.f32.xlu0 %v2044_v45  ;;  %v1887_v39 = vpop.f32.mrf.mxu3 }
 0x851   :  { %v1967_v60 = vadd.f32 %v1966_v52, %v1887_v39  ;;  %v2124_v25 = vsel %vm155_vm1, %v2086_v23, 0.0  ;;  %6438 = vmatmul.msk.bf16.gmra.mxu1 %vm155_vm1, %v2450_v62  ;;  %v1973_v26 = vpop.f32.mrf.mxu0 }
 0x852   :  { %2125 = vadd.xlane.f32.xlu1 %v2124_v25 }
 0x853   :  { %v1988_v40 = vadd.f32 %v1967_v60, %v7578_v58 }
 0x855   :  { %v8734_v55 = vadd.f32 %v8528_v1, %v1988_v40 }
 0x857   :  { %v2047_v8 = vsel %vm155_vm1, %v8734_v55, 0.0  ;;  %v2087_v7 = vmul.f32 %v8734_v55, %v8734_v55 }
 0x858   :  { %2048 = vadd.xlane.f32.xlu0 %v2047_v8  ;;  %v1889_v32 = vpop.f32.mrf.mxu3 }
 0x859   :  { %v1969_v4 = vadd.f32 %v1968_v31, %v1889_v32  ;;  %v2127_v13 = vsel %vm155_vm1, %v2087_v7, 0.0 }
 0x85a   :  { %2128 = vadd.xlane.f32.xlu1 %v2127_v13 }
 0x85b   :  { %v1989_v20 = vadd.f32 %v1969_v4, %v7573_v54 }
 0x85d   :  { %v8743_v58 = vadd.f32 %v8528_v1, %v1989_v20 }
 0x85f   :  { %v2050_v59 = vsel %vm155_vm1, %v8743_v58, 0.0  ;;  %v2088_v17 = vmul.f32 %v8743_v58, %v8743_v58 }
 0x860   :  { %2051 = vadd.xlane.f32.xlu2 %v2050_v59  ;;  %v1892_v56 = vpop.f32.mrf.mxu3 }
 0x861   :  { %v1972_v29 = vadd.f32 %v1971_v34, %v1892_v56  ;;  %v2130_v27 = vsel %vm155_vm1, %v2088_v17, 0.0 }
 0x862   :  { %2131 = vadd.xlane.f32.xlu0 %v2130_v27 }
 0x863   :  { %v1990_v19 = vadd.f32 %v1972_v29, %v7586_v12 }
 0x865   :  { %v8752_v54 = vadd.f32 %v8528_v1, %v1990_v19 }
 0x867   :  { %v2053_v11 = vsel %vm155_vm1, %v8752_v54, 0.0  ;;  %v2089_v37 = vmul.f32 %v8752_v54, %v8752_v54 }
 0x868   :  { %2054 = vadd.xlane.f32.xlu2 %v2053_v11  ;;  %v1894_v41 = vpop.f32.mrf.mxu3 }
 0x869   :  { %v1974_v33 = vadd.f32 %v1973_v26, %v1894_v41  ;;  %v2133_v30 = vsel %vm155_vm1, %v2089_v37, 0.0 }
 0x86a   :  { %2134 = vadd.xlane.f32.xlu0 %v2133_v30 }
 0x86b   :  { %v1991_v46 = vadd.f32 %v1974_v33, %v11244_v47 }
 0x86d   :  { %v8761_v12 = vadd.f32 %v8528_v1, %v1991_v46  ;;  %v6662_v1 = vld [vmem:[%s11198_s1 + $0x50] sm:$0xff] }
 0x86e   :  { %2716 = vmatpush.bf16.xpose.msrb.mxu2 %v6662_v1 }
 0x86f   :  { %v2056_v35 = vsel %vm155_vm1, %v8761_v12, 0.0  ;;  %v2090_v3 = vmul.f32 %v8761_v12, %v8761_v12 }
 0x870   :  { %2057 = vadd.xlane.f32.xlu1 %v2056_v35 }
 0x871   :  { %v2136_v36 = vsel %vm155_vm1, %v2090_v3, 0.0 }
 0x872   :  { %2137 = vadd.xlane.f32.xlu2 %v2136_v36 }
 0x89e   :  { %v2501_v5 = vpop.f32.mrf.mxu1 }
 0x89f   :  { %v2502_v2 = vadd.f32 %v2501_v5, %v8777_v21 }
 0x8a1   :  { %v2541_v48 = vmul.f32 %v2502_v2, %v2502_v2 }
 0x8a3   :  { %v2557_v52 = vmul.f32 %v2541_v48, %v2502_v2 }
 0x8a5   :  { %v2573_v43 = vmul.f32 0.044715, %v2557_v52 }
 0x8a6   :  { %v2503_v50 = vpop.f32.mrf.mxu1 }
 0x8a7   :  { %v2589_v53 = vadd.f32 %v2573_v43, %v2502_v2  ;;  %v2504_v9 = vadd.f32 %v2503_v50, %v8777_v21 }
 0x8a9   :  { %v2605_v24 = vmul.f32 0.7978846, %v2589_v53  ;;  %v2542_v28 = vmul.f32 %v2504_v9, %v2504_v9 }
 0x8ab   :  { %v2558_v45 = vmul.f32 %v2542_v28, %v2504_v9  ;;  %v2037_v23 = vpop.xlane.xlu2 %2036  ;;  %6959 = vtanh.f32 %v2605_v24 }
 0x8ac   :  { %v8782_v62 = vmul.f32 %v2037_v23, %v7588_v42 }
 0x8ad   :  { %v2574_v39 = vmul.f32 0.044715, %v2558_v45  ;;  %v2117_v60 = vpop.xlane.xlu0 %2116 }
 0x8ae   :  { %v2163_v25 = vmul.f32 %v8782_v62, %v8782_v62  ;;  %v2147_v40 = vmul.f32 %v2117_v60, %v7588_v42  ;;  %v2506_v31 = vpop.f32.mrf.mxu1 }
 0x8af   :  { %v2590_v8 = vadd.f32 %v2574_v39, %v2504_v9  ;;  %v8788_v7 = vadd.f32 %v2506_v31, %v8777_v21 }
 0x8b0   :  { %v2179_v32 = vsub.f32 %v2147_v40, %v2163_v25 }
 0x8b1   :  { %v2606_v4 = vmul.f32 0.7978846, %v2590_v8  ;;  %v2543_v13 = vmul.f32 %v8788_v7, %v8788_v7  ;;  %v6960_v34 = vpop.eup %6959 }
 0x8b2   :  { %v2195_v20 = vadd.f32 1e-06, %v2179_v32  ;;  %v2637_v19 = vadd.f32 1.0, %v6960_v34 }
 0x8b3   :  { %6961 = vtanh.f32 %v2606_v4  ;;  %v2559_v59 = vmul.f32 %v2543_v13, %v8788_v7  ;;  %v2040_v17 = vpop.xlane.xlu1 %2039 }
 0x8b4   :  { %6963 = vrsqrt.f32 %v2195_v20  ;;  %v8794_v56 = vmul.f32 %v2040_v17, %v7588_v42  ;;  %v2653_v36 = vmul.f32 0.5, %v2637_v19  ;;  %vm2289_vm8 = vweird.f32 %v2195_v20 }
 0x8b5   :  { %v2575_v29 = vmul.f32 0.044715, %v2559_v59  ;;  %v2120_v27 = vpop.xlane.xlu2 %2119 }
 0x8b6   :  { %v2164_v11 = vmul.f32 %v8794_v56, %v8794_v56  ;;  %v2148_v37 = vmul.f32 %v2120_v27, %v7588_v42  ;;  %v2508_v26 = vpop.f32.mrf.mxu1  ;;  %v2669_v45 = vmul.f32 %v2653_v36, %v2502_v2 }
 0x8b7   :  { %v2591_v41 = vadd.f32 %v2575_v29, %v8788_v7  ;;  %v8801_v33 = vadd.f32 %v2508_v26, %v8777_v21 }
 0x8b8   :  { %v2180_v30 = vsub.f32 %v2148_v37, %v2164_v11 }
 0x8b9   :  { %v6962_v47 = vpop.eup %6961  ;;  %v2607_v46 = vmul.f32 0.7978846, %v2591_v41  ;;  %v2544_v35 = vmul.f32 %v8801_v33, %v8801_v33 }
 0x8ba   :  { %v6964_v3 = vpop.eup %6963  ;;  %v2638_v10 = vadd.f32 1.0, %v6962_v47  ;;  %v8805_v1 = vadd.f32 1e-06, %v2180_v30 }
 0x8bb   :  { %v2284_v5 = vmul.f32 %v6964_v3, %v2195_v20  ;;  %6965 = vtanh.f32 %v2607_v46  ;;  %v2560_v48 = vmul.f32 %v2544_v35, %v8801_v33  ;;  %v2043_v52 = vpop.xlane.xlu1 %2042  ;;  %vm2290_vm7 = vweird.f32 %v6964_v3 }
 0x8bc   :  { %v2654_v43 = vmul.f32 0.5, %v2638_v10  ;;  %6967 = vrsqrt.f32 %v8805_v1  ;;  %v8810_v50 = vmul.f32 %v2043_v52, %v7588_v42  ;;  %vm2291_vm10 = vmor %vm2289_vm8, %vm2290_vm7  ;;  %vm2299_vm12 = vweird.f32 %v8805_v1 }
 0x8bd   :  { %v2285_v53 = vmul.f32 %v6964_v3, %v2284_v5  ;;  %v2576_v24 = vmul.f32 0.044715, %v2560_v48  ;;  %v2123_v28 = vpop.xlane.xlu2 %2122 }
 0x8be   :  { %v2670_v23 = vmul.f32 %v2654_v43, %v2504_v9  ;;  %v2165_v39 = vmul.f32 %v8810_v50, %v8810_v50  ;;  %v2149_v60 = vmul.f32 %v2123_v28, %v7588_v42  ;;  %v2511_v25 = vpop.f32.mrf.mxu1 }
 0x8bf   :  { %v2286_v40 = vmul.f32 0.5, %v2285_v53  ;;  %v2592_v31 = vadd.f32 %v2576_v24, %v8801_v33  ;;  %v8817_v8 = vadd.f32 %v2511_v25, %v8777_v21 }
 0x8c0   :  { %v2689_v32 = vpack.c.bf16 %v2670_v23, %v2669_v45  ;;  %v2181_v4 = vsub.f32 %v2149_v60, %v2165_v39 }
 0x8c1   :  { %v6966_v13 = vpop.eup %6965  ;;  %v2287_v34 = vsub.f32 1.5, %v2286_v40  ;;  %v2608_v59 = vmul.f32 0.7978846, %v2592_v31  ;;  %v2545_v2 = vmul.f32 %v8817_v8, %v8817_v8 }
 0x8c2   :  { %v6968_v9 = vpop.eup %6967  ;;  %v8821_v17 = vadd.f32 1e-06, %v2181_v4  ;;  %2717 = vmatmul.bf16.vlgmr.msrb.gmra.mxu2 %v2689_v32  ;;  %v2639_v26 = vadd.f32 1.0, %v6966_v13 }
 0x8c3   :  { %v2288_v29 = vmul.f32 %v6964_v3, %v2287_v34  ;;  %v2294_v27 = vmul.f32 %v6968_v9, %v8805_v1  ;;  %v2561_v19 = vmul.f32 %v2545_v2, %v8817_v8  ;;  %v2046_v11 = vpop.xlane.xlu0 %2045  ;;  %vm2300_vm11 = vweird.f32 %v6968_v9 }
 0x8c4   :  { %6969 = vrsqrt.f32 %v8821_v17  ;;  %v8827_v37 = vmul.f32 %v2046_v11, %v7588_v42  ;;  %v2655_v24 = vmul.f32 0.5, %v2639_v26  ;;  %vm2309_vm13 = vweird.f32 %v8821_v17  ;;  %vm2301_vm14 = vmor %vm2299_vm12, %vm2300_vm11 }
 0x8c5   :  { %v2292_v41 = vsel %vm2291_vm10, %v6964_v3, %v2288_v29  ;;  %v2295_v30 = vmul.f32 %v6968_v9, %v2294_v27  ;;  %v2577_v47 = vmul.f32 0.044715, %v2561_v19  ;;  %v2126_v46 = vpop.xlane.xlu1 %2125  ;;  %6971 = vtanh.f32 %v2608_v59 }
 0x8c6   :  { %v2166_v20 = vmul.f32 %v8827_v37, %v8827_v37  ;;  %v2150_v35 = vmul.f32 %v2126_v46, %v7588_v42  ;;  %v2513_v36 = vpop.f32.mrf.mxu1  ;;  %v2371_v10 = vmul.f32 %v2292_v41, %v8628_v22  ;;  %v2671_v2 = vmul.f32 %v2655_v24, %v8788_v7 }
 0x8c7   :  { %v2296_v5 = vmul.f32 0.5, %v2295_v30  ;;  %v8834_v48 = vadd.f32 %v2513_v36, %v8777_v21  ;;  %v2593_v52 = vadd.f32 %v2577_v47, %v8817_v8 }
 0x8c8   :  { %v2182_v43 = vsub.f32 %v2150_v35, %v2166_v20  ;;  %v2403_v40 = vmul.f32 %v2371_v10, %v8782_v62 }
 0x8c9   :  { %v2297_v3 = vsub.f32 1.5, %v2296_v5  ;;  %v2546_v53 = vmul.f32 %v8834_v48, %v8834_v48  ;;  %v2609_v31 = vmul.f32 0.7978846, %v2593_v52 }
 0x8ca   :  { %v8839_v28 = vpop.eup %6969  ;;  %v8842_v45 = vadd.f32 1e-06, %v2182_v43  ;;  %v2419_v30 = vsub.f32 %v8640_v15, %v2403_v40 }
 0x8cb   :  { %v6972_v23 = vpop.eup %6971  ;;  %v2298_v39 = vmul.f32 %v6968_v9, %v2297_v3  ;;  %v2304_v60 = vmul.f32 %v8839_v28, %v8821_v17  ;;  %v2049_v25 = vpop.xlane.xlu0 %2048  ;;  %v2562_v32 = vmul.f32 %v2546_v53, %v8834_v48  ;;  %vm2310_vm15 = vweird.f32 %v8839_v28 }
 0x8cc   :  { %6973 = vrsqrt.f32 %v8842_v45  ;;  %v8851_v1 = vmul.f32 %v2049_v25, %v7588_v42  ;;  %v2640_v59 = vadd.f32 1.0, %v6972_v23  ;;  %v2387_v3 = vmul.f32 %v2371_v10, %v8681_v16  ;;  %vm8879_vm2 = vmor %vm2309_vm13, %vm2310_vm15 }
 0x8cd   :  { %v2302_v4 = vsel %vm2301_vm14, %v6968_v9, %v2298_v39  ;;  %v2305_v13 = vmul.f32 %v8839_v28, %v2304_v60  ;;  %v2129_v34 = vpop.xlane.xlu1 %2128  ;;  %v2578_v27 = vmul.f32 0.044715, %v2562_v32  ;;  %6975 = vtanh.f32 %v2609_v31 }
 0x8ce   :  { %v2372_v29 = vmul.f32 %v2302_v4, %v8628_v22  ;;  %v2167_v62 = vmul.f32 %v8851_v1, %v8851_v1  ;;  %v2151_v19 = vmul.f32 %v2129_v34, %v7588_v42  ;;  %v2516_v11 = vpop.f32.mrf.mxu1  ;;  %v2656_v9 = vmul.f32 0.5, %v2640_v59 }
 0x8cf   :  { %v2306_v26 = vmul.f32 0.5, %v2305_v13  ;;  %v8860_v41 = vadd.f32 %v2516_v11, %v8777_v21  ;;  %v2594_v47 = vadd.f32 %v2578_v27, %v8834_v48  ;;  %v2435_v40 = vadd.f32 %v2419_v30, %v2387_v3 }
 0x8d0   :  { %v2183_v7 = vsub.f32 %v2151_v19, %v2167_v62  ;;  %v2404_v46 = vmul.f32 %v2372_v29, %v8794_v56  ;;  %v2672_v36 = vmul.f32 %v2656_v9, %v8801_v33  ;;  %v2388_v60 = vmul.f32 %v2372_v29, %v8697_v49 }
 0x8d1   :  { %v2307_v20 = vsub.f32 1.5, %v2306_v26  ;;  %v2547_v35 = vmul.f32 %v8860_v41, %v8860_v41  ;;  %v2610_v52 = vmul.f32 0.7978846, %v2594_v47  ;;  %vm2319_vm4 = vweird.f32 %v8842_v45 }
 0x8d2   :  { %v6974_v5 = vpop.eup %6973  ;;  %v8869_v43 = vadd.f32 1e-06, %v2183_v7  ;;  %v2420_v53 = vsub.f32 %v8640_v15, %v2404_v46  ;;  %v2690_v25 = vpack.c.bf16 %v2672_v36, %v2671_v2 }
 0x8d3   :  { %v2308_v24 = vmul.f32 %v8839_v28, %v2307_v20  ;;  %v2314_v56 = vmul.f32 %v6974_v5, %v8842_v45  ;;  %v2563_v23 = vmul.f32 %v2547_v35, %v8860_v41  ;;  %v2052_v39 = vpop.xlane.xlu2 %2051  ;;  %v6976_v17 = vpop.eup %6975  ;;  %vm2320_vm3 = vweird.f32 %v6974_v5 }
 0x8d4   :  { %6977 = vrsqrt.f32 %v8869_v43  ;;  %v8885_v10 = vmul.f32 %v2052_v39, %v7588_v42  ;;  %v2436_v34 = vadd.f32 %v2420_v53, %v2388_v60  ;;  %2722 = vmatmul.bf16.gmra.mxu2 %v2690_v25  ;;  %v2641_v47 = vadd.f32 1.0, %v6976_v17  ;;  %vm2321_vm5 = vmor %vm2319_vm4, %vm2320_vm3 }
 0x8d5   :  { %v2312_v31 = vsel %vm8879_vm2, %v8839_v28, %v2308_v24  ;;  %v2315_v32 = vmul.f32 %v6974_v5, %v2314_v56  ;;  %v2579_v4 = vmul.f32 0.044715, %v2563_v23  ;;  %v2132_v13 = vpop.xlane.xlu0 %2131  ;;  %6979 = vtanh.f32 %v2610_v52 }
 0x8d6   :  { %v2168_v59 = vmul.f32 %v8885_v10, %v8885_v10  ;;  %v2152_v29 = vmul.f32 %v2132_v13, %v7588_v42  ;;  %v2518_v27 = vpop.f32.mrf.mxu1  ;;  %v2451_v28 = vpack.c.bf16 %v2436_v34, %v2435_v40  ;;  %v2373_v11 = vmul.f32 %v2312_v31, %v8628_v22 }
 0x8d7   :  { %v2316_v62 = vmul.f32 0.5, %v2315_v32  ;;  %v2595_v2 = vadd.f32 %v2579_v4, %v8860_v41  ;;  %v8895_v19 = vadd.f32 %v2518_v27, %v8777_v21  ;;  %v2657_v45 = vmul.f32 0.5, %v2641_v47 }
 0x8d8   :  { %v2184_v26 = vsub.f32 %v2152_v29, %v2168_v59  ;;  %6439 = vmatmul.msk.bf16.gmra.mxu1 %vm155_vm1, %v2451_v28  ;;  %v2405_v56 = vmul.f32 %v2373_v11, %v8810_v50  ;;  %v2389_v34 = vmul.f32 %v2373_v11, %v8708_v14  ;;  %vm2329_vm7 = vweird.f32 %v8869_v43 }
 0x8d9   :  { %v2317_v9 = vsub.f32 1.5, %v2316_v62  ;;  %v2548_v30 = vmul.f32 %v8895_v19, %v8895_v19  ;;  %v2611_v36 = vmul.f32 0.7978846, %v2595_v2  ;;  %v2673_v27 = vmul.f32 %v2657_v45, %v8817_v8 }
 0x8da   :  { %v6978_v7 = vpop.eup %6977  ;;  %v8901_v46 = vadd.f32 1e-06, %v2184_v26  ;;  %v2421_v59 = vsub.f32 %v8640_v15, %v2405_v56 }
 0x8db   :  { %v2318_v20 = vmul.f32 %v6974_v5, %v2317_v9  ;;  %v2324_v35 = vmul.f32 %v6978_v7, %v8869_v43  ;;  %v2055_v52 = vpop.xlane.xlu2 %2054  ;;  %v6980_v3 = vpop.eup %6979  ;;  %v2564_v53 = vmul.f32 %v2548_v30, %v8895_v19  ;;  %vm2330_vm6 = vweird.f32 %v6978_v7 }
 0x8dc   :  { %6981 = vrsqrt.f32 %v8901_v46  ;;  %v8908_v24 = vmul.f32 %v2055_v52, %v7588_v42  ;;  %v2642_v33 = vadd.f32 1.0, %v6980_v3  ;;  %vm2331_vm8 = vmor %vm2329_vm7, %vm2330_vm6  ;;  %vm2339_vm11 = vweird.f32 %v8901_v46 }
 0x8dd   :  { %v2322_v23 = vsel %vm2321_vm5, %v6974_v5, %v2318_v20  ;;  %v2325_v39 = vmul.f32 %v6978_v7, %v2324_v35  ;;  %v2135_v60 = vpop.xlane.xlu0 %2134  ;;  %v2580_v40 = vmul.f32 0.044715, %v2564_v53  ;;  %6983 = vtanh.f32 %v2611_v36 }
 0x8de   :  { %v2374_v25 = vmul.f32 %v2322_v23, %v8628_v22  ;;  %v2169_v31 = vmul.f32 %v8908_v24, %v8908_v24  ;;  %v2153_v32 = vmul.f32 %v2135_v60, %v7588_v42  ;;  %v2658_v13 = vmul.f32 0.5, %v2642_v33 }
 0x8df   :  { %v2326_v4 = vmul.f32 0.5, %v2325_v39  ;;  %v2596_v50 = vadd.f32 %v2580_v40, %v8895_v19 }
 0x8e0   :  { %v2185_v5 = vsub.f32 %v2153_v32, %v2169_v31  ;;  %v2406_v17 = vmul.f32 %v2374_v25, %v8827_v37  ;;  %v2674_v62 = vmul.f32 %v2658_v13, %v8834_v48  ;;  %v2390_v9 = vmul.f32 %v2374_v25, %v8724_v61 }
 0x8e1   :  { %v2327_v29 = vsub.f32 1.5, %v2326_v4  ;;  %v2612_v28 = vmul.f32 0.7978846, %v2596_v50  ;;  %v2437_v48 = vadd.f32 %v2421_v59, %v2389_v34 }
 0x8e2   :  { %v6982_v2 = vpop.eup %6981  ;;  %v2201_v26 = vadd.f32 1e-06, %v2185_v5  ;;  %v2422_v11 = vsub.f32 %v8640_v15, %v2406_v17  ;;  %v2691_v47 = vpack.c.bf16 %v2674_v62, %v2673_v27 }
 0x8e3   :  { %v2328_v30 = vmul.f32 %v6978_v7, %v2327_v29  ;;  %v2334_v37 = vmul.f32 %v6982_v2, %v8901_v46  ;;  %v2058_v20 = vpop.xlane.xlu1 %2057  ;;  %v6984_v36 = vpop.eup %6983  ;;  %vm2340_vm10 = vweird.f32 %v6982_v2 }
 0x8e4   :  { %6985 = vrsqrt.f32 %v2201_v26  ;;  %v8926_v8 = vmul.f32 %v2058_v20, %v7588_v42  ;;  %v2438_v35 = vadd.f32 %v2422_v11, %v2390_v9  ;;  %2727 = vmatmul.bf16.gmra.mxu2 %v2691_v47  ;;  %v2643_v45 = vadd.f32 1.0, %v6984_v36  ;;  %vm2341_vm12 = vmor %vm2339_vm11, %vm2340_vm10 }
 0x8e5   :  { %v2332_v52 = vsel %vm2331_vm8, %v6978_v7, %v2328_v30  ;;  %v2335_v3 = vmul.f32 %v6982_v2, %v2334_v37  ;;  %v2138_v53 = vpop.xlane.xlu2 %2137  ;;  %6987 = vtanh.f32 %v2612_v28  ;;  %vm2349_vm14 = vweird.f32 %v2201_v26 }
 0x8e6   :  { %v2170_v43 = vmul.f32 %v8926_v8, %v8926_v8  ;;  %v2154_v56 = vmul.f32 %v2138_v53, %v7588_v42  ;;  %v2452_v23 = vpack.c.bf16 %v2438_v35, %v2437_v48  ;;  %v2375_v60 = vmul.f32 %v2332_v52, %v8628_v22  ;;  %v7265_v52 = vld [vmem:[%s11200_s2 + $0x91] ss:$0 sm:$0xff] }
 0x8e7   :  { %v2336_v39 = vmul.f32 0.5, %v2335_v3  ;;  %v2659_v34 = vmul.f32 0.5, %v2643_v45 }
 0x8e8   :  { %v2186_v33 = vsub.f32 %v2154_v56, %v2170_v43  ;;  %6440 = vmatmul.msk.bf16.gmra.mxu1 %vm155_vm1, %v2452_v23  ;;  %v2407_v50 = vmul.f32 %v2375_v60, %v8851_v1  ;;  %v2391_v1 = vmul.f32 %v2375_v60, %v8734_v55 }
 0x8e9   :  { %v2337_v25 = vsub.f32 1.5, %v2336_v39  ;;  %v2675_v62 = vmul.f32 %v2659_v34, %v8860_v41 }
 0x8ea   :  { %v6986_v7 = vpop.eup %6985  ;;  %v2202_v40 = vadd.f32 1e-06, %v2186_v33  ;;  %v2423_v46 = vsub.f32 %v8640_v15, %v2407_v50 }
 0x8eb   :  { %v6988_v31 = vpop.eup %6987  ;;  %v2338_v32 = vmul.f32 %v6982_v2, %v2337_v25  ;;  %v2344_v4 = vmul.f32 %v6986_v7, %v2201_v26  ;;  %vm2350_vm13 = vweird.f32 %v6986_v7  ;;  %v7266_v25 = vld [vmem:[%s11200_s2 + $0x92] ss:$0 sm:$0xff] }
 0x8ec   :  { %6989 = vrsqrt.f32 %v2202_v40  ;;  %v2644_v13 = vadd.f32 1.0, %v6988_v31  ;;  %vm2351_vm15 = vmor %vm2349_vm14, %vm2350_vm13  ;;  %v2439_v41 = vadd.f32 %v2423_v46, %v2391_v1  ;;  %vm2359_vm3 = vweird.f32 %v2202_v40  ;;  %v8992_v1 = vld [vmem:[%s11198_s1 + $0x68] sm:$0xff] }
 0x8ed   :  { %v2342_v5 = vsel %vm2341_vm12, %v6982_v2, %v2338_v32  ;;  %v2345_v17 = vmul.f32 %v6986_v7, %v2344_v4  ;;  %3280 = vmatpush.bf16.msra.mxu3 %v8992_v1 }
 0x8ee   :  { %v2376_v59 = vmul.f32 %v2342_v5, %v8628_v22  ;;  %v2660_v29 = vmul.f32 0.5, %v2644_v13 }
 0x8ef   :  { %v2346_v27 = vmul.f32 0.5, %v2345_v17 }
 0x8f0   :  { %v2676_v28 = vmul.f32 %v2660_v29, %v8895_v19  ;;  %v2408_v9 = vmul.f32 %v2376_v59, %v8885_v10  ;;  %v2392_v2 = vmul.f32 %v2376_v59, %v8743_v58 }
 0x8f1   :  { %v2347_v11 = vsub.f32 1.5, %v2346_v27 }
 0x8f2   :  { %v6990_v30 = vpop.eup %6989  ;;  %v2692_v37 = vpack.c.bf16 %v2676_v28, %v2675_v62  ;;  %v2424_v22 = vsub.f32 %v8640_v15, %v2408_v9 }
 0x8f3   :  { %v2348_v47 = vmul.f32 %v6986_v7, %v2347_v11  ;;  %v2354_v20 = vmul.f32 %v6990_v30, %v2202_v40  ;;  %vm2360_vm2 = vweird.f32 %v6990_v30 }
 0x8f4   :  { %v2440_v19 = vadd.f32 %v2424_v22, %v2392_v2  ;;  %2732 = vmatmul.bf16.gmra.mxu2 %v2692_v37  ;;  %vm2361_vm4 = vmor %vm2359_vm3, %vm2360_vm2 }
 0x8f5   :  { %v2352_v48 = vsel %vm2351_vm15, %v6986_v7, %v2348_v47  ;;  %v2355_v10 = vmul.f32 %v6990_v30, %v2354_v20 }
 0x8f6   :  { %v2453_v35 = vpack.c.bf16 %v2440_v19, %v2439_v41  ;;  %v2377_v3 = vmul.f32 %v7265_v52, %v2352_v48 }
 0x8f7   :  { %v2356_v36 = vmul.f32 0.5, %v2355_v10 }
 0x8f8   :  { %6441 = vmatmul.msk.bf16.gmra.mxu1 %vm155_vm1, %v2453_v35  ;;  %v2409_v26 = vmul.f32 %v2377_v3, %v8908_v24  ;;  %v2393_v33 = vmul.f32 %v2377_v3, %v8752_v54 }
 0x8f9   :  { %v2357_v53 = vsub.f32 1.5, %v2356_v36 }
 0x8fa   :  { %v2425_v60 = vsub.f32 %v8640_v15, %v2409_v26 }
 0x8fb   :  { %v2358_v43 = vmul.f32 %v6990_v30, %v2357_v53 }
 0x8fc   :  { %v2441_v31 = vadd.f32 %v2425_v60, %v2393_v33 }
 0x8fd   :  { %v2362_v56 = vsel %vm2361_vm4, %v6990_v30, %v2358_v43 }
 0x8fe   :  { %v2378_v23 = vmul.f32 %v7265_v52, %v2362_v56 }
 0x900   :  { %v2410_v39 = vmul.f32 %v2378_v23, %v8926_v8  ;;  %v2394_v45 = vmul.f32 %v2378_v23, %v8761_v12  ;;  %v8959_v8 = vld [vmem:[%s11200_s2 + $0x94] ss:$0 sm:$0xff] }
 0x902   :  { %v2426_v7 = vsub.f32 %v7266_v25, %v2410_v39 }
 0x904   :  { %v2442_v40 = vadd.f32 %v2426_v7, %v2394_v45 }
 0x906   :  { %v2454_v32 = vpack.c.bf16 %v2442_v40, %v2441_v31 }
 0x908   :  { %6442 = vmatmul.msk.bf16.gmra.mxu1 %vm155_vm1, %v2454_v32 }
 0x945   :  { %v2718_v24 = vpop.f32.mrf.mxu2 }
 0x946   :  { %v2758_v15 = vadd.f32 %v2718_v24, %v8532_v63 }
 0x948   :  { %v8963_v4 = vadd.f32 %v8959_v8, %v2758_v15 }
 0x94a   :  { %v2793_v13 = vsel %vm155_vm1, %v8963_v4, 0.0  ;;  %v2857_v34 = vmul.f32 %v8963_v4, %v8963_v4 }
 0x94b   :  { %2794 = vadd.xlane.f32.xlu1 %v2793_v13  ;;  %v9026_v13 = vld [vmem:[%s11198_s1 + $0x60] sm:$0xff] }
 0x94c   :  { %v2873_v50 = vsel %vm155_vm1, %v2857_v34, 0.0  ;;  %3281 = vmatpush.bf16.msra.mxu3 %v9026_v13 }
 0x94d   :  { %2874 = vadd.xlane.f32.xlu2 %v2873_v50  ;;  %v2720_v5 = vpop.f32.mrf.mxu2 }
 0x94e   :  { %v2759_v17 = vadd.f32 %v2720_v5, %v8541_v38 }
 0x950   :  { %v8972_v59 = vadd.f32 %v8959_v8, %v2759_v17 }
 0x952   :  { %v2796_v63 = vsel %vm155_vm1, %v8972_v59, 0.0  ;;  %v2858_v29 = vmul.f32 %v8972_v59, %v8972_v59 }
 0x953   :  { %2797 = vadd.xlane.f32.xlu0 %v2796_v63 }
 0x954   :  { %v2876_v27 = vsel %vm155_vm1, %v2858_v29, 0.0 }
 0x955   :  { %2877 = vadd.xlane.f32.xlu1 %v2876_v27  ;;  %v2521_v62 = vpop.f32.mrf.mxu1 }
 0x956   :  { %v8980_v28 = vadd.f32 %v2521_v62, %v8777_v21 }
 0x957   :  { %v2723_v9 = vpop.f32.mrf.mxu2 }
 0x958   :  { %v2549_v38 = vmul.f32 %v8980_v28, %v8980_v28  ;;  %v2760_v46 = vadd.f32 %v2723_v9, %v8550_v44 }
 0x95a   :  { %v2565_v11 = vmul.f32 %v2549_v38, %v8980_v28  ;;  %v8987_v30 = vadd.f32 %v8959_v8, %v2760_v46 }
 0x95c   :  { %v2581_v37 = vmul.f32 0.044715, %v2565_v11  ;;  %v2799_v2 = vsel %vm155_vm1, %v8987_v30, 0.0  ;;  %v2859_v47 = vmul.f32 %v8987_v30, %v8987_v30 }
 0x95d   :  { %v2523_v22 = vpop.f32.mrf.mxu1  ;;  %2800 = vadd.xlane.f32.xlu0 %v2799_v2 }
 0x95e   :  { %v2597_v44 = vadd.f32 %v2581_v37, %v8980_v28  ;;  %v2524_v20 = vadd.f32 %v2523_v22, %v8777_v21  ;;  %v2879_v41 = vsel %vm155_vm1, %v2859_v47, 0.0 }
 0x95f   :  { %2880 = vadd.xlane.f32.xlu1 %v2879_v41  ;;  %v2725_v10 = vpop.f32.mrf.mxu2 }
 0x960   :  { %v2613_v19 = vmul.f32 0.7978846, %v2597_v44  ;;  %v2550_v48 = vmul.f32 %v2524_v20, %v2524_v20  ;;  %v2761_v35 = vadd.f32 %v2725_v10, %v8559_v51 }
 0x962   :  { %v2566_v36 = vmul.f32 %v2550_v48, %v2524_v20  ;;  %v9004_v52 = vadd.f32 %v8959_v8, %v2761_v35  ;;  %6991 = vtanh.f32 %v2613_v19 }
 0x964   :  { %v2582_v3 = vmul.f32 0.044715, %v2566_v36  ;;  %v2802_v53 = vsel %vm155_vm1, %v9004_v52, 0.0  ;;  %v2860_v26 = vmul.f32 %v9004_v52, %v9004_v52 }
 0x965   :  { %v2526_v43 = vpop.f32.mrf.mxu1  ;;  %2803 = vadd.xlane.f32.xlu2 %v2802_v53 }
 0x966   :  { %v2598_v56 = vadd.f32 %v2582_v3, %v2524_v20  ;;  %v9011_v23 = vadd.f32 %v2526_v43, %v8777_v21  ;;  %v2882_v51 = vsel %vm155_vm1, %v2860_v26, 0.0 }
 0x967   :  { %2883 = vadd.xlane.f32.xlu0 %v2882_v51  ;;  %v2728_v33 = vpop.f32.mrf.mxu2 }
 0x968   :  { %v2614_v39 = vmul.f32 0.7978846, %v2598_v56  ;;  %v2551_v60 = vmul.f32 %v9011_v23, %v9011_v23  ;;  %v2762_v45 = vadd.f32 %v2728_v33, %v8568_v57  ;;  %v6992_v25 = vpop.eup %6991 }
 0x969   :  { %v2645_v15 = vadd.f32 1.0, %v6992_v25 }
 0x96a   :  { %v2567_v7 = vmul.f32 %v2551_v60, %v9011_v23  ;;  %6993 = vtanh.f32 %v2614_v39  ;;  %v9019_v31 = vadd.f32 %v8959_v8, %v2762_v45 }
 0x96b   :  { %v2661_v38 = vmul.f32 0.5, %v2645_v15 }
 0x96c   :  { %v2583_v40 = vmul.f32 0.044715, %v2567_v7  ;;  %v2805_v32 = vsel %vm155_vm1, %v9019_v31, 0.0  ;;  %v2861_v27 = vmul.f32 %v9019_v31, %v9019_v31 }
 0x96d   :  { %v2528_v24 = vpop.f32.mrf.mxu1  ;;  %2806 = vadd.xlane.f32.xlu1 %v2805_v32 }
 0x96e   :  { %v2599_v57 = vadd.f32 %v2583_v40, %v9011_v23  ;;  %v2529_v34 = vadd.f32 %v2528_v24, %v8777_v21  ;;  %v2885_v2 = vsel %vm155_vm1, %v2861_v27, 0.0 }
 0x96f   :  { %v2730_v63 = vpop.f32.mrf.mxu2 }
 0x970   :  { %v6994_v50 = vpop.eup %6993  ;;  %v2615_v5 = vmul.f32 0.7978846, %v2599_v57  ;;  %v2552_v17 = vmul.f32 %v2529_v34, %v2529_v34  ;;  %v2763_v29 = vadd.f32 %v2730_v63, %v8577_v0  ;;  %v2677_v0 = vmul.f32 %v2661_v38, %v8980_v28 }
 0x971   :  { %v2646_v62 = vadd.f32 1.0, %v6994_v50 }
 0x972   :  { %v2568_v9 = vmul.f32 %v2552_v17, %v2529_v34  ;;  %v9035_v46 = vadd.f32 %v8959_v8, %v2763_v29  ;;  %6995 = vtanh.f32 %v2615_v5 }
 0x973   :  { %v2662_v11 = vmul.f32 0.5, %v2646_v62 }
 0x974   :  { %v2584_v37 = vmul.f32 0.044715, %v2568_v9  ;;  %v2808_v22 = vsel %vm155_vm1, %v9035_v46, 0.0  ;;  %v2862_v36 = vmul.f32 %v9035_v46, %v9035_v46 }
 0x975   :  { %v2531_v47 = vpop.f32.mrf.mxu1  ;;  %v2678_v44 = vmul.f32 %v2662_v11, %v2524_v20  ;;  %2886 = vadd.xlane.f32.xlu1 %v2885_v2  ;;  %2809 = vadd.xlane.f32.xlu0 %v2808_v22 }
 0x976   :  { %v2600_v41 = vadd.f32 %v2584_v37, %v2529_v34  ;;  %v9042_v19 = vadd.f32 %v2531_v47, %v8777_v21  ;;  %v2888_v26 = vsel %vm155_vm1, %v2862_v36, 0.0 }
 0x977   :  { %v2693_v48 = vpack.c.bf16 %v2678_v44, %v2677_v0  ;;  %v2733_v28 = vpop.f32.mrf.mxu2 }
 0x978   :  { %v2616_v10 = vmul.f32 0.7978846, %v2600_v41  ;;  %v2553_v35 = vmul.f32 %v9042_v19, %v9042_v19  ;;  %v6996_v3 = vpop.eup %6995  ;;  %v2764_v43 = vadd.f32 %v2733_v28, %v8587_v6 }
 0x979   :  { %2737 = vmatmul.bf16.gmra.mxu2 %v2693_v48  ;;  %v2647_v51 = vadd.f32 1.0, %v6996_v3 }
 0x97a   :  { %v2569_v53 = vmul.f32 %v2553_v35, %v9042_v19  ;;  %6997 = vtanh.f32 %v2616_v10  ;;  %v9056_v7 = vadd.f32 %v8959_v8, %v2764_v43 }
 0x97b   :  { %v2663_v6 = vmul.f32 0.5, %v2647_v51 }
 0x97c   :  { %v2585_v20 = vmul.f32 0.044715, %v2569_v53  ;;  %v2811_v57 = vsel %vm155_vm1, %v9056_v7, 0.0  ;;  %v2863_v37 = vmul.f32 %v9056_v7, %v9056_v7 }
 0x97d   :  { %v2533_v56 = vpop.f32.mrf.mxu1  ;;  %3326 = vrot.lane.b32.xlu2 %v8992_v1, %s7271_s15  ;;  %2889 = vadd.xlane.f32.xlu0 %v2888_v26  ;;  %v2679_v5 = vmul.f32 %v2663_v6, %v9011_v23 }
 0x97e   :  { %v2601_v39 = vadd.f32 %v2585_v20, %v9042_v19  ;;  %v2534_v60 = vadd.f32 %v2533_v56, %v8777_v21 }
 0x97f   :  { %v2735_v29 = vpop.f32.mrf.mxu2 }
 0x980   :  { %v6998_v33 = vpop.eup %6997  ;;  %v2617_v45 = vmul.f32 0.7978846, %v2601_v39  ;;  %v2554_v25 = vmul.f32 %v2534_v60, %v2534_v60  ;;  %v2765_v11 = vadd.f32 %v2735_v29, %v8596_v18 }
 0x981   :  { %v2648_v40 = vadd.f32 1.0, %v6998_v33 }
 0x982   :  { %v2570_v32 = vmul.f32 %v2554_v25, %v2534_v60  ;;  %6999 = vtanh.f32 %v2617_v45  ;;  %v9066_v23 = vadd.f32 %v8959_v8, %v2765_v11 }
 0x983   :  { %v2664_v24 = vmul.f32 0.5, %v2648_v40 }
 0x984   :  { %v2586_v15 = vmul.f32 0.044715, %v2570_v32  ;;  %v2864_v36 = vmul.f32 %v9066_v23, %v9066_v23 }
 0x985   :  { %v2536_v50 = vpop.f32.mrf.mxu1  ;;  %v2680_v17 = vmul.f32 %v2664_v24, %v2529_v34  ;;  %2812 = vadd.xlane.f32.xlu0 %v2811_v57  ;;  %v2891_v34 = vsel %vm155_vm1, %v2863_v37, 0.0 }
 0x986   :  { %v2602_v63 = vadd.f32 %v2586_v15, %v2534_v60  ;;  %v2537_v27 = vadd.f32 %v2536_v50, %v8777_v21  ;;  %v2894_v26 = vsel %vm155_vm1, %v2864_v36, 0.0  ;;  %v2814_v50 = vsel %vm155_vm1, %v9066_v23, 0.0 }
 0x987   :  { %v2694_v62 = vpack.c.bf16 %v2680_v17, %v2679_v5 }
 0x988   :  { %v2618_v38 = vmul.f32 0.7978846, %v2602_v63  ;;  %v2555_v9 = vmul.f32 %v2537_v27, %v2537_v27  ;;  %v7000_v2 = vpop.eup %6999 }
 0x989   :  { %2742 = vmatmul.bf16.gmra.mxu2 %v2694_v62  ;;  %v2649_v44 = vadd.f32 1.0, %v7000_v2 }
 0x98a   :  { %v2571_v22 = vmul.f32 %v2555_v9, %v2537_v27  ;;  %7001 = vtanh.f32 %v2618_v38 }
 0x98b   :  { %v2665_v53 = vmul.f32 0.5, %v2649_v44 }
 0x98c   :  { %v2587_v47 = vmul.f32 0.044715, %v2571_v22 }
 0x98d   :  { %v2538_v0 = vpop.f32.mrf.mxu1  ;;  %2892 = vadd.xlane.f32.xlu0 %v2891_v34  ;;  %v2681_v56 = vmul.f32 %v2665_v53, %v9042_v19 }
 0x98e   :  { %v2603_v41 = vadd.f32 %v2587_v47, %v2537_v27  ;;  %v2539_v48 = vadd.f32 %v2538_v0, %v8777_v21  ;;  %3324 = vrot.lane.b32.xlu1 %v9026_v13, %s7271_s15 }
 0x990   :  { %v7002_v18 = vpop.eup %7001  ;;  %v2619_v10 = vmul.f32 0.7978846, %v2603_v41  ;;  %v2556_v35 = vmul.f32 %v2539_v48, %v2539_v48 }
 0x991   :  { %v2650_v3 = vadd.f32 1.0, %v7002_v18 }
 0x992   :  { %v2572_v28 = vmul.f32 %v2556_v35, %v2539_v48  ;;  %7003 = vtanh.f32 %v2619_v10 }
 0x993   :  { %v2666_v20 = vmul.f32 0.5, %v2650_v3 }
 0x994   :  { %v2588_v43 = vmul.f32 0.044715, %v2572_v28 }
 0x995   :  { %v2682_v21 = vmul.f32 %v2666_v20, %v2534_v60  ;;  %2895 = vadd.xlane.f32.xlu0 %v2894_v26  ;;  %v9091_v26 = vld [vmem:[%s11200_s2 + $0xa3] ss:$0 sm:$0xff] }
 0x996   :  { %v2604_v51 = vadd.f32 %v2588_v43, %v2539_v48 }
 0x997   :  { %v2695_v39 = vpack.c.bf16 %v2682_v21, %v2681_v56 }
 0x998   :  { %v2620_v33 = vmul.f32 0.7978846, %v2604_v51  ;;  %v7004_v45 = vpop.eup %7003 }
 0x999   :  { %2747 = vmatmul.bf16.gmra.mxu2 %v2695_v39  ;;  %v2651_v25 = vadd.f32 1.0, %v7004_v45 }
 0x99a   :  { %7005 = vtanh.f32 %v2620_v33 }
 0x99b   :  { %v2667_v32 = vmul.f32 0.5, %v2651_v25 }
 0x99d   :  { %v2683_v15 = vmul.f32 %v2667_v32, %v2537_v27 }
 0x9a0   :  { %v7006_v40 = vpop.eup %7005 }
 0x9a1   :  { %v2652_v6 = vadd.f32 1.0, %v7006_v40 }
 0x9a3   :  { %v2668_v24 = vmul.f32 0.5, %v2652_v6 }
 0x9a5   :  { %v2684_v57 = vmul.f32 %v2668_v24, %v2539_v48 }
 0x9a6   :  { %2815 = vadd.xlane.f32.xlu2 %v2814_v50  ;;  %v9103_v50 = vld [vmem:[%s11200_s2 + $0xa4] ss:$0 sm:$0xff] }
 0x9a7   :  { %v2696_v19 = vpack.c.bf16 %v2684_v57, %v2683_v15 }
 0x9a9   :  { %2752 = vmatmul.bf16.gmra.mxu2 %v2696_v19 }
 0x9be   :  { %v2795_v60 = vpop.xlane.xlu1 %2794 }
 0x9bf   :  { %v2841_v5 = vmul.f32 %v2795_v60, %v7588_v42 }
 0x9c0   :  { %v2875_v17 = vpop.xlane.xlu2 %2874 }
 0x9c1   :  { %v2937_v63 = vmul.f32 %v2841_v5, %v2841_v5  ;;  %v2921_v29 = vmul.f32 %v2875_v17, %v7588_v42 }
 0x9c3   :  { %v2953_v62 = vsub.f32 %v2921_v29, %v2937_v63 }
 0x9c5   :  { %v2969_v38 = vadd.f32 1e-06, %v2953_v62 }
 0x9c6   :  { %v2798_v9 = vpop.xlane.xlu0 %2797 }
 0x9c7   :  { %7007 = vrsqrt.f32 %v2969_v38  ;;  %v2842_v27 = vmul.f32 %v2798_v9, %v7588_v42  ;;  %vm2991_vm6 = vweird.f32 %v2969_v38 }
 0x9c8   :  { %v2878_v11 = vpop.xlane.xlu1 %2877 }
 0x9c9   :  { %v2938_v37 = vmul.f32 %v2842_v27, %v2842_v27  ;;  %v2922_v2 = vmul.f32 %v2878_v11, %v7588_v42 }
 0x9cb   :  { %v2954_v22 = vsub.f32 %v2922_v2, %v2938_v37 }
 0x9cd   :  { %v7008_v47 = vpop.eup %7007  ;;  %v2970_v34 = vadd.f32 1e-06, %v2954_v22 }
 0x9ce   :  { %v2986_v0 = vmul.f32 %v7008_v47, %v2969_v38  ;;  %vm2992_vm5 = vweird.f32 %v7008_v47 }
 0x9cf   :  { %7009 = vrsqrt.f32 %v2970_v34  ;;  %vm2993_vm7 = vmor %vm2991_vm6, %vm2992_vm5  ;;  %vm3001_vm10 = vweird.f32 %v2970_v34 }
 0x9d0   :  { %v2987_v44 = vmul.f32 %v7008_v47, %v2986_v0  ;;  %v2801_v48 = vpop.xlane.xlu0 %2800 }
 0x9d1   :  { %v9083_v18 = vmul.f32 %v2801_v48, %v7588_v42 }
 0x9d2   :  { %v2988_v41 = vmul.f32 0.5, %v2987_v44  ;;  %v2881_v35 = vpop.xlane.xlu1 %2880 }
 0x9d3   :  { %v2939_v3 = vmul.f32 %v9083_v18, %v9083_v18  ;;  %v2923_v53 = vmul.f32 %v2881_v35, %v7588_v42 }
 0x9d4   :  { %v2989_v10 = vsub.f32 1.5, %v2988_v41 }
 0x9d5   :  { %v7010_v36 = vpop.eup %7009  ;;  %v2955_v43 = vsub.f32 %v2923_v53, %v2939_v3 }
 0x9d6   :  { %v2990_v28 = vmul.f32 %v7008_v47, %v2989_v10  ;;  %v2996_v20 = vmul.f32 %v7010_v36, %v2970_v34  ;;  %vm3002_vm8 = vweird.f32 %v7010_v36 }
 0x9d7   :  { %v2971_v51 = vadd.f32 1e-06, %v2955_v43  ;;  %vm3003_vm11 = vmor %vm3001_vm10, %vm3002_vm8 }
 0x9d8   :  { %v2994_v56 = vsel %vm2993_vm7, %v7008_v47, %v2990_v28  ;;  %v2997_v21 = vmul.f32 %v7010_v36, %v2996_v20  ;;  %v2804_v33 = vpop.xlane.xlu2 %2803 }
 0x9d9   :  { %v3145_v45 = vmul.f32 %v2994_v56, %v9091_v26  ;;  %7011 = vrsqrt.f32 %v2971_v51  ;;  %v9095_v40 = vmul.f32 %v2804_v33, %v7588_v42  ;;  %vm3011_vm13 = vweird.f32 %v2971_v51 }
 0x9da   :  { %v2998_v39 = vmul.f32 0.5, %v2997_v21  ;;  %v2884_v6 = vpop.xlane.xlu0 %2883 }
 0x9db   :  { %v2924_v32 = vmul.f32 %v2884_v6, %v7588_v42  ;;  %v2940_v15 = vmul.f32 %v9095_v40, %v9095_v40  ;;  %v3177_v57 = vmul.f32 %v3145_v45, %v2841_v5  ;;  %v3161_v2 = vmul.f32 %v3145_v45, %v8963_v4 }
 0x9dc   :  { %v2999_v25 = vsub.f32 1.5, %v2998_v39 }
 0x9dd   :  { %v2956_v60 = vsub.f32 %v2924_v32, %v2940_v15  ;;  %v3193_v11 = vsub.f32 %v9103_v50, %v3177_v57 }
 0x9de   :  { %v3000_v24 = vmul.f32 %v7010_v36, %v2999_v25 }
 0x9df   :  { %v7012_v17 = vpop.eup %7011  ;;  %v2972_v62 = vadd.f32 1e-06, %v2956_v60  ;;  %v3209_v0 = vadd.f32 %v3193_v11, %v3161_v2 }
 0x9e0   :  { %v3004_v19 = vsel %vm3003_vm11, %v7010_v36, %v3000_v24  ;;  %v3006_v29 = vmul.f32 %v7012_v17, %v2971_v51  ;;  %v3327_v38 = vpop.permute.xlu2 %3326  ;;  %v2807_v9 = vpop.xlane.xlu1 %2806  ;;  %vm3012_vm12 = vweird.f32 %v7012_v17 }
 0x9e1   :  { %v3146_v63 = vmul.f32 %v3004_v19, %v9091_v26  ;;  %3336 = vmatpush.bf16.msrb.mxu0 %v3327_v38  ;;  %7013 = vrsqrt.f32 %v2972_v62  ;;  %v9111_v41 = vmul.f32 %v2807_v9, %v7588_v42  ;;  %vm3013_vm14 = vmor %vm3011_vm13, %vm3012_vm12  ;;  %vm3021_vm2 = vweird.f32 %v2972_v62 }
 0x9e2   :  { %v3007_v5 = vmul.f32 %v7012_v17, %v3006_v29 }
 0x9e3   :  { %v3178_v37 = vmul.f32 %v3146_v63, %v2842_v27  ;;  %v3162_v22 = vmul.f32 %v3146_v63, %v8972_v59  ;;  %v2941_v28 = vmul.f32 %v9111_v41, %v9111_v41 }
 0x9e4   :  { %v3008_v34 = vmul.f32 0.5, %v3007_v5 }
 0x9e5   :  { %v3194_v47 = vsub.f32 %v9103_v50, %v3178_v37 }
 0x9e6   :  { %v3009_v48 = vsub.f32 1.5, %v3008_v34 }
 0x9e7   :  { %v3210_v44 = vadd.f32 %v3194_v47, %v3162_v22  ;;  %v7014_v27 = vpop.eup %7013 }
 0x9e8   :  { %v3010_v35 = vmul.f32 %v7012_v17, %v3009_v48  ;;  %v2810_v36 = vpop.xlane.xlu0 %2809  ;;  %v2887_v3 = vpop.xlane.xlu1 %2886  ;;  %v3016_v53 = vmul.f32 %v7014_v27, %v2972_v62  ;;  %vm3022_vm15 = vweird.f32 %v7014_v27 }
 0x9e9   :  { %v9113_v10 = vpack.c.bf16 %v3210_v44, %v3209_v0  ;;  %v2925_v20 = vmul.f32 %v2887_v3, %v7588_v42  ;;  %v9121_v33 = vmul.f32 %v2810_v36, %v7588_v42  ;;  %vm3023_vm3 = vmor %vm3021_vm2, %vm3022_vm15 }
 0x9ea   :  { %v3014_v43 = vsel %vm3013_vm14, %v7012_v17, %v3010_v35  ;;  %v3017_v56 = vmul.f32 %v7014_v27, %v3016_v53 }
 0x9eb   :  { %6459 = vmatmul.msk.bf16.vlgmr.msra.gmra.mxu3 %vm155_vm1, %v9113_v10  ;;  %v2957_v21 = vsub.f32 %v2925_v20, %v2941_v28  ;;  %v3147_v51 = vmul.f32 %v3014_v43, %v9091_v26  ;;  %v2942_v24 = vmul.f32 %v9121_v33, %v9121_v33 }
 0x9ec   :  { %v3018_v39 = vmul.f32 0.5, %v3017_v56 }
 0x9ed   :  { %v2973_v45 = vadd.f32 1e-06, %v2957_v21  ;;  %v3179_v57 = vmul.f32 %v3147_v51, %v9083_v18  ;;  %v3163_v62 = vmul.f32 %v3147_v51, %v8987_v30 }
 0x9ee   :  { %v3019_v25 = vsub.f32 1.5, %v3018_v39 }
 0x9ef   :  { %7015 = vrsqrt.f32 %v2973_v45  ;;  %v3195_v38 = vsub.f32 %v9103_v50, %v3179_v57  ;;  %vm3031_vm5 = vweird.f32 %v2973_v45 }
 0x9f0   :  { %v2890_v6 = vpop.xlane.xlu0 %2889  ;;  %v3020_v32 = vmul.f32 %v7014_v27, %v3019_v25 }
 0x9f1   :  { %v2926_v15 = vmul.f32 %v2890_v6, %v7588_v42  ;;  %v3211_v22 = vadd.f32 %v3195_v38, %v3163_v62 }
 0x9f2   :  { %v3024_v19 = vsel %vm3023_vm3, %v7014_v27, %v3020_v32 }
 0x9f3   :  { %v2958_v60 = vsub.f32 %v2926_v15, %v2942_v24  ;;  %v3148_v17 = vmul.f32 %v3024_v19, %v9091_v26 }
 0x9f5   :  { %v7016_v63 = vpop.eup %7015  ;;  %v2974_v29 = vadd.f32 1e-06, %v2958_v60  ;;  %v3180_v9 = vmul.f32 %v3148_v17, %v9095_v40  ;;  %v3164_v37 = vmul.f32 %v3148_v17, %v9004_v52 }
 0x9f6   :  { %v3026_v11 = vmul.f32 %v7016_v63, %v2973_v45  ;;  %vm3032_vm4 = vweird.f32 %v7016_v63 }
 0x9f7   :  { %7017 = vrsqrt.f32 %v2974_v29  ;;  %v3196_v5 = vsub.f32 %v9103_v50, %v3180_v9  ;;  %vm3033_vm6 = vmor %vm3031_vm5, %vm3032_vm4  ;;  %vm3041_vm8 = vweird.f32 %v2974_v29 }
 0x9f8   :  { %v3027_v18 = vmul.f32 %v7016_v63, %v3026_v11  ;;  %v2813_v2 = vpop.xlane.xlu0 %2812 }
 0x9f9   :  { %v3212_v47 = vadd.f32 %v3196_v5, %v3164_v37  ;;  %v9143_v53 = vmul.f32 %v2813_v2, %v7588_v42 }
 0x9fa   :  { %v3028_v34 = vmul.f32 0.5, %v3027_v18 }
 0x9fb   :  { %v9135_v27 = vpack.c.bf16 %v3212_v47, %v3211_v22  ;;  %v2943_v24 = vmul.f32 %v9143_v53, %v9143_v53 }
 0x9fc   :  { %v2738_v0 = vpop.f32.mrf.mxu2  ;;  %v3029_v44 = vsub.f32 1.5, %v3028_v34 }
 0x9fd   :  { %v2766_v48 = vadd.f32 %v2738_v0, %v8681_v16  ;;  %v7018_v40 = vpop.eup %7017  ;;  %6460 = vmatmul.msk.bf16.gmra.mxu3 %vm155_vm1, %v9135_v27 }
 0x9fe   :  { %v3030_v35 = vmul.f32 %v7016_v63, %v3029_v44  ;;  %v3036_v36 = vmul.f32 %v7018_v40, %v2974_v29  ;;  %vm3042_vm7 = vweird.f32 %v7018_v40 }
 0x9ff   :  { %v9138_v3 = vadd.f32 %v8959_v8, %v2766_v48  ;;  %vm3043_vm10 = vmor %vm3041_vm8, %vm3042_vm7 }
 0xa00   :  { %v3034_v28 = vsel %vm3033_vm6, %v7016_v63, %v3030_v35  ;;  %v3037_v20 = vmul.f32 %v7018_v40, %v3036_v36  ;;  %v2893_v43 = vpop.xlane.xlu0 %2892  ;;  %v3325_v16 = vpop.permute.xlu1 %3324 }
 0xa01   :  { %v2817_v56 = vsel %vm155_vm1, %v9138_v3, 0.0  ;;  %v2865_v21 = vmul.f32 %v9138_v3, %v9138_v3  ;;  %3337 = vmatpush.bf16.msrb.mxu0 %v3325_v16  ;;  %v2927_v45 = vmul.f32 %v2893_v43, %v7588_v42  ;;  %v3149_v25 = vmul.f32 %v3034_v28, %v9091_v26 }
 0xa02   :  { %2818 = vadd.xlane.f32.xlu1 %v2817_v56  ;;  %v3038_v39 = vmul.f32 0.5, %v3037_v20 }
 0xa03   :  { %v2897_v51 = vsel %vm155_vm1, %v2865_v21, 0.0  ;;  %v2959_v19 = vsub.f32 %v2927_v45, %v2943_v24  ;;  %v3181_v17 = vmul.f32 %v3149_v25, %v9111_v41  ;;  %v3165_v5 = vmul.f32 %v3149_v25, %v9019_v31 }
 0xa04   :  { %2898 = vadd.xlane.f32.xlu0 %v2897_v51  ;;  %v2740_v6 = vpop.f32.mrf.mxu2  ;;  %v3039_v32 = vsub.f32 1.5, %v3038_v39  ;;  %6467 = vmatmul.msk.bf16.vlgmr.msrb.gmra.mxu0 %vm155_vm1, %v9113_v10 }
 0xa05   :  { %v2767_v15 = vadd.f32 %v2740_v6, %v8697_v49  ;;  %v9162_v9 = vadd.f32 1e-06, %v2959_v19  ;;  %v3197_v62 = vsub.f32 %v9103_v50, %v3181_v17 }
 0xa06   :  { %v3040_v57 = vmul.f32 %v7018_v40, %v3039_v32 }
 0xa07   :  { %v9158_v60 = vadd.f32 %v8959_v8, %v2767_v15  ;;  %7019 = vrsqrt.f32 %v9162_v9  ;;  %v3213_v47 = vadd.f32 %v3197_v62, %v3165_v5  ;;  %vm3051_vm12 = vweird.f32 %v9162_v9 }
 0xa08   :  { %v3044_v63 = vsel %vm3043_vm10, %v7018_v40, %v3040_v57  ;;  %v2896_v43 = vpop.xlane.xlu0 %2895 }
 0xa09   :  { %v3150_v38 = vmul.f32 %v3044_v63, %v9091_v26  ;;  %v2820_v11 = vsel %vm155_vm1, %v9158_v60, 0.0  ;;  %v2866_v22 = vmul.f32 %v9158_v60, %v9158_v60  ;;  %v2928_v45 = vmul.f32 %v2896_v43, %v7588_v42 }
 0xa0b   :  { %v3182_v49 = vmul.f32 %v3150_v38, %v9121_v33  ;;  %v3166_v41 = vmul.f32 %v3150_v38, %v9035_v46  ;;  %v2900_v0 = vsel %vm155_vm1, %v2866_v22, 0.0 }
 0xa0c   :  { %2821 = vadd.xlane.f32.xlu0 %v2820_v11  ;;  %v2743_v29 = vpop.f32.mrf.mxu2 }
 0xa0d   :  { %v2768_v37 = vadd.f32 %v2743_v29, %v8708_v14  ;;  %v3198_v18 = vsub.f32 %v9103_v50, %v3182_v49  ;;  %v7020_v48 = vpop.eup %7019 }
 0xa0e   :  { %v3046_v28 = vmul.f32 %v7020_v48, %v9162_v9  ;;  %vm3052_vm11 = vweird.f32 %v7020_v48 }
 0xa0f   :  { %v9174_v2 = vadd.f32 %v8959_v8, %v2768_v37  ;;  %v3214_v33 = vadd.f32 %v3198_v18, %v3166_v41  ;;  %vm3053_vm13 = vmor %vm3051_vm12, %vm3052_vm11 }
 0xa10   :  { %v3047_v39 = vmul.f32 %v7020_v48, %v3046_v28 }
 0xa11   :  { %v2823_v34 = vsel %vm155_vm1, %v9174_v2, 0.0  ;;  %v9180_v14 = vpack.c.bf16 %v3214_v33, %v3213_v47  ;;  %v2867_v35 = vmul.f32 %v9174_v2, %v9174_v2 }
 0xa12   :  { %2824 = vadd.xlane.f32.xlu2 %v2823_v34  ;;  %v3048_v15 = vmul.f32 0.5, %v3047_v39 }
 0xa13   :  { %6461 = vmatmul.msk.bf16.gmra.mxu3 %vm155_vm1, %v9180_v14  ;;  %v2903_v20 = vsel %vm155_vm1, %v2867_v35, 0.0 }
 0xa14   :  { %2901 = vadd.xlane.f32.xlu0 %v2900_v0  ;;  %v2745_v44 = vpop.f32.mrf.mxu2  ;;  %6468 = vmatmul.msk.bf16.gmra.mxu0 %vm155_vm1, %v9135_v27  ;;  %v3049_v38 = vsub.f32 1.5, %v3048_v15 }
 0xa15   :  { %v2769_v40 = vadd.f32 %v2745_v44, %v8724_v61 }
 0xa16   :  { %v3050_v29 = vmul.f32 %v7020_v48, %v3049_v38 }
 0xa17   :  { %v9191_v36 = vadd.f32 %v8959_v8, %v2769_v40 }
 0xa18   :  { %v3054_v47 = vsel %vm3053_vm13, %v7020_v48, %v3050_v29 }
 0xa19   :  { %v2816_v16 = vpop.xlane.xlu2 %2815  ;;  %v2826_v21 = vsel %vm155_vm1, %v9191_v36, 0.0  ;;  %v2868_v24 = vmul.f32 %v9191_v36, %v9191_v36  ;;  %v3151_v44 = vmul.f32 %v3054_v47, %v9091_v26 }
 0xa1a   :  { %2904 = vadd.xlane.f32.xlu2 %v2903_v20  ;;  %v2848_v56 = vmul.f32 %v2816_v16, %v7588_v42 }
 0xa1b   :  { %v2906_v63 = vsel %vm155_vm1, %v2868_v24, 0.0  ;;  %v3183_v48 = vmul.f32 %v3151_v44, %v9143_v53  ;;  %v3167_v53 = vmul.f32 %v3151_v44, %v9056_v7 }
 0xa1c   :  { %2827 = vadd.xlane.f32.xlu0 %v2826_v21  ;;  %v2748_v61 = vpop.f32.mrf.mxu2  ;;  %v2944_v51 = vmul.f32 %v2848_v56, %v2848_v56 }
 0xa1d   :  { %v2770_v25 = vadd.f32 %v2748_v61, %v8734_v55  ;;  %v3199_v61 = vsub.f32 %v9103_v50, %v3183_v48 }
 0xa1e   :  { %v2960_v6 = vsub.f32 %v2928_v45, %v2944_v51 }
 0xa1f   :  { %v9201_v32 = vadd.f32 %v8959_v8, %v2770_v25 }
 0xa20   :  { %v2976_v57 = vadd.f32 1e-06, %v2960_v6 }
 0xa21   :  { %v2829_v19 = vsel %vm155_vm1, %v9201_v32, 0.0  ;;  %v2869_v17 = vmul.f32 %v9201_v32, %v9201_v32 }
 0xa22   :  { %2830 = vadd.xlane.f32.xlu2 %v2829_v19  ;;  %7021 = vrsqrt.f32 %v2976_v57  ;;  %vm3061_vm15 = vweird.f32 %v2976_v57 }
 0xa23   :  { %v2909_v55 = vsel %vm155_vm1, %v2869_v17, 0.0 }
 0xa24   :  { %2907 = vadd.xlane.f32.xlu0 %v2906_v63  ;;  %2910 = vadd.xlane.f32.xlu1 %v2909_v55  ;;  %v2750_v11 = vpop.f32.mrf.mxu2 }
 0xa25   :  { %6469 = vmatmul.msk.bf16.gmra.mxu0 %vm155_vm1, %v9180_v14  ;;  %v2771_v62 = vadd.f32 %v2750_v11, %v8743_v58 }
 0xa27   :  { %v9215_v49 = vadd.f32 %v8959_v8, %v2771_v62 }
 0xa28   :  { %v7022_v37 = vpop.eup %7021 }
 0xa29   :  { %v2870_v5 = vmul.f32 %v9215_v49, %v9215_v49  ;;  %v3056_v41 = vmul.f32 %v7022_v37, %v2976_v57  ;;  %v2832_v22 = vsel %vm155_vm1, %v9215_v49, 0.0  ;;  %vm3062_vm14 = vweird.f32 %v7022_v37 }
 0xa2a   :  { %vm3063_vm2 = vmor %vm3061_vm15, %vm3062_vm14 }
 0xa2b   :  { %v2912_v18 = vsel %vm155_vm1, %v2870_v5, 0.0  ;;  %v3057_v58 = vmul.f32 %v7022_v37, %v3056_v41 }
 0xa2c   :  { %2913 = vadd.xlane.f32.xlu2 %v2912_v18  ;;  %2833 = vadd.xlane.f32.xlu0 %v2832_v22  ;;  %v2753_v33 = vpop.f32.mrf.mxu2 }
 0xa2d   :  { %v2772_v34 = vadd.f32 %v2753_v33, %v8752_v54  ;;  %v3058_v0 = vmul.f32 0.5, %v3057_v58 }
 0xa2f   :  { %v9226_v40 = vadd.f32 %v8959_v8, %v2772_v34  ;;  %v3059_v9 = vsub.f32 1.5, %v3058_v0 }
 0xa31   :  { %v2871_v35 = vmul.f32 %v9226_v40, %v9226_v40  ;;  %v3060_v28 = vmul.f32 %v7022_v37, %v3059_v9  ;;  %v2835_v54 = vsel %vm155_vm1, %v9226_v40, 0.0 }
 0xa33   :  { %v2915_v20 = vsel %vm155_vm1, %v2871_v35, 0.0  ;;  %v3064_v43 = vsel %vm3063_vm2, %v7022_v37, %v3060_v28 }
 0xa34   :  { %2916 = vadd.xlane.f32.xlu2 %v2915_v20  ;;  %2836 = vadd.xlane.f32.xlu0 %v2835_v54  ;;  %v2755_v16 = vpop.f32.mrf.mxu2  ;;  %v3152_v21 = vmul.f32 %v3064_v43, %v9091_v26 }
 0xa35   :  { %v2773_v39 = vadd.f32 %v2755_v16, %v8761_v12  ;;  %v3215_v12 = vadd.f32 %v3199_v61, %v3167_v53 }
 0xa36   :  { %v3184_v45 = vmul.f32 %v3152_v21, %v2848_v56  ;;  %v3168_v25 = vmul.f32 %v3152_v21, %v9066_v23 }
 0xa37   :  { %v9238_v51 = vadd.f32 %v8959_v8, %v2773_v39 }
 0xa38   :  { %v3200_v6 = vsub.f32 %v9103_v50, %v3184_v45 }
 0xa39   :  { %v2838_v24 = vsel %vm155_vm1, %v9238_v51, 0.0  ;;  %v2872_v15 = vmul.f32 %v9238_v51, %v9238_v51 }
 0xa3a   :  { %2839 = vadd.xlane.f32.xlu1 %v2838_v24  ;;  %v3216_v57 = vadd.f32 %v3200_v6, %v3168_v25 }
 0xa3b   :  { %v2918_v56 = vsel %vm155_vm1, %v2872_v15, 0.0 }
 0xa3c   :  { %2919 = vadd.xlane.f32.xlu0 %v2918_v56  ;;  %v9248_v8 = vpack.c.bf16 %v3216_v57, %v3215_v12 }
 0xa3e   :  { %6462 = vmatmul.msk.bf16.gmra.mxu3 %vm155_vm1, %v9248_v8  ;;  %6470 = vmatmul.msk.bf16.gmra.mxu0 %vm155_vm1, %v9248_v8 }
 0xa4c   :  { %3380 = vrot.lane.b32.xlu2 %v9026_v13, %s7273_s22 }
 0xa53   :  { %3382 = vrot.lane.b32.xlu1 %v8992_v1, %s7273_s22 }
 0xa75   :  { %v2819_v19 = vpop.xlane.xlu1 %2818 }
 0xa76   :  { %v9259_v17 = vmul.f32 %v2819_v19, %v7588_v42 }
 0xa77   :  { %v2899_v63 = vpop.xlane.xlu0 %2898 }
 0xa78   :  { %v2945_v55 = vmul.f32 %v9259_v17, %v9259_v17  ;;  %v2929_v38 = vmul.f32 %v2899_v63, %v7588_v42 }
 0xa7a   :  { %v2961_v11 = vsub.f32 %v2929_v38, %v2945_v55 }
 0xa7c   :  { %v2977_v62 = vadd.f32 1e-06, %v2961_v11 }
 0xa7e   :  { %7023 = vrsqrt.f32 %v2977_v62  ;;  %vm3071_vm4 = vweird.f32 %v2977_v62 }
 0xa7f   :  { %v2822_v29 = vpop.xlane.xlu0 %2821 }
 0xa80   :  { %v9267_v5 = vmul.f32 %v2822_v29, %v7588_v42 }
 0xa81   :  { %v9264_v37 = vpop.f32.mrf.mxu0 }
 0xa82   :  { %v2946_v47 = vmul.f32 %v9267_v5, %v9267_v5 }
 0xa84   :  { %v7024_v13 = vpop.eup %7023 }
 0xa85   :  { %v3066_v1 = vmul.f32 %v7024_v13, %v2977_v62  ;;  %v2825_v41 = vpop.xlane.xlu2 %2824  ;;  %vm3072_vm3 = vweird.f32 %v7024_v13 }
 0xa86   :  { %v9273_v33 = vmul.f32 %v2825_v41, %v7588_v42  ;;  %vm3073_vm5 = vmor %vm3071_vm4, %vm3072_vm3 }
 0xa87   :  { %v3067_v18 = vmul.f32 %v7024_v13, %v3066_v1  ;;  %v2902_v22 = vpop.xlane.xlu0 %2901 }
 0xa88   :  { %v2930_v58 = vmul.f32 %v2902_v22, %v7588_v42  ;;  %v2947_v28 = vmul.f32 %v9273_v33, %v9273_v33 }
 0xa89   :  { %v3068_v0 = vmul.f32 0.5, %v3067_v18  ;;  %v9275_v9 = vpop.f32.mrf.mxu0 }
 0xa8a   :  { %v2962_v34 = vsub.f32 %v2930_v58, %v2946_v47 }
 0xa8b   :  { %v3069_v20 = vsub.f32 1.5, %v3068_v0 }
 0xa8c   :  { %v2978_v44 = vadd.f32 1e-06, %v2962_v34 }
 0xa8d   :  { %v2905_v35 = vpop.xlane.xlu2 %2904  ;;  %v3070_v21 = vmul.f32 %v7024_v13, %v3069_v20 }
 0xa8e   :  { %7025 = vrsqrt.f32 %v2978_v44  ;;  %v2931_v48 = vmul.f32 %v2905_v35, %v7588_v42  ;;  %vm3081_vm7 = vweird.f32 %v2978_v44 }
 0xa8f   :  { %v2828_v54 = vpop.xlane.xlu0 %2827  ;;  %v3074_v24 = vsel %vm3073_vm5, %v7024_v13, %v3070_v21 }
 0xa90   :  { %v2963_v43 = vsub.f32 %v2931_v48, %v2947_v28  ;;  %v9281_v61 = vmul.f32 %v2828_v54, %v7588_v42  ;;  %v3153_v62 = vmul.f32 %v3074_v24, %v9091_v26 }
 0xa91   :  { %v9283_v25 = vpop.f32.mrf.mxu0 }
 0xa92   :  { %v2979_v16 = vadd.f32 1e-06, %v2963_v43  ;;  %v2948_v57 = vmul.f32 %v9281_v61, %v9281_v61  ;;  %v3185_v34 = vmul.f32 %v3153_v62, %v9259_v17 }
 0xa94   :  { %v7026_v39 = vpop.eup %7025  ;;  %7027 = vrsqrt.f32 %v2979_v16  ;;  %vm3091_vm11 = vweird.f32 %v2979_v16 }
 0xa95   :  { %v3076_v45 = vmul.f32 %v7026_v39, %v2978_v44  ;;  %v2831_v53 = vpop.xlane.xlu2 %2830  ;;  %vm3082_vm6 = vweird.f32 %v7026_v39 }
 0xa96   :  { %v9286_v6 = vmul.f32 %v2831_v53, %v7588_v42  ;;  %vm3083_vm8 = vmor %vm3081_vm7, %vm3082_vm6 }
 0xa97   :  { %v3077_v15 = vmul.f32 %v7026_v39, %v3076_v45  ;;  %v2908_v12 = vpop.xlane.xlu0 %2907  ;;  %v2911_v63 = vpop.xlane.xlu1 %2910  ;;  %v3201_v45 = vsub.f32 %v9103_v50, %v3185_v34 }
 0xa98   :  { %v2949_v56 = vmul.f32 %v9286_v6, %v9286_v6  ;;  %v2932_v19 = vmul.f32 %v2908_v12, %v7588_v42  ;;  %v2933_v38 = vmul.f32 %v2911_v63, %v7588_v42 }
 0xa99   :  { %v3078_v55 = vmul.f32 0.5, %v3077_v15  ;;  %v9300_v20 = vpop.f32.mrf.mxu0 }
 0xa9a   :  { %v7028_v11 = vpop.eup %7027  ;;  %v2964_v29 = vsub.f32 %v2932_v19, %v2948_v57  ;;  %v2965_v41 = vsub.f32 %v2933_v38, %v2949_v56 }
 0xa9b   :  { %v3079_v1 = vsub.f32 1.5, %v3078_v55  ;;  %v3086_v13 = vmul.f32 %v7028_v11, %v2979_v16  ;;  %vm3092_vm10 = vweird.f32 %v7028_v11 }
 0xa9c   :  { %v2980_v18 = vadd.f32 1e-06, %v2964_v29  ;;  %v9295_v58 = vadd.f32 1e-06, %v2965_v41  ;;  %vm3093_vm12 = vmor %vm3091_vm11, %vm3092_vm10 }
 0xa9d   :  { %v3080_v22 = vmul.f32 %v7026_v39, %v3079_v1  ;;  %v3087_v47 = vmul.f32 %v7028_v11, %v3086_v13 }
 0xa9e   :  { %7029 = vrsqrt.f32 %v2980_v18  ;;  %vm3101_vm14 = vweird.f32 %v2980_v18  ;;  %vm3111_vm4 = vweird.f32 %v9295_v58 }
 0xa9f   :  { %v3084_v0 = vsel %vm3083_vm8, %v7026_v39, %v3080_v22  ;;  %v3088_v35 = vmul.f32 0.5, %v3087_v47  ;;  %7031 = vrsqrt.f32 %v9295_v58  ;;  %v2914_v28 = vpop.xlane.xlu2 %2913  ;;  %v2834_v54 = vpop.xlane.xlu0 %2833 }
 0xaa0   :  { %v3154_v48 = vmul.f32 %v3084_v0, %v9091_v26  ;;  %v9303_v44 = vmul.f32 %v2834_v54, %v7588_v42  ;;  %v2934_v17 = vmul.f32 %v2914_v28, %v7588_v42 }
 0xaa1   :  { %v3089_v43 = vsub.f32 1.5, %v3088_v35 }
 0xaa2   :  { %v3186_v21 = vmul.f32 %v3154_v48, %v9267_v5  ;;  %v2950_v39 = vmul.f32 %v9303_v44, %v9303_v44  ;;  %v3170_v24 = vmul.f32 %v3154_v48, %v9158_v60  ;;  %v3169_v5 = vmul.f32 %v3153_v62, %v9138_v3  ;;  %v9321_v62 = vpop.f32.mrf.mxu0 }
 0xaa3   :  { %v3090_v12 = vmul.f32 %v7028_v11, %v3089_v43 }
 0xaa4   :  { %v7030_v53 = vpop.eup %7029  ;;  %v3202_v15 = vsub.f32 %v9103_v50, %v3186_v21  ;;  %v2966_v19 = vsub.f32 %v2934_v17, %v2950_v39  ;;  %v3217_v1 = vadd.f32 %v3201_v45, %v3169_v5 }
 0xaa5   :  { %v9312_v57 = vpop.eup %7031  ;;  %v3096_v56 = vmul.f32 %v7030_v53, %v2980_v18  ;;  %v3094_v13 = vsel %vm3093_vm12, %v7028_v11, %v3090_v12  ;;  %vm3102_vm13 = vweird.f32 %v7030_v53 }
 0xaa6   :  { %v3218_v63 = vadd.f32 %v3202_v15, %v3170_v24  ;;  %v3106_v55 = vmul.f32 %v9312_v57, %v9295_v58  ;;  %v2982_v29 = vadd.f32 1e-06, %v2966_v19  ;;  %v3155_v35 = vmul.f32 %v3094_v13, %v9091_v26  ;;  %vm3103_vm15 = vmor %vm3101_vm14, %vm3102_vm13 }
 0xaa7   :  { %v3097_v38 = vmul.f32 %v7030_v53, %v3096_v56  ;;  %v2917_v41 = vpop.xlane.xlu2 %2916  ;;  %v2837_v22 = vpop.xlane.xlu0 %2836  ;;  %vm3112_vm2 = vweird.f32 %v9312_v57 }
 0xaa8   :  { %v3107_v34 = vmul.f32 %v9312_v57, %v3106_v55  ;;  %7033 = vrsqrt.f32 %v2982_v29  ;;  %v9319_v0 = vmul.f32 %v2837_v22, %v7588_v42  ;;  %v9323_v16 = vpack.c.bf16 %v3218_v63, %v3217_v1  ;;  %vm3113_vm5 = vmor %vm3111_vm4, %vm3112_vm2 }
 0xaa9   :  { %v3098_v47 = vmul.f32 0.5, %v3097_v38  ;;  %v2935_v48 = vmul.f32 %v2917_v41, %v7588_v42  ;;  %v3187_v24 = vmul.f32 %v3155_v35, %v9273_v33  ;;  %vm3121_vm6 = vweird.f32 %v2982_v29 }
 0xaaa   :  { %v2951_v11 = vmul.f32 %v9319_v0, %v9319_v0  ;;  %6463 = vmatmul.msk.bf16.gmra.mxu3 %vm155_vm1, %v9323_v16  ;;  %6471 = vmatmul.msk.bf16.gmra.mxu0 %vm155_vm1, %v9323_v16  ;;  %v3108_v43 = vmul.f32 0.5, %v3107_v34  ;;  %v3351_v22 = vpop.f32.mrf.mxu0  ;;  %v3171_v34 = vmul.f32 %v3155_v35, %v9174_v2 }
 0xaab   :  { %v3099_v28 = vsub.f32 1.5, %v3098_v47  ;;  %v3203_v33 = vsub.f32 %v9103_v50, %v3187_v24 }
 0xaac   :  { %v2967_v21 = vsub.f32 %v2935_v48, %v2951_v11  ;;  %v3109_v63 = vsub.f32 1.5, %v3108_v43 }
 0xaad   :  { %v3100_v54 = vmul.f32 %v7030_v53, %v3099_v28  ;;  %v2840_v45 = vpop.xlane.xlu1 %2839  ;;  %v3219_v43 = vadd.f32 %v3203_v33, %v3171_v34  ;;  %v9368_v33 = vld [vmem:[%s11200_s2 + $0x97] ss:$0 sm:$0xff] }
 0xaae   :  { %v9334_v17 = vmul.f32 %v2840_v45, %v7588_v42  ;;  %v7034_v39 = vpop.eup %7033  ;;  %v9337_v12 = vadd.f32 1e-06, %v2967_v21  ;;  %v3110_v28 = vmul.f32 %v9312_v57, %v3109_v63 }
 0xaaf   :  { %v3104_v15 = vsel %vm3103_vm15, %v7030_v53, %v3100_v54  ;;  %v3116_v19 = vmul.f32 %v7034_v39, %v2982_v29  ;;  %v2920_v5 = vpop.xlane.xlu0 %2919  ;;  %vm3122_vm3 = vweird.f32 %v7034_v39 }
 0xab0   :  { %v3156_v56 = vmul.f32 %v3104_v15, %v9091_v26  ;;  %7035 = vrsqrt.f32 %v9337_v12  ;;  %v2952_v18 = vmul.f32 %v9334_v17, %v9334_v17  ;;  %v2936_v1 = vmul.f32 %v2920_v5, %v7588_v42  ;;  %vm3123_vm7 = vmor %vm3121_vm6, %vm3122_vm3 }
 0xab1   :  { %v3117_v38 = vmul.f32 %v7034_v39, %v3116_v19  ;;  %v3114_v35 = vsel %vm3113_vm5, %v9312_v57, %v3110_v28  ;;  %vm3131_vm11 = vweird.f32 %v9337_v12 }
 0xab2   :  { %v3188_v55 = vmul.f32 %v3156_v56, %v9281_v61  ;;  %v3172_v53 = vmul.f32 %v3156_v56, %v9191_v36  ;;  %v2968_v47 = vsub.f32 %v2936_v1, %v2952_v18  ;;  %v3157_v5 = vmul.f32 %v3114_v35, %v9091_v26 }
 0xab3   :  { %v3118_v41 = vmul.f32 0.5, %v3117_v38 }
 0xab4   :  { %v3204_v13 = vsub.f32 %v9103_v50, %v3188_v55  ;;  %v2984_v11 = vadd.f32 1e-06, %v2968_v47  ;;  %v3189_v55 = vmul.f32 %v3157_v5, %v9286_v6 }
 0xab5   :  { %v3119_v61 = vsub.f32 1.5, %v3118_v41 }
 0xab6   :  { %v3220_v48 = vadd.f32 %v3204_v13, %v3172_v53  ;;  %v7036_v54 = vpop.eup %7035  ;;  %7037 = vrsqrt.f32 %v2984_v11  ;;  %v3205_v41 = vsub.f32 %v9103_v50, %v3189_v55  ;;  %vm3141_vm13 = vweird.f32 %v2984_v11 }
 0xab7   :  { %v3120_v21 = vmul.f32 %v7034_v39, %v3119_v61  ;;  %v3126_v45 = vmul.f32 %v7036_v54, %v9337_v12  ;;  %vm3132_vm8 = vweird.f32 %v7036_v54  ;;  %v3173_v61 = vmul.f32 %v3157_v5, %v9201_v32 }
 0xab8   :  { %v9354_v24 = vpack.c.bf16 %v3220_v48, %v3219_v43  ;;  %vm9376_vm12 = vmor %vm3131_vm11, %vm3132_vm8 }
 0xab9   :  { %v3124_v15 = vsel %vm3123_vm7, %v7034_v39, %v3120_v21  ;;  %v3127_v56 = vmul.f32 %v7036_v54, %v3126_v45 }
 0xaba   :  { %v3158_v19 = vmul.f32 %v3124_v15, %v9091_v26  ;;  %6464 = vmatmul.msk.bf16.gmra.mxu3 %vm155_vm1, %v9354_v24  ;;  %6472 = vmatmul.msk.bf16.gmra.mxu0 %vm155_vm1, %v9354_v24  ;;  %v3381_v15 = vpop.permute.xlu2 %3380 }
 0xabb   :  { %v3354_v58 = vpop.f32.mrf.mxu0  ;;  %v3128_v29 = vmul.f32 0.5, %v3127_v56  ;;  %v3221_v56 = vadd.f32 %v3205_v41, %v3173_v61 }
 0xabc   :  { %v7038_v63 = vpop.eup %7037  ;;  %v3190_v57 = vmul.f32 %v3158_v19, %v9303_v44  ;;  %v3174_v13 = vmul.f32 %v3158_v19, %v9215_v49  ;;  %v3355_v44 = vadd.f32 %v3354_v58, %v9368_v33  ;;  %v3352_v58 = vadd.f32 %v3351_v22, %v9368_v33 }
 0xabd   :  { %v3136_v18 = vmul.f32 %v7038_v63, %v2984_v11  ;;  %v3129_v39 = vsub.f32 1.5, %v3128_v29  ;;  %vm3142_vm10 = vweird.f32 %v7038_v63  ;;  %v3350_v11 = vadd.f32 %v9321_v62, %v9368_v33 }
 0xabe   :  { %v3206_v1 = vsub.f32 %v9103_v50, %v3190_v57  ;;  %vm3143_vm14 = vmor %vm3141_vm13, %vm3142_vm10  ;;  %v3347_v62 = vadd.f32 %v9300_v20, %v9368_v33  ;;  %v3342_v20 = vadd.f32 %v9275_v9, %v9368_v33 }
 0xabf   :  { %v3137_v38 = vmul.f32 %v7038_v63, %v3136_v18  ;;  %v3130_v34 = vmul.f32 %v7036_v54, %v3129_v39  ;;  %v3441_v22 = vpack.c.bf16 %v3352_v58, %v3350_v11 }
 0xac0   :  { %v3222_v43 = vadd.f32 %v3206_v1, %v3174_v13 }
 0xac1   :  { %v3138_v53 = vmul.f32 0.5, %v3137_v38  ;;  %v3134_v19 = vsel %vm9376_vm12, %v7036_v54, %v3130_v34  ;;  %v3283_v54 = vpop.f32.mrf.mxu3  ;;  %v3345_v38 = vadd.f32 %v9283_v25, %v9368_v33  ;;  %v3340_v25 = vadd.f32 %v9264_v37, %v9368_v33 }
 0xac2   :  { %v9384_v12 = vpack.c.bf16 %v3222_v43, %v3221_v56  ;;  %v3159_v18 = vmul.f32 %v3134_v19, %v9091_v26 }
 0xac3   :  { %v3356_v47 = vpop.f32.mrf.mxu0  ;;  %v3139_v6 = vsub.f32 1.5, %v3138_v53  ;;  %v3440_v13 = vpack.c.bf16 %v3347_v62, %v3345_v38 }
 0xac4   :  { %v3357_v28 = vadd.f32 %v3356_v47, %v9368_v33  ;;  %v3191_v55 = vmul.f32 %v3159_v18, %v9319_v0 }
 0xac5   :  { %v3383_v48 = vpop.permute.xlu1 %3382  ;;  %v3140_v45 = vmul.f32 %v7038_v63, %v3139_v6  ;;  %v3459_v47 = vsel %vm813_vm9, %v3440_v13, 0  ;;  %v9424_v6 = vld [vmem:[%s11200_s2 + $0x95] ss:$0 sm:$0xff] }
 0xac6   :  { %3392 = vmatpush.bf16.msra.mxu1 %v3383_v48  ;;  %v3442_v35 = vpack.c.bf16 %v3357_v28, %v3355_v44  ;;  %v3207_v1 = vsub.f32 %v9103_v50, %v3191_v55  ;;  %v3284_v48 = vadd.f32 %v3283_v54, %v9424_v6 }
 0xac7   :  { %v3144_v5 = vsel %vm3143_vm14, %v7038_v63, %v3140_v45 }
 0xac8   :  { %v3465_v29 = vsel %vm813_vm9, %v3442_v35, 0  ;;  %v3160_v57 = vmul.f32 %v3144_v5, %v9091_v26  ;;  %v3462_v26 = vsel %vm813_vm9, %v3441_v22, 0 }
 0xac9   :  { %3471 = vmatpush.bf16.xpose.msra.mxu2 %v3465_v29  ;;  %v3285_v0 = vpop.f32.mrf.mxu3 }
 0xaca   :  { %3393 = vmatpush.bf16.msra.mxu1 %v3381_v15  ;;  %6465 = vmatmul.msk.bf16.gmra.mxu3 %vm155_vm1, %v9384_v12  ;;  %v3192_v63 = vmul.f32 %v3160_v57, %v9334_v17  ;;  %v3176_v53 = vmul.f32 %v3160_v57, %v9238_v51  ;;  %v3175_v17 = vmul.f32 %v3159_v18, %v9226_v40 }
 0xacb   :  { %6473 = vmatmul.msk.bf16.gmra.mxu0 %vm155_vm1, %v9384_v12  ;;  %v3286_v37 = vadd.f32 %v3285_v0, %v9424_v6 }
 0xacc   :  { %v3208_v39 = vsub.f32 %v9103_v50, %v3192_v63  ;;  %v3223_v44 = vadd.f32 %v3207_v1, %v3175_v17  ;;  %v3439_v50 = vpack.c.bf16 %v3342_v20, %v3340_v25 }
 0xacd   :  { %6475 = vmatmul.msk.bf16.vlgmr.msra.gmra.mxu1 %vm155_vm1, %v9113_v10  ;;  %v3435_v61 = vpack.c.bf16 %v3286_v37, %v3284_v48 }
 0xace   :  { %v3224_v41 = vadd.f32 %v3208_v39, %v3176_v53  ;;  %v3456_v9 = vsel %vm813_vm9, %v3439_v50, 0 }
 0xad0   :  { %v9410_v34 = vpack.c.bf16 %v3224_v41, %v3223_v44 }
 0xad1   :  { %3472 = vmatpush.bf16.xpose.msra.mxu2 %v3462_v26  ;;  %v3288_v28 = vpop.f32.mrf.mxu3 }
 0xad2   :  { %v3289_v35 = vadd.f32 %v3288_v28, %v9424_v6 }
 0xad9   :  { %3473 = vmatpush.bf16.xpose.msra.mxu2 %v3459_v47  ;;  %v3290_v43 = vpop.f32.mrf.mxu3 }
 0xada   :  { %6466 = vmatmul.msk.bf16.gmra.mxu3 %vm155_vm1, %v9410_v34  ;;  %v3291_v21 = vadd.f32 %v3290_v43, %v9424_v6 }
 0xadb   :  { %6474 = vmatmul.msk.bf16.gmra.mxu0 %vm155_vm1, %v9410_v34 }
 0xadc   :  { %v3436_v15 = vpack.c.bf16 %v3291_v21, %v3289_v35 }
 0xadd   :  { %6476 = vmatmul.msk.bf16.gmra.mxu1 %vm155_vm1, %v9135_v27 }
 0xae1   :  { %3474 = vmatpush.bf16.xpose.msra.mxu2 %v3456_v9  ;;  %v3293_v45 = vpop.f32.mrf.mxu3 }
 0xae2   :  { %v3294_v58 = vadd.f32 %v3293_v45, %v9424_v6 }
 0xae8   :  { %6483 = vmatmul.msk.bf16.vlgmr.msra.gmra.mxu2 %vm813_vm9, %v3435_v61 }
 0xae9   :  { %v3295_v56 = vpop.f32.mrf.mxu3 }
 0xaea   :  { %v3296_v19 = vadd.f32 %v3295_v56, %v9424_v6 }
 0xaec   :  { %v3437_v29 = vpack.c.bf16 %v3296_v19, %v3294_v58 }
 0xaed   :  { %6477 = vmatmul.msk.bf16.gmra.mxu1 %vm155_vm1, %v9180_v14 }
 0xaf1   :  { %v3298_v5 = vpop.f32.mrf.mxu3 }
 0xaf2   :  { %v3299_v18 = vadd.f32 %v3298_v5, %v9424_v6 }
 0xaf8   :  { %6484 = vmatmul.msk.bf16.gmra.mxu2 %vm813_vm9, %v3436_v15 }
 0xaf9   :  { %v3300_v57 = vpop.f32.mrf.mxu3 }
 0xafa   :  { %v3301_v11 = vadd.f32 %v3300_v57, %v9424_v6 }
 0xafc   :  { %v3438_v22 = vpack.c.bf16 %v3301_v11, %v3299_v18 }
 0xafd   :  { %6478 = vmatmul.msk.bf16.gmra.mxu1 %vm155_vm1, %v9248_v8 }
 0xb08   :  { %6485 = vmatmul.msk.bf16.gmra.mxu2 %vm813_vm9, %v3437_v29 }
 0xb0d   :  { %6479 = vmatmul.msk.bf16.gmra.mxu1 %vm155_vm1, %v9323_v16 }
 0xb18   :  { %6486 = vmatmul.msk.bf16.gmra.mxu2 %vm813_vm9, %v3438_v22 }
 0xb1d   :  { %6480 = vmatmul.msk.bf16.gmra.mxu1 %vm155_vm1, %v9354_v24 }
 0xb27   :  { %v3359_v54 = vpop.f32.mrf.mxu0 }
 0xb28   :  { %v3360_v18 = vadd.f32 %v3359_v54, %v9368_v33 }
 0xb2d   :  { %6481 = vmatmul.msk.bf16.gmra.mxu1 %vm155_vm1, %v9384_v12  ;;  %v3303_v50 = vpop.f32.mrf.mxu3 }
 0xb2f   :  { %v3361_v63 = vpop.f32.mrf.mxu0 }
 0xb30   :  { %v3362_v29 = vadd.f32 %v3361_v63, %v9368_v33 }
 0xb35   :  { %v3305_v15 = vpop.f32.mrf.mxu3 }
 0xb37   :  { %v3364_v55 = vpop.f32.mrf.mxu0 }
 0xb38   :  { %v3365_v35 = vadd.f32 %v3364_v55, %v9368_v33  ;;  %v3645_v55 = vpack.c.bf16 %v3362_v29, %v3360_v18 }
 0xb3d   :  { %6482 = vmatmul.msk.bf16.gmra.mxu1 %vm155_vm1, %v9410_v34 }
 0xb3f   :  { %v3366_v62 = vpop.f32.mrf.mxu0 }
 0xb40   :  { %v3367_v43 = vadd.f32 %v3366_v62, %v9368_v33  ;;  %v3308_v62 = vpop.f32.mrf.mxu3 }
 0xb42   :  { %v3646_v19 = vpack.c.bf16 %v3367_v43, %v3365_v35 }
 0xb44   :  { %v3665_v57 = vsel %vm813_vm9, %v3646_v19, 0 }
 0xb48   :  { %v3369_v26 = vpop.f32.mrf.mxu0 }
 0xb49   :  { %v3370_v9 = vadd.f32 %v3369_v26, %v9368_v33 }
 0xb4a   :  { %v9450_v39 = vpop.f32.mrf.mxu1 }
 0xb50   :  { %v3371_v38 = vpop.f32.mrf.mxu0 }
 0xb51   :  { %v3372_v47 = vadd.f32 %v3371_v38, %v9368_v33 }
 0xb52   :  { %v9452_v1 = vpop.f32.mrf.mxu1 }
 0xb53   :  { %v3647_v37 = vpack.c.bf16 %v3372_v47, %v3370_v9  ;;  %v3310_v9 = vpop.f32.mrf.mxu3 }
 0xb55   :  { %v3668_v21 = vsel %vm813_vm9, %v3647_v37, 0 }
 0xb58   :  { %v3374_v53 = vpop.f32.mrf.mxu0 }
 0xb59   :  { %v3375_v41 = vadd.f32 %v3374_v53, %v9368_v33  ;;  %v3662_v53 = vsel %vm813_vm9, %v3645_v55, 0 }
 0xb5a   :  { %v3400_v13 = vpop.f32.mrf.mxu1 }
 0xb60   :  { %v3376_v17 = vpop.f32.mrf.mxu0 }
 0xb61   :  { %v3377_v0 = vadd.f32 %v3376_v17, %v9368_v33  ;;  %v3306_v17 = vadd.f32 %v3305_v15, %v9424_v6  ;;  %v9483_v33 = vld [vmem:[%s11200_s2 + $0xa1] ss:$0 sm:$0xff] }
 0xb62   :  { %v3402_v44 = vpop.f32.mrf.mxu1  ;;  %v3401_v19 = vadd.f32 %v3400_v13, %v9483_v33 }
 0xb63   :  { %v3648_v20 = vpack.c.bf16 %v3377_v0, %v3375_v41  ;;  %v3304_v41 = vadd.f32 %v3303_v50, %v9424_v6 }
 0xb65   :  { %v3671_v25 = vsel %vm813_vm9, %v3648_v20, 0  ;;  %v3641_v47 = vpack.c.bf16 %v3306_v17, %v3304_v41 }
 0xb66   :  { %3677 = vmatpush.bf16.xpose.msrb.mxu3 %v3671_v25 }
 0xb6a   :  { %v3405_v28 = vpop.f32.mrf.mxu1 }
 0xb6b   :  { %v3476_v48 = vpop.f32.mrf.mxu2  ;;  %v3406_v50 = vadd.f32 %v3405_v28, %v9483_v33  ;;  %v3396_v28 = vadd.f32 %v9450_v39, %v9483_v33 }
 0xb6c   :  { %v9459_v61 = vmul.f32 0.25, %v3476_v48 }
 0xb6e   :  { %3678 = vmatpush.bf16.xpose.msrb.mxu3 %v3668_v21  ;;  %v3504_v45 = vsel %vm79_vm0, %v9459_v61, -inf }
 0xb6f   :  { %3505 = vmax.xlane.f32.xlu0 %v3504_v45  ;;  %v3403_v45 = vadd.f32 %v3402_v44, %v9483_v33  ;;  %v3311_v44 = vadd.f32 %v3310_v9, %v9424_v6 }
 0xb71   :  { %v3597_v29 = vpack.c.bf16 %v3403_v45, %v3401_v19 }
 0xb72   :  { %v3407_v56 = vpop.f32.mrf.mxu1 }
 0xb73   :  { %v3478_v58 = vpop.f32.mrf.mxu2  ;;  %v3408_v37 = vadd.f32 %v3407_v56, %v9483_v33 }
 0xb74   :  { %v9466_v5 = vmul.f32 0.25, %v3478_v58  ;;  %v3398_v58 = vadd.f32 %v9452_v1, %v9483_v33 }
 0xb75   :  { %v3598_v35 = vpack.c.bf16 %v3408_v37, %v3406_v50 }
 0xb76   :  { %3679 = vmatpush.bf16.xpose.msrb.mxu3 %v3665_v57  ;;  %v3507_v11 = vsel %vm79_vm0, %v9466_v5, -inf  ;;  %v3596_v13 = vpack.c.bf16 %v3398_v58, %v3396_v28 }
 0xb77   :  { %3508 = vmax.xlane.f32.xlu0 %v3507_v11  ;;  %v3313_v11 = vpop.f32.mrf.mxu3 }
 0xb7a   :  { %v3410_v22 = vpop.f32.mrf.mxu1 }
 0xb7b   :  { %v3481_v26 = vpop.f32.mrf.mxu2  ;;  %v3411_v0 = vadd.f32 %v3410_v22, %v9483_v33  ;;  %v3309_v22 = vadd.f32 %v3308_v62, %v9424_v6 }
 0xb7c   :  { %v9473_v38 = vmul.f32 0.25, %v3481_v26 }
 0xb7d   :  { %v3642_v1 = vpack.c.bf16 %v3311_v44, %v3309_v22 }
 0xb7e   :  { %3680 = vmatpush.bf16.xpose.msrb.mxu3 %v3662_v53  ;;  %v3510_v63 = vsel %vm79_vm0, %v9473_v38, -inf }
 0xb7f   :  { %3511 = vmax.xlane.f32.xlu0 %v3510_v63  ;;  %v3315_v63 = vpop.f32.mrf.mxu3 }
 0xb82   :  { %v3412_v54 = vpop.f32.mrf.mxu1 }
 0xb83   :  { %v3413_v20 = vadd.f32 %v3412_v54, %v9483_v33  ;;  %v3483_v25 = vpop.f32.mrf.mxu2 }
 0xb84   :  { %v9488_v43 = vmul.f32 0.25, %v3483_v25 }
 0xb85   :  { %v3599_v48 = vpack.c.bf16 %v3413_v20, %v3411_v0  ;;  %6491 = vmatmul.msk.bf16.vlgmr.msrb.gmra.mxu3 %vm813_vm9, %v3641_v47  ;;  %v3316_v0 = vadd.f32 %v3315_v63, %v9424_v6  ;;  %v3314_v20 = vadd.f32 %v3313_v11, %v9424_v6 }
 0xb86   :  { %v3513_v21 = vsel %vm79_vm0, %v9488_v43, -inf }
 0xb87   :  { %3616 = vmatpush.bf16.msrb.mxu2 %v3599_v48  ;;  %3514 = vmax.xlane.f32.xlu1 %v3513_v21  ;;  %v3318_v25 = vpop.f32.mrf.mxu3  ;;  %v3643_v9 = vpack.c.bf16 %v3316_v0, %v3314_v20 }
 0xb88   :  { %v3319_v19 = vadd.f32 %v3318_v25, %v9424_v6 }
 0xb8a   :  { %v3415_v15 = vpop.f32.mrf.mxu1 }
 0xb8b   :  { %3617 = vmatpush.bf16.msrb.mxu2 %v3598_v35  ;;  %v3486_v56 = vpop.f32.mrf.mxu2 }
 0xb8c   :  { %v9498_v57 = vmul.f32 0.25, %v3486_v56 }
 0xb8e   :  { %v3516_v18 = vsel %vm79_vm0, %v9498_v57, -inf }
 0xb8f   :  { %3618 = vmatpush.bf16.msrb.mxu2 %v3597_v29  ;;  %3517 = vmax.xlane.f32.xlu2 %v3516_v18  ;;  %v3320_v45 = vpop.f32.mrf.mxu3 }
 0xb90   :  { %v3321_v35 = vadd.f32 %v3320_v45, %v9424_v6 }
 0xb92   :  { %v3417_v55 = vpop.f32.mrf.mxu1  ;;  %v3644_v58 = vpack.c.bf16 %v3321_v35, %v3319_v19 }
 0xb93   :  { %3619 = vmatpush.bf16.msrb.mxu2 %v3596_v13  ;;  %v3488_v26 = vpop.f32.mrf.mxu2 }
 0xb94   :  { %v9506_v53 = vmul.f32 0.25, %v3488_v26 }
 0xb95   :  { %6492 = vmatmul.msk.bf16.gmra.mxu3 %vm813_vm9, %v3642_v1 }
 0xb96   :  { %v3519_v39 = vsel %vm79_vm0, %v9506_v53, -inf }
 0xb97   :  { %3520 = vmax.xlane.f32.xlu0 %v3519_v39  ;;  %v3418_v39 = vadd.f32 %v3417_v55, %v9483_v33 }
 0xb9a   :  { %v3420_v17 = vpop.f32.mrf.mxu1 }
 0xb9b   :  { %v3491_v41 = vpop.f32.mrf.mxu2  ;;  %v3421_v6 = vadd.f32 %v3420_v17, %v9483_v33 }
 0xb9c   :  { %v9511_v54 = vmul.f32 0.25, %v3491_v41  ;;  %v3416_v41 = vadd.f32 %v3415_v15, %v9483_v33 }
 0xb9e   :  { %v3522_v62 = vsel %vm79_vm0, %v9511_v54, -inf }
 0xb9f   :  { %3523 = vmax.xlane.f32.xlu0 %v3522_v62  ;;  %v3802_v62 = vpack.c.bf16 %v3418_v39, %v3416_v41 }
 0xba2   :  { %v3422_v47 = vpop.f32.mrf.mxu1 }
 0xba3   :  { %v3493_v37 = vpop.f32.mrf.mxu2  ;;  %v3423_v1 = vadd.f32 %v3422_v47, %v9483_v33 }
 0xba4   :  { %v9517_v48 = vmul.f32 0.25, %v3493_v37 }
 0xba5   :  { %6493 = vmatmul.msk.bf16.gmra.mxu3 %vm813_vm9, %v3643_v9  ;;  %v3803_v63 = vpack.c.bf16 %v3423_v1, %v3421_v6 }
 0xba6   :  { %v3525_v50 = vsel %vm79_vm0, %v9517_v48, -inf }
 0xba7   :  { %3526 = vmax.xlane.f32.xlu0 %v3525_v50 }
 0xbaa   :  { %v3425_v21 = vpop.f32.mrf.mxu1 }
 0xbab   :  { %v3426_v22 = vadd.f32 %v3425_v21, %v9483_v33 }
 0xbb2   :  { %v3427_v56 = vpop.f32.mrf.mxu1 }
 0xbb3   :  { %v3428_v44 = vadd.f32 %v3427_v56, %v9483_v33 }
 0xbb5   :  { %6494 = vmatmul.msk.bf16.gmra.mxu3 %vm813_vm9, %v3644_v58  ;;  %v3804_v26 = vpack.c.bf16 %v3428_v44, %v3426_v22 }
 0xbba   :  { %v3430_v29 = vpop.f32.mrf.mxu1 }
 0xbbb   :  { %v3431_v11 = vadd.f32 %v3430_v29, %v9483_v33 }
 0xbc2   :  { %v3432_v28 = vpop.f32.mrf.mxu1 }
 0xbc3   :  { %v3433_v18 = vadd.f32 %v3432_v28, %v9483_v33 }
 0xbc5   :  { %v3805_v13 = vpack.c.bf16 %v3433_v18, %v3431_v11 }
 0xbc7   :  { %3822 = vmatpush.bf16.msra.mxu0 %v3805_v13 }
 0xbcb   :  { %3823 = vmatpush.bf16.msra.mxu0 %v3804_v26 }
 0xbcf   :  { %3824 = vmatpush.bf16.msra.mxu0 %v3803_v63 }
 0xbd3   :  { %3825 = vmatpush.bf16.msra.mxu0 %v3802_v62 }
 0xbe2   :  { %v3506_v0 = vpop.xlane.xlu0 %3505 }
 0xbe3   :  { %v3528_v20 = vsub.f32 %v9459_v61, %v3506_v0 }
 0xbe5   :  { %v3536_v25 = vmul.f32 1.442695, %v3528_v20 }
 0xbe7   :  { %7039 = vpow2.f32 %v3536_v25 }
 0xbea   :  { %v3509_v9 = vpop.xlane.xlu0 %3508 }
 0xbeb   :  { %v3529_v47 = vsub.f32 %v9466_v5, %v3509_v9 }
 0xbed   :  { %v9535_v37 = vpop.eup %7039  ;;  %v3538_v17 = vmul.f32 1.442695, %v3529_v47  ;;  %v9583_v47 = vld [vmem:[%s11198_s1 + $0x60] sm:$0xff] }
 0xbee   :  { %v3552_v55 = vsel %vm79_vm0, %v9535_v37, 0.0 }
 0xbef   :  { %7041 = vpow2.f32 %v3538_v17  ;;  %3553 = vadd.xlane.f32.xlu0 %v3552_v55 }
 0xbf2   :  { %v3512_v33 = vpop.xlane.xlu0 %3511 }
 0xbf3   :  { %v3530_v15 = vsub.f32 %v9473_v38, %v3512_v33 }
 0xbf5   :  { %v9540_v50 = vpop.eup %7041  ;;  %v3540_v21 = vmul.f32 1.442695, %v3530_v15 }
 0xbf6   :  { %v3555_v61 = vsel %vm79_vm0, %v9540_v50, 0.0 }
 0xbf7   :  { %7043 = vpow2.f32 %v3540_v21  ;;  %3556 = vadd.xlane.f32.xlu0 %v3555_v61 }
 0xbfa   :  { %v3515_v5 = vpop.xlane.xlu1 %3514 }
 0xbfb   :  { %v3531_v45 = vsub.f32 %v9488_v43, %v3515_v5 }
 0xbfd   :  { %v9545_v35 = vpop.eup %7043  ;;  %v3542_v19 = vmul.f32 1.442695, %v3531_v45 }
 0xbfe   :  { %v3558_v56 = vsel %vm79_vm0, %v9545_v35, 0.0 }
 0xbff   :  { %7045 = vpow2.f32 %v3542_v19  ;;  %3559 = vadd.xlane.f32.xlu2 %v3558_v56 }
 0xc02   :  { %v3518_v38 = vpop.xlane.xlu2 %3517 }
 0xc03   :  { %v3532_v58 = vsub.f32 %v9498_v57, %v3518_v38 }
 0xc05   :  { %v9550_v29 = vpop.eup %7045  ;;  %v3544_v28 = vmul.f32 1.442695, %v3532_v58 }
 0xc06   :  { %v3561_v11 = vsel %vm79_vm0, %v9550_v29, 0.0 }
 0xc07   :  { %7047 = vpow2.f32 %v3544_v28  ;;  %3562 = vadd.xlane.f32.xlu1 %v3561_v11 }
 0xc0a   :  { %v3521_v43 = vpop.xlane.xlu0 %3520 }
 0xc0b   :  { %v3533_v18 = vsub.f32 %v9506_v53, %v3521_v43 }
 0xc0d   :  { %v9555_v44 = vpop.eup %7047  ;;  %v3546_v13 = vmul.f32 1.442695, %v3533_v18 }
 0xc0e   :  { %v3564_v22 = vsel %vm79_vm0, %v9555_v44, 0.0 }
 0xc0f   :  { %7049 = vpow2.f32 %v3546_v13  ;;  %3565 = vadd.xlane.f32.xlu0 %v3564_v22 }
 0xc12   :  { %v3524_v57 = vpop.xlane.xlu0 %3523 }
 0xc13   :  { %v3534_v1 = vsub.f32 %v9511_v54, %v3524_v57  ;;  %v3682_v54 = vpop.f32.mrf.mxu3 }
 0xc14   :  { %v9597_v45 = vmul.f32 0.25, %v3682_v54 }
 0xc15   :  { %v9560_v26 = vpop.eup %7049  ;;  %v3548_v6 = vmul.f32 1.442695, %v3534_v1 }
 0xc16   :  { %v3567_v39 = vsel %vm79_vm0, %v9560_v26, 0.0  ;;  %v3710_v28 = vsel %vm79_vm0, %v9597_v45, -inf }
 0xc17   :  { %7051 = vpow2.f32 %v3548_v6  ;;  %3568 = vadd.xlane.f32.xlu2 %v3567_v39 }
 0xc1a   :  { %v3527_v53 = vpop.xlane.xlu0 %3526 }
 0xc1b   :  { %v3535_v63 = vsub.f32 %v9517_v48, %v3527_v53  ;;  %v3684_v9 = vpop.f32.mrf.mxu3  ;;  %v9576_v48 = vld [vmem:[%s11198_s1 + $0x68] sm:$0xff] }
 0xc1c   :  { %v9593_v61 = vmul.f32 0.25, %v3684_v9 }
 0xc1d   :  { %v9565_v41 = vpop.eup %7051  ;;  %v3550_v62 = vmul.f32 1.442695, %v3535_v63 }
 0xc1e   :  { %v3570_v0 = vsel %vm79_vm0, %v9565_v41, 0.0  ;;  %v3713_v56 = vsel %vm79_vm0, %v9593_v61, -inf }
 0xc1f   :  { %7053 = vpow2.f32 %v3550_v62  ;;  %3571 = vadd.xlane.f32.xlu1 %v3570_v0 }
 0xc23   :  { %v3687_v17 = vpop.f32.mrf.mxu3 }
 0xc24   :  { %v9591_v21 = vmul.f32 0.25, %v3687_v17 }
 0xc25   :  { %v9569_v20 = vpop.eup %7053 }
 0xc26   :  { %v3573_v25 = vsel %vm79_vm0, %v9569_v20, 0.0  ;;  %v3716_v5 = vsel %vm79_vm0, %v9591_v21, -inf }
 0xc27   :  { %3574 = vadd.xlane.f32.xlu0 %v3573_v25 }
 0xc2b   :  { %v3689_v55 = vpop.f32.mrf.mxu3 }
 0xc2c   :  { %v9609_v18 = vmul.f32 0.25, %v3689_v55 }
 0xc2e   :  { %v3719_v1 = vsel %vm79_vm0, %v9609_v18, -inf }
 0xc2f   :  { %3916 = vrot.lane.b32.xlu2 %v9576_v48, %s7274_s30 }
 0xc33   :  { %v3692_v33 = vpop.f32.mrf.mxu3 }
 0xc34   :  { %v9605_v11 = vmul.f32 0.25, %v3692_v33 }
 0xc36   :  { %v3722_v13 = vsel %vm79_vm0, %v9605_v11, -inf }
 0xc37   :  { %3858 = vrot.lane.b32.xlu2 %v9583_v47, %s7275_s6 }
 0xc38   :  { %3914 = vrot.lane.b32.xlu1 %v9583_v47, %s7274_s30 }
 0xc3b   :  { %3860 = vrot.lane.b32.xlu0 %v9576_v48, %s7275_s6  ;;  %v3694_v15 = vpop.f32.mrf.mxu3 }
 0xc3c   :  { %v9601_v58 = vmul.f32 0.25, %v3694_v15 }
 0xc3e   :  { %v3725_v43 = vsel %vm79_vm0, %v9601_v58, -inf }
 0xc43   :  { %v3697_v19 = vpop.f32.mrf.mxu3 }
 0xc44   :  { %v9617_v53 = vmul.f32 0.25, %v3697_v19 }
 0xc46   :  { %v3728_v9 = vsel %vm79_vm0, %v9617_v53, -inf }
 0xc4b   :  { %v3699_v22 = vpop.f32.mrf.mxu3 }
 0xc4c   :  { %v9615_v6 = vmul.f32 0.25, %v3699_v22 }
 0xc4e   :  { %v3731_v62 = vsel %vm79_vm0, %v9615_v6, -inf }
 0xc60   :  { %3717 = vmax.xlane.f32.xlu2 %v3716_v5 }
 0xc62   :  { %v3554_v38 = vpop.xlane.xlu0 %3553  ;;  %3714 = vmax.xlane.f32.xlu1 %v3713_v56 }
 0xc63   :  { %7055 = vrcp.f32 %v3554_v38 }
 0xc65   :  { %3711 = vmax.xlane.f32.xlu0 %v3710_v28 }
 0xc68   :  { %3726 = vmax.xlane.f32.xlu2 %v3725_v43 }
 0xc69   :  { %v7056_v39 = vpop.eup %7055 }
 0xc6a   :  { %v3557_v57 = vpop.xlane.xlu0 %3556  ;;  %3723 = vmax.xlane.f32.xlu1 %v3722_v13  ;;  %v3584_v0 = vmul.f32 %v7056_v39, %v9535_v37 }
 0xc6b   :  { %7057 = vrcp.f32 %v3557_v57 }
 0xc6d   :  { %3720 = vmax.xlane.f32.xlu0 %v3719_v1 }
 0xc71   :  { %v7058_v63 = vpop.eup %7057 }
 0xc72   :  { %v3585_v54 = vmul.f32 %v7058_v63, %v9540_v50  ;;  %3732 = vmax.xlane.f32.xlu1 %v3731_v62  ;;  %v3560_v17 = vpop.xlane.xlu2 %3559 }
 0xc73   :  { %7059 = vrcp.f32 %v3560_v17 }
 0xc74   :  { %v3592_v25 = vpack.c.bf16 %v3585_v54, %v3584_v0 }
 0xc75   :  { %3729 = vmax.xlane.f32.xlu0 %v3728_v9 }
 0xc76   :  { %6487 = vmatmul.msk.bf16.vlgmr.msrb.gmra.mxu2 %vm79_vm0, %v3592_v25 }
 0xc79   :  { %v7060_v33 = vpop.eup %7059 }
 0xc7a   :  { %v3563_v55 = vpop.xlane.xlu1 %3562  ;;  %v3586_v5 = vmul.f32 %v7060_v33, %v9545_v35 }
 0xc7b   :  { %7061 = vrcp.f32 %v3563_v55 }
 0xc81   :  { %v7062_v15 = vpop.eup %7061 }
 0xc82   :  { %v3587_v37 = vmul.f32 %v7062_v15, %v9550_v29  ;;  %v3566_v50 = vpop.xlane.xlu0 %3565 }
 0xc83   :  { %7063 = vrcp.f32 %v3566_v50 }
 0xc84   :  { %v3593_v19 = vpack.c.bf16 %v3587_v37, %v3586_v5 }
 0xc86   :  { %6488 = vmatmul.msk.bf16.gmra.mxu2 %vm79_vm0, %v3593_v19 }
 0xc89   :  { %v7064_v38 = vpop.eup %7063 }
 0xc8a   :  { %v3569_v56 = vpop.xlane.xlu2 %3568  ;;  %v3588_v43 = vmul.f32 %v7064_v38, %v9555_v44 }
 0xc8b   :  { %7065 = vrcp.f32 %v3569_v56 }
 0xc91   :  { %v7066_v28 = vpop.eup %7065 }
 0xc92   :  { %v3589_v13 = vmul.f32 %v7066_v28, %v9560_v26  ;;  %v3917_v22 = vpop.permute.xlu2 %3916  ;;  %v3572_v1 = vpop.xlane.xlu1 %3571 }
 0xc93   :  { %3926 = vmatpush.bf16.msra.mxu2 %v3917_v22  ;;  %7067 = vrcp.f32 %v3572_v1 }
 0xc94   :  { %v3594_v57 = vpack.c.bf16 %v3589_v13, %v3588_v43 }
 0xc96   :  { %6489 = vmatmul.msk.bf16.gmra.mxu2 %vm79_vm0, %v3594_v57 }
 0xc99   :  { %v7068_v29 = vpop.eup %7067 }
 0xc9a   :  { %v3575_v35 = vpop.xlane.xlu0 %3574  ;;  %v3590_v63 = vmul.f32 %v7068_v29, %v9565_v41  ;;  %v3859_v54 = vpop.permute.xlu2 %3858 }
 0xc9b   :  { %7069 = vrcp.f32 %v3575_v35 }
 0xca1   :  { %v7070_v39 = vpop.eup %7069 }
 0xca2   :  { %v3591_v62 = vmul.f32 %v7070_v39, %v9569_v20 }
 0xca4   :  { %v3595_v0 = vpack.c.bf16 %v3591_v62, %v3590_v63 }
 0xca6   :  { %6490 = vmatmul.msk.bf16.gmra.mxu2 %vm79_vm0, %v3595_v0 }
 0xcaa   :  { %v3915_v44 = vpop.permute.xlu1 %3914 }
 0xcab   :  { %3927 = vmatpush.bf16.msra.mxu2 %v3915_v44 }
 0xcad   :  { %v3861_v26 = vpop.permute.xlu0 %3860 }
 0xcae   :  { %3870 = vmatpush.bf16.msrb.mxu1 %v3861_v26 }
 0xcb2   :  { %3871 = vmatpush.bf16.msrb.mxu1 %v3859_v54 }
 0xcb5   :  { %6499 = vmatmul.msk.bf16.vlgmr.msrb.gmra.mxu1 %vm155_vm1, %v9113_v10 }
 0xcb6   :  { %6507 = vmatmul.msk.bf16.vlgmr.msra.gmra.mxu2 %vm155_vm1, %v9113_v10 }
 0xcc5   :  { %6500 = vmatmul.msk.bf16.gmra.mxu1 %vm155_vm1, %v9135_v27 }
 0xcc6   :  { %6508 = vmatmul.msk.bf16.gmra.mxu2 %vm155_vm1, %v9135_v27 }
 0xcd3   :  { %v3718_v41 = vpop.xlane.xlu2 %3717 }
 0xcd4   :  { %v3736_v20 = vsub.f32 %v9591_v21, %v3718_v41 }
 0xcd5   :  { %6501 = vmatmul.msk.bf16.gmra.mxu1 %vm155_vm1, %v9180_v14  ;;  %v3715_v25 = vpop.xlane.xlu1 %3714 }
 0xcd6   :  { %v3746_v9 = vmul.f32 1.442695, %v3736_v20  ;;  %v3735_v17 = vsub.f32 %v9593_v61, %v3715_v25  ;;  %6509 = vmatmul.msk.bf16.gmra.mxu2 %vm155_vm1, %v9180_v14 }
 0xcd8   :  { %7071 = vpow2.f32 %v3746_v9  ;;  %v3744_v55 = vmul.f32 1.442695, %v3735_v17  ;;  %v3712_v33 = vpop.xlane.xlu0 %3711 }
 0xcd9   :  { %v3734_v15 = vsub.f32 %v9597_v45, %v3712_v33 }
 0xcda   :  { %7073 = vpow2.f32 %v3744_v55 }
 0xcdb   :  { %v3742_v5 = vmul.f32 1.442695, %v3734_v15  ;;  %v3727_v37 = vpop.xlane.xlu2 %3726 }
 0xcdc   :  { %v3739_v21 = vsub.f32 %v9601_v58, %v3727_v37 }
 0xcdd   :  { %7075 = vpow2.f32 %v3742_v5  ;;  %v3724_v19 = vpop.xlane.xlu1 %3723 }
 0xcde   :  { %v9651_v50 = vpop.eup %7071  ;;  %v3752_v56 = vmul.f32 1.442695, %v3739_v21  ;;  %v3738_v61 = vsub.f32 %v9605_v11, %v3724_v19 }
 0xcdf   :  { %v3764_v38 = vsel %vm79_vm0, %v9651_v50, 0.0 }
 0xce0   :  { %v9656_v28 = vpop.eup %7073  ;;  %7077 = vpow2.f32 %v3752_v56  ;;  %v3750_v43 = vmul.f32 1.442695, %v3738_v61  ;;  %v3721_v45 = vpop.xlane.xlu0 %3720  ;;  %3765 = vadd.xlane.f32.xlu1 %v3764_v38 }
 0xce1   :  { %v3737_v13 = vsub.f32 %v9609_v18, %v3721_v45  ;;  %v3761_v58 = vsel %vm79_vm0, %v9656_v28, 0.0 }
 0xce2   :  { %7079 = vpow2.f32 %v3750_v43  ;;  %3762 = vadd.xlane.f32.xlu0 %v3761_v58 }
 0xce3   :  { %v7076_v22 = vpop.eup %7075  ;;  %v3748_v57 = vmul.f32 1.442695, %v3737_v13 }
 0xce4   :  { %v3758_v11 = vsel %vm79_vm0, %v7076_v22, 0.0 }
 0xce5   :  { %7081 = vpow2.f32 %v3748_v57  ;;  %3759 = vadd.xlane.f32.xlu2 %v3758_v11  ;;  %6502 = vmatmul.msk.bf16.gmra.mxu1 %vm155_vm1, %v9248_v8  ;;  %v3733_v1 = vpop.xlane.xlu1 %3732 }
 0xce6   :  { %v9664_v35 = vpop.eup %7077  ;;  %v3741_v29 = vsub.f32 %v9615_v6, %v3733_v1  ;;  %6510 = vmatmul.msk.bf16.gmra.mxu2 %vm155_vm1, %v9248_v8 }
 0xce7   :  { %v3773_v18 = vsel %vm79_vm0, %v9664_v35, 0.0 }
 0xce8   :  { %v9671_v39 = vpop.eup %7079  ;;  %v3756_v63 = vmul.f32 1.442695, %v3741_v29  ;;  %v3730_v62 = vpop.xlane.xlu0 %3729  ;;  %3774 = vadd.xlane.f32.xlu1 %v3773_v18 }
 0xce9   :  { %v3740_v0 = vsub.f32 %v9617_v53, %v3730_v62  ;;  %v3770_v44 = vsel %vm79_vm0, %v9671_v39, 0.0 }
 0xcea   :  { %7083 = vpow2.f32 %v3756_v63  ;;  %3771 = vadd.xlane.f32.xlu0 %v3770_v44 }
 0xceb   :  { %v7082_v26 = vpop.eup %7081  ;;  %v3754_v6 = vmul.f32 1.442695, %v3740_v0 }
 0xcec   :  { %v3767_v54 = vsel %vm79_vm0, %v7082_v26, 0.0 }
 0xced   :  { %7085 = vpow2.f32 %v3754_v6  ;;  %3768 = vadd.xlane.f32.xlu2 %v3767_v54 }
 0xcf0   :  { %v9677_v41 = vpop.eup %7083 }
 0xcf1   :  { %v3779_v20 = vsel %vm79_vm0, %v9677_v41, 0.0 }
 0xcf2   :  { %3780 = vadd.xlane.f32.xlu0 %v3779_v20 }
 0xcf3   :  { %v9681_v25 = vpop.eup %7085 }
 0xcf4   :  { %v3776_v53 = vsel %vm79_vm0, %v9681_v25, 0.0 }
 0xcf5   :  { %3777 = vadd.xlane.f32.xlu2 %v3776_v53  ;;  %6503 = vmatmul.msk.bf16.gmra.mxu1 %vm155_vm1, %v9323_v16 }
 0xcf6   :  { %6511 = vmatmul.msk.bf16.gmra.mxu2 %vm155_vm1, %v9323_v16 }
 0xcf9   :  { %v9689_v9 = vpop.f32.mrf.mxu2 }
 0xd01   :  { %v9691_v17 = vpop.f32.mrf.mxu2  ;;  %3972 = vrot.lane.b32.xlu1 %v9576_v48, %s7276_s7 }
 0xd05   :  { %6504 = vmatmul.msk.bf16.gmra.mxu1 %vm155_vm1, %v9354_v24 }
 0xd06   :  { %6512 = vmatmul.msk.bf16.gmra.mxu2 %vm155_vm1, %v9354_v24 }
 0xd09   :  { %v9699_v55 = vpop.f32.mrf.mxu2 }
 0xd0d   :  { %3970 = vrot.lane.b32.xlu2 %v9583_v47, %s7276_s7 }
 0xd11   :  { %v9703_v33 = vpop.f32.mrf.mxu2 }
 0xd15   :  { %6505 = vmatmul.msk.bf16.gmra.mxu1 %vm155_vm1, %v9384_v12 }
 0xd16   :  { %6513 = vmatmul.msk.bf16.gmra.mxu2 %vm155_vm1, %v9384_v12 }
 0xd19   :  { %v9709_v48 = vpop.f32.mrf.mxu2 }
 0xd21   :  { %v9711_v15 = vpop.f32.mrf.mxu2 }
 0xd25   :  { %6506 = vmatmul.msk.bf16.gmra.mxu1 %vm155_vm1, %v9410_v34 }
 0xd26   :  { %6514 = vmatmul.msk.bf16.gmra.mxu2 %vm155_vm1, %v9410_v34 }
 0xd29   :  { %v9717_v5 = vpop.f32.mrf.mxu2 }
 0xd31   :  { %v9719_v47 = vpop.f32.mrf.mxu2 }
 0xd32   :  { %v9727_v63 = vpop.f32.mrf.mxu1 }
 0xd39   :  { %v9721_v37 = vpop.f32.mrf.mxu2 }
 0xd41   :  { %v9723_v21 = vpop.f32.mrf.mxu2 }
 0xd49   :  { %v3934_v19 = vpop.f32.mrf.mxu2 }
 0xd51   :  { %v3936_v56 = vpop.f32.mrf.mxu2 }
 0xd53   :  { %v3766_v11 = vpop.xlane.xlu1 %3765 }
 0xd55   :  { %v3763_v61 = vpop.xlane.xlu0 %3762 }
 0xd56   :  { %7087 = vrcp.f32 %v3763_v61 }
 0xd58   :  { %v3760_v38 = vpop.xlane.xlu2 %3759 }
 0xd59   :  { %7089 = vrcp.f32 %v3760_v38  ;;  %v3939_v43 = vpop.f32.mrf.mxu2 }
 0xd5b   :  { %v3775_v44 = vpop.xlane.xlu1 %3774 }
 0xd5c   :  { %v7088_v45 = vpop.eup %7087 }
 0xd5d   :  { %v3791_v58 = vmul.f32 %v7088_v45, %v9656_v28  ;;  %v9733_v28 = vld [vmem:[%s11200_s2 + $0xa0] ss:$0 sm:$0xff]  ;;  %v3772_v38 = vpop.xlane.xlu0 %3771 }
 0xd5f   :  { %v7090_v13 = vpop.eup %7089 }
 0xd60   :  { %v3790_v57 = vmul.f32 %v7090_v13, %v7076_v22  ;;  %v3769_v18 = vpop.xlane.xlu2 %3768  ;;  %v3875_v22 = vpop.f32.mrf.mxu1 }
 0xd61   :  { %v3941_v1 = vpop.f32.mrf.mxu2  ;;  %7091 = vrcp.f32 %v3769_v18  ;;  %v3940_v18 = vadd.f32 %v3939_v43, %v9733_v28 }
 0xd62   :  { %v3798_v29 = vpack.c.bf16 %v3791_v58, %v3790_v57  ;;  %7093 = vrcp.f32 %v3766_v11 }
 0xd63   :  { %7095 = vrcp.f32 %v3772_v38 }
 0xd64   :  { %6495 = vmatmul.msk.bf16.vlgmr.msra.gmra.mxu0 %vm79_vm0, %v3798_v29  ;;  %7097 = vrcp.f32 %v3775_v44  ;;  %v3935_v44 = vadd.f32 %v3934_v19, %v9733_v28  ;;  %v3930_v19 = vadd.f32 %v9721_v37, %v9733_v28 }
 0xd67   :  { %v7092_v0 = vpop.eup %7091 }
 0xd68   :  { %v7094_v6 = vpop.eup %7093  ;;  %v3778_v54 = vpop.xlane.xlu2 %3777  ;;  %v3793_v20 = vmul.f32 %v7092_v0, %v7082_v26  ;;  %v3942_v26 = vadd.f32 %v3941_v1, %v9733_v28 }
 0xd69   :  { %v3944_v62 = vpop.f32.mrf.mxu2  ;;  %v3792_v53 = vmul.f32 %v7094_v6, %v9651_v50  ;;  %v7096_v6 = vpop.eup %7095  ;;  %7099 = vrcp.f32 %v3778_v54 }
 0xd6a   :  { %v3945_v45 = vadd.f32 %v3944_v62, %v9733_v28  ;;  %v4031_v0 = vpack.c.bf16 %v3942_v26, %v3940_v18  ;;  %v3794_v1 = vmul.f32 %v7096_v6, %v9671_v39 }
 0xd6b   :  { %v3799_v58 = vpack.c.bf16 %v3793_v20, %v3792_v53  ;;  %v3878_v20 = vpop.f32.mrf.mxu1  ;;  %v7098_v53 = vpop.eup %7097 }
 0xd6c   :  { %v4052_v38 = vsel %vm813_vm9, %v4031_v0, 0  ;;  %v3795_v43 = vmul.f32 %v7098_v53, %v9664_v35 }
 0xd70   :  { %v3971_v50 = vpop.permute.xlu2 %3970 }
 0xd71   :  { %v3946_v61 = vpop.f32.mrf.mxu2 }
 0xd72   :  { %v3947_v13 = vadd.f32 %v3946_v61, %v9733_v28  ;;  %v3937_v61 = vadd.f32 %v3936_v56, %v9733_v28  ;;  %v3932_v56 = vadd.f32 %v9723_v21, %v9733_v28 }
 0xd73   :  { %v3973_v57 = vpop.permute.xlu1 %3972 }
 0xd74   :  { %v4032_v11 = vpack.c.bf16 %v3947_v13, %v3945_v45  ;;  %6496 = vmatmul.msk.bf16.gmra.mxu0 %vm79_vm0, %v3799_v58  ;;  %3982 = vmatpush.bf16.msra.mxu3 %v3973_v57  ;;  %v3800_v13 = vpack.c.bf16 %v3795_v43, %v3794_v1  ;;  %v4030_v58 = vpack.c.bf16 %v3937_v61, %v3935_v44  ;;  %v3781_v57 = vpop.xlane.xlu0 %3780 }
 0xd75   :  { %7101 = vrcp.f32 %v3781_v57 }
 0xd76   :  { %v4055_v29 = vsel %vm813_vm9, %v4032_v11, 0  ;;  %v4049_v39 = vsel %vm813_vm9, %v4030_v58, 0  ;;  %v4029_v11 = vpack.c.bf16 %v3932_v56, %v3930_v19 }
 0xd77   :  { %4061 = vmatpush.bf16.xpose.msrb.mxu0 %v4055_v29 }
 0xd78   :  { %3983 = vmatpush.bf16.msra.mxu3 %v3971_v50  ;;  %v7100_v50 = vpop.eup %7099  ;;  %v4046_v54 = vsel %vm813_vm9, %v4029_v11, 0 }
 0xd79   :  { %v9741_v62 = vpop.f32.mrf.mxu2  ;;  %v3796_v29 = vmul.f32 %v7100_v50, %v9681_v25 }
 0xd7b   :  { %6515 = vmatmul.msk.bf16.vlgmr.msra.gmra.mxu3 %vm155_vm1, %v9113_v10  ;;  %v3880_v10 = vpop.f32.mrf.mxu1  ;;  %v7102_v26 = vpop.eup %7101 }
 0xd7c   :  { %v3797_v21 = vmul.f32 %v7102_v26, %v9677_v41 }
 0xd7e   :  { %v3801_v6 = vpack.c.bf16 %v3797_v21, %v3796_v29 }
 0xd7f   :  { %4062 = vmatpush.bf16.xpose.msrb.mxu0 %v4052_v38 }
 0xd81   :  { %v9750_v45 = vpop.f32.mrf.mxu2 }
 0xd83   :  { %v3883_v18 = vpop.f32.mrf.mxu1 }
 0xd84   :  { %6497 = vmatmul.msk.bf16.gmra.mxu0 %vm79_vm0, %v3800_v13 }
 0xd87   :  { %4063 = vmatpush.bf16.xpose.msrb.mxu0 %v4049_v39 }
 0xd89   :  { %v3954_v35 = vpop.f32.mrf.mxu2 }
 0xd8b   :  { %6516 = vmatmul.msk.bf16.gmra.mxu3 %vm155_vm1, %v9135_v27  ;;  %v3885_v37 = vpop.f32.mrf.mxu1  ;;  %v9769_v27 = vld [vmem:[%s11200_s2 + $0x96] ss:$0 sm:$0xff] }
 0xd8c   :  { %v3876_v25 = vadd.f32 %v3875_v22, %v9769_v27  ;;  %v3874_v61 = vadd.f32 %v9727_v63, %v9769_v27  ;;  %v3881_v43 = vadd.f32 %v3880_v10, %v9769_v27  ;;  %v3879_v13 = vadd.f32 %v3878_v20, %v9769_v27 }
 0xd8d   :  { %v3886_v20 = vadd.f32 %v3885_v37, %v9769_v27  ;;  %v3884_v29 = vadd.f32 %v3883_v18, %v9769_v27 }
 0xd8e   :  { %v4025_v1 = vpack.c.bf16 %v3876_v25, %v3874_v61  ;;  %v4026_v57 = vpack.c.bf16 %v3881_v43, %v3879_v13 }
 0xd8f   :  { %4064 = vmatpush.bf16.xpose.msrb.mxu0 %v4046_v54  ;;  %v3955_v54 = vadd.f32 %v3954_v35, %v9733_v28 }
 0xd91   :  { %v3956_v0 = vpop.f32.mrf.mxu2 }
 0xd92   :  { %v3957_v50 = vadd.f32 %v3956_v0, %v9733_v28  ;;  %v3950_v0 = vadd.f32 %v9741_v62, %v9733_v28 }
 0xd93   :  { %v3888_v38 = vpop.f32.mrf.mxu1 }
 0xd94   :  { %6498 = vmatmul.msk.bf16.gmra.mxu0 %vm79_vm0, %v3801_v6  ;;  %v4027_v6 = vpack.c.bf16 %v3886_v20, %v3884_v29  ;;  %v4236_v25 = vpack.c.bf16 %v3957_v50, %v3955_v54 }
 0xd99   :  { %v3959_v53 = vpop.f32.mrf.mxu2 }
 0xd9b   :  { %6517 = vmatmul.msk.bf16.gmra.mxu3 %vm155_vm1, %v9180_v14  ;;  %v3890_v14 = vpop.f32.mrf.mxu1 }
 0xd9c   :  { %v3891_v35 = vadd.f32 %v3890_v14, %v9769_v27 }
 0xda1   :  { %v3961_v41 = vpop.f32.mrf.mxu2 }
 0xda2   :  { %v3962_v39 = vadd.f32 %v3961_v41, %v9733_v28  ;;  %v3889_v41 = vadd.f32 %v3888_v38, %v9769_v27 }
 0xda3   :  { %v3893_v11 = vpop.f32.mrf.mxu1 }
 0xda4   :  { %6523 = vmatmul.msk.bf16.vlgmr.msrb.gmra.mxu0 %vm813_vm9, %v4025_v1  ;;  %v4028_v1 = vpack.c.bf16 %v3891_v35, %v3889_v41 }
 0xda9   :  { %v3964_v44 = vpop.f32.mrf.mxu2 }
 0xdaa   :  { %v3965_v22 = vadd.f32 %v3964_v44, %v9733_v28  ;;  %v3894_v44 = vadd.f32 %v3893_v11, %v9769_v27 }
 0xdab   :  { %6518 = vmatmul.msk.bf16.gmra.mxu3 %vm155_vm1, %v9248_v8  ;;  %v3960_v8 = vadd.f32 %v3959_v53, %v9733_v28  ;;  %v3895_v21 = vpop.f32.mrf.mxu1  ;;  %v3952_v53 = vadd.f32 %v9750_v45, %v9733_v28 }
 0xdac   :  { %v3896_v45 = vadd.f32 %v3895_v21, %v9769_v27 }
 0xdad   :  { %v4237_v10 = vpack.c.bf16 %v3962_v39, %v3960_v8  ;;  %v4235_v37 = vpack.c.bf16 %v3952_v53, %v3950_v0 }
 0xdae   :  { %v4231_v43 = vpack.c.bf16 %v3896_v45, %v3894_v44 }
 0xdaf   :  { %v4258_v26 = vsel %vm813_vm9, %v4237_v10, 0  ;;  %v4252_v18 = vsel %vm813_vm9, %v4235_v37, 0 }
 0xdb1   :  { %v3966_v58 = vpop.f32.mrf.mxu2 }
 0xdb2   :  { %v3967_v63 = vadd.f32 %v3966_v58, %v9733_v28 }
 0xdb3   :  { %v3898_v61 = vpop.f32.mrf.mxu1 }
 0xdb4   :  { %v4238_v56 = vpack.c.bf16 %v3967_v63, %v3965_v22  ;;  %6524 = vmatmul.msk.bf16.gmra.mxu0 %vm813_vm9, %v4026_v57  ;;  %v3899_v38 = vadd.f32 %v3898_v61, %v9769_v27 }
 0xdb6   :  { %v4261_v19 = vsel %vm813_vm9, %v4238_v56, 0 }
 0xdb7   :  { %4267 = vmatpush.bf16.xpose.msra.mxu1 %v4261_v19 }
 0xdbb   :  { %6519 = vmatmul.msk.bf16.gmra.mxu3 %vm155_vm1, %v9323_v16  ;;  %v4255_v16 = vsel %vm813_vm9, %v4236_v25, 0  ;;  %v3900_v28 = vpop.f32.mrf.mxu1 }
 0xdbc   :  { %v3901_v62 = vadd.f32 %v3900_v28, %v9769_v27 }
 0xdbe   :  { %v4232_v13 = vpack.c.bf16 %v3901_v62, %v3899_v38 }
 0xdbf   :  { %4268 = vmatpush.bf16.xpose.msra.mxu1 %v4258_v26 }
 0xdc4   :  { %6525 = vmatmul.msk.bf16.gmra.mxu0 %vm813_vm9, %v4027_v6 }
 0xdc7   :  { %4269 = vmatpush.bf16.xpose.msra.mxu1 %v4255_v16 }
 0xdcb   :  { %6520 = vmatmul.msk.bf16.gmra.mxu3 %vm155_vm1, %v9354_v24  ;;  %v3903_v24 = vpop.f32.mrf.mxu1 }
 0xdcf   :  { %4270 = vmatpush.bf16.xpose.msra.mxu1 %v4252_v18 }
 0xdd3   :  { %v3905_v58 = vpop.f32.mrf.mxu1 }
 0xdd4   :  { %6526 = vmatmul.msk.bf16.gmra.mxu0 %vm813_vm9, %v4028_v1  ;;  %v3906_v22 = vadd.f32 %v3905_v58, %v9769_v27 }
 0xdd6   :  { %6531 = vmatmul.msk.bf16.vlgmr.msra.gmra.mxu1 %vm813_vm9, %v4231_v43  ;;  %v9851_v43 = vld [vmem:[%s11200_s2 + $0xa2] ss:$0 sm:$0xff] }
 0xddb   :  { %6521 = vmatmul.msk.bf16.gmra.mxu3 %vm155_vm1, %v9384_v12  ;;  %v3904_v12 = vadd.f32 %v3903_v24, %v9769_v27  ;;  %v3908_v56 = vpop.f32.mrf.mxu1 }
 0xddd   :  { %v4233_v39 = vpack.c.bf16 %v3906_v22, %v3904_v12 }
 0xde1   :  { %v9810_v14 = vpop.f32.mrf.mxu0 }
 0xde3   :  { %v3910_v11 = vpop.f32.mrf.mxu1 }
 0xde4   :  { %v3911_v10 = vadd.f32 %v3910_v11, %v9769_v27 }
 0xde6   :  { %6532 = vmatmul.msk.bf16.gmra.mxu1 %vm813_vm9, %v4232_v13 }
 0xde9   :  { %v9814_v57 = vpop.f32.mrf.mxu0 }
 0xdeb   :  { %6522 = vmatmul.msk.bf16.gmra.mxu3 %vm155_vm1, %v9410_v34  ;;  %v3909_v34 = vadd.f32 %v3908_v56, %v9769_v27 }
 0xded   :  { %v4234_v50 = vpack.c.bf16 %v3911_v10, %v3909_v34 }
 0xdf1   :  { %v9819_v63 = vpop.f32.mrf.mxu0 }
 0xdf6   :  { %6533 = vmatmul.msk.bf16.gmra.mxu1 %vm813_vm9, %v4233_v39 }
 0xdf9   :  { %v9823_v19 = vpop.f32.mrf.mxu0 }
 0xdfe   :  { %v3985_v8 = vpop.f32.mrf.mxu3 }
 0xe01   :  { %v9826_v20 = vpop.f32.mrf.mxu0 }
 0xe06   :  { %v3987_v26 = vpop.f32.mrf.mxu3  ;;  %6534 = vmatmul.msk.bf16.gmra.mxu1 %vm813_vm9, %v4234_v50 }
 0xe07   :  { %v3988_v50 = vadd.f32 %v3987_v26, %v9851_v43 }
 0xe09   :  { %v9830_v29 = vpop.f32.mrf.mxu0 }
 0xe0e   :  { %v3990_v54 = vpop.f32.mrf.mxu3 }
 0xe0f   :  { %v3991_v34 = vadd.f32 %v3990_v54, %v9851_v43 }
 0xe11   :  { %v9832_v21 = vpop.f32.mrf.mxu0 }
 0xe16   :  { %v3992_v6 = vpop.f32.mrf.mxu3 }
 0xe17   :  { %v3993_v39 = vadd.f32 %v3992_v6, %v9851_v43 }
 0xe19   :  { %v9834_v25 = vpop.f32.mrf.mxu0 }
 0xe1e   :  { %v3995_v53 = vpop.f32.mrf.mxu3 }
 0xe1f   :  { %v3996_v12 = vadd.f32 %v3995_v53, %v9851_v43  ;;  %v3986_v53 = vadd.f32 %v3985_v8, %v9851_v43 }
 0xe21   :  { %v4066_v16 = vpop.f32.mrf.mxu0 }
 0xe22   :  { %v9836_v0 = vmul.f32 0.25, %v4066_v16  ;;  %v4187_v16 = vpack.c.bf16 %v3993_v39, %v3991_v34 }
 0xe24   :  { %v4094_v37 = vsel %vm79_vm0, %v9836_v0, -inf }
 0xe25   :  { %4095 = vmax.xlane.f32.xlu0 %v4094_v37 }
 0xe26   :  { %v3997_v27 = vpop.f32.mrf.mxu3 }
 0xe27   :  { %v3998_v38 = vadd.f32 %v3997_v27, %v9851_v43 }
 0xe29   :  { %v4068_v61 = vpop.f32.mrf.mxu0  ;;  %v4188_v11 = vpack.c.bf16 %v3998_v38, %v3996_v12 }
 0xe2a   :  { %v9840_v35 = vmul.f32 0.25, %v4068_v61 }
 0xe2c   :  { %v4097_v18 = vsel %vm79_vm0, %v9840_v35, -inf }
 0xe2d   :  { %4098 = vmax.xlane.f32.xlu0 %v4097_v18  ;;  %v4186_v18 = vpack.c.bf16 %v3988_v50, %v3986_v53 }
 0xe2e   :  { %v4000_v41 = vpop.f32.mrf.mxu3 }
 0xe2f   :  { %v4001_v24 = vadd.f32 %v4000_v41, %v9851_v43 }
 0xe31   :  { %v4071_v45 = vpop.f32.mrf.mxu0 }
 0xe32   :  { %v9844_v1 = vmul.f32 0.25, %v4071_v45 }
 0xe34   :  { %v4100_v44 = vsel %vm79_vm0, %v9844_v1, -inf }
 0xe35   :  { %4101 = vmax.xlane.f32.xlu0 %v4100_v44 }
 0xe36   :  { %v4002_v28 = vpop.f32.mrf.mxu3 }
 0xe37   :  { %v4003_v62 = vadd.f32 %v4002_v28, %v9851_v43 }
 0xe39   :  { %v4189_v13 = vpack.c.bf16 %v4003_v62, %v4001_v24  ;;  %v4073_v58 = vpop.f32.mrf.mxu0 }
 0xe3a   :  { %v9856_v22 = vmul.f32 0.25, %v4073_v58 }
 0xe3b   :  { %4206 = vmatpush.bf16.msra.mxu0 %v4189_v13 }
 0xe3c   :  { %v4103_v56 = vsel %vm79_vm0, %v9856_v22, -inf }
 0xe3d   :  { %4104 = vmax.xlane.f32.xlu1 %v4103_v56 }
 0xe3e   :  { %v4005_v10 = vpop.f32.mrf.mxu3 }
 0xe3f   :  { %4207 = vmatpush.bf16.msra.mxu0 %v4188_v11 }
 0xe41   :  { %v4076_v37 = vpop.f32.mrf.mxu0 }
 0xe42   :  { %v9864_v27 = vmul.f32 0.25, %v4076_v37 }
 0xe43   :  { %4208 = vmatpush.bf16.msra.mxu0 %v4187_v16 }
 0xe44   :  { %v4106_v61 = vsel %vm79_vm0, %v9864_v27, -inf }
 0xe45   :  { %4107 = vmax.xlane.f32.xlu2 %v4106_v61 }
 0xe46   :  { %v4007_v6 = vpop.f32.mrf.mxu3 }
 0xe47   :  { %4209 = vmatpush.bf16.msra.mxu0 %v4186_v18 }
 0xe49   :  { %v4078_v41 = vpop.f32.mrf.mxu0 }
 0xe4a   :  { %v9869_v45 = vmul.f32 0.25, %v4078_v41 }
 0xe4c   :  { %v4109_v26 = vsel %vm79_vm0, %v9869_v45, -inf }
 0xe4d   :  { %4110 = vmax.xlane.f32.xlu0 %v4109_v26 }
 0xe4e   :  { %v4010_v54 = vpop.f32.mrf.mxu3 }
 0xe51   :  { %v4081_v44 = vpop.f32.mrf.mxu0 }
 0xe52   :  { %v9873_v28 = vmul.f32 0.25, %v4081_v44 }
 0xe53   :  { %v4272_v8 = vpop.f32.mrf.mxu1 }
 0xe54   :  { %v9875_v24 = vmul.f32 0.25, %v4272_v8  ;;  %v4112_v62 = vsel %vm79_vm0, %v9873_v28, -inf }
 0xe55   :  { %4113 = vmax.xlane.f32.xlu0 %v4112_v62 }
 0xe56   :  { %v4012_v38 = vpop.f32.mrf.mxu3  ;;  %v4300_v13 = vsel %vm79_vm0, %v9875_v24, -inf }
 0xe57   :  { %4301 = vmax.xlane.f32.xlu1 %v4300_v13 }
 0xe59   :  { %v4083_v58 = vpop.f32.mrf.mxu0 }
 0xe5a   :  { %v9881_v12 = vmul.f32 0.25, %v4083_v58  ;;  %v4013_v58 = vadd.f32 %v4012_v38, %v9851_v43 }
 0xe5b   :  { %v4274_v56 = vpop.f32.mrf.mxu1 }
 0xe5c   :  { %v9883_v39 = vmul.f32 0.25, %v4274_v56  ;;  %v4115_v11 = vsel %vm79_vm0, %v9881_v12, -inf }
 0xe5d   :  { %4116 = vmax.xlane.f32.xlu0 %v4115_v11  ;;  %v4011_v11 = vadd.f32 %v4010_v54, %v9851_v43 }
 0xe5e   :  { %v4015_v34 = vpop.f32.mrf.mxu3  ;;  %v4303_v50 = vsel %vm79_vm0, %v9883_v39, -inf }
 0xe5f   :  { %4304 = vmax.xlane.f32.xlu2 %v4303_v50  ;;  %v4016_v13 = vadd.f32 %v4015_v34, %v9851_v43  ;;  %v4008_v50 = vadd.f32 %v4007_v6, %v9851_v43 }
 0xe63   :  { %v4277_v16 = vpop.f32.mrf.mxu1 }
 0xe64   :  { %v9889_v37 = vmul.f32 0.25, %v4277_v16  ;;  %v4393_v16 = vpack.c.bf16 %v4013_v58, %v4011_v11 }
 0xe66   :  { %v4017_v53 = vpop.f32.mrf.mxu3  ;;  %v4306_v61 = vsel %vm79_vm0, %v9889_v37, -inf }
 0xe67   :  { %4307 = vmax.xlane.f32.xlu2 %v4306_v61  ;;  %v4018_v8 = vadd.f32 %v4017_v53, %v9851_v43  ;;  %v4006_v61 = vadd.f32 %v4005_v10, %v9851_v43 }
 0xe69   :  { %v4394_v56 = vpack.c.bf16 %v4018_v8, %v4016_v13 }
 0xe6b   :  { %v4279_v13 = vpop.f32.mrf.mxu1 }
 0xe6e   :  { %v4020_v18 = vpop.f32.mrf.mxu3 }
 0xe6f   :  { %v4021_v26 = vadd.f32 %v4020_v18, %v9851_v43  ;;  %v4392_v18 = vpack.c.bf16 %v4008_v50, %v4006_v61 }
 0xe76   :  { %v4022_v41 = vpop.f32.mrf.mxu3 }
 0xe77   :  { %v4023_v44 = vadd.f32 %v4022_v41, %v9851_v43 }
 0xe79   :  { %v4395_v62 = vpack.c.bf16 %v4023_v44, %v4021_v26 }
 0xe7b   :  { %4412 = vmatpush.bf16.msrb.mxu2 %v4395_v62 }
 0xe7f   :  { %4413 = vmatpush.bf16.msrb.mxu2 %v4394_v56 }
 0xe83   :  { %4414 = vmatpush.bf16.msrb.mxu2 %v4393_v16  ;;  %v9917_v16 = vmul.f32 0.25, %v4279_v13 }
 0xe87   :  { %4415 = vmatpush.bf16.msrb.mxu2 %v4392_v18 }
 0xe98   :  { %v4096_v41 = vpop.xlane.xlu0 %4095 }
 0xe99   :  { %v4118_v53 = vsub.f32 %v9836_v0, %v4096_v41 }
 0xe9b   :  { %v4126_v26 = vmul.f32 1.442695, %v4118_v53 }
 0xe9d   :  { %7103 = vpow2.f32 %v4126_v26 }
 0xea0   :  { %v4099_v34 = vpop.xlane.xlu0 %4098 }
 0xea1   :  { %v4119_v38 = vsub.f32 %v9840_v35, %v4099_v34 }
 0xea3   :  { %v9903_v44 = vpop.eup %7103  ;;  %v4128_v54 = vmul.f32 1.442695, %v4119_v38 }
 0xea4   :  { %v4142_v6 = vsel %vm79_vm0, %v9903_v44, 0.0 }
 0xea5   :  { %7105 = vpow2.f32 %v4128_v54  ;;  %4143 = vadd.xlane.f32.xlu0 %v4142_v6 }
 0xea8   :  { %v4102_v43 = vpop.xlane.xlu0 %4101 }
 0xea9   :  { %v4120_v10 = vsub.f32 %v9844_v1, %v4102_v43  ;;  %v4282_v1 = vpop.f32.mrf.mxu1 }
 0xeaa   :  { %v9926_v34 = vmul.f32 0.25, %v4282_v1 }
 0xeab   :  { %v9908_v8 = vpop.eup %7105  ;;  %v4130_v62 = vmul.f32 1.442695, %v4120_v10 }
 0xeac   :  { %v4145_v0 = vsel %vm79_vm0, %v9908_v8, 0.0  ;;  %v4312_v10 = vsel %vm79_vm0, %v9926_v34, -inf }
 0xead   :  { %7107 = vpow2.f32 %v4130_v62  ;;  %4146 = vadd.xlane.f32.xlu0 %v4145_v0 }
 0xeb0   :  { %v4105_v35 = vpop.xlane.xlu1 %4104 }
 0xeb1   :  { %v4121_v58 = vsub.f32 %v9856_v22, %v4105_v35  ;;  %v4309_v22 = vsel %vm79_vm0, %v9917_v16, -inf  ;;  %v4284_v54 = vpop.f32.mrf.mxu1 }
 0xeb2   :  { %v9935_v0 = vmul.f32 0.25, %v4284_v54 }
 0xeb3   :  { %v9913_v56 = vpop.eup %7107  ;;  %v4132_v11 = vmul.f32 1.442695, %v4121_v58 }
 0xeb4   :  { %v4148_v50 = vsel %vm79_vm0, %v9913_v56, 0.0  ;;  %v4315_v1 = vsel %vm79_vm0, %v9935_v0, -inf }
 0xeb5   :  { %7109 = vpow2.f32 %v4132_v11  ;;  %4149 = vadd.xlane.f32.xlu0 %v4148_v50 }
 0xeb8   :  { %v4108_v61 = vpop.xlane.xlu2 %4107 }
 0xeb9   :  { %v4122_v18 = vsub.f32 %v9864_v27, %v4108_v61 }
 0xebb   :  { %v9920_v41 = vpop.eup %7109  ;;  %v4134_v53 = vmul.f32 1.442695, %v4122_v18 }
 0xebc   :  { %v4151_v26 = vsel %vm79_vm0, %v9920_v41, 0.0 }
 0xebd   :  { %7111 = vpow2.f32 %v4134_v53  ;;  %4310 = vmax.xlane.f32.xlu0 %v4309_v22  ;;  %4152 = vadd.xlane.f32.xlu1 %v4151_v26 }
 0xec0   :  { %v4111_v38 = vpop.xlane.xlu0 %4110 }
 0xec1   :  { %v4123_v6 = vsub.f32 %v9869_v45, %v4111_v38  ;;  %v4287_v45 = vpop.f32.mrf.mxu1 }
 0xec2   :  { %v9944_v61 = vmul.f32 0.25, %v4287_v45 }
 0xec3   :  { %v9929_v43 = vpop.eup %7111  ;;  %v4136_v27 = vmul.f32 1.442695, %v4123_v6 }
 0xec4   :  { %v4154_v62 = vsel %vm79_vm0, %v9929_v43, 0.0 }
 0xec5   :  { %7113 = vpow2.f32 %v4136_v27  ;;  %4313 = vmax.xlane.f32.xlu0 %v4312_v10  ;;  %4155 = vadd.xlane.f32.xlu1 %v4154_v62  ;;  %v4318_v10 = vsel %vm79_vm0, %v9944_v61, -inf }
 0xec8   :  { %v4114_v13 = vpop.xlane.xlu0 %4113 }
 0xec9   :  { %v4124_v35 = vsub.f32 %v9873_v28, %v4114_v13  ;;  %v4289_v62 = vpop.f32.mrf.mxu1 }
 0xeca   :  { %v4302_v18 = vpop.xlane.xlu1 %4301 }
 0xecb   :  { %v9938_v58 = vpop.eup %7113  ;;  %v4138_v11 = vmul.f32 1.442695, %v4124_v35  ;;  %v4324_v38 = vsub.f32 %v9875_v24, %v4302_v18  ;;  %v9955_v35 = vmul.f32 0.25, %v4289_v62 }
 0xecc   :  { %v4157_v50 = vsel %vm79_vm0, %v9938_v58, 0.0 }
 0xecd   :  { %7115 = vpow2.f32 %v4138_v11  ;;  %4158 = vadd.xlane.f32.xlu2 %v4157_v50  ;;  %4316 = vmax.xlane.f32.xlu1 %v4315_v1  ;;  %v4321_v11 = vsel %vm79_vm0, %v9955_v35, -inf }
 0xed0   :  { %v4117_v53 = vpop.xlane.xlu0 %4116 }
 0xed1   :  { %v4125_v22 = vsub.f32 %v9881_v12, %v4117_v53  ;;  %v4332_v12 = vmul.f32 1.442695, %v4324_v38 }
 0xed2   :  { %v4305_v28 = vpop.xlane.xlu2 %4304 }
 0xed3   :  { %v9947_v26 = vpop.eup %7115  ;;  %v4140_v54 = vmul.f32 1.442695, %v4125_v22  ;;  %v4325_v6 = vsub.f32 %v9883_v39, %v4305_v28 }
 0xed4   :  { %v4160_v27 = vsel %vm79_vm0, %v9947_v26, 0.0 }
 0xed5   :  { %7117 = vpow2.f32 %v4140_v54  ;;  %v4334_v13 = vmul.f32 1.442695, %v4325_v6  ;;  %4161 = vadd.xlane.f32.xlu2 %v4160_v27  ;;  %4319 = vmax.xlane.f32.xlu1 %v4318_v10 }
 0xed7   :  { %7119 = vpow2.f32 %v4334_v13 }
 0xed8   :  { %7121 = vpow2.f32 %v4332_v12 }
 0xeda   :  { %v4308_v45 = vpop.xlane.xlu2 %4307 }
 0xedb   :  { %v9957_v24 = vpop.eup %7117  ;;  %v4326_v39 = vsub.f32 %v9889_v37, %v4308_v45 }
 0xedc   :  { %v4163_v50 = vsel %vm79_vm0, %v9957_v24, 0.0 }
 0xedd   :  { %v9964_v1 = vpop.eup %7119  ;;  %v4336_v18 = vmul.f32 1.442695, %v4326_v39  ;;  %4322 = vmax.xlane.f32.xlu2 %v4321_v11  ;;  %4164 = vadd.xlane.f32.xlu0 %v4163_v50 }
 0xede   :  { %v4351_v53 = vsel %vm79_vm0, %v9964_v1, 0.0  ;;  %v9968_v22 = vpop.eup %7121 }
 0xedf   :  { %7123 = vpow2.f32 %v4336_v18  ;;  %4352 = vadd.xlane.f32.xlu1 %v4351_v53  ;;  %v4348_v37 = vsel %vm79_vm0, %v9968_v22, 0.0 }
 0xee5   :  { %v9972_v28 = vpop.eup %7123  ;;  %4349 = vadd.xlane.f32.xlu0 %v4348_v37 }
 0xee6   :  { %v4354_v38 = vsel %vm79_vm0, %v9972_v28, 0.0 }
 0xee7   :  { %4355 = vadd.xlane.f32.xlu2 %v4354_v38 }
 0xf18   :  { %v4144_v54 = vpop.xlane.xlu0 %4143 }
 0xf19   :  { %7125 = vrcp.f32 %v4144_v54 }
 0xf1f   :  { %v7126_v27 = vpop.eup %7125 }
 0xf20   :  { %v4147_v6 = vpop.xlane.xlu0 %4146  ;;  %v4174_v62 = vmul.f32 %v7126_v27, %v9903_v44 }
 0xf21   :  { %7127 = vrcp.f32 %v4147_v6 }
 0xf27   :  { %v7128_v10 = vpop.eup %7127 }
 0xf28   :  { %v4175_v13 = vmul.f32 %v7128_v10, %v9908_v8  ;;  %v4150_v12 = vpop.xlane.xlu0 %4149 }
 0xf29   :  { %7129 = vrcp.f32 %v4150_v12 }
 0xf2a   :  { %v4182_v45 = vpack.c.bf16 %v4175_v13, %v4174_v62 }
 0xf2c   :  { %6527 = vmatmul.msk.bf16.vlgmr.msra.gmra.mxu0 %vm79_vm0, %v4182_v45 }
 0xf2f   :  { %v7130_v53 = vpop.eup %7129 }
 0xf30   :  { %v4311_v39 = vpop.xlane.xlu0 %4310  ;;  %v4153_v11 = vpop.xlane.xlu1 %4152  ;;  %v4176_v38 = vmul.f32 %v7130_v53, %v9913_v56 }
 0xf31   :  { %v4327_v50 = vsub.f32 %v9917_v16, %v4311_v39  ;;  %7131 = vrcp.f32 %v4153_v11  ;;  %v6666_v39 = vld [vmem:[%s11198_s1 + $0x70] sm:$0xff] }
 0xf32   :  { %4563 = vmatpush.bf16.msrb.mxu0 %v6666_v39 }
 0xf33   :  { %v4338_v18 = vmul.f32 1.442695, %v4327_v50 }
 0xf35   :  { %7133 = vpow2.f32 %v4338_v18 }
 0xf37   :  { %v7132_v37 = vpop.eup %7131 }
 0xf38   :  { %v4177_v44 = vmul.f32 %v7132_v37, %v9920_v41  ;;  %v4314_v54 = vpop.xlane.xlu0 %4313  ;;  %v4156_v8 = vpop.xlane.xlu1 %4155 }
 0xf39   :  { %v4328_v6 = vsub.f32 %v9926_v34, %v4314_v54 }
 0xf3a   :  { %v4183_v27 = vpack.c.bf16 %v4177_v44, %v4176_v38 }
 0xf3b   :  { %v9983_v10 = vpop.eup %7133  ;;  %v4340_v62 = vmul.f32 1.442695, %v4328_v6 }
 0xf3c   :  { %6528 = vmatmul.msk.bf16.gmra.mxu0 %vm79_vm0, %v4183_v27  ;;  %v4357_v16 = vsel %vm79_vm0, %v9983_v10, 0.0 }
 0xf3d   :  { %7135 = vpow2.f32 %v4340_v62  ;;  %4358 = vadd.xlane.f32.xlu0 %v4357_v16 }
 0xf3e   :  { %7137 = vrcp.f32 %v4156_v8 }
 0xf40   :  { %v4159_v13 = vpop.xlane.xlu2 %4158  ;;  %v4317_v56 = vpop.xlane.xlu1 %4316 }
 0xf41   :  { %7139 = vrcp.f32 %v4159_v13  ;;  %v4329_v41 = vsub.f32 %v9935_v0, %v4317_v56 }
 0xf43   :  { %v9989_v12 = vpop.eup %7135  ;;  %v4342_v34 = vmul.f32 1.442695, %v4329_v41 }
 0xf44   :  { %v4360_v45 = vsel %vm79_vm0, %v9989_v12, 0.0  ;;  %v7138_v11 = vpop.eup %7137 }
 0xf45   :  { %7141 = vpow2.f32 %v4342_v34  ;;  %4361 = vadd.xlane.f32.xlu1 %v4360_v45  ;;  %v4178_v18 = vmul.f32 %v7138_v11, %v9929_v43 }
 0xf47   :  { %v7140_v50 = vpop.eup %7139 }
 0xf48   :  { %v4179_v53 = vmul.f32 %v7140_v50, %v9938_v58  ;;  %v4162_v0 = vpop.xlane.xlu2 %4161  ;;  %v4320_v37 = vpop.xlane.xlu1 %4319 }
 0xf49   :  { %v4330_v38 = vsub.f32 %v9944_v61, %v4320_v37 }
 0xf4a   :  { %v4184_v44 = vpack.c.bf16 %v4179_v53, %v4178_v18 }
 0xf4b   :  { %v9999_v54 = vpop.eup %7141  ;;  %v4344_v8 = vmul.f32 1.442695, %v4330_v38  ;;  %v3850_v38 = vpack.c.bf16 %v9703_v33, %v9699_v55  ;;  %v3853_v55 = vpack.c.bf16 %v9814_v57, %v9810_v14  ;;  %v3854_v14 = vpack.c.bf16 %v9823_v19, %v9819_v63 }
 0xf4c   :  { %6529 = vmatmul.msk.bf16.gmra.mxu0 %vm79_vm0, %v4184_v44  ;;  %v4363_v6 = vsel %vm79_vm0, %v9999_v54, 0.0  ;;  %v3851_v44 = vpack.c.bf16 %v9711_v15, %v9709_v48  ;;  %v3855_v19 = vpack.c.bf16 %v9830_v29, %v9826_v20  ;;  %v3856_v29 = vpack.c.bf16 %v9834_v25, %v9832_v21  ;;  %v10063_v21 = vld [vmem:[%s11200_s2 + $0xa5] ss:$0 sm:$0xff] }
 0xf4d   :  { %7143 = vpow2.f32 %v4344_v8  ;;  %4364 = vadd.xlane.f32.xlu2 %v4363_v6 }
 0xf4e   :  { %7145 = vrcp.f32 %v4162_v0 }
 0xf50   :  { %v4323_v27 = vpop.xlane.xlu2 %4322  ;;  %v4165_v43 = vpop.xlane.xlu0 %4164 }
 0xf51   :  { %v4331_v58 = vsub.f32 %v9955_v35, %v4323_v27  ;;  %7147 = vrcp.f32 %v4165_v43 }
 0xf52   :  { %v4353_v16 = vpop.xlane.xlu1 %4352 }
 0xf53   :  { %v10005_v62 = vpop.eup %7143  ;;  %v4346_v61 = vmul.f32 1.442695, %v4331_v58 }
 0xf54   :  { %v4366_v13 = vsel %vm79_vm0, %v10005_v62, 0.0  ;;  %v7146_v56 = vpop.eup %7145 }
 0xf55   :  { %7149 = vpow2.f32 %v4346_v61  ;;  %4367 = vadd.xlane.f32.xlu0 %v4366_v13  ;;  %v4180_v34 = vmul.f32 %v7146_v56, %v9947_v26 }
 0xf56   :  { %7151 = vrcp.f32 %v4353_v16 }
 0xf57   :  { %v7148_v41 = vpop.eup %7147 }
 0xf58   :  { %v4181_v45 = vmul.f32 %v7148_v41, %v9957_v24  ;;  %v4350_v39 = vpop.xlane.xlu0 %4349  ;;  %v3849_v24 = vpack.c.bf16 %v9691_v17, %v9689_v9  ;;  %v3852_v9 = vpack.c.bf16 %v9719_v47, %v9717_v5 }
 0xf59   :  { %7153 = vrcp.f32 %v4350_v39 }
 0xf5a   :  { %v4185_v35 = vpack.c.bf16 %v4181_v45, %v4180_v34  ;;  %v4356_v33 = vpop.xlane.xlu2 %4355 }
 0xf5b   :  { %v10011_v11 = vpop.eup %7149  ;;  %7155 = vrcp.f32 %v4356_v33 }
 0xf5c   :  { %6530 = vmatmul.msk.bf16.gmra.mxu0 %vm79_vm0, %v4185_v35  ;;  %v4369_v50 = vsel %vm79_vm0, %v10011_v11, 0.0  ;;  %v7152_v18 = vpop.eup %7151 }
 0xf5d   :  { %4370 = vadd.xlane.f32.xlu1 %v4369_v50  ;;  %v4381_v0 = vmul.f32 %v7152_v18, %v9964_v1  ;;  %v6667_v1 = vld [vmem:[%s11198_s1 + $0x78] sm:$0xff] }
 0xf5e   :  { %4484 = vmatpush.bf16.msrb.mxu3 %v6667_v1 }
 0xf5f   :  { %v7154_v53 = vpop.eup %7153 }
 0xf60   :  { %v4380_v37 = vmul.f32 %v7154_v53, %v9968_v22 }
 0xf61   :  { %v7156_v8 = vpop.eup %7155 }
 0xf62   :  { %v4388_v26 = vpack.c.bf16 %v4381_v0, %v4380_v37  ;;  %v4382_v5 = vmul.f32 %v7156_v8, %v9972_v28 }
 0xf64   :  { %6535 = vmatmul.msk.bf16.vlgmr.msrb.gmra.mxu2 %vm79_vm0, %v4388_v26 }
 0xf6c   :  { %6555 = vmatmul.msk.bf16.vlgmr.msrb.gmra.mxu0 %vm813_vm9, %v3849_v24 }
 0xf7c   :  { %6556 = vmatmul.msk.bf16.gmra.mxu0 %vm813_vm9, %v3850_v38 }
 0xf8c   :  { %6557 = vmatmul.msk.bf16.gmra.mxu0 %vm813_vm9, %v3851_v44 }
 0xf9c   :  { %6558 = vmatmul.msk.bf16.gmra.mxu0 %vm813_vm9, %v3852_v9 }
 0xfa9   :  { %v4211_v17 = vpop.f32.mrf.mxu0 }
 0xfac   :  { %6559 = vmatmul.msk.bf16.gmra.mxu0 %vm813_vm9, %v3853_v55 }
 0xfb0   :  { %v4359_v48 = vpop.xlane.xlu0 %4358 }
 0xfb1   :  { %7157 = vrcp.f32 %v4359_v48  ;;  %v4213_v15 = vpop.f32.mrf.mxu0 }
 0xfb2   :  { %v4439_v22 = vpack.c.bf16 %v4213_v15, %v4211_v17 }
 0xfb4   :  { %6543 = vmatmul.msk.bf16.vlgmr.msrb.gmra.mxu3 %vm813_vm9, %v4439_v22 }
 0xfb7   :  { %v7158_v6 = vpop.eup %7157 }
 0xfb8   :  { %v4383_v47 = vmul.f32 %v7158_v6, %v9983_v10  ;;  %v4362_v43 = vpop.xlane.xlu1 %4361 }
 0xfb9   :  { %v4216_v27 = vpop.f32.mrf.mxu0  ;;  %7159 = vrcp.f32 %v4362_v43 }
 0xfba   :  { %v4389_v57 = vpack.c.bf16 %v4383_v47, %v4382_v5 }
 0xfbc   :  { %6536 = vmatmul.msk.bf16.gmra.mxu2 %vm79_vm0, %v4389_v57  ;;  %6560 = vmatmul.msk.bf16.gmra.mxu0 %vm813_vm9, %v3854_v14 }
 0xfbf   :  { %v7160_v28 = vpop.eup %7159 }
 0xfc0   :  { %v4365_v58 = vpop.xlane.xlu2 %4364  ;;  %v4384_v10 = vmul.f32 %v7160_v28, %v9989_v12 }
 0xfc1   :  { %7161 = vrcp.f32 %v4365_v58  ;;  %v4218_v61 = vpop.f32.mrf.mxu0 }
 0xfc2   :  { %v4440_v16 = vpack.c.bf16 %v4218_v61, %v4216_v27 }
 0xfc4   :  { %6544 = vmatmul.msk.bf16.gmra.mxu3 %vm813_vm9, %v4440_v16 }
 0xfc7   :  { %v7162_v13 = vpop.eup %7161 }
 0xfc8   :  { %v4385_v56 = vmul.f32 %v7162_v13, %v9999_v54  ;;  %v4368_v34 = vpop.xlane.xlu0 %4367 }
 0xfc9   :  { %v4221_v63 = vpop.f32.mrf.mxu0  ;;  %7163 = vrcp.f32 %v4368_v34 }
 0xfca   :  { %v4390_v41 = vpack.c.bf16 %v4385_v56, %v4384_v10 }
 0xfcc   :  { %6537 = vmatmul.msk.bf16.gmra.mxu2 %vm79_vm0, %v4390_v41  ;;  %6561 = vmatmul.msk.bf16.gmra.mxu0 %vm813_vm9, %v3855_v19 }
 0xfcf   :  { %v7164_v12 = vpop.eup %7163 }
 0xfd0   :  { %v4371_v45 = vpop.xlane.xlu1 %4370  ;;  %v4386_v54 = vmul.f32 %v7164_v12, %v10005_v62 }
 0xfd1   :  { %7165 = vrcp.f32 %v4371_v45  ;;  %v4223_v39 = vpop.f32.mrf.mxu0 }
 0xfd2   :  { %v4441_v35 = vpack.c.bf16 %v4223_v39, %v4221_v63 }
 0xfd4   :  { %6545 = vmatmul.msk.bf16.gmra.mxu3 %vm813_vm9, %v4441_v35 }
 0xfd7   :  { %v7166_v50 = vpop.eup %7165 }
 0xfd8   :  { %v4387_v18 = vmul.f32 %v7166_v50, %v10011_v11 }
 0xfd9   :  { %v4226_v20 = vpop.f32.mrf.mxu0 }
 0xfda   :  { %v4391_v53 = vpack.c.bf16 %v4387_v18, %v4386_v54 }
 0xfdc   :  { %6538 = vmatmul.msk.bf16.gmra.mxu2 %vm79_vm0, %v4391_v53  ;;  %6562 = vmatmul.msk.bf16.gmra.mxu0 %vm813_vm9, %v3856_v29 }
 0xfe1   :  { %v4228_v0 = vpop.f32.mrf.mxu0 }
 0xfe2   :  { %v4442_v37 = vpack.c.bf16 %v4228_v0, %v4226_v20 }
 0xfe4   :  { %6546 = vmatmul.msk.bf16.gmra.mxu3 %vm813_vm9, %v4442_v37 }
 0xfe7   :  { %v4417_v26 = vpop.f32.mrf.mxu2 }
 0xfe9   :  { %v4565_v62 = vpop.f32.mrf.mxu0 }
 0xfef   :  { %v4419_v24 = vpop.f32.mrf.mxu2 }
 0xff0   :  { %v4443_v38 = vpack.c.bf16 %v4419_v24, %v4417_v26 }
 0xff1   :  { %v4567_v11 = vpop.f32.mrf.mxu0 }
 0xff4   :  { %6547 = vmatmul.msk.bf16.gmra.mxu3 %vm813_vm9, %v4443_v38 }
 0xff9   :  { %v4570_v1 = vpop.f32.mrf.mxu0 }
0x1001   :  { %v4572_v6 = vpop.f32.mrf.mxu0 }
0x1009   :  { %v4575_v13 = vpop.f32.mrf.mxu0 }
0x1011   :  { %v4577_v12 = vpop.f32.mrf.mxu0 }
0x1037   :  { %v4486_v44 = vpop.f32.mrf.mxu3 }
0x1038   :  { %v4566_v9 = vadd.f32 %v4565_v62, %v4486_v44 }
0x103a   :  { %v4605_v25 = vadd.f32 %v4566_v9, %v8963_v4  ;;  %v4580_v9 = vpop.f32.mrf.mxu0 }
0x103c   :  { %v10067_v17 = vadd.f32 %v10063_v21, %v4605_v25 }
0x103e   :  { %v4640_v55 = vsel %vm155_vm1, %v10067_v17, 0.0  ;;  %v4704_v33 = vmul.f32 %v10067_v17, %v10067_v17 }
0x103f   :  { %v4488_v48 = vpop.f32.mrf.mxu3  ;;  %4641 = vadd.xlane.f32.xlu2 %v4640_v55  ;;  %v4422_v15 = vpop.f32.mrf.mxu2 }
0x1040   :  { %v4568_v22 = vadd.f32 %v4567_v11, %v4488_v48  ;;  %v4720_v8 = vsel %vm155_vm1, %v4704_v33, 0.0 }
0x1041   :  { %4721 = vadd.xlane.f32.xlu1 %v4720_v8 }
0x1042   :  { %v4606_v5 = vadd.f32 %v4568_v22, %v8972_v59 }
0x1044   :  { %v10076_v47 = vadd.f32 %v10063_v21, %v4606_v5 }
0x1046   :  { %v4643_v27 = vsel %vm155_vm1, %v10076_v47, 0.0  ;;  %v4705_v14 = vmul.f32 %v10076_v47, %v10076_v47 }
0x1047   :  { %v4491_v57 = vpop.f32.mrf.mxu3  ;;  %4644 = vadd.xlane.f32.xlu0 %v4643_v27  ;;  %v4424_v43 = vpop.f32.mrf.mxu2 }
0x1048   :  { %v4571_v58 = vadd.f32 %v4570_v1, %v4491_v57  ;;  %v4444_v61 = vpack.c.bf16 %v4424_v43, %v4422_v15  ;;  %v4723_v16 = vsel %vm155_vm1, %v4705_v14, 0.0  ;;  %v4582_v14 = vpop.f32.mrf.mxu0 }
0x1049   :  { %4724 = vadd.xlane.f32.xlu2 %v4723_v16 }
0x104a   :  { %v4607_v28 = vadd.f32 %v4571_v58, %v8987_v30  ;;  %6548 = vmatmul.msk.bf16.gmra.mxu3 %vm813_vm9, %v4444_v61 }
0x104c   :  { %v10086_v10 = vadd.f32 %v10063_v21, %v4607_v28 }
0x104e   :  { %v4646_v56 = vsel %vm155_vm1, %v10086_v10, 0.0  ;;  %v4706_v63 = vmul.f32 %v10086_v10, %v10086_v10 }
0x104f   :  { %v4493_v19 = vpop.f32.mrf.mxu3  ;;  %4647 = vadd.xlane.f32.xlu0 %v4646_v56  ;;  %v4427_v41 = vpop.f32.mrf.mxu2 }
0x1050   :  { %v4573_v34 = vadd.f32 %v4572_v6, %v4493_v19  ;;  %v4726_v45 = vsel %vm155_vm1, %v4706_v63, 0.0  ;;  %v4585_v63 = vpop.f32.mrf.mxu0 }
0x1051   :  { %4727 = vadd.xlane.f32.xlu2 %v4726_v45 }
0x1052   :  { %v4608_v39 = vadd.f32 %v4573_v34, %v9004_v52 }
0x1054   :  { %v10095_v35 = vadd.f32 %v10063_v21, %v4608_v39 }
0x1056   :  { %v4649_v50 = vsel %vm155_vm1, %v10095_v35, 0.0  ;;  %v4707_v54 = vmul.f32 %v10095_v35, %v10095_v35 }
0x1057   :  { %v4496_v18 = vpop.f32.mrf.mxu3  ;;  %4650 = vadd.xlane.f32.xlu1 %v4649_v50  ;;  %v4429_v20 = vpop.f32.mrf.mxu2 }
0x1058   :  { %v4576_v29 = vadd.f32 %v4575_v13, %v4496_v18  ;;  %v4445_v53 = vpack.c.bf16 %v4429_v20, %v4427_v41  ;;  %v4729_v0 = vsel %vm155_vm1, %v4707_v54, 0.0  ;;  %v4587_v20 = vpop.f32.mrf.mxu0 }
0x1059   :  { %4730 = vadd.xlane.f32.xlu0 %v4729_v0 }
0x105a   :  { %v4609_v37 = vadd.f32 %v4576_v29, %v9019_v31  ;;  %6549 = vmatmul.msk.bf16.gmra.mxu3 %vm813_vm9, %v4445_v53 }
0x105c   :  { %v10105_v26 = vadd.f32 %v10063_v21, %v4609_v37 }
0x105e   :  { %v4652_v24 = vsel %vm155_vm1, %v10105_v26, 0.0  ;;  %v4708_v38 = vmul.f32 %v10105_v26, %v10105_v26 }
0x105f   :  { %v4498_v62 = vpop.f32.mrf.mxu3  ;;  %4653 = vadd.xlane.f32.xlu1 %v4652_v24  ;;  %v4432_v11 = vpop.f32.mrf.mxu2 }
0x1060   :  { %v4578_v44 = vadd.f32 %v4577_v12, %v4498_v62  ;;  %v4732_v1 = vsel %vm155_vm1, %v4708_v38, 0.0 }
0x1061   :  { %4733 = vadd.xlane.f32.xlu0 %v4732_v1 }
0x1062   :  { %v4610_v25 = vadd.f32 %v4578_v44, %v9035_v46 }
0x1064   :  { %v10114_v55 = vadd.f32 %v10063_v21, %v4610_v25 }
0x1066   :  { %v4655_v33 = vsel %vm155_vm1, %v10114_v55, 0.0  ;;  %v4709_v48 = vmul.f32 %v10114_v55, %v10114_v55 }
0x1067   :  { %v4501_v15 = vpop.f32.mrf.mxu3  ;;  %4656 = vadd.xlane.f32.xlu2 %v4655_v33  ;;  %v4434_v22 = vpop.f32.mrf.mxu2 }
0x1068   :  { %v4581_v8 = vadd.f32 %v4580_v9, %v4501_v15  ;;  %v4446_v6 = vpack.c.bf16 %v4434_v22, %v4432_v11  ;;  %v4735_v5 = vsel %vm155_vm1, %v4709_v48, 0.0  ;;  %v6669_v15 = vld [vmem:[%s11198_s1 + $0x88] sm:$0xff] }
0x1069   :  { %4736 = vadd.xlane.f32.xlu1 %v4735_v5  ;;  %5127 = vmatpush.bf16.msrb.mxu1 %v6669_v15  ;;  %v6668_v5 = vld [vmem:[%s11198_s1 + $0x80] sm:$0xff] }
0x106a   :  { %v4611_v27 = vadd.f32 %v4581_v8, %v9056_v7  ;;  %6550 = vmatmul.msk.bf16.gmra.mxu3 %vm813_vm9, %v4446_v6 }
0x106c   :  { %v10124_v57 = vadd.f32 %v10063_v21, %v4611_v27 }
0x106d   :  { %5128 = vmatpush.bf16.msrb.mxu1 %v6668_v5 }
0x106e   :  { %v4658_v43 = vsel %vm155_vm1, %v10124_v57, 0.0  ;;  %v4710_v58 = vmul.f32 %v10124_v57, %v10124_v57 }
0x106f   :  { %v4503_v61 = vpop.f32.mrf.mxu3  ;;  %4659 = vadd.xlane.f32.xlu2 %v4658_v43 }
0x1070   :  { %v4583_v16 = vadd.f32 %v4582_v14, %v4503_v61  ;;  %v4738_v28 = vsel %vm155_vm1, %v4710_v58, 0.0 }
0x1071   :  { %4739 = vadd.xlane.f32.xlu1 %v4738_v28 }
0x1072   :  { %v4612_v13 = vadd.f32 %v4583_v16, %v9066_v23 }
0x1074   :  { %v10133_v56 = vadd.f32 %v10063_v21, %v4612_v13 }
0x1076   :  { %v4661_v19 = vsel %vm155_vm1, %v10133_v56, 0.0  ;;  %v4711_v41 = vmul.f32 %v10133_v56, %v10133_v56 }
0x1077   :  { %4662 = vadd.xlane.f32.xlu0 %v4661_v19  ;;  %v4506_v34 = vpop.f32.mrf.mxu3 }
0x1078   :  { %v4586_v45 = vadd.f32 %v4585_v63, %v4506_v34  ;;  %v4741_v39 = vsel %vm155_vm1, %v4711_v41, 0.0  ;;  %v4590_v63 = vpop.f32.mrf.mxu0 }
0x1079   :  { %4742 = vadd.xlane.f32.xlu2 %v4741_v39 }
0x107a   :  { %v4613_v12 = vadd.f32 %v4586_v45, %v9138_v3 }
0x107c   :  { %v10142_v50 = vadd.f32 %v10063_v21, %v4613_v12 }
0x107e   :  { %v4664_v54 = vsel %vm155_vm1, %v10142_v50, 0.0  ;;  %v4712_v18 = vmul.f32 %v10142_v50, %v10142_v50 }
0x107f   :  { %4665 = vadd.xlane.f32.xlu0 %v4664_v54  ;;  %v4508_v29 = vpop.f32.mrf.mxu3 }
0x1080   :  { %v4588_v53 = vadd.f32 %v4587_v20, %v4508_v29  ;;  %v4744_v0 = vsel %vm155_vm1, %v4712_v18, 0.0 }
0x1081   :  { %4745 = vadd.xlane.f32.xlu2 %v4744_v0 }
0x1082   :  { %v4614_v37 = vadd.f32 %v4588_v53, %v9158_v60 }
0x1084   :  { %v10151_v24 = vadd.f32 %v10063_v21, %v4614_v37 }
0x1086   :  { %v4667_v38 = vsel %vm155_vm1, %v10151_v24, 0.0  ;;  %v4713_v62 = vmul.f32 %v10151_v24, %v10151_v24 }
0x1087   :  { %4668 = vadd.xlane.f32.xlu1 %v4667_v38 }
0x1088   :  { %v4747_v11 = vsel %vm155_vm1, %v4713_v62, 0.0  ;;  %v10191_v62 = vld [vmem:[%s11200_s2 + $0xa6] ss:$0 sm:$0xff] }
0x1089   :  { %4748 = vadd.xlane.f32.xlu0 %v4747_v11 }
0x10b2   :  { %v4642_v44 = vpop.xlane.xlu2 %4641 }
0x10b3   :  { %v10159_v1 = vmul.f32 %v4642_v44, %v7588_v42 }
0x10b4   :  { %v4722_v9 = vpop.xlane.xlu1 %4721 }
0x10b5   :  { %v4784_v25 = vmul.f32 %v10159_v1, %v10159_v1  ;;  %v4768_v33 = vmul.f32 %v4722_v9, %v7588_v42 }
0x10b7   :  { %v4800_v48 = vsub.f32 %v4768_v33, %v4784_v25  ;;  %v4592_v25 = vpop.f32.mrf.mxu0 }
0x10b9   :  { %v4816_v22 = vadd.f32 1e-06, %v4800_v48 }
0x10ba   :  { %v4645_v8 = vpop.xlane.xlu0 %4644 }
0x10bb   :  { %7167 = vrsqrt.f32 %v4816_v22  ;;  %v10168_v6 = vmul.f32 %v4645_v8, %v7588_v42  ;;  %vm4838_vm15 = vweird.f32 %v4816_v22 }
0x10bc   :  { %v4725_v27 = vpop.xlane.xlu2 %4724 }
0x10bd   :  { %v4785_v14 = vmul.f32 %v10168_v6, %v10168_v6  ;;  %v4769_v43 = vmul.f32 %v4725_v27, %v7588_v42 }
0x10bf   :  { %v4801_v58 = vsub.f32 %v4769_v43, %v4785_v14 }
0x10c1   :  { %v7168_v61 = vpop.eup %7167  ;;  %v4817_v16 = vadd.f32 1e-06, %v4801_v58 }
0x10c2   :  { %v4833_v28 = vmul.f32 %v7168_v61, %v4816_v22  ;;  %v4648_v13 = vpop.xlane.xlu0 %4647  ;;  %vm4839_vm9 = vweird.f32 %v7168_v61 }
0x10c3   :  { %7169 = vrsqrt.f32 %v4817_v16  ;;  %v10177_v19 = vmul.f32 %v4648_v13, %v7588_v42  ;;  %vm4840_vm2 = vmor %vm4838_vm15, %vm4839_vm9  ;;  %vm4848_vm4 = vweird.f32 %v4817_v16 }
0x10c4   :  { %v4834_v41 = vmul.f32 %v7168_v61, %v4833_v28  ;;  %v4728_v34 = vpop.xlane.xlu2 %4727 }
0x10c5   :  { %v4786_v45 = vmul.f32 %v10177_v19, %v10177_v19  ;;  %v4770_v39 = vmul.f32 %v4728_v34, %v7588_v42 }
0x10c6   :  { %v4835_v12 = vmul.f32 0.5, %v4834_v41 }
0x10c7   :  { %v4802_v54 = vsub.f32 %v4770_v39, %v4786_v45  ;;  %v10212_v39 = vld [vmem:[%s11200_s2 + $0xa7] ss:$0 sm:$0xff] }
0x10c8   :  { %v4836_v18 = vsub.f32 1.5, %v4835_v12 }
0x10c9   :  { %v7170_v20 = vpop.eup %7169  ;;  %v10182_v29 = vadd.f32 1e-06, %v4802_v54 }
0x10ca   :  { %v4837_v53 = vmul.f32 %v7168_v61, %v4836_v18  ;;  %v4843_v0 = vmul.f32 %v7170_v20, %v4817_v16  ;;  %v4651_v37 = vpop.xlane.xlu1 %4650  ;;  %vm4849_vm3 = vweird.f32 %v7170_v20 }
0x10cb   :  { %7171 = vrsqrt.f32 %v10182_v29  ;;  %v10186_v38 = vmul.f32 %v4651_v37, %v7588_v42  ;;  %vm4850_vm5 = vmor %vm4848_vm4, %vm4849_vm3  ;;  %vm4858_vm7 = vweird.f32 %v10182_v29 }
0x10cc   :  { %v4841_v11 = vsel %vm4840_vm2, %v7168_v61, %v4837_v53  ;;  %v4844_v44 = vmul.f32 %v7170_v20, %v4843_v0  ;;  %v4731_v9 = vpop.xlane.xlu0 %4730 }
0x10cd   :  { %v4787_v33 = vmul.f32 %v10186_v38, %v10186_v38  ;;  %v4771_v48 = vmul.f32 %v4731_v9, %v7588_v42  ;;  %v4511_v15 = vpop.f32.mrf.mxu3  ;;  %v4992_v5 = vmul.f32 %v4841_v11, %v10191_v62 }
0x10ce   :  { %v4845_v22 = vmul.f32 0.5, %v4844_v44  ;;  %v4591_v8 = vadd.f32 %v4590_v63, %v4511_v15 }
0x10cf   :  { %v4803_v27 = vsub.f32 %v4771_v48, %v4787_v33  ;;  %v5024_v63 = vmul.f32 %v4992_v5, %v10159_v1  ;;  %v4595_v33 = vpop.f32.mrf.mxu0 }
0x10d0   :  { %v4846_v14 = vsub.f32 1.5, %v4845_v22  ;;  %v4615_v43 = vadd.f32 %v4591_v8, %v9174_v2 }
0x10d1   :  { %v7172_v58 = vpop.eup %7171  ;;  %v10198_v61 = vadd.f32 1e-06, %v4803_v27  ;;  %v5040_v48 = vsub.f32 %v10212_v39, %v5024_v63 }
0x10d2   :  { %v4847_v28 = vmul.f32 %v7170_v20, %v4846_v14  ;;  %v4853_v13 = vmul.f32 %v7172_v58, %v10182_v29  ;;  %v10202_v41 = vadd.f32 %v10063_v21, %v4615_v43  ;;  %v4654_v34 = vpop.xlane.xlu1 %4653  ;;  %vm4859_vm6 = vweird.f32 %v7172_v58 }
0x10d3   :  { %7173 = vrsqrt.f32 %v10198_v61  ;;  %v10207_v45 = vmul.f32 %v4654_v34, %v7588_v42  ;;  %v5008_v43 = vmul.f32 %v4992_v5, %v10067_v17  ;;  %vm10236_vm8 = vmor %vm4858_vm7, %vm4859_vm6  ;;  %vm4868_vm11 = vweird.f32 %v10198_v61 }
0x10d4   :  { %v4851_v16 = vsel %vm4850_vm5, %v7170_v20, %v4847_v28  ;;  %v4854_v12 = vmul.f32 %v7172_v58, %v4853_v13  ;;  %v4734_v54 = vpop.xlane.xlu0 %4733  ;;  %v4670_v18 = vsel %vm155_vm1, %v10202_v41, 0.0  ;;  %v4714_v1 = vmul.f32 %v10202_v41, %v10202_v41 }
0x10d5   :  { %v4993_v53 = vmul.f32 %v4851_v16, %v10191_v62  ;;  %v4788_v0 = vmul.f32 %v10207_v45, %v10207_v45  ;;  %v4772_v37 = vmul.f32 %v4734_v54, %v7588_v42  ;;  %4671 = vadd.xlane.f32.xlu1 %v4670_v18  ;;  %v4513_v11 = vpop.f32.mrf.mxu3 }
0x10d6   :  { %v4855_v44 = vmul.f32 0.5, %v4854_v12  ;;  %v4593_v9 = vadd.f32 %v4592_v25, %v4513_v11  ;;  %v4750_v20 = vsel %vm155_vm1, %v4714_v1, 0.0  ;;  %v5056_v12 = vadd.f32 %v5040_v48, %v5008_v43 }
0x10d7   :  { %v5025_v15 = vmul.f32 %v4993_v53, %v10168_v6  ;;  %v4804_v22 = vsub.f32 %v4772_v37, %v4788_v0  ;;  %4751 = vadd.xlane.f32.xlu0 %v4750_v20  ;;  %v5009_v28 = vmul.f32 %v4993_v53, %v10076_v47 }
0x10d8   :  { %v4856_v8 = vsub.f32 1.5, %v4855_v44  ;;  %v4616_v27 = vadd.f32 %v4593_v9, %v9191_v36 }
0x10d9   :  { %v7174_v14 = vpop.eup %7173  ;;  %v5041_v25 = vsub.f32 %v10212_v39, %v5025_v15  ;;  %v10229_v13 = vadd.f32 1e-06, %v4804_v22 }
0x10da   :  { %v4857_v34 = vmul.f32 %v7172_v58, %v4856_v8  ;;  %v4863_v6 = vmul.f32 %v7174_v14, %v10198_v61  ;;  %v10234_v63 = vadd.f32 %v10063_v21, %v4616_v27  ;;  %v4657_v16 = vpop.xlane.xlu2 %4656  ;;  %vm4869_vm10 = vweird.f32 %v7174_v14 }
0x10db   :  { %v5057_v54 = vadd.f32 %v5041_v25, %v5009_v28  ;;  %7175 = vrsqrt.f32 %v10229_v13  ;;  %v10242_v5 = vmul.f32 %v4657_v16, %v7588_v42  ;;  %v4597_v25 = vpop.f32.mrf.mxu0  ;;  %vm4870_vm12 = vmor %vm4868_vm11, %vm4869_vm10  ;;  %vm4878_vm14 = vweird.f32 %v10229_v13 }
0x10dc   :  { %v4861_v29 = vsel %vm10236_vm8, %v7172_v58, %v4857_v34  ;;  %v4864_v1 = vmul.f32 %v7174_v14, %v4863_v6  ;;  %v4737_v53 = vpop.xlane.xlu1 %4736  ;;  %v4673_v0 = vsel %vm155_vm1, %v10234_v63, 0.0  ;;  %v4715_v37 = vmul.f32 %v10234_v63, %v10234_v63 }
0x10dd   :  { %v4789_v11 = vmul.f32 %v10242_v5, %v10242_v5  ;;  %v4773_v44 = vmul.f32 %v4737_v53, %v7588_v42  ;;  %4674 = vadd.xlane.f32.xlu2 %v4673_v0  ;;  %v4516_v9 = vpop.f32.mrf.mxu3  ;;  %v5076_v20 = vpack.c.bf16 %v5057_v54, %v5056_v12  ;;  %v4994_v22 = vmul.f32 %v4861_v29, %v10191_v62 }
0x10de   :  { %v4865_v48 = vmul.f32 0.5, %v4864_v1  ;;  %v4596_v15 = vadd.f32 %v4595_v33, %v4516_v9  ;;  %v4753_v58 = vsel %vm155_vm1, %v4715_v37, 0.0 }
0x10df   :  { %v4805_v8 = vsub.f32 %v4773_v44, %v4789_v11  ;;  %4754 = vadd.xlane.f32.xlu1 %v4753_v58  ;;  %6571 = vmatmul.msk.bf16.vlgmr.msrb.gmra.mxu1 %vm155_vm1, %v5076_v20  ;;  %v5026_v18 = vmul.f32 %v4994_v22, %v10177_v19 }
0x10e0   :  { %v4866_v27 = vsub.f32 1.5, %v4865_v48  ;;  %v4617_v43 = vadd.f32 %v4596_v15, %v9201_v32 }
0x10e1   :  { %v7176_v28 = vpop.eup %7175  ;;  %v10257_v34 = vadd.f32 1e-06, %v4805_v8  ;;  %v5042_v58 = vsub.f32 %v10212_v39, %v5026_v18 }
0x10e2   :  { %v4867_v6 = vmul.f32 %v7174_v14, %v4866_v27  ;;  %v4873_v33 = vmul.f32 %v7176_v28, %v10229_v13  ;;  %v10262_v16 = vadd.f32 %v10063_v21, %v4617_v43  ;;  %v4660_v12 = vpop.xlane.xlu2 %4659  ;;  %vm4879_vm13 = vweird.f32 %v7176_v28 }
0x10e3   :  { %7177 = vrsqrt.f32 %v10257_v34  ;;  %v10266_v54 = vmul.f32 %v4660_v12, %v7588_v42  ;;  %vm10291_vm9 = vmor %vm4878_vm14, %vm4879_vm13  ;;  %vm4888_vm2 = vweird.f32 %v10257_v34 }
0x10e4   :  { %v4871_v29 = vsel %vm4870_vm12, %v7174_v14, %v4867_v6  ;;  %v4874_v1 = vmul.f32 %v7176_v28, %v4873_v33  ;;  %v4740_v53 = vpop.xlane.xlu1 %4739  ;;  %v4676_v61 = vsel %vm155_vm1, %v10262_v16, 0.0  ;;  %v4716_v0 = vmul.f32 %v10262_v16, %v10262_v16 }
0x10e5   :  { %v4995_v37 = vmul.f32 %v4871_v29, %v10191_v62  ;;  %v4790_v11 = vmul.f32 %v10266_v54, %v10266_v54  ;;  %v4774_v44 = vmul.f32 %v4740_v53, %v7588_v42  ;;  %4677 = vadd.xlane.f32.xlu2 %v4676_v61  ;;  %v4518_v9 = vpop.f32.mrf.mxu3  ;;  %v5010_v33 = vmul.f32 %v4994_v22, %v10086_v10  ;;  %v4600_v53 = vpop.f32.mrf.mxu0 }
0x10e6   :  { %v4875_v20 = vmul.f32 0.5, %v4874_v1  ;;  %v4598_v19 = vadd.f32 %v4597_v25, %v4518_v9  ;;  %v4756_v14 = vsel %vm155_vm1, %v4716_v0, 0.0 }
0x10e7   :  { %v4806_v48 = vsub.f32 %v4774_v44, %v4790_v11  ;;  %4757 = vadd.xlane.f32.xlu1 %v4756_v14  ;;  %v5027_v15 = vmul.f32 %v4995_v37, %v10186_v38  ;;  %v5011_v12 = vmul.f32 %v4995_v37, %v10095_v35  ;;  %v5058_v0 = vadd.f32 %v5042_v58, %v5010_v33 }
0x10e8   :  { %v4876_v8 = vsub.f32 1.5, %v4875_v20  ;;  %v4618_v27 = vadd.f32 %v4598_v19, %v9215_v49 }
0x10e9   :  { %v7178_v43 = vpop.eup %7177  ;;  %v10281_v6 = vadd.f32 1e-06, %v4806_v48  ;;  %v5043_v25 = vsub.f32 %v10212_v39, %v5027_v15 }
0x10ea   :  { %v4877_v29 = vmul.f32 %v7176_v28, %v4876_v8  ;;  %v4883_v38 = vmul.f32 %v7178_v43, %v10257_v34  ;;  %v10289_v18 = vadd.f32 %v10063_v21, %v4618_v27  ;;  %v4663_v1 = vpop.xlane.xlu0 %4662  ;;  %vm4889_vm15 = vweird.f32 %v7178_v43 }
0x10eb   :  { %7179 = vrsqrt.f32 %v10281_v6  ;;  %v10297_v22 = vmul.f32 %v4663_v1, %v7588_v42  ;;  %v5059_v37 = vadd.f32 %v5043_v25, %v5011_v12  ;;  %vm4890_vm3 = vmor %vm4888_vm2, %vm4889_vm15  ;;  %vm4898_vm5 = vweird.f32 %v10281_v6 }
0x10ec   :  { %v4881_v13 = vsel %vm10291_vm9, %v7176_v28, %v4877_v29  ;;  %v4884_v11 = vmul.f32 %v7178_v43, %v4883_v38  ;;  %v4743_v44 = vpop.xlane.xlu2 %4742  ;;  %v4679_v9 = vsel %vm155_vm1, %v10289_v18, 0.0  ;;  %v4717_v20 = vmul.f32 %v10289_v18, %v10289_v18 }
0x10ed   :  { %v4791_v19 = vmul.f32 %v10297_v22, %v10297_v22  ;;  %v4775_v14 = vmul.f32 %v4743_v44, %v7588_v42  ;;  %4680 = vadd.xlane.f32.xlu0 %v4679_v9  ;;  %v4521_v48 = vpop.f32.mrf.mxu3  ;;  %v5077_v15 = vpack.c.bf16 %v5059_v37, %v5058_v0  ;;  %v4996_v27 = vmul.f32 %v4881_v13, %v10191_v62 }
0x10ee   :  { %v4885_v58 = vmul.f32 0.5, %v4884_v11  ;;  %v4601_v8 = vadd.f32 %v4600_v53, %v4521_v48  ;;  %v4759_v28 = vsel %vm155_vm1, %v4717_v20, 0.0 }
0x10ef   :  { %v4807_v33 = vsub.f32 %v4775_v14, %v4791_v19  ;;  %4760 = vadd.xlane.f32.xlu2 %v4759_v28  ;;  %6572 = vmatmul.msk.bf16.gmra.mxu1 %vm155_vm1, %v5077_v15  ;;  %v5028_v13 = vmul.f32 %v4996_v27, %v10207_v45  ;;  %v4602_v19 = vpop.f32.mrf.mxu0 }
0x10f0   :  { %v4886_v12 = vsub.f32 1.5, %v4885_v58  ;;  %v4619_v25 = vadd.f32 %v4601_v8, %v9226_v40 }
0x10f1   :  { %v7180_v29 = vpop.eup %7179  ;;  %v10312_v38 = vadd.f32 1e-06, %v4807_v33 }
0x10f2   :  { %v4887_v1 = vmul.f32 %v7178_v43, %v4886_v12  ;;  %v4893_v53 = vmul.f32 %v7180_v29, %v10281_v6  ;;  %v10317_v61 = vadd.f32 %v10063_v21, %v4619_v25  ;;  %v4666_v0 = vpop.xlane.xlu0 %4665  ;;  %v5044_v12 = vsub.f32 %v10212_v39, %v5028_v13 }
0x10f3   :  { %7181 = vrsqrt.f32 %v10312_v38  ;;  %v10321_v37 = vmul.f32 %v4666_v0, %v7588_v42  ;;  %vm4899_vm4 = vweird.f32 %v7180_v29  ;;  %vm4908_vm8 = vweird.f32 %v10312_v38 }
0x10f4   :  { %v4891_v11 = vsel %vm4890_vm3, %v7178_v43, %v4887_v1  ;;  %v4894_v44 = vmul.f32 %v7180_v29, %v4893_v53  ;;  %v4746_v9 = vpop.xlane.xlu2 %4745  ;;  %v4682_v34 = vsel %vm155_vm1, %v10317_v61, 0.0  ;;  %v4718_v20 = vmul.f32 %v10317_v61, %v10317_v61  ;;  %vm10344_vm6 = vmor %vm4898_vm5, %vm4899_vm4 }
0x10f5   :  { %v4997_v14 = vmul.f32 %v4891_v11, %v10191_v62  ;;  %v4792_v48 = vmul.f32 %v10321_v37, %v10321_v37  ;;  %v4776_v15 = vmul.f32 %v4746_v9, %v7588_v42  ;;  %4683 = vadd.xlane.f32.xlu0 %v4682_v34  ;;  %v4523_v58 = vpop.f32.mrf.mxu3  ;;  %v5012_v11 = vmul.f32 %v4996_v27, %v10105_v26 }
0x10f6   :  { %v4895_v45 = vmul.f32 0.5, %v4894_v44  ;;  %v4603_v43 = vadd.f32 %v4602_v19, %v4523_v58  ;;  %v4762_v8 = vsel %vm155_vm1, %v4718_v20, 0.0 }
0x10f7   :  { %v4808_v28 = vsub.f32 %v4776_v15, %v4792_v48  ;;  %4763 = vadd.xlane.f32.xlu2 %v4762_v8  ;;  %v5029_v33 = vmul.f32 %v4997_v14, %v10242_v5  ;;  %v5013_v9 = vmul.f32 %v4997_v14, %v10114_v55  ;;  %v5060_v14 = vadd.f32 %v5044_v12, %v5012_v11 }
0x10f8   :  { %v4896_v25 = vsub.f32 1.5, %v4895_v45  ;;  %v4620_v1 = vadd.f32 %v4603_v43, %v9238_v51 }
0x10f9   :  { %v7182_v53 = vpop.eup %7181  ;;  %v4824_v0 = vadd.f32 1e-06, %v4808_v28  ;;  %v5045_v44 = vsub.f32 %v10212_v39, %v5029_v33 }
0x10fa   :  { %v4897_v34 = vmul.f32 %v7180_v29, %v4896_v25  ;;  %v4903_v20 = vmul.f32 %v7182_v53, %v10312_v38  ;;  %v10342_v5 = vadd.f32 %v10063_v21, %v4620_v1  ;;  %v4669_v13 = vpop.xlane.xlu1 %4668  ;;  %vm4909_vm7 = vweird.f32 %v7182_v53 }
0x10fb   :  { %7183 = vrsqrt.f32 %v4824_v0  ;;  %v10349_v27 = vmul.f32 %v4669_v13, %v7588_v42  ;;  %v5061_v48 = vadd.f32 %v5045_v44, %v5013_v9  ;;  %vm4910_vm10 = vmor %vm4908_vm8, %vm4909_vm7  ;;  %vm4918_vm12 = vweird.f32 %v4824_v0 }
0x10fc   :  { %v4901_v15 = vsel %vm10344_vm6, %v7180_v29, %v4897_v34  ;;  %v4904_v6 = vmul.f32 %v7182_v53, %v4903_v20  ;;  %v4749_v58 = vpop.xlane.xlu0 %4748  ;;  %v4685_v21 = vsel %vm155_vm1, %v10342_v5, 0.0  ;;  %v4719_v45 = vmul.f32 %v10342_v5, %v10342_v5 }
0x10fd   :  { %v4793_v43 = vmul.f32 %v10349_v27, %v10349_v27  ;;  %v4777_v8 = vmul.f32 %v4749_v58, %v7588_v42  ;;  %4686 = vadd.xlane.f32.xlu1 %v4685_v21  ;;  %v5078_v28 = vpack.c.bf16 %v5061_v48, %v5060_v14  ;;  %v4998_v29 = vmul.f32 %v4901_v15, %v10191_v62 }
0x10fe   :  { %v4905_v33 = vmul.f32 0.5, %v4904_v6  ;;  %v4765_v12 = vsel %vm155_vm1, %v4719_v45, 0.0 }
0x10ff   :  { %v4809_v25 = vsub.f32 %v4777_v8, %v4793_v43  ;;  %4766 = vadd.xlane.f32.xlu0 %v4765_v12  ;;  %6573 = vmatmul.msk.bf16.gmra.mxu1 %vm155_vm1, %v5078_v28  ;;  %v5030_v20 = vmul.f32 %v4998_v29, %v10266_v54  ;;  %v5014_v45 = vmul.f32 %v4998_v29, %v10124_v57 }
0x1100   :  { %v4906_v1 = vsub.f32 1.5, %v4905_v33 }
0x1101   :  { %v7184_v11 = vpop.eup %7183  ;;  %v4825_v9 = vadd.f32 1e-06, %v4809_v25  ;;  %v5046_v6 = vsub.f32 %v10212_v39, %v5030_v20 }
0x1102   :  { %v4907_v44 = vmul.f32 %v7182_v53, %v4906_v1  ;;  %v4913_v34 = vmul.f32 %v7184_v11, %v4824_v0  ;;  %vm4919_vm11 = vweird.f32 %v7184_v11 }
0x1103   :  { %7185 = vrsqrt.f32 %v4825_v9  ;;  %vm4920_vm13 = vmor %vm4918_vm12, %vm4919_vm11  ;;  %vm4928_vm9 = vweird.f32 %v4825_v9 }
0x1104   :  { %v4911_v13 = vsel %vm4910_vm10, %v7182_v53, %v4907_v44  ;;  %v4914_v19 = vmul.f32 %v7184_v11, %v4913_v34  ;;  %v5062_v53 = vadd.f32 %v5046_v6, %v5014_v45  ;;  %v11255_v44 = vld [vmem:[#allocation3_spill] sm:$0xff]  ;;  %v11256_v34 = vld [vmem:[#allocation2_spill] sm:$0xff] }
0x1105   :  { %v4999_v14 = vmul.f32 %v4911_v13, %v10191_v62  ;;  %v11257_v29 = vpack.i.bf16 %v11255_v44, %v11256_v34 }
0x1106   :  { %v4915_v48 = vmul.f32 0.5, %v4914_v19  ;;  %v11259_v19 = vld [vmem:[#allocation4_spill] sm:$0xff] }
0x1107   :  { %v5031_v15 = vmul.f32 %v4999_v14, %v10297_v22  ;;  %v5015_v38 = vmul.f32 %v4999_v14, %v10133_v56 }
0x1108   :  { %v4916_v58 = vsub.f32 1.5, %v4915_v48 }
0x1109   :  { %v7186_v21 = vpop.eup %7185  ;;  %v5047_v43 = vsub.f32 %v10212_v39, %v5031_v15  ;;  %v6701_v15 = vpack.i.bf16 %v8972_v59, %v8963_v4 }
0x110a   :  { %v4917_v8 = vmul.f32 %v7184_v11, %v4916_v58  ;;  %v4923_v54 = vmul.f32 %v7186_v21, %v4825_v9  ;;  %vm4929_vm14 = vweird.f32 %v7186_v21  ;;  %v6711_v58 = vpack.i.bf16 %v9004_v52, %v8987_v30  ;;  %v11262_v30 = vld [vmem:[#allocation8_spill] sm:$0xff] }
0x110b   :  { %v5063_v28 = vadd.f32 %v5047_v43, %v5015_v38  ;;  %vm4930_vm15 = vmor %vm4928_vm9, %vm4929_vm14  ;;  %v11261_v43 = vld [vmem:[#allocation9_spill] sm:$0xff] }
0x110c   :  { %v4921_v33 = vsel %vm4920_vm13, %v7184_v11, %v4917_v8  ;;  %v4924_v12 = vmul.f32 %v7186_v21, %v4923_v54  ;;  %v11258_v11 = vld [vmem:[#allocation5_spill] sm:$0xff]  ;;  %v11263_v52 = vpack.i.bf16 %v11261_v43, %v11262_v30  ;;  %v6721_v8 = vpack.i.bf16 %v9035_v46, %v9019_v31 }
0x110d   :  { %v5079_v22 = vpack.c.bf16 %v5063_v28, %v5062_v53  ;;  %v5000_v1 = vmul.f32 %v4921_v33, %v10191_v62  ;;  %v11260_v14 = vpack.i.bf16 %v11258_v11, %v11259_v19  ;;  %v11265_v53 = vld [vmem:[#allocation6_spill] sm:$0xff]  ;;  %v6731_v33 = vpack.i.bf16 %v9066_v23, %v9056_v7  ;;  %v6671_v7 = vld [vmem:[%s11198_s1 + $0x98] sm:$0xff] }
0x110e   :  { %v4925_v25 = vmul.f32 0.5, %v4924_v12  ;;  %5344 = vmatpush.bf16.xpose.msra.mxu2 %v6671_v7 }
0x110f   :  { %6707 = vrot.lane.b32.xlu2 %v11257_v29, %s7273_s22  ;;  %6574 = vmatmul.msk.bf16.gmra.mxu1 %vm155_vm1, %v5079_v22  ;;  %v5032_v13 = vmul.f32 %v5000_v1, %v10321_v37  ;;  %v5016_v45 = vmul.f32 %v5000_v1, %v10142_v50 }
0x1110   :  { %v4926_v20 = vsub.f32 1.5, %v4925_v25 }
0x1111   :  { %v5048_v9 = vsub.f32 %v10212_v39, %v5032_v13 }
0x1112   :  { %v4927_v0 = vmul.f32 %v7186_v21, %v4926_v20 }
0x1113   :  { %6717 = vrot.lane.b32.xlu0 %v11260_v14, %s7273_s22  ;;  %v5064_v59 = vadd.f32 %v5048_v9, %v5016_v45 }
0x1114   :  { %v4931_v48 = vsel %vm4930_vm15, %v7186_v21, %v4927_v0 }
0x1115   :  { %v5001_v6 = vmul.f32 %v4931_v48, %v10191_v62 }
0x1116   :  { %6702 = vrot.lane.b32.xlu1 %v6701_v15, %s7277_s28 }
0x1117   :  { %6712 = vrot.lane.b32.xlu2 %v6711_v58, %s7277_s28  ;;  %v5033_v37 = vmul.f32 %v5001_v6, %v10349_v27  ;;  %v5017_v21 = vmul.f32 %v5001_v6, %v10151_v24  ;;  %v11264_v27 = vld [vmem:[#allocation7_spill] sm:$0xff] }
0x1118   :  { %v11266_v28 = vpack.i.bf16 %v11264_v27, %v11265_v53 }
0x1119   :  { %v5049_v4 = vsub.f32 %v10212_v39, %v5033_v37  ;;  %v10430_v37 = vld [vmem:[%s11200_s2 + $0xb0] ss:$0 sm:$0xff] }
0x111b   :  { %v5065_v38 = vadd.f32 %v5049_v4, %v5017_v21  ;;  %6737 = vrot.lane.b32.xlu0 %v11263_v52, %s7273_s22  ;;  %v6670_v21 = vld [vmem:[%s11198_s1 + $0x90] sm:$0xff] }
0x111c   :  { %5345 = vmatpush.bf16.xpose.msra.mxu2 %v6670_v21 }
0x111d   :  { %v5080_v54 = vpack.c.bf16 %v5065_v38, %v5064_v59 }
0x111e   :  { %6727 = vrot.lane.b32.xlu1 %v11266_v28, %s7273_s22 }
0x111f   :  { %6722 = vrot.lane.b32.xlu2 %v6721_v8, %s7277_s28  ;;  %6575 = vmatmul.msk.bf16.gmra.mxu1 %vm155_vm1, %v5080_v54 }
0x1126   :  { %6732 = vrot.lane.b32.xlu1 %v6731_v33, %s7277_s28 }
0x1148   :  { %v4672_v12 = vpop.xlane.xlu1 %4671 }
0x1149   :  { %v10410_v22 = vmul.f32 %v4672_v12, %v7588_v42 }
0x114a   :  { %v4752_v31 = vpop.xlane.xlu0 %4751 }
0x114b   :  { %v4794_v46 = vmul.f32 %v10410_v22, %v10410_v22  ;;  %v4778_v25 = vmul.f32 %v4752_v31, %v7588_v42 }
0x114d   :  { %v4810_v1 = vsub.f32 %v4778_v25, %v4794_v46 }
0x114f   :  { %v4826_v44 = vadd.f32 1e-06, %v4810_v1 }
0x1150   :  { %v4675_v34 = vpop.xlane.xlu2 %4674 }
0x1151   :  { %7187 = vrsqrt.f32 %v4826_v44  ;;  %v10416_v29 = vmul.f32 %v4675_v34, %v7588_v42  ;;  %vm4938_vm3 = vweird.f32 %v4826_v44 }
0x1152   :  { %v4755_v23 = vpop.xlane.xlu1 %4754 }
0x1153   :  { %v4795_v20 = vmul.f32 %v10416_v29, %v10416_v29  ;;  %v4779_v0 = vmul.f32 %v4755_v23, %v7588_v42 }
0x1155   :  { %v4811_v13 = vsub.f32 %v4779_v0, %v4795_v20 }
0x1157   :  { %v7188_v11 = vpop.eup %7187  ;;  %v4827_v19 = vadd.f32 1e-06, %v4811_v13 }
0x1158   :  { %v4933_v14 = vmul.f32 %v7188_v11, %v4826_v44  ;;  %v4678_v48 = vpop.xlane.xlu2 %4677  ;;  %vm4939_vm2 = vweird.f32 %v7188_v11 }
0x1159   :  { %7189 = vrsqrt.f32 %v4827_v19  ;;  %v10425_v15 = vmul.f32 %v4678_v48, %v7588_v42  ;;  %vm4940_vm4 = vmor %vm4938_vm3, %vm4939_vm2  ;;  %vm4948_vm6 = vweird.f32 %v4827_v19 }
0x115a   :  { %v4934_v6 = vmul.f32 %v7188_v11, %v4933_v14  ;;  %v4758_v58 = vpop.xlane.xlu1 %4757 }
0x115b   :  { %v4796_v9 = vmul.f32 %v10425_v15, %v10425_v15  ;;  %v4780_v45 = vmul.f32 %v4758_v58, %v7588_v42 }
0x115c   :  { %v4935_v4 = vmul.f32 0.5, %v4934_v6  ;;  %v5130_v59 = vpop.f32.mrf.mxu1 }
0x115d   :  { %v4812_v38 = vsub.f32 %v4780_v45, %v4796_v9  ;;  %v10439_v43 = vadd.f32 %v5130_v59, %v10430_v37 }
0x115e   :  { %v4936_v30 = vsub.f32 1.5, %v4935_v4 }
0x115f   :  { %v7190_v52 = vpop.eup %7189  ;;  %v10441_v8 = vadd.f32 1e-06, %v4812_v38  ;;  %v5170_v54 = vmul.f32 %v10439_v43, %v10439_v43 }
0x1160   :  { %v4943_v27 = vmul.f32 %v7190_v52, %v4827_v19  ;;  %v4681_v53 = vpop.xlane.xlu0 %4680  ;;  %v4937_v28 = vmul.f32 %v7188_v11, %v4936_v30  ;;  %vm4949_vm5 = vweird.f32 %v7190_v52 }
0x1161   :  { %7191 = vrsqrt.f32 %v10441_v8  ;;  %v5186_v33 = vmul.f32 %v5170_v54, %v10439_v43  ;;  %v10448_v12 = vmul.f32 %v4681_v53, %v7588_v42  ;;  %vm4950_vm7 = vmor %vm4948_vm6, %vm4949_vm5  ;;  %vm4958_vm10 = vweird.f32 %v10441_v8 }
0x1162   :  { %v4944_v31 = vmul.f32 %v7190_v52, %v4943_v27  ;;  %v4761_v46 = vpop.xlane.xlu2 %4760  ;;  %v4941_v20 = vsel %vm4940_vm4, %v7188_v11, %v4937_v28 }
0x1163   :  { %v5202_v25 = vmul.f32 0.044715, %v5186_v33  ;;  %v4797_v1 = vmul.f32 %v10448_v12, %v10448_v12  ;;  %v4781_v34 = vmul.f32 %v4761_v46, %v7588_v42  ;;  %v5002_v45 = vmul.f32 %v4941_v20, %v10191_v62 }
0x1164   :  { %v4945_v7 = vmul.f32 0.5, %v4944_v31  ;;  %v5132_v23 = vpop.f32.mrf.mxu1 }
0x1165   :  { %v5218_v0 = vadd.f32 %v5202_v25, %v10439_v43  ;;  %v4813_v13 = vsub.f32 %v4781_v34, %v4797_v1  ;;  %v10455_v14 = vadd.f32 %v5132_v23, %v10430_v37  ;;  %v5034_v25 = vmul.f32 %v5002_v45, %v10410_v22 }
0x1166   :  { %v4946_v48 = vsub.f32 1.5, %v4945_v7 }
0x1167   :  { %v7192_v6 = vpop.eup %7191  ;;  %v5234_v44 = vmul.f32 0.7978846, %v5218_v0  ;;  %v10457_v58 = vadd.f32 1e-06, %v4813_v13  ;;  %v5171_v9 = vmul.f32 %v10455_v14, %v10455_v14 }
0x1168   :  { %v4947_v21 = vmul.f32 %v7190_v52, %v4946_v48  ;;  %v4953_v11 = vmul.f32 %v7192_v6, %v10441_v8  ;;  %v4684_v4 = vpop.xlane.xlu0 %4683  ;;  %vm4959_vm8 = vweird.f32 %v7192_v6 }
0x1169   :  { %7193 = vtanh.f32 %v5234_v44  ;;  %v5187_v59 = vmul.f32 %v5171_v9, %v10455_v14  ;;  %v10465_v38 = vmul.f32 %v4684_v4, %v7588_v42  ;;  %vm10486_vm11 = vmor %vm4958_vm10, %vm4959_vm8  ;;  %vm4968_vm13 = vweird.f32 %v10457_v58 }
0x116a   :  { %v4951_v30 = vsel %vm4950_vm7, %v7190_v52, %v4947_v21  ;;  %v4954_v54 = vmul.f32 %v7192_v6, %v4953_v11  ;;  %7195 = vrsqrt.f32 %v10457_v58  ;;  %v4764_v27 = vpop.xlane.xlu2 %4763  ;;  %v5050_v21 = vsub.f32 %v10212_v39, %v5034_v25 }
0x116b   :  { %v5003_v53 = vmul.f32 %v4951_v30, %v10191_v62  ;;  %v5203_v28 = vmul.f32 0.044715, %v5187_v59  ;;  %v4798_v19 = vmul.f32 %v10465_v38, %v10465_v38  ;;  %v4782_v33 = vmul.f32 %v4764_v27, %v7588_v42 }
0x116c   :  { %v4955_v31 = vmul.f32 0.5, %v4954_v54  ;;  %v5135_v46 = vpop.f32.mrf.mxu1  ;;  %v5018_v54 = vmul.f32 %v5002_v45, %v10202_v41 }
0x116d   :  { %v5219_v1 = vadd.f32 %v5203_v28, %v10455_v14  ;;  %v4814_v34 = vsub.f32 %v4782_v33, %v4798_v19  ;;  %v10475_v52 = vadd.f32 %v5135_v46, %v10430_v37  ;;  %v5035_v23 = vmul.f32 %v5003_v53, %v10416_v29 }
0x116e   :  { %v4956_v7 = vsub.f32 1.5, %v4955_v31  ;;  %v5019_v19 = vmul.f32 %v5003_v53, %v10234_v63 }
0x116f   :  { %v7194_v20 = vpop.eup %7193  ;;  %v5235_v0 = vmul.f32 0.7978846, %v5219_v1  ;;  %v10478_v13 = vadd.f32 1e-06, %v4814_v34  ;;  %v5172_v48 = vmul.f32 %v10475_v52, %v10475_v52  ;;  %v5051_v29 = vsub.f32 %v10212_v39, %v5035_v23 }
0x1170   :  { %v7196_v44 = vpop.eup %7195  ;;  %v4957_v9 = vmul.f32 %v7192_v6, %v4956_v7  ;;  %v4687_v22 = vpop.xlane.xlu1 %4686  ;;  %v5266_v33 = vadd.f32 1.0, %v7194_v20  ;;  %v5066_v1 = vadd.f32 %v5050_v21, %v5018_v54 }
0x1171   :  { %v4963_v11 = vmul.f32 %v7196_v44, %v10457_v58  ;;  %7197 = vtanh.f32 %v5235_v0  ;;  %v5188_v59 = vmul.f32 %v5172_v48, %v10475_v52  ;;  %v10496_v28 = vmul.f32 %v4687_v22, %v7588_v42 }
0x1172   :  { %7199 = vrsqrt.f32 %v10478_v13  ;;  %v4767_v30 = vpop.xlane.xlu0 %4766  ;;  %v4961_v27 = vsel %vm10486_vm11, %v7192_v6, %v4957_v9  ;;  %v5067_v6 = vadd.f32 %v5051_v29, %v5019_v19  ;;  %vm4969_vm12 = vweird.f32 %v7196_v44 }
0x1173   :  { %v4964_v8 = vmul.f32 %v7196_v44, %v4963_v11  ;;  %v5204_v31 = vmul.f32 0.044715, %v5188_v59  ;;  %v4783_v46 = vmul.f32 %v4767_v30, %v7588_v42  ;;  %v4799_v7 = vmul.f32 %v10496_v28, %v10496_v28  ;;  %vm4970_vm14 = vmor %vm4968_vm13, %vm4969_vm12 }
0x1174   :  { %v5137_v25 = vpop.f32.mrf.mxu1  ;;  %v5004_v23 = vmul.f32 %v4961_v27, %v10191_v62  ;;  %v5081_v22 = vpack.c.bf16 %v5067_v6, %v5066_v1  ;;  %v5282_v11 = vmul.f32 0.5, %v5266_v33  ;;  %vm4978_vm15 = vweird.f32 %v10478_v13 }
0x1175   :  { %v4965_v34 = vmul.f32 0.5, %v4964_v8  ;;  %v10503_v45 = vadd.f32 %v5137_v25, %v10430_v37  ;;  %v5220_v0 = vadd.f32 %v5204_v31, %v10475_v52  ;;  %v4815_v48 = vsub.f32 %v4783_v46, %v4799_v7 }
0x1176   :  { %6576 = vmatmul.msk.bf16.gmra.mxu1 %vm155_vm1, %v5081_v22  ;;  %v5036_v33 = vmul.f32 %v5004_v23, %v10425_v15  ;;  %v5298_v58 = vmul.f32 %v5282_v11, %v10439_v43 }
0x1177   :  { %v7198_v53 = vpop.eup %7197  ;;  %v4966_v20 = vsub.f32 1.5, %v4965_v34  ;;  %v5173_v9 = vmul.f32 %v10503_v45, %v10503_v45  ;;  %v5236_v30 = vmul.f32 0.7978846, %v5220_v0  ;;  %v4831_v54 = vadd.f32 1e-06, %v4815_v48 }
0x1178   :  { %v7200_v21 = vpop.eup %7199  ;;  %v5267_v4 = vadd.f32 1.0, %v7198_v53  ;;  %v5052_v43 = vsub.f32 %v10212_v39, %v5036_v33 }
0x1179   :  { %v4967_v59 = vmul.f32 %v7196_v44, %v4966_v20  ;;  %v4973_v29 = vmul.f32 %v7200_v21, %v10478_v13  ;;  %v5189_v8 = vmul.f32 %v5173_v9, %v10503_v45  ;;  %7201 = vrsqrt.f32 %v4831_v54 }
0x117a   :  { %v5283_v27 = vmul.f32 0.5, %v5267_v4  ;;  %7203 = vtanh.f32 %v5236_v30  ;;  %vm4979_vm9 = vweird.f32 %v7200_v21  ;;  %vm4988_vm4 = vweird.f32 %v4831_v54 }
0x117b   :  { %v4971_v19 = vsel %vm4970_vm14, %v7196_v44, %v4967_v59  ;;  %v4974_v31 = vmul.f32 %v7200_v21, %v4973_v29  ;;  %v5205_v1 = vmul.f32 0.044715, %v5189_v8  ;;  %v5020_v59 = vmul.f32 %v5004_v23, %v10262_v16  ;;  %vm4980_vm2 = vmor %vm4978_vm15, %vm4979_vm9 }
0x117c   :  { %v5005_v46 = vmul.f32 %v4971_v19, %v10191_v62  ;;  %v5299_v25 = vmul.f32 %v5283_v27, %v10455_v14  ;;  %v5140_v34 = vpop.f32.mrf.mxu1 }
0x117d   :  { %v4975_v7 = vmul.f32 0.5, %v4974_v31  ;;  %v10519_v6 = vadd.f32 %v5140_v34, %v10430_v37  ;;  %v5221_v44 = vadd.f32 %v5205_v1, %v10503_v45  ;;  %v5068_v8 = vadd.f32 %v5052_v43, %v5020_v59 }
0x117e   :  { %v5318_v0 = vpack.c.bf16 %v5299_v25, %v5298_v58  ;;  %v5037_v53 = vmul.f32 %v5005_v46, %v10448_v12  ;;  %v5021_v14 = vmul.f32 %v5005_v46, %v10289_v18 }
0x117f   :  { %v4976_v20 = vsub.f32 1.5, %v4975_v7  ;;  %v5174_v15 = vmul.f32 %v10519_v6, %v10519_v6  ;;  %v5237_v48 = vmul.f32 0.7978846, %v5221_v44  ;;  %v7202_v22 = vpop.eup %7201 }
0x1180   :  { %5346 = vmatmul.bf16.vlgmr.msra.gmra.mxu2 %v5318_v0  ;;  %v5053_v9 = vsub.f32 %v10212_v39, %v5037_v53  ;;  %v4983_v12 = vmul.f32 %v7202_v22, %v4831_v54  ;;  %v7204_v30 = vpop.eup %7203  ;;  %vm4989_vm3 = vweird.f32 %v7202_v22 }
0x1181   :  { %v4977_v11 = vmul.f32 %v7200_v21, %v4976_v20  ;;  %v5190_v4 = vmul.f32 %v5174_v15, %v10519_v6  ;;  %7205 = vtanh.f32 %v5237_v48  ;;  %v5268_v34 = vadd.f32 1.0, %v7204_v30  ;;  %vm4990_vm5 = vmor %vm4988_vm4, %vm4989_vm3 }
0x1182   :  { %v5069_v29 = vadd.f32 %v5053_v9, %v5021_v14  ;;  %v4984_v19 = vmul.f32 %v7202_v22, %v4983_v12 }
0x1183   :  { %v5206_v27 = vmul.f32 0.044715, %v5190_v4  ;;  %v4981_v33 = vsel %vm4980_vm2, %v7200_v21, %v4977_v11  ;;  %v5284_v15 = vmul.f32 0.5, %v5268_v34 }
0x1184   :  { %v5142_v31 = vpop.f32.mrf.mxu1  ;;  %v5082_v25 = vpack.c.bf16 %v5069_v29, %v5068_v8  ;;  %v4985_v1 = vmul.f32 0.5, %v4984_v19  ;;  %v5006_v44 = vmul.f32 %v4981_v33, %v10191_v62 }
0x1185   :  { %v5222_v58 = vadd.f32 %v5206_v27, %v10519_v6  ;;  %v5143_v46 = vadd.f32 %v5142_v31, %v10430_v37  ;;  %v5300_v29 = vmul.f32 %v5284_v15, %v10475_v52 }
0x1186   :  { %v4986_v53 = vsub.f32 1.5, %v4985_v1  ;;  %6577 = vmatmul.msk.bf16.gmra.mxu1 %vm155_vm1, %v5082_v25  ;;  %v5038_v11 = vmul.f32 %v5006_v44, %v10465_v38 }
0x1187   :  { %v5238_v23 = vmul.f32 0.7978846, %v5222_v58  ;;  %v5175_v7 = vmul.f32 %v5143_v46, %v5143_v46  ;;  %v7206_v0 = vpop.eup %7205 }
0x1188   :  { %v4987_v20 = vmul.f32 %v7202_v22, %v4986_v53  ;;  %v5269_v21 = vadd.f32 1.0, %v7206_v0 }
0x1189   :  { %v5191_v13 = vmul.f32 %v5175_v7, %v5143_v46  ;;  %7207 = vtanh.f32 %v5238_v23 }
0x118a   :  { %v4991_v48 = vsel %vm4990_vm5, %v7202_v22, %v4987_v20  ;;  %v5285_v9 = vmul.f32 0.5, %v5269_v21  ;;  %v5054_v22 = vsub.f32 %v10212_v39, %v5038_v11 }
0x118b   :  { %v5207_v43 = vmul.f32 0.044715, %v5191_v13  ;;  %v5007_v4 = vmul.f32 %v4991_v48, %v10191_v62  ;;  %v5022_v62 = vmul.f32 %v5006_v44, %v10317_v61 }
0x118c   :  { %v5145_v14 = vpop.f32.mrf.mxu1  ;;  %v5301_v30 = vmul.f32 %v5285_v9, %v10503_v45 }
0x118d   :  { %v5223_v59 = vadd.f32 %v5207_v43, %v5143_v46  ;;  %v5146_v12 = vadd.f32 %v5145_v14, %v10430_v37  ;;  %v5039_v8 = vmul.f32 %v5007_v4, %v10496_v28  ;;  %v5023_v38 = vmul.f32 %v5007_v4, %v10342_v5 }
0x118e   :  { %v5319_v19 = vpack.c.bf16 %v5301_v30, %v5300_v29  ;;  %v5070_v45 = vadd.f32 %v5054_v22, %v5022_v62 }
0x118f   :  { %v5239_v54 = vmul.f32 0.7978846, %v5223_v59  ;;  %v5176_v27 = vmul.f32 %v5146_v12, %v5146_v12  ;;  %v7208_v31 = vpop.eup %7207  ;;  %v5055_v58 = vsub.f32 %v10212_v39, %v5039_v8 }
0x1190   :  { %5351 = vmatmul.bf16.gmra.mxu2 %v5319_v19  ;;  %v5270_v34 = vadd.f32 1.0, %v7208_v31 }
0x1191   :  { %7209 = vtanh.f32 %v5239_v54  ;;  %v5192_v33 = vmul.f32 %v5176_v27, %v5146_v12  ;;  %v5071_v1 = vadd.f32 %v5055_v58, %v5023_v38 }
0x1192   :  { %v5286_v21 = vmul.f32 0.5, %v5270_v34 }
0x1193   :  { %v5208_v52 = vmul.f32 0.044715, %v5192_v33  ;;  %v5083_v7 = vpack.c.bf16 %v5071_v1, %v5070_v45 }
0x1194   :  { %v5147_v25 = vpop.f32.mrf.mxu1  ;;  %v5302_v48 = vmul.f32 %v5286_v21, %v10519_v6 }
0x1195   :  { %v5224_v23 = vadd.f32 %v5208_v52, %v5146_v12  ;;  %v5148_v28 = vadd.f32 %v5147_v25, %v10430_v37 }
0x1196   :  { %6578 = vmatmul.msk.bf16.gmra.mxu1 %vm155_vm1, %v5083_v7 }
0x1197   :  { %v7210_v0 = vpop.eup %7209  ;;  %v5240_v53 = vmul.f32 0.7978846, %v5224_v23  ;;  %v5177_v13 = vmul.f32 %v5148_v28, %v5148_v28 }
0x1198   :  { %v5271_v20 = vadd.f32 1.0, %v7210_v0 }
0x1199   :  { %v5193_v15 = vmul.f32 %v5177_v13, %v5148_v28  ;;  %7211 = vtanh.f32 %v5240_v53 }
0x119a   :  { %v5287_v44 = vmul.f32 0.5, %v5271_v20 }
0x119b   :  { %v5209_v39 = vmul.f32 0.044715, %v5193_v15 }
0x119c   :  { %v5150_v43 = vpop.f32.mrf.mxu1  ;;  %v5303_v14 = vmul.f32 %v5287_v44, %v5143_v46 }
0x119d   :  { %v5225_v9 = vadd.f32 %v5209_v39, %v5148_v28  ;;  %v5151_v11 = vadd.f32 %v5150_v43, %v10430_v37 }
0x119e   :  { %v5320_v4 = vpack.c.bf16 %v5303_v14, %v5302_v48 }
0x119f   :  { %v5241_v59 = vmul.f32 0.7978846, %v5225_v9  ;;  %v5178_v29 = vmul.f32 %v5151_v11, %v5151_v11  ;;  %v7212_v30 = vpop.eup %7211 }
0x11a0   :  { %5356 = vmatmul.bf16.gmra.mxu2 %v5320_v4  ;;  %v5272_v19 = vadd.f32 1.0, %v7212_v30 }
0x11a1   :  { %7213 = vtanh.f32 %v5241_v59  ;;  %v5194_v54 = vmul.f32 %v5178_v29, %v5151_v11 }
0x11a2   :  { %v5288_v38 = vmul.f32 0.5, %v5272_v19 }
0x11a3   :  { %v5210_v27 = vmul.f32 0.044715, %v5194_v54 }
0x11a4   :  { %v5152_v8 = vpop.f32.mrf.mxu1  ;;  %v5304_v45 = vmul.f32 %v5288_v38, %v5146_v12 }
0x11a5   :  { %v5226_v22 = vadd.f32 %v5210_v27, %v5151_v11  ;;  %v5153_v31 = vadd.f32 %v5152_v8, %v10430_v37 }
0x11a7   :  { %v7214_v33 = vpop.eup %7213  ;;  %v5242_v62 = vmul.f32 0.7978846, %v5226_v22  ;;  %v5179_v6 = vmul.f32 %v5153_v31, %v5153_v31 }
0x11a8   :  { %v5273_v46 = vadd.f32 1.0, %v7214_v33 }
0x11a9   :  { %v5195_v58 = vmul.f32 %v5179_v6, %v5153_v31  ;;  %7215 = vtanh.f32 %v5242_v62 }
0x11aa   :  { %v5289_v52 = vmul.f32 0.5, %v5273_v46 }
0x11ab   :  { %v5211_v25 = vmul.f32 0.044715, %v5195_v58 }
0x11ac   :  { %v5305_v1 = vmul.f32 %v5289_v52, %v5148_v28 }
0x11ad   :  { %v5227_v34 = vadd.f32 %v5211_v25, %v5153_v31 }
0x11ae   :  { %v5321_v23 = vpack.c.bf16 %v5305_v1, %v5304_v45 }
0x11af   :  { %v5243_v7 = vmul.f32 0.7978846, %v5227_v34  ;;  %v7216_v0 = vpop.eup %7215 }
0x11b0   :  { %5361 = vmatmul.bf16.gmra.mxu2 %v5321_v23  ;;  %v5274_v53 = vadd.f32 1.0, %v7216_v0 }
0x11b1   :  { %7217 = vtanh.f32 %v5243_v7 }
0x11b2   :  { %v5290_v21 = vmul.f32 0.5, %v5274_v53 }
0x11b4   :  { %v5306_v44 = vmul.f32 %v5290_v21, %v5151_v11  ;;  %v10555_v11 = vld [vmem:[%s11200_s2 + $0xb1] ss:$0 sm:$0xff] }
0x11b7   :  { %v7218_v13 = vpop.eup %7217 }
0x11b8   :  { %v5275_v20 = vadd.f32 1.0, %v7218_v13 }
0x11ba   :  { %v5291_v15 = vmul.f32 0.5, %v5275_v20 }
0x11bc   :  { %v5307_v39 = vmul.f32 %v5291_v15, %v5153_v31 }
0x11be   :  { %v5322_v43 = vpack.c.bf16 %v5307_v39, %v5306_v44 }
0x11c0   :  { %5366 = vmatmul.bf16.gmra.mxu2 %v5322_v43 }
0x11f3   :  { %v5155_v48 = vpop.f32.mrf.mxu1 }
0x11f4   :  { %v5156_v14 = vadd.f32 %v5155_v48, %v10430_v37 }
0x11f6   :  { %v5180_v12 = vmul.f32 %v5156_v14, %v5156_v14 }
0x11f8   :  { %v5196_v28 = vmul.f32 %v5180_v12, %v5156_v14 }
0x11fa   :  { %v5212_v9 = vmul.f32 0.044715, %v5196_v28 }
0x11fb   :  { %v5157_v4 = vpop.f32.mrf.mxu1 }
0x11fc   :  { %v5228_v59 = vadd.f32 %v5212_v9, %v5156_v14  ;;  %v5158_v29 = vadd.f32 %v5157_v4, %v10430_v37 }
0x11fe   :  { %v5244_v30 = vmul.f32 0.7978846, %v5228_v59  ;;  %v5181_v54 = vmul.f32 %v5158_v29, %v5158_v29 }
0x1200   :  { %v5197_v27 = vmul.f32 %v5181_v54, %v5158_v29  ;;  %7219 = vtanh.f32 %v5244_v30 }
0x1202   :  { %v5213_v22 = vmul.f32 0.044715, %v5197_v27 }
0x1203   :  { %v5347_v8 = vpop.f32.mrf.mxu2  ;;  %v5160_v31 = vpop.f32.mrf.mxu1 }
0x1204   :  { %v5387_v19 = vadd.f32 %v5347_v8, %v10067_v17  ;;  %v5229_v62 = vadd.f32 %v5213_v22, %v5158_v29  ;;  %v10562_v6 = vadd.f32 %v5160_v31, %v10430_v37 }
0x1206   :  { %v10559_v33 = vadd.f32 %v10555_v11, %v5387_v19  ;;  %v5245_v58 = vmul.f32 0.7978846, %v5229_v62  ;;  %v5182_v17 = vmul.f32 %v10562_v6, %v10562_v6  ;;  %v7220_v25 = vpop.eup %7219 }
0x1207   :  { %v5276_v53 = vadd.f32 1.0, %v7220_v25 }
0x1208   :  { %v5422_v46 = vsel %vm155_vm1, %v10559_v33, 0.0  ;;  %v5486_v38 = vmul.f32 %v10559_v33, %v10559_v33  ;;  %7221 = vtanh.f32 %v5245_v58  ;;  %v5198_v45 = vmul.f32 %v5182_v17, %v10562_v6 }
0x1209   :  { %5423 = vadd.xlane.f32.xlu1 %v5422_v46  ;;  %v5292_v12 = vmul.f32 0.5, %v5276_v53 }
0x120a   :  { %v5502_v52 = vsel %vm155_vm1, %v5486_v38, 0.0  ;;  %v5214_v23 = vmul.f32 0.044715, %v5198_v45 }
0x120b   :  { %5503 = vadd.xlane.f32.xlu0 %v5502_v52  ;;  %v5349_v1 = vpop.f32.mrf.mxu2  ;;  %v5162_v7 = vpop.f32.mrf.mxu1  ;;  %v5308_v27 = vmul.f32 %v5292_v12, %v5156_v14 }
0x120c   :  { %v5388_v34 = vadd.f32 %v5349_v1, %v10076_v47  ;;  %v5230_v13 = vadd.f32 %v5214_v23, %v10562_v6  ;;  %v5163_v20 = vadd.f32 %v5162_v7, %v10430_v37 }
0x120e   :  { %v10574_v0 = vadd.f32 %v10555_v11, %v5388_v34  ;;  %v7222_v44 = vpop.eup %7221  ;;  %v5246_v39 = vmul.f32 0.7978846, %v5230_v13  ;;  %v5183_v43 = vmul.f32 %v5163_v20, %v5163_v20 }
0x120f   :  { %v5277_v48 = vadd.f32 1.0, %v7222_v44 }
0x1210   :  { %v5425_v21 = vsel %vm155_vm1, %v10574_v0, 0.0  ;;  %v5487_v15 = vmul.f32 %v10574_v0, %v10574_v0  ;;  %v5199_v28 = vmul.f32 %v5183_v43, %v5163_v20  ;;  %7223 = vtanh.f32 %v5246_v39 }
0x1211   :  { %5426 = vadd.xlane.f32.xlu2 %v5425_v21  ;;  %v5293_v9 = vmul.f32 0.5, %v5277_v48 }
0x1212   :  { %v5505_v47 = vsel %vm155_vm1, %v5487_v15, 0.0  ;;  %v5215_v4 = vmul.f32 0.044715, %v5199_v28 }
0x1213   :  { %5506 = vadd.xlane.f32.xlu1 %v5505_v47  ;;  %v5352_v59 = vpop.f32.mrf.mxu2  ;;  %v5165_v30 = vpop.f32.mrf.mxu1  ;;  %v5309_v8 = vmul.f32 %v5293_v9, %v5158_v29 }
0x1214   :  { %v5389_v54 = vadd.f32 %v5352_v59, %v10086_v10  ;;  %v5231_v19 = vadd.f32 %v5215_v4, %v5163_v20  ;;  %v10585_v22 = vadd.f32 %v5165_v30, %v10430_v37 }
0x1215   :  { %v5323_v62 = vpack.c.bf16 %v5309_v8, %v5308_v27 }
0x1216   :  { %v10588_v31 = vadd.f32 %v10555_v11, %v5389_v54  ;;  %v5247_v46 = vmul.f32 0.7978846, %v5231_v19  ;;  %v5184_v38 = vmul.f32 %v10585_v22, %v10585_v22  ;;  %v7224_v14 = vpop.eup %7223 }
0x1217   :  { %5371 = vmatmul.bf16.gmra.mxu2 %v5323_v62  ;;  %v5278_v34 = vadd.f32 1.0, %v7224_v14 }
0x1218   :  { %v5428_v58 = vsel %vm155_vm1, %v10588_v31, 0.0  ;;  %v5488_v10 = vmul.f32 %v10588_v31, %v10588_v31  ;;  %7225 = vtanh.f32 %v5247_v46  ;;  %v5200_v29 = vmul.f32 %v5184_v38, %v10585_v22 }
0x1219   :  { %5429 = vadd.xlane.f32.xlu2 %v5428_v58  ;;  %v5294_v47 = vmul.f32 0.5, %v5278_v34 }
0x121a   :  { %v5508_v17 = vsel %vm155_vm1, %v5488_v10, 0.0  ;;  %v5216_v52 = vmul.f32 0.044715, %v5200_v29 }
0x121b   :  { %5509 = vadd.xlane.f32.xlu1 %v5508_v17  ;;  %v5354_v25 = vpop.f32.mrf.mxu2  ;;  %v5167_v45 = vpop.f32.mrf.mxu1  ;;  %v5310_v4 = vmul.f32 %v5294_v47, %v10562_v6 }
0x121c   :  { %v5390_v1 = vadd.f32 %v5354_v25, %v10095_v35  ;;  %v5232_v23 = vadd.f32 %v5216_v52, %v10585_v22  ;;  %v5168_v7 = vadd.f32 %v5167_v45, %v10430_v37 }
0x121e   :  { %v10602_v53 = vadd.f32 %v10555_v11, %v5390_v1  ;;  %v7226_v13 = vpop.eup %7225  ;;  %v5248_v21 = vmul.f32 0.7978846, %v5232_v23  ;;  %v5185_v15 = vmul.f32 %v5168_v7, %v5168_v7 }
0x121f   :  { %v5279_v43 = vadd.f32 1.0, %v7226_v13  ;;  %v6679_v13 = vld [vmem:[%s11198_s1 + $0xd8] sm:$0xff] }
0x1220   :  { %v5431_v44 = vsel %vm155_vm1, %v10602_v53, 0.0  ;;  %v5489_v39 = vmul.f32 %v10602_v53, %v10602_v53  ;;  %v5201_v35 = vmul.f32 %v5185_v15, %v5168_v7  ;;  %7227 = vtanh.f32 %v5248_v21  ;;  %v6687_v21 = vld [vmem:[%s11198_s1 + $0x118] sm:$0xff]  ;;  %6157 = vmatpush.bf16.xpose.msra.mxu3 %v6679_v13 }
0x1221   :  { %5432 = vadd.xlane.f32.xlu0 %v5431_v44  ;;  %v5295_v12 = vmul.f32 0.5, %v5279_v43  ;;  %6206 = vmatpush.bf16.xpose.msra.mxu0 %v6687_v21 }
0x1222   :  { %v5511_v48 = vsel %vm155_vm1, %v5489_v39, 0.0  ;;  %v5217_v37 = vmul.f32 0.044715, %v5201_v35  ;;  %v6741_v35 = vpack.i.bf16 %v9158_v60, %v9138_v3 }
0x1223   :  { %5512 = vadd.xlane.f32.xlu2 %v5511_v48  ;;  %v5357_v28 = vpop.f32.mrf.mxu2  ;;  %v5311_v59 = vmul.f32 %v5295_v12, %v5163_v20 }
0x1224   :  { %v5391_v9 = vadd.f32 %v5357_v28, %v10105_v26  ;;  %v5233_v30 = vadd.f32 %v5217_v37, %v5168_v7 }
0x1225   :  { %v5324_v27 = vpack.c.bf16 %v5311_v59, %v5310_v4 }
0x1226   :  { %v10612_v54 = vadd.f32 %v10555_v11, %v5391_v9  ;;  %v5249_v8 = vmul.f32 0.7978846, %v5233_v30  ;;  %v7228_v46 = vpop.eup %7227  ;;  %v6686_v30 = vld [vmem:[%s11198_s1 + $0x110] sm:$0xff] }
0x1227   :  { %5376 = vmatmul.bf16.gmra.mxu2 %v5324_v27  ;;  %v5280_v38 = vadd.f32 1.0, %v7228_v46  ;;  %v6685_v46 = vld [vmem:[%s11198_s1 + $0x108] sm:$0xff] }
0x1228   :  { %v5434_v19 = vsel %vm155_vm1, %v10612_v54, 0.0  ;;  %v5490_v62 = vmul.f32 %v10612_v54, %v10612_v54  ;;  %7229 = vtanh.f32 %v5249_v8 }
0x1229   :  { %5435 = vadd.xlane.f32.xlu0 %v5434_v19  ;;  %v5296_v52 = vmul.f32 0.5, %v5280_v38  ;;  %6207 = vmatpush.bf16.xpose.msra.mxu0 %v6686_v30  ;;  %v10692_v38 = vpop.permute.xlu2 %6707 }
0x122a   :  { %v5514_v26 = vsel %vm155_vm1, %v5490_v62, 0.0  ;;  %v6677_v62 = vld [vmem:[%s11198_s1 + $0xc8] sm:$0xff] }
0x122b   :  { %5515 = vadd.xlane.f32.xlu2 %v5514_v26  ;;  %v5359_v6 = vpop.f32.mrf.mxu2  ;;  %v5312_v34 = vmul.f32 %v5296_v52, %v10585_v22  ;;  %v10684_v26 = vpop.permute.xlu1 %6702  ;;  %v6683_v52 = vld [vmem:[%s11198_s1 + $0xf8] sm:$0xff] }
0x122c   :  { %v5392_v20 = vadd.f32 %v5359_v6, %v10114_v55  ;;  %v6676_v6 = vld [vmem:[%s11198_s1 + $0xc0] sm:$0xff] }
0x122e   :  { %v10621_v58 = vadd.f32 %v10555_v11, %v5392_v20  ;;  %v7230_v10 = vpop.eup %7229  ;;  %v6684_v20 = vld [vmem:[%s11198_s1 + $0x100] sm:$0xff] }
0x122f   :  { %v5281_v17 = vadd.f32 1.0, %v7230_v10 }
0x1230   :  { %v5437_v14 = vsel %vm155_vm1, %v10621_v58, 0.0  ;;  %v5491_v29 = vmul.f32 %v10621_v58, %v10621_v58 }
0x1231   :  { %5438 = vadd.xlane.f32.xlu1 %v5437_v14  ;;  %v5297_v45 = vmul.f32 0.5, %v5281_v17  ;;  %6208 = vmatpush.bf16.xpose.msra.mxu0 %v6685_v46  ;;  %v10696_v14 = vpop.permute.xlu0 %6717  ;;  %v6675_v17 = vld [vmem:[%s11198_s1 + $0xb8] sm:$0xff] }
0x1232   :  { %v5517_v25 = vsel %vm155_vm1, %v5491_v29, 0.0 }
0x1233   :  { %5518 = vadd.xlane.f32.xlu0 %v5517_v25  ;;  %v5362_v1 = vpop.f32.mrf.mxu2  ;;  %v5313_v23 = vmul.f32 %v5297_v45, %v5168_v7  ;;  %v10694_v10 = vpop.permute.xlu1 %6727 }
0x1234   :  { %v5393_v55 = vadd.f32 %v5362_v1, %v10124_v57  ;;  %v10706_v25 = vpop.permute.xlu2 %6712 }
0x1235   :  { %v5325_v44 = vpack.c.bf16 %v5313_v23, %v5312_v34  ;;  %v6682_v34 = vld [vmem:[%s11198_s1 + $0xf0] sm:$0xff] }
0x1236   :  { %v10637_v15 = vadd.f32 %v10555_v11, %v5393_v55  ;;  %v6674_v55 = vld [vmem:[%s11198_s1 + $0xb0] sm:$0xff] }
0x1237   :  { %5381 = vmatmul.bf16.gmra.mxu2 %v5325_v44 }
0x1238   :  { %v5440_v57 = vsel %vm155_vm1, %v10637_v15, 0.0  ;;  %v5492_v43 = vmul.f32 %v10637_v15, %v10637_v15 }
0x1239   :  { %6209 = vmatpush.bf16.xpose.msra.mxu0 %v6684_v20  ;;  %v10710_v1 = vpop.permute.xlu0 %6737 }
0x123a   :  { %v5520_v48 = vsel %vm155_vm1, %v5492_v43, 0.0 }
0x123b   :  { %5441 = vadd.xlane.f32.xlu0 %v5440_v57  ;;  %v5364_v22 = vpop.f32.mrf.mxu2  ;;  %v10708_v45 = vpop.permute.xlu1 %6732  ;;  %v6673_v57 = vld [vmem:[%s11198_s1 + $0xa8] sm:$0xff] }
0x123c   :  { %v5394_v7 = vadd.f32 %v5364_v22, %v10133_v56  ;;  %v10718_v23 = vpop.permute.xlu2 %6722  ;;  %v6681_v22 = vld [vmem:[%s11198_s1 + $0xe8] sm:$0xff] }
0x123e   :  { %v10643_v39 = vadd.f32 %v10555_v11, %v5394_v7 }
0x1240   :  { %v5493_v47 = vmul.f32 %v10643_v39, %v10643_v39  ;;  %v5443_v3 = vsel %vm155_vm1, %v10643_v39, 0.0 }
0x1241   :  { %6210 = vmatpush.bf16.xpose.msra.mxu0 %v6683_v52 }
0x1242   :  { %v5523_v12 = vsel %vm155_vm1, %v5493_v47, 0.0 }
0x1243   :  { %6742 = vrot.lane.b32.xlu2 %v6741_v35, %s7277_s28  ;;  %5521 = vadd.xlane.f32.xlu0 %v5520_v48  ;;  %v5367_v56 = vpop.f32.mrf.mxu2 }
0x1244   :  { %5524 = vadd.xlane.f32.xlu1 %v5523_v12  ;;  %v5395_v37 = vadd.f32 %v5367_v56, %v10142_v50  ;;  %v6678_v50 = vld [vmem:[%s11198_s1 + $0xd0] sm:$0xff] }
0x1245   :  { %6158 = vmatpush.bf16.xpose.msra.mxu3 %v6678_v50 }
0x1246   :  { %v10656_v28 = vadd.f32 %v10555_v11, %v5395_v37  ;;  %v6672_v37 = vld [vmem:[%s11198_s1 + $0xa0] sm:$0xff] }
0x1248   :  { %v5494_v9 = vmul.f32 %v10656_v28, %v10656_v28  ;;  %v5446_v29 = vsel %vm155_vm1, %v10656_v28, 0.0 }
0x1249   :  { %6211 = vmatpush.bf16.xpose.msra.mxu0 %v6682_v34 }
0x124a   :  { %v5526_v60 = vsel %vm155_vm1, %v5494_v9, 0.0  ;;  %v6680_v9 = vld [vmem:[%s11198_s1 + $0xe0] sm:$0xff] }
0x124b   :  { %5444 = vadd.xlane.f32.xlu0 %v5443_v3  ;;  %v5369_v4 = vpop.f32.mrf.mxu2 }
0x124c   :  { %5527 = vadd.xlane.f32.xlu1 %v5526_v60  ;;  %v5396_v59 = vadd.f32 %v5369_v4, %v10151_v24 }
0x124d   :  { %6159 = vmatpush.bf16.xpose.msra.mxu3 %v6677_v62 }
0x124e   :  { %v10671_v27 = vadd.f32 %v10555_v11, %v5396_v59 }
0x1250   :  { %v5495_v8 = vmul.f32 %v10671_v27, %v10671_v27  ;;  %v5449_v24 = vsel %vm155_vm1, %v10671_v27, 0.0 }
0x1251   :  { %6212 = vmatpush.bf16.xpose.msra.mxu0 %v6681_v22 }
0x1252   :  { %v5529_v19 = vsel %vm155_vm1, %v5495_v8, 0.0 }
0x1253   :  { %5450 = vadd.xlane.f32.xlu0 %v5449_v24 }
0x1254   :  { %5530 = vadd.xlane.f32.xlu1 %v5529_v19 }
0x1255   :  { %6160 = vmatpush.bf16.xpose.msra.mxu3 %v6676_v6 }
0x1259   :  { %6213 = vmatpush.bf16.xpose.msra.mxu0 %v6680_v9 }
0x125d   :  { %6161 = vmatpush.bf16.xpose.msra.mxu3 %v6675_v17 }
0x1265   :  { %6162 = vmatpush.bf16.xpose.msra.mxu3 %v6674_v55  ;;  %v10749_v55 = vld [vmem:[%s11200_s2 + $0xb2] ss:$0 sm:$0xff] }
0x126c   :  { %5447 = vadd.xlane.f32.xlu2 %v5446_v29 }
0x126d   :  { %6163 = vmatpush.bf16.xpose.msra.mxu3 %v6673_v57 }
0x1275   :  { %6164 = vmatpush.bf16.xpose.msra.mxu3 %v6672_v37 }
0x127c   :  { %v5424_v13 = vpop.xlane.xlu1 %5423 }
0x127d   :  { %v5470_v21 = vmul.f32 %v5424_v13, %v7588_v42 }
0x127e   :  { %v5504_v44 = vpop.xlane.xlu0 %5503 }
0x127f   :  { %v5566_v7 = vmul.f32 %v5470_v21, %v5470_v21  ;;  %v5550_v43 = vmul.f32 %v5504_v44, %v7588_v42 }
0x1281   :  { %v5582_v47 = vsub.f32 %v5550_v43, %v5566_v7 }
0x1283   :  { %v5598_v35 = vadd.f32 1e-06, %v5582_v47 }
0x1284   :  { %v5427_v48 = vpop.xlane.xlu2 %5426 }
0x1285   :  { %7231 = vrsqrt.f32 %v5598_v35  ;;  %v10729_v12 = vmul.f32 %v5427_v48, %v7588_v42  ;;  %vm5620_vm7 = vweird.f32 %v5598_v35 }
0x1286   :  { %v5507_v56 = vpop.xlane.xlu1 %5506 }
0x1287   :  { %v5567_v3 = vmul.f32 %v10729_v12, %v10729_v12  ;;  %v5551_v60 = vmul.f32 %v5507_v56, %v7588_v42 }
0x1289   :  { %v5583_v4 = vsub.f32 %v5551_v60, %v5567_v3  ;;  %v10764_v60 = vld [vmem:[%s11200_s2 + $0xb3] ss:$0 sm:$0xff] }
0x128b   :  { %v7232_v59 = vpop.eup %7231  ;;  %v5599_v50 = vadd.f32 1e-06, %v5583_v4 }
0x128c   :  { %v5615_v30 = vmul.f32 %v7232_v59, %v5598_v35  ;;  %v5430_v19 = vpop.xlane.xlu2 %5429  ;;  %vm5621_vm6 = vweird.f32 %v7232_v59 }
0x128d   :  { %7233 = vrsqrt.f32 %v5599_v50  ;;  %v10741_v24 = vmul.f32 %v5430_v19, %v7588_v42  ;;  %vm5622_vm8 = vmor %vm5620_vm7, %vm5621_vm6  ;;  %vm5630_vm11 = vweird.f32 %v5599_v50 }
0x128e   :  { %v5616_v8 = vmul.f32 %v7232_v59, %v5615_v30  ;;  %v5510_v46 = vpop.xlane.xlu1 %5509 }
0x128f   :  { %v5568_v6 = vmul.f32 %v10741_v24, %v10741_v24  ;;  %v5552_v20 = vmul.f32 %v5510_v46, %v7588_v42 }
0x1290   :  { %v5617_v62 = vmul.f32 0.5, %v5616_v8 }
0x1291   :  { %v5584_v52 = vsub.f32 %v5552_v20, %v5568_v6 }
0x1292   :  { %v5618_v29 = vsub.f32 1.5, %v5617_v62 }
0x1293   :  { %v7234_v17 = vpop.eup %7233  ;;  %v10751_v44 = vadd.f32 1e-06, %v5584_v52 }
0x1294   :  { %v5619_v34 = vmul.f32 %v7232_v59, %v5618_v29  ;;  %v5625_v13 = vmul.f32 %v7234_v17, %v5599_v50  ;;  %v5433_v7 = vpop.xlane.xlu0 %5432  ;;  %vm5631_vm10 = vweird.f32 %v7234_v17 }
0x1295   :  { %7235 = vrsqrt.f32 %v10751_v44  ;;  %v10756_v47 = vmul.f32 %v5433_v7, %v7588_v42  ;;  %vm5632_vm12 = vmor %vm5630_vm11, %vm5631_vm10  ;;  %vm5640_vm14 = vweird.f32 %v10751_v44 }
0x1296   :  { %v5623_v57 = vsel %vm5622_vm8, %v7232_v59, %v5619_v34  ;;  %v5626_v22 = vmul.f32 %v7234_v17, %v5625_v13  ;;  %v5513_v56 = vpop.xlane.xlu2 %5512 }
0x1297   :  { %v5774_v43 = vmul.f32 %v5623_v57, %v10749_v55  ;;  %v5569_v37 = vmul.f32 %v10756_v47, %v10756_v47  ;;  %v5553_v35 = vmul.f32 %v5513_v56, %v7588_v42 }
0x1298   :  { %v5627_v48 = vmul.f32 0.5, %v5626_v22 }
0x1299   :  { %v5806_v9 = vmul.f32 %v5774_v43, %v5470_v21  ;;  %v5585_v4 = vsub.f32 %v5553_v35, %v5569_v37  ;;  %v5790_v50 = vmul.f32 %v5774_v43, %v10559_v33  ;;  %v6709_v43 = vunpack.i.l.bf16 %v10692_v38 }
0x129a   :  { %v5628_v3 = vsub.f32 1.5, %v5627_v48  ;;  %v5372_v19 = vpop.f32.mrf.mxu2 }
0x129b   :  { %v7236_v30 = vpop.eup %7235  ;;  %v10766_v8 = vadd.f32 1e-06, %v5585_v4  ;;  %v5822_v62 = vsub.f32 %v10764_v60, %v5806_v9  ;;  %v5397_v6 = vadd.f32 %v5372_v19, %v10202_v41 }
0x129c   :  { %v5629_v59 = vmul.f32 %v7234_v17, %v5628_v3  ;;  %v5635_v21 = vmul.f32 %v7236_v30, %v10751_v44  ;;  %v5436_v20 = vpop.xlane.xlu0 %5435  ;;  %v6704_v3 = vunpack.i.l.bf16 %v10684_v26  ;;  %vm5641_vm13 = vweird.f32 %v7236_v30 }
0x129d   :  { %7237 = vrsqrt.f32 %v10766_v8  ;;  %v10774_v52 = vmul.f32 %v5436_v20, %v7588_v42  ;;  %v10778_v13 = vadd.f32 %v10555_v11, %v5397_v6  ;;  %v5838_v48 = vadd.f32 %v5822_v62, %v5790_v50  ;;  %vm5642_vm9 = vmor %vm5640_vm14, %vm5641_vm13 }
0x129e   :  { %v5633_v46 = vsel %vm5632_vm12, %v7234_v17, %v5629_v59  ;;  %v5636_v34 = vmul.f32 %v7236_v30, %v5635_v21  ;;  %v5516_v57 = vpop.xlane.xlu2 %5515  ;;  %v6710_v17 = vunpack.i.h.bf16 %v10692_v38  ;;  %v6705_v62 = vunpack.i.h.bf16 %v10684_v26 }
0x129f   :  { %v5775_v29 = vmul.f32 %v5633_v46, %v10749_v55  ;;  %v5570_v41 = vmul.f32 %v10774_v52, %v10774_v52  ;;  %v5554_v7 = vmul.f32 %v5516_v57, %v7588_v42  ;;  %v5452_v37 = vsel %vm155_vm1, %v10778_v13, 0.0 }
0x12a0   :  { %v5637_v56 = vmul.f32 0.5, %v5636_v34  ;;  %v5496_v33 = vmul.f32 %v10778_v13, %v10778_v13  ;;  %5453 = vadd.xlane.f32.xlu0 %v5452_v37  ;;  %v5982_v50 = vsel %vm155_vm1, %v5838_v48, %v6704_v3  ;;  %vm5650_vm2 = vweird.f32 %v10766_v8 }
0x12a1   :  { %v5807_v22 = vmul.f32 %v5775_v29, %v10729_v12  ;;  %v5791_v35 = vmul.f32 %v5775_v29, %v10574_v0  ;;  %v5586_v12 = vsub.f32 %v5554_v7, %v5570_v41 }
0x12a2   :  { %v5638_v4 = vsub.f32 1.5, %v5637_v56  ;;  %v5532_v59 = vsel %vm155_vm1, %v5496_v33, 0.0  ;;  %v5374_v0 = vpop.f32.mrf.mxu2  ;;  %v5998_v56 = vsel %vm79_vm0, %v5982_v50, %v6709_v43 }
0x12a3   :  { %v5823_v9 = vsub.f32 %v10764_v60, %v5807_v22  ;;  %v7238_v19 = vpop.eup %7237  ;;  %v10796_v21 = vadd.f32 1e-06, %v5586_v12  ;;  %5533 = vadd.xlane.f32.xlu2 %v5532_v59  ;;  %v5398_v20 = vadd.f32 %v5374_v0, %v10234_v63 }
0x12a4   :  { %v5639_v38 = vmul.f32 %v7236_v30, %v5638_v4  ;;  %v5645_v6 = vmul.f32 %v7238_v19, %v10766_v8  ;;  %v5439_v29 = vpop.xlane.xlu1 %5438  ;;  %vm5651_vm15 = vweird.f32 %v7238_v19  ;;  %v6719_v8 = vunpack.i.l.bf16 %v10696_v14 }
0x12a5   :  { %v5839_v46 = vadd.f32 %v5823_v9, %v5791_v35  ;;  %7239 = vrsqrt.f32 %v10796_v21  ;;  %v10803_v26 = vmul.f32 %v5439_v29, %v7588_v42  ;;  %v10807_v22 = vadd.f32 %v10555_v11, %v5398_v20  ;;  %vm5652_vm3 = vmor %vm5650_vm2, %vm5651_vm15 }
0x12a6   :  { %v5643_v34 = vsel %vm5642_vm9, %v7236_v30, %v5639_v38  ;;  %v5646_v57 = vmul.f32 %v7238_v19, %v5645_v6  ;;  %v5519_v41 = vpop.xlane.xlu0 %5518  ;;  %v6714_v38 = vunpack.i.l.bf16 %v10706_v25  ;;  %vm5660_vm5 = vweird.f32 %v10796_v21 }
0x12a7   :  { %v5983_v44 = vsel %vm155_vm1, %v5839_v46, %v6705_v62  ;;  %v5776_v63 = vmul.f32 %v5643_v34, %v10749_v55  ;;  %v5571_v48 = vmul.f32 %v10803_v26, %v10803_v26  ;;  %v5555_v33 = vmul.f32 %v5519_v41, %v7588_v42 }
0x12a8   :  { %v5999_v7 = vsel %vm79_vm0, %v5983_v44, %v6710_v17  ;;  %v5647_v37 = vmul.f32 0.5, %v5646_v57  ;;  %v5455_v30 = vsel %vm155_vm1, %v10807_v22, 0.0 }
0x12a9   :  { %v6046_v35 = vpack.c.bf16 %v5999_v7, %v5998_v56  ;;  %v5808_v9 = vmul.f32 %v5776_v63, %v10741_v24  ;;  %5456 = vadd.xlane.f32.xlu0 %v5455_v30  ;;  %v5587_v17 = vsub.f32 %v5555_v33, %v5571_v48  ;;  %v5792_v43 = vmul.f32 %v5776_v63, %v10588_v31 }
0x12aa   :  { %v5648_v12 = vsub.f32 1.5, %v5647_v37  ;;  %v5377_v4 = vpop.f32.mrf.mxu2  ;;  %v5497_v24 = vmul.f32 %v10807_v22, %v10807_v22 }
0x12ab   :  { %6165 = vmatmul.bf16.vlgmr.msra.gmra.mxu3 %v6046_v35  ;;  %6214 = vmatmul.bf16.vlgmr.msra.gmra.mxu0 %v6046_v35  ;;  %v7240_v3 = vpop.eup %7239  ;;  %v5824_v59 = vsub.f32 %v10764_v60, %v5808_v9  ;;  %v10822_v0 = vadd.f32 1e-06, %v5587_v17  ;;  %v5399_v6 = vadd.f32 %v5377_v4, %v10262_v16  ;;  %v6715_v4 = vunpack.i.h.bf16 %v10706_v25 }
0x12ac   :  { %v5649_v62 = vmul.f32 %v7238_v19, %v5648_v12  ;;  %v5655_v46 = vmul.f32 %v7240_v3, %v10796_v21  ;;  %v5535_v7 = vsel %vm155_vm1, %v5497_v24, 0.0  ;;  %vm5661_vm4 = vweird.f32 %v7240_v3 }
0x12ad   :  { %v5840_v20 = vadd.f32 %v5824_v59, %v5792_v43  ;;  %7241 = vrsqrt.f32 %v10822_v0  ;;  %v10832_v34 = vadd.f32 %v10555_v11, %v5399_v6  ;;  %vm5662_vm6 = vmor %vm5660_vm5, %vm5661_vm4  ;;  %vm5670_vm8 = vweird.f32 %v10822_v0 }
0x12ae   :  { %v5653_v29 = vsel %vm5652_vm3, %v7238_v19, %v5649_v62  ;;  %v5656_v31 = vmul.f32 %v7240_v3, %v5655_v46  ;;  %v5442_v50 = vpop.xlane.xlu0 %5441  ;;  %v6720_v62 = vunpack.i.h.bf16 %v10696_v14 }
0x12af   :  { %v5777_v44 = vmul.f32 %v5653_v29, %v10749_v55  ;;  %v5984_v57 = vsel %vm155_vm1, %v5840_v20, %v6714_v38  ;;  %v5458_v19 = vsel %vm155_vm1, %v10832_v34, 0.0  ;;  %v5498_v48 = vmul.f32 %v10832_v34, %v10832_v34 }
0x12b0   :  { %v5657_v41 = vmul.f32 0.5, %v5656_v31  ;;  %v6000_v16 = vsel %vm79_vm0, %v5984_v57, %v6719_v8  ;;  %v10843_v37 = vmul.f32 %v5442_v50, %v7588_v42  ;;  %5459 = vadd.xlane.f32.xlu1 %v5458_v19 }
0x12b1   :  { %v5809_v63 = vmul.f32 %v5777_v44, %v10756_v47  ;;  %5536 = vadd.xlane.f32.xlu0 %v5535_v7  ;;  %v5538_v33 = vsel %vm155_vm1, %v5498_v48, 0.0  ;;  %v5793_v35 = vmul.f32 %v5777_v44, %v10602_v53 }
0x12b2   :  { %v5658_v56 = vsub.f32 1.5, %v5657_v41  ;;  %v5379_v30 = vpop.f32.mrf.mxu2  ;;  %5539 = vadd.xlane.f32.xlu2 %v5538_v33  ;;  %v5572_v53 = vmul.f32 %v10843_v37, %v10843_v37 }
0x12b3   :  { %v5825_v47 = vsub.f32 %v10764_v60, %v5809_v63  ;;  %v7242_v9 = vpop.eup %7241  ;;  %v5400_v17 = vadd.f32 %v5379_v30, %v10289_v18 }
0x12b4   :  { %v5659_v12 = vmul.f32 %v7240_v3, %v5658_v56  ;;  %v5665_v43 = vmul.f32 %v7242_v9, %v10822_v0  ;;  %vm5671_vm7 = vweird.f32 %v7242_v9 }
0x12b5   :  { %v5841_v59 = vadd.f32 %v5825_v47, %v5793_v35  ;;  %v10856_v24 = vadd.f32 %v10555_v11, %v5400_v17  ;;  %vm5672_vm10 = vmor %vm5670_vm8, %vm5671_vm7  ;;  %v6724_v17 = vunpack.i.l.bf16 %v10718_v23 }
0x12b6   :  { %v5663_v46 = vsel %vm5662_vm6, %v7240_v3, %v5659_v12  ;;  %v5522_v38 = vpop.xlane.xlu0 %5521  ;;  %v5666_v6 = vmul.f32 %v7242_v9, %v5665_v43 }
0x12b7   :  { %v5778_v21 = vmul.f32 %v5663_v46, %v10749_v55  ;;  %v5556_v18 = vmul.f32 %v5522_v38, %v7588_v42  ;;  %v5985_v25 = vsel %vm155_vm1, %v5841_v59, %v6715_v4  ;;  %v5499_v20 = vmul.f32 %v10856_v24, %v10856_v24  ;;  %v5525_v63 = vpop.xlane.xlu1 %5524 }
0x12b8   :  { %v6001_v14 = vsel %vm79_vm0, %v5985_v25, %v6720_v62  ;;  %v5667_v3 = vmul.f32 0.5, %v5666_v6  ;;  %v5557_v30 = vmul.f32 %v5525_v63, %v7588_v42  ;;  %v6729_v38 = vunpack.i.l.bf16 %v10694_v10 }
0x12b9   :  { %v5588_v8 = vsub.f32 %v5556_v18, %v5572_v53  ;;  %v6047_v29 = vpack.c.bf16 %v6001_v14, %v6000_v16  ;;  %v5810_v31 = vmul.f32 %v5778_v21, %v10774_v52  ;;  %v5541_v50 = vsel %vm155_vm1, %v5499_v20, 0.0 }
0x12ba   :  { %v5668_v44 = vsub.f32 1.5, %v5667_v3  ;;  %v10866_v41 = vpop.f32.mrf.mxu2  ;;  %5542 = vadd.xlane.f32.xlu2 %v5541_v50  ;;  %v5794_v33 = vmul.f32 %v5778_v21, %v10612_v54  ;;  %v6725_v53 = vunpack.i.h.bf16 %v10718_v23  ;;  %v11269_v3 = vld [vmem:[#allocation11_spill] sm:$0xff] }
0x12bb   :  { %v5604_v57 = vadd.f32 1e-06, %v5588_v8  ;;  %6170 = vmatmul.bf16.gmra.mxu3 %v6047_v29  ;;  %6219 = vmatmul.bf16.gmra.mxu0 %v6047_v29  ;;  %v5826_v16 = vsub.f32 %v10764_v60, %v5810_v31  ;;  %v11270_v8 = vld [vmem:[#allocation10_spill] sm:$0xff] }
0x12bc   :  { %v5669_v7 = vmul.f32 %v7242_v9, %v5668_v44  ;;  %v11271_v29 = vpack.i.bf16 %v11269_v3, %v11270_v8  ;;  %v11272_v44 = vld [vmem:[#allocation13_spill] sm:$0xff] }
0x12bd   :  { %7243 = vrsqrt.f32 %v5604_v57  ;;  %v5842_v12 = vadd.f32 %v5826_v16, %v5794_v33  ;;  %vm5680_vm12 = vweird.f32 %v5604_v57 }
0x12be   :  { %v5445_v19 = vpop.xlane.xlu0 %5444  ;;  %v5673_v52 = vsel %vm5672_vm10, %v7242_v9, %v5669_v7  ;;  %v6751_v9 = vpack.i.bf16 %v9191_v36, %v9174_v2  ;;  %v11273_v7 = vld [vmem:[#allocation12_spill] sm:$0xff] }
0x12bf   :  { %v5477_v48 = vmul.f32 %v5445_v19, %v7588_v42  ;;  %v5779_v56 = vmul.f32 %v5673_v52, %v10749_v55  ;;  %v5986_v36 = vsel %vm155_vm1, %v5842_v12, %v6724_v17  ;;  %v11274_v63 = vpack.i.bf16 %v11272_v44, %v11273_v7 }
0x12c1   :  { %v5573_v35 = vmul.f32 %v5477_v48, %v5477_v48  ;;  %v5811_v47 = vmul.f32 %v5779_v56, %v10803_v26  ;;  %v5795_v46 = vmul.f32 %v5779_v56, %v10621_v58  ;;  %v6730_v26 = vunpack.i.h.bf16 %v10694_v10 }
0x12c2   :  { %v5384_v43 = vpop.f32.mrf.mxu2  ;;  %v6002_v10 = vsel %vm79_vm0, %v5986_v36, %v6729_v38 }
0x12c3   :  { %v7244_v0 = vpop.eup %7243  ;;  %v5589_v4 = vsub.f32 %v5557_v30, %v5573_v35  ;;  %v5402_v62 = vadd.f32 %v5384_v43, %v10342_v5  ;;  %v5827_v54 = vsub.f32 %v10764_v60, %v5811_v47 }
0x12c4   :  { %v5675_v59 = vmul.f32 %v7244_v0, %v5604_v57  ;;  %vm5681_vm11 = vweird.f32 %v7244_v0  ;;  %v6761_v57 = vpack.i.bf16 %v9215_v49, %v9201_v32 }
0x12c5   :  { %v5605_v21 = vadd.f32 1e-06, %v5589_v4  ;;  %6752 = vrot.lane.b32.xlu0 %v6751_v9, %s7277_s28  ;;  %v10886_v18 = vadd.f32 %v10555_v11, %v5402_v62  ;;  %v5843_v2 = vadd.f32 %v5827_v54, %v5795_v46  ;;  %vm5682_vm13 = vmor %vm5680_vm12, %vm5681_vm11  ;;  %v6740_v54 = vunpack.i.h.bf16 %v10710_v1 }
0x12c6   :  { %v5676_v6 = vmul.f32 %v7244_v0, %v5675_v59  ;;  %v6735_v59 = vunpack.i.h.bf16 %v10708_v45 }
0x12c7   :  { %7245 = vrsqrt.f32 %v5605_v21  ;;  %v5467_v58 = vsel %vm155_vm1, %v10886_v18, 0.0  ;;  %v5987_v23 = vsel %vm155_vm1, %v5843_v2, %v6725_v53  ;;  %vm5690_vm9 = vweird.f32 %v5605_v21 }
0x12c8   :  { %v5677_v5 = vmul.f32 0.5, %v5676_v6  ;;  %5468 = vadd.xlane.f32.xlu2 %v5467_v58  ;;  %v6003_v25 = vsel %vm79_vm0, %v5987_v23, %v6730_v26  ;;  %v6739_v53 = vunpack.i.l.bf16 %v10710_v1  ;;  %v5528_v58 = vpop.xlane.xlu1 %5527  ;;  %v5451_v23 = vpop.xlane.xlu0 %5450  ;;  %v5501_v44 = vmul.f32 %v10886_v18, %v10886_v18 }
0x12c9   :  { %v6048_v14 = vpack.c.bf16 %v6003_v25, %v6002_v10  ;;  %6747 = vrot.lane.b32.xlu1 %v11271_v29, %s7273_s22  ;;  %v5461_v25 = vsel %vm155_vm1, %v10856_v24, 0.0  ;;  %v5558_v8 = vmul.f32 %v5528_v58, %v7588_v42 }
0x12ca   :  { %v5678_v20 = vsub.f32 1.5, %v5677_v5  ;;  %v10932_v5 = vpop.permute.xlu2 %6742 }
0x12cb   :  { %6175 = vmatmul.bf16.gmra.mxu3 %v6048_v14  ;;  %6224 = vmatmul.bf16.gmra.mxu0 %v6048_v14 }
0x12cc   :  { %v5679_v31 = vmul.f32 %v7244_v0, %v5678_v20  ;;  %v10937_v20 = vmul.f32 %v5451_v23, %v7588_v42 }
0x12cd   :  { %v7246_v50 = vpop.eup %7245  ;;  %6757 = vrot.lane.b32.xlu0 %v11274_v63, %s7273_s22 }
0x12ce   :  { %v5683_v19 = vsel %vm5682_vm13, %v7244_v0, %v5679_v31  ;;  %v5685_v16 = vmul.f32 %v7246_v50, %v5605_v21  ;;  %vm5691_vm14 = vweird.f32 %v7246_v50 }
0x12cf   :  { %v5780_v52 = vmul.f32 %v5683_v19, %v10749_v55  ;;  %vm5692_vm15 = vmor %vm5690_vm9, %vm5691_vm14  ;;  %v6771_v19 = vpack.i.bf16 %v9238_v51, %v9226_v40 }
0x12d0   :  { %v5686_v56 = vmul.f32 %v7246_v50, %v5685_v16  ;;  %v5547_v16 = vsel %vm155_vm1, %v5501_v44, 0.0 }
0x12d1   :  { %v5812_v30 = vmul.f32 %v5780_v52, %v10843_v37  ;;  %v5796_v4 = vmul.f32 %v5780_v52, %v10637_v15  ;;  %v6734_v37 = vunpack.i.l.bf16 %v10708_v45  ;;  %v11275_v15 = vld [vmem:[#allocation15_spill] sm:$0xff]  ;;  %v5401_v45 = vadd.f32 %v10866_v41, %v10317_v61 }
0x12d2   :  { %v5687_v33 = vmul.f32 0.5, %v5686_v56  ;;  %v5575_v41 = vmul.f32 %v10937_v20, %v10937_v20 }
0x12d3   :  { %v5828_v12 = vsub.f32 %v10764_v60, %v5812_v30  ;;  %v10927_v2 = vadd.f32 %v10555_v11, %v5401_v45  ;;  %v5531_v11 = vpop.xlane.xlu1 %5530 }
0x12d4   :  { %v5688_v35 = vsub.f32 1.5, %v5687_v33  ;;  %v5559_v3 = vmul.f32 %v5531_v11, %v7588_v42 }
0x12d5   :  { %6762 = vrot.lane.b32.xlu0 %v6761_v57, %s7277_s28  ;;  %v5844_v9 = vadd.f32 %v5828_v12, %v5796_v4  ;;  %v5500_v1 = vmul.f32 %v10927_v2, %v10927_v2  ;;  %v5464_v29 = vsel %vm155_vm1, %v10927_v2, 0.0 }
0x12d6   :  { %v5689_v47 = vmul.f32 %v7246_v50, %v5688_v35  ;;  %v5591_v31 = vsub.f32 %v5559_v3, %v5575_v41 }
0x12d7   :  { %v5988_v46 = vsel %vm155_vm1, %v5844_v9, %v6734_v37  ;;  %v5544_v36 = vsel %vm155_vm1, %v5500_v1, 0.0 }
0x12d8   :  { %v5693_v0 = vsel %vm5692_vm15, %v7246_v50, %v5689_v47  ;;  %v5607_v7 = vadd.f32 1e-06, %v5591_v31 }
0x12d9   :  { %v5781_v17 = vmul.f32 %v5693_v0, %v10749_v55 }
0x12da   :  { %7247 = vrsqrt.f32 %v5607_v7  ;;  %vm5710_vm4 = vweird.f32 %v5607_v7 }
0x12db   :  { %v5813_v43 = vmul.f32 %v5781_v17, %v5477_v48  ;;  %v5797_v32 = vmul.f32 %v5781_v17, %v10643_v39  ;;  %v11276_v48 = vld [vmem:[#allocation14_spill] sm:$0xff]  ;;  %v6004_v39 = vsel %vm79_vm0, %v5988_v46, %v6739_v53 }
0x12dc   :  { %v11277_v38 = vpack.i.bf16 %v11275_v15, %v11276_v48 }
0x12dd   :  { %v5829_v49 = vsub.f32 %v10764_v60, %v5813_v43 }
0x12df   :  { %v5845_v62 = vadd.f32 %v5829_v49, %v5797_v32  ;;  %v5448_v10 = vpop.xlane.xlu2 %5447  ;;  %v6587_v49 = vld [vmem:[%s11200_s2 + $0xb4] ss:$8 sm:$0x3] }
0x12e0   :  { %6767 = vrot.lane.b32.xlu2 %v11277_v38, %s7273_s22  ;;  %v10940_v61 = vmul.f32 %v5448_v10, %v7588_v42  ;;  %v7248_v56 = vpop.eup %7247  ;;  %v10975_v53 = vperm.slane %v6587_v49, 1  ;;  %v10986_v23 = vperm.slane %v6587_v49, 0 }
0x12e1   :  { %v5989_v26 = vsel %vm155_vm1, %v5845_v62, %v6735_v59  ;;  %v5705_v40 = vmul.f32 %v7248_v56, %v5607_v7  ;;  %v11278_v59 = vld [vmem:[#allocation17_spill] sm:$0xff]  ;;  %v11279_v62 = vld [vmem:[#allocation16_spill] sm:$0xff]  ;;  %vm5711_vm2 = vweird.f32 %v7248_v56 }
0x12e2   :  { %v6005_v21 = vsel %vm79_vm0, %v5989_v26, %v6740_v54  ;;  %v5574_v14 = vmul.f32 %v10940_v61, %v10940_v61  ;;  %v11280_v46 = vpack.i.bf16 %v11278_v59, %v11279_v62  ;;  %vm5712_vm5 = vmor %vm5710_vm4, %vm5711_vm2 }
0x12e3   :  { %v6049_v6 = vpack.c.bf16 %v6005_v21, %v6004_v39  ;;  %v5706_v17 = vmul.f32 %v7248_v56, %v5705_v40 }
0x12e4   :  { %v5590_v50 = vsub.f32 %v5558_v8, %v5574_v14 }
0x12e5   :  { %6180 = vmatmul.bf16.gmra.mxu3 %v6049_v6  ;;  %6229 = vmatmul.bf16.gmra.mxu0 %v6049_v6  ;;  %v5707_v9 = vmul.f32 0.5, %v5706_v17 }
0x12e6   :  { %v5606_v63 = vadd.f32 1e-06, %v5590_v50 }
0x12e7   :  { %v5708_v26 = vsub.f32 1.5, %v5707_v9 }
0x12e8   :  { %7249 = vrsqrt.f32 %v5606_v63  ;;  %vm5700_vm6 = vweird.f32 %v5606_v63 }
0x12e9   :  { %v5709_v1 = vmul.f32 %v7248_v56, %v5708_v26 }
0x12ee   :  { %v7250_v30 = vpop.eup %7249 }
0x12ef   :  { %v5695_v51 = vmul.f32 %v7250_v30, %v5606_v63  ;;  %vm5701_vm3 = vweird.f32 %v7250_v30 }
0x12f0   :  { %vm5702_vm7 = vmor %vm5700_vm6, %vm5701_vm3 }
0x12f1   :  { %v5696_v4 = vmul.f32 %v7250_v30, %v5695_v51 }
0x12f3   :  { %5545 = vadd.xlane.f32.xlu1 %v5544_v36  ;;  %v5697_v37 = vmul.f32 0.5, %v5696_v4 }
0x12f5   :  { %v5698_v15 = vsub.f32 1.5, %v5697_v37 }
0x12f7   :  { %v5699_v36 = vmul.f32 %v7250_v30, %v5698_v15 }
0x12f9   :  { %v5703_v11 = vsel %vm5702_vm7, %v7250_v30, %v5699_v36 }
0x12fa   :  { %v5782_v31 = vmul.f32 %v5703_v11, %v10749_v55 }
0x12ff   :  { %5462 = vadd.xlane.f32.xlu0 %v5461_v25  ;;  %v5713_v25 = vsel %vm5712_vm5, %v7248_v56, %v5709_v1 }
0x1307   :  { %5465 = vadd.xlane.f32.xlu0 %v5464_v29  ;;  %v5783_v29 = vmul.f32 %v5713_v25, %v10749_v55 }
0x1309   :  { %v5799_v4 = vmul.f32 %v5783_v29, %v10671_v27  ;;  %v6744_v27 = vunpack.i.l.bf16 %v10932_v5 }
0x130c   :  { %6772 = vrot.lane.b32.xlu1 %v6771_v19, %s7277_s28  ;;  %v5815_v19 = vmul.f32 %v5783_v29, %v10937_v20 }
0x130e   :  { %v5831_v20 = vsub.f32 %v10764_v60, %v5815_v19 }
0x130f   :  { %5548 = vadd.xlane.f32.xlu0 %v5547_v16  ;;  %v5814_v16 = vmul.f32 %v5782_v31, %v10940_v61 }
0x1310   :  { %v5847_v59 = vadd.f32 %v5831_v20, %v5799_v4 }
0x1311   :  { %v5830_v40 = vsub.f32 %v10764_v60, %v5814_v16 }
0x1313   :  { %v5454_v52 = vpop.xlane.xlu0 %5453 }
0x1314   :  { %v10957_v33 = vmul.f32 %v5454_v52, %v7588_v42 }
0x1316   :  { %v5534_v57 = vpop.xlane.xlu2 %5533  ;;  %v5576_v35 = vmul.f32 %v10957_v33, %v10957_v33 }
0x1317   :  { %v5560_v47 = vmul.f32 %v5534_v57, %v7588_v42 }
0x1319   :  { %v5592_v12 = vsub.f32 %v5560_v47, %v5576_v35 }
0x131b   :  { %v10962_v43 = vadd.f32 1e-06, %v5592_v12 }
0x131c   :  { %v5457_v0 = vpop.xlane.xlu0 %5456 }
0x131d   :  { %v10965_v32 = vmul.f32 %v5457_v0, %v7588_v42  ;;  %7251 = vrsqrt.f32 %v10962_v43  ;;  %v5798_v0 = vmul.f32 %v5782_v31, %v10656_v28  ;;  %vm5720_vm13 = vweird.f32 %v10962_v43 }
0x131f   :  { %v5577_v48 = vmul.f32 %v10965_v32, %v10965_v32  ;;  %v5846_v37 = vadd.f32 %v5830_v40, %v5798_v0 }
0x1323   :  { %6777 = vrot.lane.b32.xlu0 %v11280_v46, %s7273_s22  ;;  %v10980_v6 = vpop.eup %7251  ;;  %v11003_v56 = vpop.xlane.xlu1 %5459  ;;  %v6745_v46 = vunpack.i.h.bf16 %v10932_v5 }
0x1324   :  { %v5537_v54 = vpop.xlane.xlu0 %5536  ;;  %v5715_v10 = vmul.f32 %v10980_v6, %v10962_v43  ;;  %vm5721_vm11 = vweird.f32 %v10980_v6  ;;  %v5990_v43 = vsel %vm155_vm1, %v5846_v37, %v6744_v27 }
0x1325   :  { %v5561_v38 = vmul.f32 %v5537_v54, %v7588_v42  ;;  %vm5722_vm14 = vmor %vm5720_vm13, %vm5721_vm11  ;;  %v5540_v20 = vpop.xlane.xlu2 %5539 }
0x1326   :  { %v5716_v3 = vmul.f32 %v10980_v6, %v5715_v10  ;;  %v5562_v4 = vmul.f32 %v5540_v20, %v7588_v42 }
0x1327   :  { %v5593_v39 = vsub.f32 %v5561_v38, %v5577_v48 }
0x1328   :  { %v6215_v21 = vpop.f32.mrf.mxu0  ;;  %v5717_v63 = vmul.f32 0.5, %v5716_v3 }
0x1329   :  { %v6216_v45 = vadd.f32 %v6215_v21, %v10975_v53  ;;  %v5609_v58 = vadd.f32 1e-06, %v5593_v39 }
0x132a   :  { %v5718_v47 = vsub.f32 1.5, %v5717_v63 }
0x132b   :  { %6256 = vst [vmem:[%s11201_s3 + $0x8] sm:$0xff] %v6216_v45  ;;  %7253 = vrsqrt.f32 %v5609_v58  ;;  %vm5730_vm10 = vweird.f32 %v5609_v58  ;;  %v5991_v45 = vsel %vm155_vm1, %v5847_v59, %v6745_v46 }
0x132c   :  { %v5719_v9 = vmul.f32 %v10980_v6, %v5718_v47 }
0x132e   :  { %v6166_v41 = vpop.f32.mrf.mxu3  ;;  %v5723_v48 = vsel %vm5722_vm14, %v10980_v6, %v5719_v9 }
0x132f   :  { %v6167_v14 = vadd.f32 %v6166_v41, %v10986_v23  ;;  %v5784_v10 = vmul.f32 %v5723_v48, %v10749_v55 }
0x1330   :  { %v6217_v8 = vpop.f32.mrf.mxu0 }
0x1331   :  { %6255 = vst [vmem:[%s11201_s3] sm:$0xff] %v6167_v14  ;;  %v6218_v50 = vadd.f32 %v6217_v8, %v10975_v53  ;;  %v7254_v44 = vpop.eup %7253  ;;  %v5816_v25 = vmul.f32 %v5784_v10, %v10957_v33 }
0x1332   :  { %v5725_v7 = vmul.f32 %v7254_v44, %v5609_v58  ;;  %vm5731_vm8 = vweird.f32 %v7254_v44 }
0x1333   :  { %6258 = vst [vmem:[%s11201_s3 + $0x18] sm:$0xff] %v6218_v50  ;;  %vm5732_vm12 = vmor %vm5730_vm10, %vm5731_vm8  ;;  %v5832_v29 = vsub.f32 %v10764_v60, %v5816_v25 }
0x1334   :  { %v5726_v52 = vmul.f32 %v7254_v44, %v5725_v7  ;;  %v5800_v7 = vmul.f32 %v5784_v10, %v10778_v13 }
0x1336   :  { %v6168_v30 = vpop.f32.mrf.mxu3  ;;  %v5727_v57 = vmul.f32 0.5, %v5726_v52  ;;  %v5848_v16 = vadd.f32 %v5832_v29, %v5800_v7 }
0x1337   :  { %v6169_v35 = vadd.f32 %v6168_v30, %v10986_v23  ;;  %v6753_v39 = vpop.permute.xlu0 %6752 }
0x1338   :  { %v5728_v51 = vsub.f32 1.5, %v5727_v57  ;;  %v6220_v12 = vpop.f32.mrf.mxu0  ;;  %v6755_v31 = vunpack.i.h.bf16 %v6753_v39 }
0x1339   :  { %6257 = vst [vmem:[%s11201_s3 + $0x10] sm:$0xff] %v6169_v35  ;;  %v6221_v61 = vadd.f32 %v6220_v12, %v10975_v53  ;;  %v11065_v12 = vmul.f32 %v11003_v56, %v7588_v42 }
0x133a   :  { %v5729_v17 = vmul.f32 %v7254_v44, %v5728_v51 }
0x133b   :  { %6260 = vst [vmem:[%s11201_s3 + $0x28] sm:$0xff] %v6221_v61  ;;  %v6748_v62 = vpop.permute.xlu1 %6747 }
0x133c   :  { %v5733_v49 = vsel %vm5732_vm12, %v7254_v44, %v5729_v17  ;;  %v6750_v54 = vunpack.i.h.bf16 %v6748_v62  ;;  %v6749_v26 = vunpack.i.l.bf16 %v6748_v62  ;;  %v5578_v17 = vmul.f32 %v11065_v12, %v11065_v12 }
0x133d   :  { %v5785_v28 = vmul.f32 %v5733_v49, %v10749_v55 }
0x133e   :  { %v6171_v15 = vpop.f32.mrf.mxu3  ;;  %v6006_v36 = vsel %vm79_vm0, %v5990_v43, %v6749_v26  ;;  %v6007_v5 = vsel %vm79_vm0, %v5991_v45, %v6750_v54  ;;  %v5594_v9 = vsub.f32 %v5562_v4, %v5578_v17 }
0x133f   :  { %v5817_v38 = vmul.f32 %v5785_v28, %v10965_v32  ;;  %v6172_v21 = vadd.f32 %v6171_v15, %v10986_v23  ;;  %v6050_v32 = vpack.c.bf16 %v6007_v5, %v6006_v36  ;;  %v5801_v11 = vmul.f32 %v5785_v28, %v10807_v22  ;;  %v6758_v50 = vpop.permute.xlu0 %6757 }
0x1340   :  { %v6222_v1 = vpop.f32.mrf.mxu0  ;;  %v6754_v22 = vunpack.i.l.bf16 %v6753_v39  ;;  %v6760_v63 = vunpack.i.h.bf16 %v6758_v50  ;;  %v6759_v19 = vunpack.i.l.bf16 %v6758_v50  ;;  %v5610_v37 = vadd.f32 1e-06, %v5594_v9  ;;  %v5543_v39 = vpop.xlane.xlu2 %5542 }
0x1341   :  { %v6223_v58 = vadd.f32 %v6222_v1, %v10975_v53  ;;  %6259 = vst [vmem:[%s11201_s3 + $0x20] sm:$0xff] %v6172_v21  ;;  %v5833_v6 = vsub.f32 %v10764_v60, %v5817_v38  ;;  %6185 = vmatmul.bf16.gmra.mxu3 %v6050_v32  ;;  %6234 = vmatmul.bf16.gmra.mxu0 %v6050_v32 }
0x1342   :  { %v5992_v57 = vsel %vm155_vm1, %v5848_v16, %v6754_v22  ;;  %7255 = vrsqrt.f32 %v5610_v37  ;;  %v5563_v45 = vmul.f32 %v5543_v39, %v7588_v42  ;;  %vm5740_vm15 = vweird.f32 %v5610_v37 }
0x1343   :  { %6262 = vst [vmem:[%s11201_s3 + $0x38] sm:$0xff] %v6223_v58  ;;  %v5849_v3 = vadd.f32 %v5833_v6, %v5801_v11  ;;  %v6008_v47 = vsel %vm79_vm0, %v5992_v57, %v6759_v19 }
0x1345   :  { %v5993_v33 = vsel %vm155_vm1, %v5849_v3, %v6755_v31 }
0x1346   :  { %v6173_v41 = vpop.f32.mrf.mxu3  ;;  %v6009_v30 = vsel %vm79_vm0, %v5993_v33, %v6760_v63 }
0x1347   :  { %v6174_v14 = vadd.f32 %v6173_v41, %v10986_v23  ;;  %v6051_v40 = vpack.c.bf16 %v6009_v30, %v6008_v47  ;;  %v11079_v62 = vpop.permute.xlu0 %6762 }
0x1348   :  { %v6225_v8 = vpop.f32.mrf.mxu0  ;;  %v7256_v27 = vpop.eup %7255  ;;  %v6764_v9 = vunpack.i.l.bf16 %v11079_v62 }
0x1349   :  { %6261 = vst [vmem:[%s11201_s3 + $0x30] sm:$0xff] %v6174_v14  ;;  %v6226_v44 = vadd.f32 %v6225_v8, %v10975_v53  ;;  %v5735_v26 = vmul.f32 %v7256_v27, %v5610_v37  ;;  %v5469_v11 = vpop.xlane.xlu2 %5468  ;;  %vm5741_vm9 = vweird.f32 %v7256_v27 }
0x134a   :  { %v11101_v8 = vmul.f32 %v5469_v11, %v7588_v42  ;;  %vm5742_vm2 = vmor %vm5740_vm15, %vm5741_vm9 }
0x134b   :  { %6264 = vst [vmem:[%s11201_s3 + $0x48] sm:$0xff] %v6226_v44  ;;  %v5736_v38 = vmul.f32 %v7256_v27, %v5735_v26 }
0x134c   :  { %v5581_v22 = vmul.f32 %v11101_v8, %v11101_v8 }
0x134d   :  { %v5737_v36 = vmul.f32 0.5, %v5736_v38 }
0x134e   :  { %v6176_v52 = vpop.f32.mrf.mxu3 }
0x134f   :  { %v6177_v35 = vadd.f32 %v6176_v52, %v10986_v23  ;;  %v5738_v10 = vsub.f32 1.5, %v5737_v36 }
0x1350   :  { %v6227_v13 = vpop.f32.mrf.mxu0 }
0x1351   :  { %6263 = vst [vmem:[%s11201_s3 + $0x40] sm:$0xff] %v6177_v35  ;;  %v6228_v51 = vadd.f32 %v6227_v13, %v10975_v53  ;;  %6190 = vmatmul.bf16.gmra.mxu3 %v6051_v40  ;;  %6239 = vmatmul.bf16.gmra.mxu0 %v6051_v40  ;;  %v5739_v3 = vmul.f32 %v7256_v27, %v5738_v10 }
0x1353   :  { %6266 = vst [vmem:[%s11201_s3 + $0x58] sm:$0xff] %v6228_v51  ;;  %v5743_v44 = vsel %vm5742_vm2, %v7256_v27, %v5739_v3 }
0x1354   :  { %v5786_v16 = vmul.f32 %v5743_v44, %v10749_v55 }
0x1356   :  { %v6178_v61 = vpop.f32.mrf.mxu3  ;;  %v5818_v13 = vmul.f32 %v5786_v16, %v11065_v12  ;;  %v5802_v37 = vmul.f32 %v5786_v16, %v10832_v34 }
0x1357   :  { %v6179_v0 = vadd.f32 %v6178_v61, %v10986_v23 }
0x1359   :  { %6265 = vst [vmem:[%s11201_s3 + $0x50] sm:$0xff] %v6179_v0 }
0x1362   :  { %v6230_v49 = vpop.f32.mrf.mxu0 }
0x1363   :  { %v6231_v59 = vadd.f32 %v6230_v49, %v10975_v53  ;;  %v6768_v49 = vpop.permute.xlu2 %6767 }
0x1364   :  { %v6769_v26 = vunpack.i.l.bf16 %v6768_v49 }
0x1365   :  { %6268 = vst [vmem:[%s11201_s3 + $0x68] sm:$0xff] %v6231_v59 }
0x1366   :  { %v5546_v32 = vpop.xlane.xlu1 %5545 }
0x1367   :  { %v5564_v41 = vmul.f32 %v5546_v32, %v7588_v42 }
0x1368   :  { %v6181_v56 = vpop.f32.mrf.mxu3 }
0x1369   :  { %v6182_v28 = vadd.f32 %v6181_v56, %v10986_v23 }
0x136a   :  { %v6232_v46 = vpop.f32.mrf.mxu0 }
0x136b   :  { %6267 = vst [vmem:[%s11201_s3 + $0x60] sm:$0xff] %v6182_v28  ;;  %v6233_v54 = vadd.f32 %v6232_v46, %v10975_v53  ;;  %v6770_v46 = vunpack.i.h.bf16 %v6768_v49 }
0x136d   :  { %6270 = vst [vmem:[%s11201_s3 + $0x78] sm:$0xff] %v6233_v54 }
0x1370   :  { %v6183_v15 = vpop.f32.mrf.mxu3 }
0x1371   :  { %v6184_v48 = vadd.f32 %v6183_v15, %v10986_v23 }
0x1372   :  { %v5463_v21 = vpop.xlane.xlu0 %5462 }
0x1373   :  { %v5483_v43 = vmul.f32 %v5463_v21, %v7588_v42  ;;  %6269 = vst [vmem:[%s11201_s3 + $0x70] sm:$0xff] %v6184_v48  ;;  %v6765_v48 = vunpack.i.h.bf16 %v11079_v62 }
0x1375   :  { %v5579_v1 = vmul.f32 %v5483_v43, %v5483_v43 }
0x1377   :  { %v5595_v5 = vsub.f32 %v5563_v45, %v5579_v1 }
0x1379   :  { %v5611_v58 = vadd.f32 1e-06, %v5595_v5 }
0x137a   :  { %v5466_v6 = vpop.xlane.xlu0 %5465 }
0x137b   :  { %7257 = vrsqrt.f32 %v5611_v58  ;;  %v11095_v25 = vmul.f32 %v5466_v6, %v7588_v42  ;;  %vm5750_vm4 = vweird.f32 %v5611_v58 }
0x137d   :  { %v5580_v14 = vmul.f32 %v11095_v25, %v11095_v25 }
0x137e   :  { %v6773_v3 = vpop.permute.xlu1 %6772 }
0x137f   :  { %v5596_v29 = vsub.f32 %v5564_v41, %v5580_v14 }
0x1381   :  { %v7258_v31 = vpop.eup %7257  ;;  %v5612_v50 = vadd.f32 1e-06, %v5596_v29 }
0x1382   :  { %v5745_v7 = vmul.f32 %v7258_v31, %v5611_v58  ;;  %v5549_v33 = vpop.xlane.xlu0 %5548  ;;  %vm5751_vm3 = vweird.f32 %v7258_v31 }
0x1383   :  { %7259 = vrsqrt.f32 %v5612_v50  ;;  %v5565_v63 = vmul.f32 %v5549_v33, %v7588_v42  ;;  %vm5752_vm5 = vmor %vm5750_vm4, %vm5751_vm3  ;;  %v5834_v42 = vsub.f32 %v10764_v60, %v5818_v13  ;;  %vm5760_vm7 = vweird.f32 %v5612_v50 }
0x1384   :  { %v5746_v19 = vmul.f32 %v7258_v31, %v5745_v7  ;;  %v6775_v33 = vunpack.i.h.bf16 %v6773_v3 }
0x1385   :  { %v5597_v52 = vsub.f32 %v5565_v63, %v5581_v22  ;;  %v5850_v28 = vadd.f32 %v5834_v42, %v5802_v37  ;;  %v6774_v22 = vunpack.i.l.bf16 %v6773_v3 }
0x1386   :  { %v5747_v30 = vmul.f32 0.5, %v5746_v19 }
0x1387   :  { %v5613_v57 = vadd.f32 1e-06, %v5597_v52  ;;  %v5994_v38 = vsel %vm155_vm1, %v5850_v28, %v6764_v9 }
0x1388   :  { %v5748_v35 = vsub.f32 1.5, %v5747_v30  ;;  %v6010_v36 = vsel %vm79_vm0, %v5994_v38, %v6769_v26 }
0x1389   :  { %v7260_v47 = vpop.eup %7259  ;;  %7261 = vrsqrt.f32 %v5613_v57  ;;  %vm5770_vm11 = vweird.f32 %v5613_v57 }
0x138a   :  { %v5749_v40 = vmul.f32 %v7258_v31, %v5748_v35  ;;  %v5755_v51 = vmul.f32 %v7260_v47, %v5612_v50  ;;  %vm5761_vm6 = vweird.f32 %v7260_v47 }
0x138b   :  { %vm5762_vm8 = vmor %vm5760_vm7, %vm5761_vm6 }
0x138c   :  { %v5753_v20 = vsel %vm5752_vm5, %v7258_v31, %v5749_v40  ;;  %v5756_v61 = vmul.f32 %v7260_v47, %v5755_v51 }
0x138d   :  { %v5787_v0 = vmul.f32 %v5753_v20, %v10749_v55 }
0x138e   :  { %v5757_v17 = vmul.f32 0.5, %v5756_v61 }
0x138f   :  { %v7262_v4 = vpop.eup %7261  ;;  %v5819_v59 = vmul.f32 %v5787_v0, %v5483_v43  ;;  %v5803_v27 = vmul.f32 %v5787_v0, %v10856_v24  ;;  %v7269_v43 = vld [vmem:[%s11200_s2 + $0xb2] ss:$0 sm:$0xff] }
0x1390   :  { %v5758_v12 = vsub.f32 1.5, %v5757_v17  ;;  %v5765_v56 = vmul.f32 %v7262_v4, %v5613_v57  ;;  %vm5771_vm10 = vweird.f32 %v7262_v4 }
0x1391   :  { %v5835_v54 = vsub.f32 %v10764_v60, %v5819_v59  ;;  %vm5772_vm12 = vmor %vm5770_vm11, %vm5771_vm10 }
0x1392   :  { %v5759_v15 = vmul.f32 %v7260_v47, %v5758_v12  ;;  %v5766_v55 = vmul.f32 %v7262_v4, %v5765_v56 }
0x1393   :  { %v5851_v34 = vadd.f32 %v5835_v54, %v5803_v27 }
0x1394   :  { %v5763_v39 = vsel %vm5762_vm8, %v7260_v47, %v5759_v15  ;;  %v5767_v21 = vmul.f32 0.5, %v5766_v55 }
0x1395   :  { %v5788_v45 = vmul.f32 %v7269_v43, %v5763_v39  ;;  %v5995_v24 = vsel %vm155_vm1, %v5851_v34, %v6765_v48  ;;  %v6778_v31 = vpop.permute.xlu0 %6777 }
0x1396   :  { %v5768_v1 = vsub.f32 1.5, %v5767_v21  ;;  %v6011_v5 = vsel %vm79_vm0, %v5995_v24, %v6770_v46  ;;  %v6780_v7 = vunpack.i.h.bf16 %v6778_v31 }
0x1397   :  { %v5820_v62 = vmul.f32 %v5788_v45, %v11095_v25  ;;  %v6052_v58 = vpack.c.bf16 %v6011_v5, %v6010_v36  ;;  %v5804_v41 = vmul.f32 %v5788_v45, %v10927_v2  ;;  %v7270_v25 = vld [vmem:[%s11200_s2 + $0xb3] ss:$0 sm:$0xff] }
0x1398   :  { %v5769_v10 = vmul.f32 %v7262_v4, %v5768_v1 }
0x1399   :  { %6195 = vmatmul.bf16.gmra.mxu3 %v6052_v58  ;;  %6244 = vmatmul.bf16.gmra.mxu0 %v6052_v58  ;;  %v5836_v6 = vsub.f32 %v10764_v60, %v5820_v62  ;;  %v6779_v60 = vunpack.i.l.bf16 %v6778_v31 }
0x139a   :  { %v5773_v32 = vsel %vm5772_vm12, %v7262_v4, %v5769_v10 }
0x139b   :  { %v5789_v11 = vmul.f32 %v7269_v43, %v5773_v32  ;;  %v5852_v29 = vadd.f32 %v5836_v6, %v5804_v41 }
0x139d   :  { %v5821_v14 = vmul.f32 %v5789_v11, %v11101_v8  ;;  %v5805_v50 = vmul.f32 %v5789_v11, %v10886_v18  ;;  %v5996_v19 = vsel %vm155_vm1, %v5852_v29, %v6774_v22 }
0x139e   :  { %v6012_v16 = vsel %vm79_vm0, %v5996_v19, %v6779_v60 }
0x139f   :  { %v5837_v44 = vsub.f32 %v7270_v25, %v5821_v14 }
0x13a1   :  { %v5853_v63 = vadd.f32 %v5837_v44, %v5805_v50 }
0x13a3   :  { %v5997_v2 = vsel %vm155_vm1, %v5853_v63, %v6775_v33 }
0x13a4   :  { %v6013_v8 = vsel %vm79_vm0, %v5997_v2, %v6780_v7 }
0x13a5   :  { %v6053_v52 = vpack.c.bf16 %v6013_v8, %v6012_v16 }
0x13a9   :  { %6200 = vmatmul.bf16.gmra.mxu3 %v6053_v52  ;;  %6249 = vmatmul.bf16.gmra.mxu0 %v6053_v52 }
0x13be   :  { %v6235_v18 = vpop.f32.mrf.mxu0 }
0x13bf   :  { %v6236_v30 = vadd.f32 %v6235_v18, %v10975_v53 }
0x13c1   :  { %6272 = vst [vmem:[%s11201_s3 + $0x88] sm:$0xff] %v6236_v30 }
0x13c4   :  { %v6186_v57 = vpop.f32.mrf.mxu3 }
0x13c5   :  { %v6187_v35 = vadd.f32 %v6186_v57, %v10986_v23 }
0x13c6   :  { %v6237_v47 = vpop.f32.mrf.mxu0 }
0x13c7   :  { %6271 = vst [vmem:[%s11201_s3 + $0x80] sm:$0xff] %v6187_v35  ;;  %v6238_v13 = vadd.f32 %v6237_v47, %v10975_v53 }
0x13c9   :  { %6274 = vst [vmem:[%s11201_s3 + $0x98] sm:$0xff] %v6238_v13 }
0x13cc   :  { %v6188_v40 = vpop.f32.mrf.mxu3 }
0x13cd   :  { %v6189_v51 = vadd.f32 %v6188_v40, %v10986_v23 }
0x13ce   :  { %v6240_v20 = vpop.f32.mrf.mxu0 }
0x13cf   :  { %6273 = vst [vmem:[%s11201_s3 + $0x90] sm:$0xff] %v6189_v51  ;;  %v6241_v61 = vadd.f32 %v6240_v20, %v10975_v53 }
0x13d1   :  { %6276 = vst [vmem:[%s11201_s3 + $0xa8] sm:$0xff] %v6241_v61 }
0x13d4   :  { %v6191_v42 = vpop.f32.mrf.mxu3 }
0x13d5   :  { %v6192_v0 = vadd.f32 %v6191_v42, %v10986_v23 }
0x13d6   :  { %v6242_v17 = vpop.f32.mrf.mxu0 }
0x13d7   :  { %6275 = vst [vmem:[%s11201_s3 + $0xa0] sm:$0xff] %v6192_v0  ;;  %v6243_v4 = vadd.f32 %v6242_v17, %v10975_v53 }
0x13d9   :  { %6278 = vst [vmem:[%s11201_s3 + $0xb8] sm:$0xff] %v6243_v4 }
0x13dc   :  { %v6193_v9 = vpop.f32.mrf.mxu3 }
0x13dd   :  { %v6194_v37 = vadd.f32 %v6193_v9, %v10986_v23 }
0x13df   :  { %6277 = vst [vmem:[%s11201_s3 + $0xb0] sm:$0xff] %v6194_v37 }
0x1416   :  { %v6245_v49 = vpop.f32.mrf.mxu0 }
0x1417   :  { %v6246_v59 = vadd.f32 %v6245_v49, %v10975_v53 }
0x1419   :  { %6280 = vst [vmem:[%s11201_s3 + $0xc8] sm:$0xff] %v6246_v59 }
0x141c   :  { %v6196_v12 = vpop.f32.mrf.mxu3 }
0x141d   :  { %v6197_v56 = vadd.f32 %v6196_v12, %v10986_v23 }
0x141e   :  { %v6247_v28 = vpop.f32.mrf.mxu0 }
0x141f   :  { %6279 = vst [vmem:[%s11201_s3 + $0xc0] sm:$0xff] %v6197_v56  ;;  %v6248_v46 = vadd.f32 %v6247_v28, %v10975_v53 }
0x1421   :  { %6282 = vst [vmem:[%s11201_s3 + $0xd8] sm:$0xff] %v6248_v46 }
0x1424   :  { %v6198_v27 = vpop.f32.mrf.mxu3 }
0x1425   :  { %v6199_v54 = vadd.f32 %v6198_v27, %v10986_v23 }
0x1426   :  { %v6250_v26 = vpop.f32.mrf.mxu0 }
0x1427   :  { %6281 = vst [vmem:[%s11201_s3 + $0xd0] sm:$0xff] %v6199_v54  ;;  %v6251_v15 = vadd.f32 %v6250_v26, %v10975_v53 }
0x1429   :  { %6284 = vst [vmem:[%s11201_s3 + $0xe8] sm:$0xff] %v6251_v15 }
0x142c   :  { %v6201_v55 = vpop.f32.mrf.mxu3 }
0x142d   :  { %v6202_v48 = vadd.f32 %v6201_v55, %v10986_v23 }
0x142e   :  { %v6252_v38 = vpop.f32.mrf.mxu0 }
0x142f   :  { %6283 = vst [vmem:[%s11201_s3 + $0xe0] sm:$0xff] %v6202_v48  ;;  %v6253_v34 = vadd.f32 %v6252_v38, %v10975_v53 }
0x1431   :  { %6286 = vst [vmem:[%s11201_s3 + $0xf8] sm:$0xff] %v6253_v34 }
0x1434   :  { %v6203_v39 = vpop.f32.mrf.mxu3 }
0x1435   :  { %v6204_v21 = vadd.f32 %v6203_v39, %v10986_v23 }
0x1437   :  { %6285 = vst [vmem:[%s11201_s3 + $0xf0] sm:$0xff] %v6204_v21 }

</bundles_post_ra>
